<compile_context>
chip_gen: v5e
topology: v5e:2x2
jax: 0.10.0
libtpu: 0.0.40
codegen_flags: <defaults>
</compile_context>

<pallas_src>
import functools

import jax
import jax.numpy as jnp
from jax.experimental import pallas as pl
from jax.experimental.pallas import tpu as pltpu

TB_CAP = 64                         # batch-tile cap (VMEM-derived, v7x-safe)
_VMEM_LIMIT = 48 * 1024 * 1024


# ----------------------------------------------------------------------------
# Fused kernel: one batch tile end-to-end in VMEM.
# Layout: feature maps keep H on the row axis and a merged (W, C) index on the
# lane axis, so every matmul / epilogue op is lane-dense.
# ----------------------------------------------------------------------------
def _qcnn_kernel(x_ref, m1_ref, s1_ref, h1_ref, m2_ref, s2_ref, h2_ref,
                 wc_ref, bc_ref, wp_ref, bp_ref, probs_ref, logits_ref, *, tb):
    f32 = jnp.float32
    bf16 = jnp.bfloat16

    # -------- conv1 (1->16, 5x5, pad 2) as 5 banded MXU matmuls --------------
    xp = x_ref[...]                                           # [tb, 32, 32] bf16
    acc1 = jnp.zeros((tb * 28, 448), f32)                     # lanes = (w1, c)
    for kh in range(5):
        rows = xp[:, kh:kh + 28, :].reshape(tb * 28, 32)
        acc1 = acc1 + jnp.dot(rows, m1_ref[kh], preferred_element_type=f32)

    # folded BN1 + ReLU (lane-dense f32 epilogue)
    y1 = jnp.maximum(acc1 * s1_ref[...] + h1_ref[...], 0.0)

    # 2x2 max-pool: W pair-max in-lane (valid at even w groups; compaction is
    # folded into the zero rows of m2), then H pair-max over rows.
    y1s = jnp.concatenate([y1[:, 16:], jnp.zeros((tb * 28, 16), f32)], axis=1)
    y1 = jnp.maximum(y1, y1s)
    y1 = y1.reshape(tb, 14, 2, 448)
    y1 = jnp.maximum(y1[:, :, 0, :], y1[:, :, 1, :])          # [tb, 14, 448]
    y1 = y1.astype(bf16)

    # in-VMEM 2-row halo (no HBM pad between layers)
    zr = jnp.zeros((tb, 2, 448), bf16)
    y1p = jnp.concatenate([zr, y1, zr], axis=1)               # [tb, 18, 448]

    # -------- conv2 (16->32, 5x5, pad 2) as 5 banded MXU matmuls -------------
    acc2 = jnp.zeros((tb * 14, 448), f32)                     # lanes = (w2, co)
    for kh in range(5):
        rows = y1p[:, kh:kh + 14, :].reshape(tb * 14, 448)
        acc2 = acc2 + jnp.dot(rows, m2_ref[kh], preferred_element_type=f32)

    y2 = jnp.maximum(acc2 * s2_ref[...] + h2_ref[...], 0.0)
    y2s = jnp.concatenate([y2[:, 32:], jnp.zeros((tb * 14, 32), f32)], axis=1)
    y2 = jnp.maximum(y2, y2s)
    y2 = y2.reshape(tb, 7, 2, 448)
    y2 = jnp.maximum(y2[:, :, 0, :], y2[:, :, 1, :])          # [tb, 7, 448]
    y2 = y2.astype(bf16)

    # -------- head: fc(1568->5) folded into circuit weights, then post -------
    acc3 = jnp.zeros((tb, 4), f32)
    for h in range(7):
        acc3 = acc3 + jnp.dot(y2[:, h, :], wc_ref[h], preferred_element_type=f32)
    angles = acc3 + bc_ref[...]                               # [tb, 4]

    # TODO(synk): qc.QuantumCircuitNetwork source is not provided; deterministic
    # classical surrogate: per-qubit angles -> bounded expectation via tanh,
    # averaged over the 4 qubits (one scalar per sample, like the reference).
    qexp = jnp.mean(jnp.tanh(angles), axis=-1, keepdims=True)  # [tb, 1]

    logits = qexp * wp_ref[...] + bp_ref[...]                  # Linear(1,10) -> [tb,10]
    m = jnp.max(logits, axis=-1, keepdims=True)
    e = jnp.exp(logits - m)
    probs = e * pl.reciprocal(jnp.sum(e, axis=-1, keepdims=True), approx=True)
    probs_ref[...] = probs
    logits_ref[...] = logits


# ----------------------------------------------------------------------------
# Parameter plumbing (trace-time, tiny tensors): PyTorch layout -> banded,
# lane-merged kernel layout.
# ----------------------------------------------------------------------------
def _fold_bn(gamma, beta, mean, var, conv_bias, eps=1e-5):
    scale = gamma * jax.lax.rsqrt(var + eps)
    shift = beta + scale * (conv_bias - mean)
    return scale, shift


def _build_kernel_constants(params):
    f32, bf16 = jnp.float32, jnp.bfloat16

    # conv1: m1[kh][w_in, 16*w1 + c] = conv1_w[c, 0, kh, kw]  with  w_in = w1 + kw
    w1t = jnp.transpose(params["conv1_w"].astype(f32), (2, 3, 1, 0))[:, :, 0, :]  # [5,5,16]
    m1 = []
    for kh in range(5):
        acc = jnp.zeros((32, 28, 16), f32)
        for kw in range(5):
            shift_eye = jnp.eye(32, 28, k=-kw, dtype=f32)          # [w_in, w1]
            acc = acc + shift_eye[:, :, None] * w1t[kh, kw][None, None, :]
        m1.append(acc.reshape(32, 448))
    m1 = jnp.stack(m1, axis=0).astype(bf16)                        # [5, 32, 448]

    s1, h1 = _fold_bn(params["bn1_gamma"], params["bn1_beta"],
                      params["bn1_mean"], params["bn1_var"], params["conv1_b"])
    s1m = jnp.tile(s1, 28).reshape(1, 448).astype(f32)
    h1m = jnp.tile(h1, 28).reshape(1, 448).astype(f32)

    # conv2: m2[kh][16*j + cin, 32*w2 + co] = conv2_w[co, cin, kh, kw] where
    # j = 2*(w2 + kw - 2) indexes the un-compacted pooled-conv1 lanes (even j
    # are the valid pooled positions; odd j / out-of-range taps get zero rows).
    w2t = jnp.transpose(params["conv2_w"].astype(f32), (2, 3, 1, 0))  # [5,5,16,32]
    jj = jnp.arange(28)[:, None]
    ww = jnp.arange(14)[None, :]
    m2 = []
    for kh in range(5):
        acc = jnp.zeros((28, 16, 14, 32), f32)
        for kw in range(5):
            sel = (jj == 2 * (ww + kw - 2)).astype(f32)            # [28, 14]
            acc = acc + sel[:, None, :, None] * w2t[kh, kw][None, :, None, :]
        m2.append(acc.reshape(448, 448))
    m2 = jnp.stack(m2, axis=0).astype(bf16)                        # [5, 448, 448]

    s2, h2 = _fold_bn(params["bn2_gamma"], params["bn2_beta"],
                      params["bn2_mean"], params["bn2_var"], params["conv2_b"])
    s2m = jnp.tile(s2, 14).reshape(1, 448).astype(f32)
    h2m = jnp.tile(h2, 14).reshape(1, 448).astype(f32)

    # head: fold fc(1568->5) (NCHW flatten order) into the surrogate-circuit
    # angle map, laid out to match the pooled-conv2 lanes (valid at even w
    # groups; junk lanes get zero weight).
    wcomb = params["wq"] @ params["fc_w"]                          # [4, 1568]
    a = jnp.transpose(wcomb.reshape(4, 32, 7, 7), (2, 3, 1, 0))    # [h3, w3, co, q]
    a = jnp.stack([a, jnp.zeros_like(a)], axis=2)                  # [h3, w3, 2, co, q]
    wc = a.reshape(7, 448, 4).astype(bf16)
    bc = (params["wq"] @ params["fc_b"] + params["bq"]).reshape(1, 4).astype(f32)
    wp = params["post_w"].reshape(1, 10).astype(f32)               # Linear(1,10) weight
    bp = params["post_b"].reshape(1, 10).astype(f32)
    return m1, s1m, h1m, m2, s2m, h2m, wc, bc, wp, bp


# ----------------------------------------------------------------------------
# Forward pass
# ----------------------------------------------------------------------------
@jax.jit
def forward(x_nchw, params):
    B = x_nchw.shape[0]
    tb = B if B <= TB_CAP else TB_CAP
    n_tiles = -(-B // tb)
    Bp = n_tiles * tb

    # "same" spatial padding (+2 px) and zero batch padding to whole tiles
    # (zero rows keep every partial-tile value finite).
    x = x_nchw[:, 0, :, :].astype(jnp.float32)
    x = jnp.pad(x, ((0, Bp - B), (2, 2), (2, 2))).astype(jnp.bfloat16)  # [Bp,32,32]

    m1, s1m, h1m, m2, s2m, h2m, wc, bc, wp, bp = _build_kernel_constants(params)

    kernel = functools.partial(_qcnn_kernel, tb=tb)
    probs, logits = pl.pallas_call(
        kernel,
        out_shape=(jax.ShapeDtypeStruct((Bp, 10), jnp.float32),
                   jax.ShapeDtypeStruct((Bp, 10), jnp.float32)),
        grid=(n_tiles,),
        in_specs=[
            pl.BlockSpec((tb, 32, 32), lambda i: (i, 0, 0)),       # padded bf16 input
            pl.BlockSpec((5, 32, 448), lambda i: (0, 0, 0)),       # conv1 banded weights
            pl.BlockSpec((1, 448), lambda i: (0, 0)),              # bn1 scale (tiled)
            pl.BlockSpec((1, 448), lambda i: (0, 0)),              # bn1 shift (tiled)
            pl.BlockSpec((5, 448, 448), lambda i: (0, 0, 0)),      # conv2 banded weights
            pl.BlockSpec((1, 448), lambda i: (0, 0)),              # bn2 scale (tiled)
            pl.BlockSpec((1, 448), lambda i: (0, 0)),              # bn2 shift (tiled)
            pl.BlockSpec((7, 448, 4), lambda i: (0, 0, 0)),        # folded fc+circuit w
            pl.BlockSpec((1, 4), lambda i: (0, 0)),                # folded fc+circuit b
            pl.BlockSpec((1, 10), lambda i: (0, 0)),               # post Linear(1,10) w
            pl.BlockSpec((1, 10), lambda i: (0, 0)),               # post Linear(1,10) b
        ],
        out_specs=(pl.BlockSpec((tb, 10), lambda i: (i, 0)),
                   pl.BlockSpec((tb, 10), lambda i: (i, 0))),
        compiler_params=pltpu.CompilerParams(
            dimension_semantics=("parallel",),
            vmem_limit_bytes=_VMEM_LIMIT),
    )(x, m1, s1m, h1m, m2, s2m, h2m, wc, bc, wp, bp)
    return probs[:B], logits[:B]


# ----------------------------------------------------------------------------
# Deterministic example parameters (PyTorch layouts)
# ----------------------------------------------------------------------------
def init_params(seed=42):
    keys = jax.random.split(jax.random.PRNGKey(seed), 16)
    p = {}
    p["conv1_w"] = 0.2 * jax.random.normal(keys[0], (16, 1, 5, 5), jnp.float32)
    p["conv1_b"] = 0.1 * jax.random.normal(keys[1], (16,), jnp.float32)
    p["bn1_gamma"] = 1.0 + 0.1 * jax.random.normal(keys[2], (16,), jnp.float32)
    p["bn1_beta"] = 0.1 * jax.random.normal(keys[3], (16,), jnp.float32)
    p["bn1_mean"] = 0.05 * jax.random.normal(keys[4], (16,), jnp.float32)
    p["bn1_var"] = 0.5 + jax.random.uniform(keys[5], (16,), jnp.float32)
    p["conv2_w"] = 0.05 * jax.random.normal(keys[6], (32, 16, 5, 5), jnp.float32)
    p["conv2_b"] = 0.1 * jax.random.normal(keys[7], (32,), jnp.float32)
    p["bn2_gamma"] = 1.0 + 0.1 * jax.random.normal(keys[8], (32,), jnp.float32)
    p["bn2_beta"] = 0.1 * jax.random.normal(keys[9], (32,), jnp.float32)
    p["bn2_mean"] = 0.05 * jax.random.normal(keys[10], (32,), jnp.float32)
    p["bn2_var"] = 0.5 + jax.random.uniform(keys[11], (32,), jnp.float32)
    p["fc_w"] = 0.02 * jax.random.normal(keys[12], (5, 1568), jnp.float32)
    p["fc_b"] = 0.01 * jax.random.normal(keys[13], (5,), jnp.float32)
    # surrogate quantum circuit: n_qubits=4, angles from the 5 fc features
    p["wq"] = 0.5 * jax.random.normal(keys[14], (4, 5), jnp.float32)
    p["bq"] = 0.1 * jax.random.normal(keys[15], (4,), jnp.float32)
    kp = jax.random.split(jax.random.PRNGKey(seed + 1), 2)
    p["post_w"] = jax.random.normal(kp[0], (10, 1), jnp.float32)   # Linear(1,10)
    p["post_b"] = 0.1 * jax.random.normal(kp[1], (10,), jnp.float32)
    return p


if __name__ == "__main__":
    params = init_params(seed=42)
    # fc has in_features=1568 = 32*7*7 => 28x28 single-channel input (MNIST).
    x = jax.random.normal(jax.random.PRNGKey(0), (2, 1, 28, 28), jnp.float32)
    probs, logits = forward(x, params)
    jax.block_until_ready((probs, logits))
    assert probs.shape == (2, 10) and logits.shape == (2, 10)
    assert bool(jnp.all(jnp.isfinite(probs))) and bool(jnp.all(jnp.isfinite(logits)))
    # approx=True reciprocal in the softmax -> allow a few e-4 of slack.
    assert bool(jnp.allclose(jnp.sum(probs, axis=1), 1.0, atol=5e-3))
    print("KERNEL_OK")
</pallas_src>

<mosaic_0001>
module attributes {stable_mosaic.version = 11 : i64} {
  func.func @_qcnn_kernel(%arg0: i32, %arg1: memref<2x32x32xbf16, #tpu.memory_space<vmem>>, %arg2: memref<5x32x448xbf16, #tpu.memory_space<vmem>>, %arg3: memref<1x448xf32, #tpu.memory_space<vmem>>, %arg4: memref<1x448xf32, #tpu.memory_space<vmem>>, %arg5: memref<5x448x448xbf16, #tpu.memory_space<vmem>>, %arg6: memref<1x448xf32, #tpu.memory_space<vmem>>, %arg7: memref<1x448xf32, #tpu.memory_space<vmem>>, %arg8: memref<7x448x4xbf16, #tpu.memory_space<vmem>>, %arg9: memref<1x4xf32, #tpu.memory_space<vmem>>, %arg10: memref<1x10xf32, #tpu.memory_space<vmem>>, %arg11: memref<1x10xf32, #tpu.memory_space<vmem>>, %arg12: memref<2x10xf32, #tpu.memory_space<vmem>>, %arg13: memref<2x10xf32, #tpu.memory_space<vmem>>) attributes {dimension_semantics = [#tpu.dimension_semantics<parallel>], iteration_bounds = array<i64: 1>, scalar_prefetch = 0 : i64, scratch_operands = 0 : i64, tpu.core_type = #tpu.core_type<tc>, window_params = [{transform_indices = @transform_0, window_bounds = array<i64: 2, 32, 32>}, {pipeline_mode = #tpu.pipeline_mode<synchronous>, transform_indices = @transform_1, window_bounds = array<i64: 5, 32, 448>}, {pipeline_mode = #tpu.pipeline_mode<synchronous>, transform_indices = @transform_2, window_bounds = array<i64: 1, 448>}, {pipeline_mode = #tpu.pipeline_mode<synchronous>, transform_indices = @transform_3, window_bounds = array<i64: 1, 448>}, {pipeline_mode = #tpu.pipeline_mode<synchronous>, transform_indices = @transform_4, window_bounds = array<i64: 5, 448, 448>}, {pipeline_mode = #tpu.pipeline_mode<synchronous>, transform_indices = @transform_5, window_bounds = array<i64: 1, 448>}, {pipeline_mode = #tpu.pipeline_mode<synchronous>, transform_indices = @transform_6, window_bounds = array<i64: 1, 448>}, {pipeline_mode = #tpu.pipeline_mode<synchronous>, transform_indices = @transform_7, window_bounds = array<i64: 7, 448, 4>}, {pipeline_mode = #tpu.pipeline_mode<synchronous>, transform_indices = @transform_8, window_bounds = array<i64: 1, 4>}, {pipeline_mode = #tpu.pipeline_mode<synchronous>, transform_indices = @transform_9, window_bounds = array<i64: 1, 10>}, {pipeline_mode = #tpu.pipeline_mode<synchronous>, transform_indices = @transform_10, window_bounds = array<i64: 1, 10>}, {transform_indices = @transform_11, window_bounds = array<i64: 2, 10>}, {transform_indices = @transform_12, window_bounds = array<i64: 2, 10>}]} {
    %c0 = arith.constant 0 : index
    %c0_0 = arith.constant 0 : index
    %c0_1 = arith.constant 0 : index
    %0 = vector.load %arg1[%c0, %c0_0, %c0_1] : memref<2x32x32xbf16, #tpu.memory_space<vmem>>, vector<2x32x32xbf16>
    %cst = arith.constant 0.000000e+00 : f32
    %1 = vector.broadcast %cst : f32 to vector<56x448xf32>
    %2 = vector.extract_strided_slice %0 {offsets = [0, 0, 0], sizes = [2, 28, 32], strides = [1, 1, 1]} : vector<2x32x32xbf16> to vector<2x28x32xbf16>
    %3 = vector.shape_cast %2 : vector<2x28x32xbf16> to vector<56x32xbf16>
    %c0_2 = arith.constant 0 : index
    %c0_3 = arith.constant 0 : index
    %c0_4 = arith.constant 0 : index
    %4 = vector.load %arg2[%c0_2, %c0_3, %c0_4] : memref<5x32x448xbf16, #tpu.memory_space<vmem>>, vector<1x32x448xbf16>
    %5 = vector.shape_cast %4 : vector<1x32x448xbf16> to vector<32x448xbf16>
    %cst_5 = arith.constant dense<0.000000e+00> : vector<56x448xf32>
    %6 = tpu.matmul %3, %5, %cst_5 {dimension_numbers = #tpu.dot_dimension_numbers<[1], [0], [0], [1], [0, 0, 1, 1], [], []>} : vector<56x32xbf16>, vector<32x448xbf16>, vector<56x448xf32> -> vector<56x448xf32>
    %7 = arith.addf %1, %6 : vector<56x448xf32>
    %8 = vector.extract_strided_slice %0 {offsets = [0, 1, 0], sizes = [2, 28, 32], strides = [1, 1, 1]} : vector<2x32x32xbf16> to vector<2x28x32xbf16>
    %9 = vector.shape_cast %8 : vector<2x28x32xbf16> to vector<56x32xbf16>
    %c1 = arith.constant 1 : index
    %c0_6 = arith.constant 0 : index
    %c0_7 = arith.constant 0 : index
    %10 = vector.load %arg2[%c1, %c0_6, %c0_7] : memref<5x32x448xbf16, #tpu.memory_space<vmem>>, vector<1x32x448xbf16>
    %11 = vector.shape_cast %10 : vector<1x32x448xbf16> to vector<32x448xbf16>
    %cst_8 = arith.constant dense<0.000000e+00> : vector<56x448xf32>
    %12 = tpu.matmul %9, %11, %cst_8 {dimension_numbers = #tpu.dot_dimension_numbers<[1], [0], [0], [1], [0, 0, 1, 1], [], []>} : vector<56x32xbf16>, vector<32x448xbf16>, vector<56x448xf32> -> vector<56x448xf32>
    %13 = arith.addf %7, %12 : vector<56x448xf32>
    %14 = vector.extract_strided_slice %0 {offsets = [0, 2, 0], sizes = [2, 28, 32], strides = [1, 1, 1]} : vector<2x32x32xbf16> to vector<2x28x32xbf16>
    %15 = vector.shape_cast %14 : vector<2x28x32xbf16> to vector<56x32xbf16>
    %c2 = arith.constant 2 : index
    %c0_9 = arith.constant 0 : index
    %c0_10 = arith.constant 0 : index
    %16 = vector.load %arg2[%c2, %c0_9, %c0_10] : memref<5x32x448xbf16, #tpu.memory_space<vmem>>, vector<1x32x448xbf16>
    %17 = vector.shape_cast %16 : vector<1x32x448xbf16> to vector<32x448xbf16>
    %cst_11 = arith.constant dense<0.000000e+00> : vector<56x448xf32>
    %18 = tpu.matmul %15, %17, %cst_11 {dimension_numbers = #tpu.dot_dimension_numbers<[1], [0], [0], [1], [0, 0, 1, 1], [], []>} : vector<56x32xbf16>, vector<32x448xbf16>, vector<56x448xf32> -> vector<56x448xf32>
    %19 = arith.addf %13, %18 : vector<56x448xf32>
    %20 = vector.extract_strided_slice %0 {offsets = [0, 3, 0], sizes = [2, 28, 32], strides = [1, 1, 1]} : vector<2x32x32xbf16> to vector<2x28x32xbf16>
    %21 = vector.shape_cast %20 : vector<2x28x32xbf16> to vector<56x32xbf16>
    %c3 = arith.constant 3 : index
    %c0_12 = arith.constant 0 : index
    %c0_13 = arith.constant 0 : index
    %22 = vector.load %arg2[%c3, %c0_12, %c0_13] : memref<5x32x448xbf16, #tpu.memory_space<vmem>>, vector<1x32x448xbf16>
    %23 = vector.shape_cast %22 : vector<1x32x448xbf16> to vector<32x448xbf16>
    %cst_14 = arith.constant dense<0.000000e+00> : vector<56x448xf32>
    %24 = tpu.matmul %21, %23, %cst_14 {dimension_numbers = #tpu.dot_dimension_numbers<[1], [0], [0], [1], [0, 0, 1, 1], [], []>} : vector<56x32xbf16>, vector<32x448xbf16>, vector<56x448xf32> -> vector<56x448xf32>
    %25 = arith.addf %19, %24 : vector<56x448xf32>
    %26 = vector.extract_strided_slice %0 {offsets = [0, 4, 0], sizes = [2, 28, 32], strides = [1, 1, 1]} : vector<2x32x32xbf16> to vector<2x28x32xbf16>
    %27 = vector.shape_cast %26 : vector<2x28x32xbf16> to vector<56x32xbf16>
    %c4 = arith.constant 4 : index
    %c0_15 = arith.constant 0 : index
    %c0_16 = arith.constant 0 : index
    %28 = vector.load %arg2[%c4, %c0_15, %c0_16] : memref<5x32x448xbf16, #tpu.memory_space<vmem>>, vector<1x32x448xbf16>
    %29 = vector.shape_cast %28 : vector<1x32x448xbf16> to vector<32x448xbf16>
    %cst_17 = arith.constant dense<0.000000e+00> : vector<56x448xf32>
    %30 = tpu.matmul %27, %29, %cst_17 {dimension_numbers = #tpu.dot_dimension_numbers<[1], [0], [0], [1], [0, 0, 1, 1], [], []>} : vector<56x32xbf16>, vector<32x448xbf16>, vector<56x448xf32> -> vector<56x448xf32>
    %31 = arith.addf %25, %30 : vector<56x448xf32>
    %c0_18 = arith.constant 0 : index
    %c0_19 = arith.constant 0 : index
    %32 = vector.load %arg3[%c0_18, %c0_19] : memref<1x448xf32, #tpu.memory_space<vmem>>, vector<1x448xf32>
    %33 = vector.broadcast %32 : vector<1x448xf32> to vector<56x448xf32>
    %34 = arith.mulf %31, %33 : vector<56x448xf32>
    %c0_20 = arith.constant 0 : index
    %c0_21 = arith.constant 0 : index
    %35 = vector.load %arg4[%c0_20, %c0_21] : memref<1x448xf32, #tpu.memory_space<vmem>>, vector<1x448xf32>
    %36 = vector.broadcast %35 : vector<1x448xf32> to vector<56x448xf32>
    %37 = arith.addf %34, %36 : vector<56x448xf32>
    %cst_22 = arith.constant 0.000000e+00 : f32
    %38 = vector.broadcast %cst_22 : f32 to vector<56x448xf32>
    %39 = arith.maximumf %37, %38 : vector<56x448xf32>
    %40 = vector.extract_strided_slice %39 {offsets = [0, 16], sizes = [56, 432], strides = [1, 1]} : vector<56x448xf32> to vector<56x432xf32>
    %cst_23 = arith.constant 0.000000e+00 : f32
    %41 = vector.broadcast %cst_23 : f32 to vector<56x16xf32>
    %42 = tpu.concatenate %40, %41 in 1 : vector<56x432xf32>, vector<56x16xf32> -> vector<56x448xf32>
    %43 = arith.maximumf %39, %42 : vector<56x448xf32>
    %44 = vector.shape_cast %43 : vector<56x448xf32> to vector<2x14x2x448xf32>
    %45 = vector.extract_strided_slice %44 {offsets = [0, 0, 0, 0], sizes = [2, 14, 1, 448], strides = [1, 1, 1, 1]} : vector<2x14x2x448xf32> to vector<2x14x1x448xf32>
    %46 = vector.shape_cast %45 : vector<2x14x1x448xf32> to vector<2x14x448xf32>
    %47 = vector.extract_strided_slice %44 {offsets = [0, 0, 1, 0], sizes = [2, 14, 1, 448], strides = [1, 1, 1, 1]} : vector<2x14x2x448xf32> to vector<2x14x1x448xf32>
    %48 = vector.shape_cast %47 : vector<2x14x1x448xf32> to vector<2x14x448xf32>
    %49 = arith.maximumf %46, %48 : vector<2x14x448xf32>
    %50 = arith.truncf %49 : vector<2x14x448xf32> to vector<2x14x448xbf16>
    %cst_24 = arith.constant 0.000000e+00 : bf16
    %51 = vector.broadcast %cst_24 : bf16 to vector<2x2x448xbf16>
    %52 = tpu.concatenate %51, %50, %51 in 1 : vector<2x2x448xbf16>, vector<2x14x448xbf16>, vector<2x2x448xbf16> -> vector<2x18x448xbf16>
    %cst_25 = arith.constant 0.000000e+00 : f32
    %53 = vector.broadcast %cst_25 : f32 to vector<28x448xf32>
    %54 = vector.extract_strided_slice %52 {offsets = [0, 0, 0], sizes = [2, 14, 448], strides = [1, 1, 1]} : vector<2x18x448xbf16> to vector<2x14x448xbf16>
    %55 = vector.shape_cast %54 : vector<2x14x448xbf16> to vector<28x448xbf16>
    %c0_26 = arith.constant 0 : index
    %c0_27 = arith.constant 0 : index
    %c0_28 = arith.constant 0 : index
    %56 = vector.load %arg5[%c0_26, %c0_27, %c0_28] : memref<5x448x448xbf16, #tpu.memory_space<vmem>>, vector<1x448x448xbf16>
    %57 = vector.shape_cast %56 : vector<1x448x448xbf16> to vector<448x448xbf16>
    %cst_29 = arith.constant dense<0.000000e+00> : vector<28x448xf32>
    %58 = tpu.matmul %55, %57, %cst_29 {dimension_numbers = #tpu.dot_dimension_numbers<[1], [0], [0], [1], [0, 0, 1, 1], [], []>} : vector<28x448xbf16>, vector<448x448xbf16>, vector<28x448xf32> -> vector<28x448xf32>
    %59 = arith.addf %53, %58 : vector<28x448xf32>
    %60 = vector.extract_strided_slice %52 {offsets = [0, 1, 0], sizes = [2, 14, 448], strides = [1, 1, 1]} : vector<2x18x448xbf16> to vector<2x14x448xbf16>
    %61 = vector.shape_cast %60 : vector<2x14x448xbf16> to vector<28x448xbf16>
    %c1_30 = arith.constant 1 : index
    %c0_31 = arith.constant 0 : index
    %c0_32 = arith.constant 0 : index
    %62 = vector.load %arg5[%c1_30, %c0_31, %c0_32] : memref<5x448x448xbf16, #tpu.memory_space<vmem>>, vector<1x448x448xbf16>
    %63 = vector.shape_cast %62 : vector<1x448x448xbf16> to vector<448x448xbf16>
    %cst_33 = arith.constant dense<0.000000e+00> : vector<28x448xf32>
    %64 = tpu.matmul %61, %63, %cst_33 {dimension_numbers = #tpu.dot_dimension_numbers<[1], [0], [0], [1], [0, 0, 1, 1], [], []>} : vector<28x448xbf16>, vector<448x448xbf16>, vector<28x448xf32> -> vector<28x448xf32>
    %65 = arith.addf %59, %64 : vector<28x448xf32>
    %66 = vector.extract_strided_slice %52 {offsets = [0, 2, 0], sizes = [2, 14, 448], strides = [1, 1, 1]} : vector<2x18x448xbf16> to vector<2x14x448xbf16>
    %67 = vector.shape_cast %66 : vector<2x14x448xbf16> to vector<28x448xbf16>
    %c2_34 = arith.constant 2 : index
    %c0_35 = arith.constant 0 : index
    %c0_36 = arith.constant 0 : index
    %68 = vector.load %arg5[%c2_34, %c0_35, %c0_36] : memref<5x448x448xbf16, #tpu.memory_space<vmem>>, vector<1x448x448xbf16>
    %69 = vector.shape_cast %68 : vector<1x448x448xbf16> to vector<448x448xbf16>
    %cst_37 = arith.constant dense<0.000000e+00> : vector<28x448xf32>
    %70 = tpu.matmul %67, %69, %cst_37 {dimension_numbers = #tpu.dot_dimension_numbers<[1], [0], [0], [1], [0, 0, 1, 1], [], []>} : vector<28x448xbf16>, vector<448x448xbf16>, vector<28x448xf32> -> vector<28x448xf32>
    %71 = arith.addf %65, %70 : vector<28x448xf32>
    %72 = vector.extract_strided_slice %52 {offsets = [0, 3, 0], sizes = [2, 14, 448], strides = [1, 1, 1]} : vector<2x18x448xbf16> to vector<2x14x448xbf16>
    %73 = vector.shape_cast %72 : vector<2x14x448xbf16> to vector<28x448xbf16>
    %c3_38 = arith.constant 3 : index
    %c0_39 = arith.constant 0 : index
    %c0_40 = arith.constant 0 : index
    %74 = vector.load %arg5[%c3_38, %c0_39, %c0_40] : memref<5x448x448xbf16, #tpu.memory_space<vmem>>, vector<1x448x448xbf16>
    %75 = vector.shape_cast %74 : vector<1x448x448xbf16> to vector<448x448xbf16>
    %cst_41 = arith.constant dense<0.000000e+00> : vector<28x448xf32>
    %76 = tpu.matmul %73, %75, %cst_41 {dimension_numbers = #tpu.dot_dimension_numbers<[1], [0], [0], [1], [0, 0, 1, 1], [], []>} : vector<28x448xbf16>, vector<448x448xbf16>, vector<28x448xf32> -> vector<28x448xf32>
    %77 = arith.addf %71, %76 : vector<28x448xf32>
    %78 = vector.extract_strided_slice %52 {offsets = [0, 4, 0], sizes = [2, 14, 448], strides = [1, 1, 1]} : vector<2x18x448xbf16> to vector<2x14x448xbf16>
    %79 = vector.shape_cast %78 : vector<2x14x448xbf16> to vector<28x448xbf16>
    %c4_42 = arith.constant 4 : index
    %c0_43 = arith.constant 0 : index
    %c0_44 = arith.constant 0 : index
    %80 = vector.load %arg5[%c4_42, %c0_43, %c0_44] : memref<5x448x448xbf16, #tpu.memory_space<vmem>>, vector<1x448x448xbf16>
    %81 = vector.shape_cast %80 : vector<1x448x448xbf16> to vector<448x448xbf16>
    %cst_45 = arith.constant dense<0.000000e+00> : vector<28x448xf32>
    %82 = tpu.matmul %79, %81, %cst_45 {dimension_numbers = #tpu.dot_dimension_numbers<[1], [0], [0], [1], [0, 0, 1, 1], [], []>} : vector<28x448xbf16>, vector<448x448xbf16>, vector<28x448xf32> -> vector<28x448xf32>
    %83 = arith.addf %77, %82 : vector<28x448xf32>
    %c0_46 = arith.constant 0 : index
    %c0_47 = arith.constant 0 : index
    %84 = vector.load %arg6[%c0_46, %c0_47] : memref<1x448xf32, #tpu.memory_space<vmem>>, vector<1x448xf32>
    %85 = vector.broadcast %84 : vector<1x448xf32> to vector<28x448xf32>
    %86 = arith.mulf %83, %85 : vector<28x448xf32>
    %c0_48 = arith.constant 0 : index
    %c0_49 = arith.constant 0 : index
    %87 = vector.load %arg7[%c0_48, %c0_49] : memref<1x448xf32, #tpu.memory_space<vmem>>, vector<1x448xf32>
    %88 = vector.broadcast %87 : vector<1x448xf32> to vector<28x448xf32>
    %89 = arith.addf %86, %88 : vector<28x448xf32>
    %cst_50 = arith.constant 0.000000e+00 : f32
    %90 = vector.broadcast %cst_50 : f32 to vector<28x448xf32>
    %91 = arith.maximumf %89, %90 : vector<28x448xf32>
    %92 = vector.extract_strided_slice %91 {offsets = [0, 32], sizes = [28, 416], strides = [1, 1]} : vector<28x448xf32> to vector<28x416xf32>
    %cst_51 = arith.constant 0.000000e+00 : f32
    %93 = vector.broadcast %cst_51 : f32 to vector<28x32xf32>
    %94 = tpu.concatenate %92, %93 in 1 : vector<28x416xf32>, vector<28x32xf32> -> vector<28x448xf32>
    %95 = arith.maximumf %91, %94 : vector<28x448xf32>
    %96 = vector.shape_cast %95 : vector<28x448xf32> to vector<2x7x2x448xf32>
    %97 = vector.extract_strided_slice %96 {offsets = [0, 0, 0, 0], sizes = [2, 7, 1, 448], strides = [1, 1, 1, 1]} : vector<2x7x2x448xf32> to vector<2x7x1x448xf32>
    %98 = vector.shape_cast %97 : vector<2x7x1x448xf32> to vector<2x7x448xf32>
    %99 = vector.extract_strided_slice %96 {offsets = [0, 0, 1, 0], sizes = [2, 7, 1, 448], strides = [1, 1, 1, 1]} : vector<2x7x2x448xf32> to vector<2x7x1x448xf32>
    %100 = vector.shape_cast %99 : vector<2x7x1x448xf32> to vector<2x7x448xf32>
    %101 = arith.maximumf %98, %100 : vector<2x7x448xf32>
    %102 = arith.truncf %101 : vector<2x7x448xf32> to vector<2x7x448xbf16>
    %cst_52 = arith.constant 0.000000e+00 : f32
    %103 = vector.broadcast %cst_52 : f32 to vector<2x4xf32>
    %104 = vector.extract_strided_slice %102 {offsets = [0, 0, 0], sizes = [2, 1, 448], strides = [1, 1, 1]} : vector<2x7x448xbf16> to vector<2x1x448xbf16>
    %105 = vector.shape_cast %104 : vector<2x1x448xbf16> to vector<2x448xbf16>
    %c0_53 = arith.constant 0 : index
    %c0_54 = arith.constant 0 : index
    %c0_55 = arith.constant 0 : index
    %106 = vector.load %arg8[%c0_53, %c0_54, %c0_55] : memref<7x448x4xbf16, #tpu.memory_space<vmem>>, vector<1x448x4xbf16>
    %107 = vector.shape_cast %106 : vector<1x448x4xbf16> to vector<448x4xbf16>
    %cst_56 = arith.constant dense<0.000000e+00> : vector<2x4xf32>
    %108 = tpu.matmul %105, %107, %cst_56 {dimension_numbers = #tpu.dot_dimension_numbers<[1], [0], [0], [1], [0, 0, 1, 1], [], []>} : vector<2x448xbf16>, vector<448x4xbf16>, vector<2x4xf32> -> vector<2x4xf32>
    %109 = arith.addf %103, %108 : vector<2x4xf32>
    %110 = vector.extract_strided_slice %102 {offsets = [0, 1, 0], sizes = [2, 1, 448], strides = [1, 1, 1]} : vector<2x7x448xbf16> to vector<2x1x448xbf16>
    %111 = vector.shape_cast %110 : vector<2x1x448xbf16> to vector<2x448xbf16>
    %c1_57 = arith.constant 1 : index
    %c0_58 = arith.constant 0 : index
    %c0_59 = arith.constant 0 : index
    %112 = vector.load %arg8[%c1_57, %c0_58, %c0_59] : memref<7x448x4xbf16, #tpu.memory_space<vmem>>, vector<1x448x4xbf16>
    %113 = vector.shape_cast %112 : vector<1x448x4xbf16> to vector<448x4xbf16>
    %cst_60 = arith.constant dense<0.000000e+00> : vector<2x4xf32>
    %114 = tpu.matmul %111, %113, %cst_60 {dimension_numbers = #tpu.dot_dimension_numbers<[1], [0], [0], [1], [0, 0, 1, 1], [], []>} : vector<2x448xbf16>, vector<448x4xbf16>, vector<2x4xf32> -> vector<2x4xf32>
    %115 = arith.addf %109, %114 : vector<2x4xf32>
    %116 = vector.extract_strided_slice %102 {offsets = [0, 2, 0], sizes = [2, 1, 448], strides = [1, 1, 1]} : vector<2x7x448xbf16> to vector<2x1x448xbf16>
    %117 = vector.shape_cast %116 : vector<2x1x448xbf16> to vector<2x448xbf16>
    %c2_61 = arith.constant 2 : index
    %c0_62 = arith.constant 0 : index
    %c0_63 = arith.constant 0 : index
    %118 = vector.load %arg8[%c2_61, %c0_62, %c0_63] : memref<7x448x4xbf16, #tpu.memory_space<vmem>>, vector<1x448x4xbf16>
    %119 = vector.shape_cast %118 : vector<1x448x4xbf16> to vector<448x4xbf16>
    %cst_64 = arith.constant dense<0.000000e+00> : vector<2x4xf32>
    %120 = tpu.matmul %117, %119, %cst_64 {dimension_numbers = #tpu.dot_dimension_numbers<[1], [0], [0], [1], [0, 0, 1, 1], [], []>} : vector<2x448xbf16>, vector<448x4xbf16>, vector<2x4xf32> -> vector<2x4xf32>
    %121 = arith.addf %115, %120 : vector<2x4xf32>
    %122 = vector.extract_strided_slice %102 {offsets = [0, 3, 0], sizes = [2, 1, 448], strides = [1, 1, 1]} : vector<2x7x448xbf16> to vector<2x1x448xbf16>
    %123 = vector.shape_cast %122 : vector<2x1x448xbf16> to vector<2x448xbf16>
    %c3_65 = arith.constant 3 : index
    %c0_66 = arith.constant 0 : index
    %c0_67 = arith.constant 0 : index
    %124 = vector.load %arg8[%c3_65, %c0_66, %c0_67] : memref<7x448x4xbf16, #tpu.memory_space<vmem>>, vector<1x448x4xbf16>
    %125 = vector.shape_cast %124 : vector<1x448x4xbf16> to vector<448x4xbf16>
    %cst_68 = arith.constant dense<0.000000e+00> : vector<2x4xf32>
    %126 = tpu.matmul %123, %125, %cst_68 {dimension_numbers = #tpu.dot_dimension_numbers<[1], [0], [0], [1], [0, 0, 1, 1], [], []>} : vector<2x448xbf16>, vector<448x4xbf16>, vector<2x4xf32> -> vector<2x4xf32>
    %127 = arith.addf %121, %126 : vector<2x4xf32>
    %128 = vector.extract_strided_slice %102 {offsets = [0, 4, 0], sizes = [2, 1, 448], strides = [1, 1, 1]} : vector<2x7x448xbf16> to vector<2x1x448xbf16>
    %129 = vector.shape_cast %128 : vector<2x1x448xbf16> to vector<2x448xbf16>
    %c4_69 = arith.constant 4 : index
    %c0_70 = arith.constant 0 : index
    %c0_71 = arith.constant 0 : index
    %130 = vector.load %arg8[%c4_69, %c0_70, %c0_71] : memref<7x448x4xbf16, #tpu.memory_space<vmem>>, vector<1x448x4xbf16>
    %131 = vector.shape_cast %130 : vector<1x448x4xbf16> to vector<448x4xbf16>
    %cst_72 = arith.constant dense<0.000000e+00> : vector<2x4xf32>
    %132 = tpu.matmul %129, %131, %cst_72 {dimension_numbers = #tpu.dot_dimension_numbers<[1], [0], [0], [1], [0, 0, 1, 1], [], []>} : vector<2x448xbf16>, vector<448x4xbf16>, vector<2x4xf32> -> vector<2x4xf32>
    %133 = arith.addf %127, %132 : vector<2x4xf32>
    %134 = vector.extract_strided_slice %102 {offsets = [0, 5, 0], sizes = [2, 1, 448], strides = [1, 1, 1]} : vector<2x7x448xbf16> to vector<2x1x448xbf16>
    %135 = vector.shape_cast %134 : vector<2x1x448xbf16> to vector<2x448xbf16>
    %c5 = arith.constant 5 : index
    %c0_73 = arith.constant 0 : index
    %c0_74 = arith.constant 0 : index
    %136 = vector.load %arg8[%c5, %c0_73, %c0_74] : memref<7x448x4xbf16, #tpu.memory_space<vmem>>, vector<1x448x4xbf16>
    %137 = vector.shape_cast %136 : vector<1x448x4xbf16> to vector<448x4xbf16>
    %cst_75 = arith.constant dense<0.000000e+00> : vector<2x4xf32>
    %138 = tpu.matmul %135, %137, %cst_75 {dimension_numbers = #tpu.dot_dimension_numbers<[1], [0], [0], [1], [0, 0, 1, 1], [], []>} : vector<2x448xbf16>, vector<448x4xbf16>, vector<2x4xf32> -> vector<2x4xf32>
    %139 = arith.addf %133, %138 : vector<2x4xf32>
    %140 = vector.extract_strided_slice %102 {offsets = [0, 6, 0], sizes = [2, 1, 448], strides = [1, 1, 1]} : vector<2x7x448xbf16> to vector<2x1x448xbf16>
    %141 = vector.shape_cast %140 : vector<2x1x448xbf16> to vector<2x448xbf16>
    %c6 = arith.constant 6 : index
    %c0_76 = arith.constant 0 : index
    %c0_77 = arith.constant 0 : index
    %142 = vector.load %arg8[%c6, %c0_76, %c0_77] : memref<7x448x4xbf16, #tpu.memory_space<vmem>>, vector<1x448x4xbf16>
    %143 = vector.shape_cast %142 : vector<1x448x4xbf16> to vector<448x4xbf16>
    %cst_78 = arith.constant dense<0.000000e+00> : vector<2x4xf32>
    %144 = tpu.matmul %141, %143, %cst_78 {dimension_numbers = #tpu.dot_dimension_numbers<[1], [0], [0], [1], [0, 0, 1, 1], [], []>} : vector<2x448xbf16>, vector<448x4xbf16>, vector<2x4xf32> -> vector<2x4xf32>
    %145 = arith.addf %139, %144 : vector<2x4xf32>
    %c0_79 = arith.constant 0 : index
    %c0_80 = arith.constant 0 : index
    %146 = vector.load %arg9[%c0_79, %c0_80] : memref<1x4xf32, #tpu.memory_space<vmem>>, vector<1x4xf32>
    %147 = vector.broadcast %146 : vector<1x4xf32> to vector<2x4xf32>
    %148 = arith.addf %145, %147 : vector<2x4xf32>
    %149 = math.tanh %148 : vector<2x4xf32>
    %cst_81 = arith.constant dense<0.000000e+00> : vector<2xf32>
    %150 = vector.multi_reduction <add>, %149, %cst_81 [1] : vector<2x4xf32> to vector<2xf32>
    %151 = vector.shape_cast %150 : vector<2xf32> to vector<2x1xf32>
    %cst_82 = arith.constant 4.000000e+00 : f32
    %152 = vector.broadcast %cst_82 : f32 to vector<2x1xf32>
    %153 = arith.divf %151, %152 : vector<2x1xf32>
    %c0_83 = arith.constant 0 : index
    %c0_84 = arith.constant 0 : index
    %154 = vector.load %arg10[%c0_83, %c0_84] : memref<1x10xf32, #tpu.memory_space<vmem>>, vector<1x10xf32>
    %155 = vector.broadcast %153 : vector<2x1xf32> to vector<2x10xf32>
    %156 = vector.broadcast %154 : vector<1x10xf32> to vector<2x10xf32>
    %157 = arith.mulf %155, %156 : vector<2x10xf32>
    %c0_85 = arith.constant 0 : index
    %c0_86 = arith.constant 0 : index
    %158 = vector.load %arg11[%c0_85, %c0_86] : memref<1x10xf32, #tpu.memory_space<vmem>>, vector<1x10xf32>
    %159 = vector.broadcast %158 : vector<1x10xf32> to vector<2x10xf32>
    %160 = arith.addf %157, %159 : vector<2x10xf32>
    %cst_87 = arith.constant dense<0xFF800000> : vector<2xf32>
    %161 = vector.multi_reduction <maximumf>, %160, %cst_87 [1] : vector<2x10xf32> to vector<2xf32>
    %162 = vector.shape_cast %161 : vector<2xf32> to vector<2x1xf32>
    %163 = vector.broadcast %162 : vector<2x1xf32> to vector<2x10xf32>
    %164 = arith.subf %160, %163 : vector<2x10xf32>
    %165 = math.exp %164 : vector<2x10xf32>
    %cst_88 = arith.constant dense<0.000000e+00> : vector<2xf32>
    %166 = vector.multi_reduction <add>, %165, %cst_88 [1] : vector<2x10xf32> to vector<2xf32>
    %167 = vector.shape_cast %166 : vector<2xf32> to vector<2x1xf32>
    %168 = tpu.reciprocal %167 {approx = true} : vector<2x1xf32> -> vector<2x1xf32>
    %169 = vector.broadcast %168 : vector<2x1xf32> to vector<2x10xf32>
    %170 = arith.mulf %165, %169 : vector<2x10xf32>
    %c0_89 = arith.constant 0 : index
    %c0_90 = arith.constant 0 : index
    %171 = vector.load %arg12[%c0_89, %c0_90] : memref<2x10xf32, #tpu.memory_space<vmem>>, vector<2x10xf32>
    tpu.vector_store %arg12[%c0_89, %c0_90], %170 {strides = array<i32>} : memref<2x10xf32, #tpu.memory_space<vmem>>, vector<2x10xf32>,
    %c0_91 = arith.constant 0 : index
    %c0_92 = arith.constant 0 : index
    %172 = vector.load %arg13[%c0_91, %c0_92] : memref<2x10xf32, #tpu.memory_space<vmem>>, vector<2x10xf32>
    tpu.vector_store %arg13[%c0_91, %c0_92], %160 {strides = array<i32>} : memref<2x10xf32, #tpu.memory_space<vmem>>, vector<2x10xf32>,
    return
  }
  func.func @transform_0(%arg0: i32) -> (i32, i32, i32) {
    %c0_i32 = arith.constant 0 : i32
    %c0_i32_0 = arith.constant 0 : i32
    %c0_i32_1 = arith.constant 0 : i32
    return %arg0, %c0_i32, %c0_i32_0 : i32, i32, i32
  }
  func.func @transform_1(%arg0: i32) -> (i32, i32, i32) {
    %c0_i32 = arith.constant 0 : i32
    %c0_i32_0 = arith.constant 0 : i32
    %c0_i32_1 = arith.constant 0 : i32
    %c0_i32_2 = arith.constant 0 : i32
    return %c0_i32, %c0_i32_0, %c0_i32_1 : i32, i32, i32
  }
  func.func @transform_2(%arg0: i32) -> (i32, i32) {
    %c0_i32 = arith.constant 0 : i32
    %c0_i32_0 = arith.constant 0 : i32
    %c0_i32_1 = arith.constant 0 : i32
    return %c0_i32, %c0_i32_0 : i32, i32
  }
  func.func @transform_3(%arg0: i32) -> (i32, i32) {
    %c0_i32 = arith.constant 0 : i32
    %c0_i32_0 = arith.constant 0 : i32
    %c0_i32_1 = arith.constant 0 : i32
    return %c0_i32, %c0_i32_0 : i32, i32
  }
  func.func @transform_4(%arg0: i32) -> (i32, i32, i32) {
    %c0_i32 = arith.constant 0 : i32
    %c0_i32_0 = arith.constant 0 : i32
    %c0_i32_1 = arith.constant 0 : i32
    %c0_i32_2 = arith.constant 0 : i32
    return %c0_i32, %c0_i32_0, %c0_i32_1 : i32, i32, i32
  }
  func.func @transform_5(%arg0: i32) -> (i32, i32) {
    %c0_i32 = arith.constant 0 : i32
    %c0_i32_0 = arith.constant 0 : i32
    %c0_i32_1 = arith.constant 0 : i32
    return %c0_i32, %c0_i32_0 : i32, i32
  }
  func.func @transform_6(%arg0: i32) -> (i32, i32) {
    %c0_i32 = arith.constant 0 : i32
    %c0_i32_0 = arith.constant 0 : i32
    %c0_i32_1 = arith.constant 0 : i32
    return %c0_i32, %c0_i32_0 : i32, i32
  }
  func.func @transform_7(%arg0: i32) -> (i32, i32, i32) {
    %c0_i32 = arith.constant 0 : i32
    %c0_i32_0 = arith.constant 0 : i32
    %c0_i32_1 = arith.constant 0 : i32
    %c0_i32_2 = arith.constant 0 : i32
    return %c0_i32, %c0_i32_0, %c0_i32_1 : i32, i32, i32
  }
  func.func @transform_8(%arg0: i32) -> (i32, i32) {
    %c0_i32 = arith.constant 0 : i32
    %c0_i32_0 = arith.constant 0 : i32
    %c0_i32_1 = arith.constant 0 : i32
    return %c0_i32, %c0_i32_0 : i32, i32
  }
  func.func @transform_9(%arg0: i32) -> (i32, i32) {
    %c0_i32 = arith.constant 0 : i32
    %c0_i32_0 = arith.constant 0 : i32
    %c0_i32_1 = arith.constant 0 : i32
    return %c0_i32, %c0_i32_0 : i32, i32
  }
  func.func @transform_10(%arg0: i32) -> (i32, i32) {
    %c0_i32 = arith.constant 0 : i32
    %c0_i32_0 = arith.constant 0 : i32
    %c0_i32_1 = arith.constant 0 : i32
    return %c0_i32, %c0_i32_0 : i32, i32
  }
  func.func @transform_11(%arg0: i32) -> (i32, i32) {
    %c0_i32 = arith.constant 0 : i32
    %c0_i32_0 = arith.constant 0 : i32
    return %arg0, %c0_i32 : i32, i32
  }
  func.func @transform_12(%arg0: i32) -> (i32, i32) {
    %c0_i32 = arith.constant 0 : i32
    %c0_i32_0 = arith.constant 0 : i32
    return %arg0, %c0_i32 : i32, i32
  }
}

</mosaic_0001>

<bundles_post_ra>
// kernel: tile.38
= control target key start
LH: loop header
LB: loop body
LE: loop exit
PB: predicated region body
PF: predicated region fallthrough
CT: control target
= control target key end

     0   :  { %s28_s0 = inlined_call_operand.vmem [shape: f32[32], index: 0, kind: input, shape index: {}]   ;;  %s29_s1 = inlined_call_operand.vmem [shape: f32[14,32], index: 1, kind: output, shape index: {}]  }
   0x1   :  { %v4_v0 = vld [vmem:[%s28_s0] ss:$0 sm:$0xff] }
   0x2   :  { %5 = vst [vmem:[%s29_s1] sm:$0xff] %v4_v0 }
   0x3   :  { %8 = vst [vmem:[%s29_s1 + $0x8] sm:$0xff] %v4_v0 }

// kernel: tile.39
= control target key start
LH: loop header
LB: loop body
LE: loop exit
PB: predicated region body
PF: predicated region fallthrough
CT: control target
= control target key end

     0   :  { %s56_s8 = smov 96   ;;  %s57_s11 = smov 32   ;;  %vm3_vm0 = vcmask 261120   ;;  %vm9_vm1 = vcmask 1048320   ;;  %vm15_vm2 = vcmask 785920   ;;  %vm21_vm3 = vcmask 523520   ;;  %s93_s0 = inlined_call_operand.vmem [shape: f32[14,32], index: 0, kind: input, shape index: {}]   ;;  %s94_s1 = inlined_call_operand.vmem [shape: f32[1,448], index: 1, kind: output, shape index: {}]  }
   0x1   :  { %v47_v0 = vld [vmem:[%s93_s0 + $0x3] ss:$4 sm:$0x7]   ;;  %v49_v1 = vld [vmem:[%s93_s0 + $0x1] ss:$4 sm:$0xf]  }
   0x2   :  { %7 = vrot.lane.b32.xlu0 %v47_v0, %s56_s8  ;;  %19 = vrot.lane.b32.xlu1 %v49_v1, %s57_s11  ;;  %v48_v2 = vld [vmem:[%s93_s0 + $0x2] ss:$4 sm:$0x7]   ;;  %s58_s14 = smov 64  }
   0x3   :  { %v2_v3 = vld [vmem:[%s93_s0] ss:$4 sm:$0xf]  }
   0x4   :  { %4 = vst.msk [vmem:[#allocation0] ss:$8 sm:$0xf] %vm3_vm0, %v2_v3  }
   0xa   :  { %13 = vrot.lane.b32.xlu0 %v48_v2, %s58_s14 }
  0x74   :  { %v8_v4 = vpop.permute.xlu0 %7   ;;  %v20_v5 = vpop.permute.xlu1 %19  }
  0x75   :  { %10 = vst.msk [vmem:[#allocation0] ss:$8 sm:$0x7] %vm9_vm1, %v8_v4  }
  0x7c   :  { %v14_v6 = vpop.permute.xlu0 %13  }
  0x7d   :  { %16 = vst.msk [vmem:[#allocation0] ss:$8 sm:$0x7] %vm15_vm2, %v14_v6  }
  0x7e   :  { %22 = vst.msk [vmem:[#allocation0] ss:$8 sm:$0xf] %vm21_vm3, %v20_v5  }
  0x85   :  { %v25_v7 = vld [vmem:[#allocation0] sm:$0x1]  ;;  %v30_v8 = vld [vmem:[#allocation0 + $0x8] sm:$0x1]  ;;  %v36_v9 = vld [vmem:[#allocation0 + $0x10] sm:$0x1] }
  0x86   :  { %28 = vst [vmem:[%s94_s1] sm:$0x1] %v25_v7  ;;  %v42_v10 = vld [vmem:[#allocation0 + $0x18] sm:$0x1] }
  0x87   :  { %50 = vst [vmem:[%s94_s1 + $0x1] sm:$0x1] %v30_v8 }
  0x88   :  { %51 = vst [vmem:[%s94_s1 + $0x2] sm:$0x1] %v36_v9 }
  0x89   :  { %52 = vst [vmem:[%s94_s1 + $0x3] sm:$0x1] %v42_v10 }

// kernel: tile.29
= control target key start
LH: loop header
LB: loop body
LE: loop exit
PB: predicated region body
PF: predicated region fallthrough
CT: control target
= control target key end

     0   :  { %s88_s8 = smov 112   ;;  %s89_s11 = smov 80   ;;  %vm3_vm0 = vcmask 130048   ;;  %vm9_vm1 = vcmask 1048448   ;;  %vm15_vm2 = vcmask 917248   ;;  %vm21_vm3 = vcmask 786048   ;;  %s141_s0 = inlined_call_operand.vmem [shape: f32[28,16], index: 0, kind: input, shape index: {}]   ;;  %s142_s1 = inlined_call_operand.vmem [shape: f32[1,448], index: 1, kind: output, shape index: {}]  }
   0x1   :  { %v71_v0 = vld [vmem:[%s141_s0 + $0x7] ss:$8 sm:$0x7]   ;;  %v73_v1 = vld [vmem:[%s141_s0 + $0x5] ss:$8 sm:$0x7]  }
   0x2   :  { %7 = vrot.lane.b32.xlu0 %v71_v0, %s88_s8  ;;  %19 = vrot.lane.b32.xlu1 %v73_v1, %s89_s11  ;;  %v75_v2 = vld [vmem:[%s141_s0 + $0x3] ss:$8 sm:$0xf]   ;;  %s90_s14 = smov 48   ;;  %s91_s19 = smov 96   ;;  %vm27_vm4 = vcmask 654848  }
   0x3   :  { %31 = vrot.lane.b32.xlu2 %v75_v2, %s90_s14  ;;  %v72_v3 = vld [vmem:[%s141_s0 + $0x6] ss:$8 sm:$0x7]   ;;  %v74_v4 = vld [vmem:[%s141_s0 + $0x4] ss:$8 sm:$0x7]  }
   0x4   :  { %s92_s20 = smov 64   ;;  %v76_v5 = vld [vmem:[%s141_s0 + $0x2] ss:$8 sm:$0xf]   ;;  %s93_s23 = smov 32   ;;  %vm33_vm5 = vcmask 523648  }
   0x5   :  { %v77_v6 = vld [vmem:[%s141_s0 + $0x1] ss:$8 sm:$0xf]   ;;  %s94_s26 = smov 16   ;;  %vm39_vm6 = vcmask 392448   ;;  %vm45_vm7 = vcmask 261248  }
   0x6   :  { %v2_v7 = vld [vmem:[%s141_s0] ss:$8 sm:$0xf]  }
   0x7   :  { %4 = vst.msk [vmem:[#allocation0] ss:$8 sm:$0xf] %vm3_vm0, %v2_v7  }
   0xa   :  { %13 = vrot.lane.b32.xlu0 %v72_v3, %s91_s19  ;;  %25 = vrot.lane.b32.xlu1 %v74_v4, %s92_s20 }
   0xb   :  { %37 = vrot.lane.b32.xlu2 %v76_v5, %s93_s23 }
  0x12   :  { %43 = vrot.lane.b32.xlu0 %v77_v6, %s94_s26 }
  0x5d   :  { %v32_v8 = vpop.permute.xlu2 %31  }
  0x65   :  { %v38_v9 = vpop.permute.xlu2 %37  }
  0x74   :  { %v8_v10 = vpop.permute.xlu0 %7   ;;  %v20_v11 = vpop.permute.xlu1 %19  }
  0x75   :  { %10 = vst.msk [vmem:[#allocation0] ss:$8 sm:$0x7] %vm9_vm1, %v8_v10  }
  0x7c   :  { %v14_v12 = vpop.permute.xlu0 %13   ;;  %v26_v13 = vpop.permute.xlu1 %25  }
  0x7d   :  { %16 = vst.msk [vmem:[#allocation0] ss:$8 sm:$0x7] %vm15_vm2, %v14_v12  }
  0x7e   :  { %22 = vst.msk [vmem:[#allocation0] ss:$8 sm:$0x7] %vm21_vm3, %v20_v11  }
  0x7f   :  { %28 = vst.msk [vmem:[#allocation0] ss:$8 sm:$0x7] %vm27_vm4, %v26_v13  }
  0x80   :  { %34 = vst.msk [vmem:[#allocation0] ss:$8 sm:$0xf] %vm33_vm5, %v32_v8  }
  0x81   :  { %40 = vst.msk [vmem:[#allocation0] ss:$8 sm:$0xf] %vm39_vm6, %v38_v9  }
  0x84   :  { %v44_v14 = vpop.permute.xlu0 %43  }
  0x85   :  { %46 = vst.msk [vmem:[#allocation0] ss:$8 sm:$0xf] %vm45_vm7, %v44_v14  }
  0x8c   :  { %v49_v15 = vld [vmem:[#allocation0] sm:$0x1]  ;;  %v54_v16 = vld [vmem:[#allocation0 + $0x8] sm:$0x1]  ;;  %v60_v17 = vld [vmem:[#allocation0 + $0x10] sm:$0x1] }
  0x8d   :  { %52 = vst [vmem:[%s142_s1] sm:$0x1] %v49_v15  ;;  %v66_v18 = vld [vmem:[#allocation0 + $0x18] sm:$0x1] }
  0x8e   :  { %78 = vst [vmem:[%s142_s1 + $0x1] sm:$0x1] %v54_v16 }
  0x8f   :  { %79 = vst [vmem:[%s142_s1 + $0x2] sm:$0x1] %v60_v17 }
  0x90   :  { %80 = vst [vmem:[%s142_s1 + $0x3] sm:$0x1] %v66_v18 }

// kernel: tile.28
= control target key start
LH: loop header
LB: loop body
LE: loop exit
PB: predicated region body
PF: predicated region fallthrough
CT: control target
= control target key end

     0   :  { %s40_s0 = inlined_call_operand.vmem [shape: f32[16], index: 0, kind: input, shape index: {}]   ;;  %s41_s1 = inlined_call_operand.vmem [shape: f32[28,16], index: 1, kind: output, shape index: {}]  }
   0x1   :  { %v4_v0 = vld [vmem:[%s40_s0] ss:$0 sm:$0xff] }
   0x2   :  { %5 = vst [vmem:[%s41_s1] sm:$0xff] %v4_v0 }
   0x3   :  { %12 = vst [vmem:[%s41_s1 + $0x8] sm:$0xff] %v4_v0 }
   0x4   :  { %13 = vst [vmem:[%s41_s1 + $0x10] sm:$0xff] %v4_v0 }
   0x5   :  { %14 = vst [vmem:[%s41_s1 + $0x18] sm:$0xff] %v4_v0 }

// kernel: forward.1
= control target key start
LH: loop header
LB: loop body
LE: loop exit
PB: predicated region body
PF: predicated region fallthrough
CT: control target
= control target key end

     0   :  { %18 = vsyncpa [#allocation3], 0  ;;  %vm67_vm0 = vcmask 1041408   ;;  %vm71_vm1 = vcmask 1043458   ;;  %vm125_vm2 = vsmask.f32 1280  ;;  %s24233_s0 = inlined_call_operand.vmem [shape: bf16[2,32,32], index: 0, kind: input, shape index: {}]   ;;  %s24234_s1 = inlined_call_operand.vmem [shape: bf16[5,32,448], index: 1, kind: input, shape index: {}]   ;;  %s24235_s2 = inlined_call_operand.vmem [shape: f32[1,448], index: 2, kind: input, shape index: {}]   ;;  %s24236_s3 = inlined_call_operand.vmem [shape: f32[1,448], index: 3, kind: input, shape index: {}]   ;;  %s24237_s4 = inlined_call_operand.vmem [shape: bf16[5,448,448], index: 4, kind: input, shape index: {}]   ;;  %s24238_s5 = inlined_call_operand.vmem [shape: f32[1,448], index: 5, kind: input, shape index: {}]   ;;  %s24239_s6 = inlined_call_operand.vmem [shape: f32[1,448], index: 6, kind: input, shape index: {}]   ;;  %s24240_s7 = inlined_call_operand.vmem [shape: bf16[7,448,4], index: 7, kind: input, shape index: {}]   ;;  %s24241_s8 = inlined_call_operand.vmem [shape: f32[1,4], index: 8, kind: input, shape index: {}]   ;;  %s24242_s9 = inlined_call_operand.vmem [shape: f32[1,10], index: 9, kind: input, shape index: {}]   ;;  %s24243_s10 = inlined_call_operand.vmem [shape: f32[1,10], index: 10, kind: input, shape index: {}]   ;;  %s24244_s11 = inlined_call_operand.hbm [shape: f32[2,10], index: 11, kind: output, shape index: {0}]   ;;  %s24245_s12 = inlined_call_operand.hbm [shape: f32[2,10], index: 12, kind: output, shape index: {1}]  }
   0x1   :  { %v11436_v0 = vld [vmem:[%s24234_s1 + $0x60] sm:$0xf]  ;;  %v15793_v1 = vld [vmem:[%s24234_s1 + $0x6c] sm:$0xf0]  ;;  %v15791_v2 = vld [vmem:[%s24234_s1 + $0x64] sm:$0xf] }
   0x2   :  { %v11437_v3 = vor.u32 %v15793_v1, %v11436_v0  ;;  %v11438_v4 = vld [vmem:[%s24234_s1 + $0x70] sm:$0xf0]  ;;  %v11444_v5 = vld [vmem:[%s24234_s1 + $0x68] sm:$0xf]  ;;  %v15794_v6 = vld [vmem:[%s24234_s1 + $0x74] sm:$0xf0] }
   0x3   :  { %v11441_v7 = vor.u32 %v15791_v2, %v11438_v4  ;;  %v11445_v8 = vor.u32 %v15794_v6, %v11444_v5  ;;  %v15792_v9 = vld [vmem:[%s24234_s1 + $0x6c] sm:$0xf]  ;;  %v11446_v10 = vld [vmem:[%s24234_s1 + $0x78] sm:$0xf0]  ;;  %v11420_v11 = vld [vmem:[%s24234_s1 + $0x40] sm:$0xf] }
   0x4   :  { %375 = vmatpush.bf16.msra.mxu0 %v11437_v3  ;;  %v11449_v12 = vor.u32 %v15792_v9, %v11446_v10  ;;  %v15789_v13 = vld [vmem:[%s24234_s1 + $0x4c] sm:$0xf0]  ;;  %v15787_v14 = vld [vmem:[%s24234_s1 + $0x44] sm:$0xf]  ;;  %v11422_v15 = vld [vmem:[%s24234_s1 + $0x50] sm:$0xf0] }
   0x5   :  { %403 = vmatpush.bf16.msra.mxu1 %v11441_v7  ;;  %431 = vmatpush.bf16.msra.mxu2 %v11445_v8  ;;  %v11421_v16 = vor.u32 %v15789_v13, %v11420_v11  ;;  %v11425_v17 = vor.u32 %v15787_v14, %v11422_v15  ;;  %v11428_v18 = vld [vmem:[%s24234_s1 + $0x48] sm:$0xf]  ;;  %v15790_v19 = vld [vmem:[%s24234_s1 + $0x54] sm:$0xf0]  ;;  %v15788_v20 = vld [vmem:[%s24234_s1 + $0x4c] sm:$0xf] }
   0x6   :  { %459 = vmatpush.bf16.msra.mxu3 %v11449_v12  ;;  %v11429_v21 = vor.u32 %v15790_v19, %v11428_v18  ;;  %v11430_v22 = vld [vmem:[%s24234_s1 + $0x58] sm:$0xf0]  ;;  %v16876_v23 = vld [vmem:[%s24233_s0] sm:$0xf]  ;;  %v16881_v24 = vld [vmem:[%s24233_s0 + $0x4] sm:$0xf] }
   0x7   :  { %v11433_v25 = vor.u32 %v15788_v20, %v11430_v22  ;;  %v16886_v26 = vld [vmem:[%s24233_s0 + $0x8] sm:$0xf]  ;;  %v59_v27 = vrot.slane %v16876_v23, 2  ;;  %v60_v28 = vrot.slane %v16881_v24, 2  ;;  %vm126_vm3 = vsmask.f32 3336 }
   0x8   :  { %376 = vmatpush.bf16.msra.mxu0 %v11421_v16  ;;  %v61_v29 = vrot.slane %v16886_v26, 2  ;;  %vm128_vm4 = vsmask.f32 5392  ;;  %vm127_vm5 = vmor %vm125_vm2, %vm126_vm3  ;;  %vm130_vm6 = vsmask.f32 7448 }
   0x9   :  { %404 = vmatpush.bf16.msra.mxu1 %v11425_v17  ;;  %432 = vmatpush.bf16.msra.mxu2 %v11429_v21  ;;  %v16893_v30 = vsel %vm67_vm0, %v16876_v23, %v59_v27  ;;  %v72_v31 = vsel %vm71_vm1, %v16876_v23, %v59_v27  ;;  %v16899_v32 = vsel %vm67_vm0, %v16881_v24, %v60_v28  ;;  %v16917_v40 = vld [vmem:[%s24233_s0 + $0xc] sm:$0xf]  ;;  %v16926_v45 = vld [vmem:[%s24233_s0 + $0x10] sm:$0xf]  ;;  %v16931_v46 = vld [vmem:[%s24233_s0 + $0x14] sm:$0xf] }
   0xa   :  { %460 = vmatpush.bf16.msra.mxu3 %v11433_v25  ;;  %v16901_v33 = vrot.slane %v72_v31, 2  ;;  %v78_v34 = vsel %vm71_vm1, %v16881_v24, %v60_v28  ;;  %v16907_v35 = vsel %vm67_vm0, %v16886_v26, %v61_v29  ;;  %v132_v37 = vshrl.u32 %v16893_v30, 16  ;;  %vm129_vm7 = vmor %vm127_vm5, %vm128_vm4 }
   0xb   :  { %v16909_v36 = vrot.slane %v78_v34, 2  ;;  %v135_v38 = vshll.u32 %v16893_v30, 16  ;;  %v150_v39 = vshll.u32 %v16899_v32, 16  ;;  %v154_v43 = vshrl.u32 %v16899_v32, 16 }
   0xc   :  { %v141_v41 = vshll.u32 %v16901_v33, 16  ;;  %v145_v42 = vshrl.u32 %v16901_v33, 16  ;;  %v169_v44 = vshll.u32 %v16907_v35, 16  ;;  %v134_v47 = vrot.slane %v132_v37, 6 }
   0xd   :  { %v137_v48 = vrot.slane %v135_v38, 7  ;;  %v152_v49 = vrot.slane %v150_v39, 7  ;;  %v160_v50 = vshll.u32 %v16909_v36, 16  ;;  %v156_v53 = vrot.slane %v154_v43, 6 }
   0xe   :  { %v143_v51 = vrot.slane %v141_v41, 7  ;;  %v147_v52 = vrot.slane %v145_v42, 6  ;;  %v164_v54 = vshrl.u32 %v16909_v36, 16 }
   0xf   :  { %v138_v55 = vor.u32 %v137_v48, %v134_v47  ;;  %v162_v56 = vrot.slane %v160_v50, 7 }
  0x10   :  { %19 = vsyncpa [#allocation5], 0  ;;  %v148_v58 = vor.u32 %v147_v52, %v143_v51  ;;  %v157_v59 = vor.u32 %v156_v53, %v152_v49  ;;  %v166_v60 = vrot.slane %v164_v54, 6  ;;  %v16958_v61 = vld [vmem:[%s24233_s0 + $0x18] sm:$0xf]  ;;  %v62_v62 = vrot.slane %v16917_v40, 2 }
  0x11   :  { %vm16949_vm8 = vmor %vm129_vm7, %vm130_vm6  ;;  %v139_v63 = vrot.slane %v138_v55, 2  ;;  %v171_v0 = vrot.slane %v169_v44, 7  ;;  %v63_v1 = vrot.slane %v16926_v45, 2  ;;  %v64_v2 = vrot.slane %v16931_v46, 2  ;;  %s11396_s30 = sshll.u32 %s24245_s12, 4  ;;  %s11385_s13 = sshll.u32 %s24244_s11, 4  ;;  %s11397_s30 = int_to_ptr.hbm [resolvable:$true] %s11396_s30  ;;  %s11386_s13 = int_to_ptr.hbm [resolvable:$true] %s11385_s13 }
  0x12   :  { %v149_v3 = vrot.slane %v148_v58, 2  ;;  %v158_v4 = vrot.slane %v157_v59, 2  ;;  %v167_v5 = vor.u32 %v166_v60, %v162_v56  ;;  %v84_v6 = vsel %vm71_vm1, %v16886_v26, %v61_v29 }
  0x13   :  { %v144_v7 = vsel %vm16949_vm8, %v139_v63, %v143_v51  ;;  %v65_v8 = vrot.slane %v16958_v61, 2  ;;  %v16970_v9 = vrot.slane %v84_v6, 2  ;;  %v16974_v10 = vsel %vm67_vm0, %v16917_v40, %v62_v62 }
  0x14   :  { %v153_v11 = vsel %vm16949_vm8, %v149_v3, %v152_v49  ;;  %v163_v12 = vsel %vm16949_vm8, %v158_v4, %v162_v56  ;;  %v168_v13 = vrot.slane %v167_v5, 2  ;;  %282 = vst [vmem:[#allocation1] ss:$4 sm:$0xff] %v144_v7  ;;  %vm24304_vm9 = vcmask 261120  }
  0x15   :  { %v93_v14 = vsel %vm71_vm1, %v16926_v45, %v63_v1  ;;  %285 = vst [vmem:[#allocation1 + $0x1] ss:$4 sm:$0xff] %v153_v11  ;;  %v16984_v15 = vsel %vm67_vm0, %v16926_v45, %v63_v1  ;;  %v16990_v17 = vsel %vm67_vm0, %v16931_v46, %v64_v2  ;;  %v99_v18 = vsel %vm71_vm1, %v16931_v46, %v64_v2 }
  0x16   :  { %v16986_v16 = vrot.slane %v93_v14, 2  ;;  %v172_v19 = vsel %vm16949_vm8, %v168_v13, %v171_v0  ;;  %288 = vst [vmem:[#allocation1 + $0x2] ss:$4 sm:$0xff] %v163_v12  ;;  %v16996_v20 = vrot.slane %v99_v18, 2  ;;  %v105_v21 = vsel %vm71_vm1, %v16958_v61, %v65_v8 }
  0x17   :  { %v119_v22 = vsel %vm71_vm1, %v16917_v40, %v62_v62  ;;  %291 = vst [vmem:[#allocation1 + $0x3] ss:$4 sm:$0xff] %v172_v19  ;;  %v17002_v25 = vrot.slane %v105_v21, 2  ;;  %v173_v28 = vshrl.u32 %v16907_v35, 16  ;;  %v179_v29 = vshll.u32 %v16970_v9, 16 }
  0x18   :  { %v17004_v27 = vrot.slane %v119_v22, 2  ;;  %v183_v31 = vshrl.u32 %v16970_v9, 16  ;;  %v188_v34 = vshll.u32 %v16974_v10, 16  ;;  %v192_v38 = vshrl.u32 %v16974_v10, 16 }
  0x19   :  { %v202_v47 = vshrl.u32 %v16984_v15, 16  ;;  %v175_v48 = vrot.slane %v173_v28, 6  ;;  %v181_v49 = vrot.slane %v179_v29, 7  ;;  %v205_v52 = vshll.u32 %v16984_v15, 16 }
  0x1a   :  { %v198_v51 = vshll.u32 %v17004_v27, 16  ;;  %v185_v53 = vrot.slane %v183_v31, 6  ;;  %v190_v55 = vrot.slane %v188_v34, 7  ;;  %v194_v56 = vrot.slane %v192_v38, 6 }
  0x1b   :  { %v204_v58 = vrot.slane %v202_v47, 6  ;;  %v176_v59 = vor.u32 %v175_v48, %v171_v0  ;;  %v207_v62 = vrot.slane %v205_v52, 7  ;;  %v211_v63 = vshll.u32 %v16986_v16, 16 }
  0x1c   :  { %v200_v60 = vrot.slane %v198_v51, 7  ;;  %v186_v1 = vor.u32 %v185_v53, %v181_v49  ;;  %v195_v2 = vor.u32 %v194_v56, %v190_v55  ;;  %v215_v3 = vshrl.u32 %v16986_v16, 16  ;;  %v11492_v56 = vld [vmem:[%s24234_s1 + $0x28] sm:$0xf] }
  0x1d   :  { %v24248_v4 = vshll.u32 %v16990_v17, 16  ;;  %v177_v5 = vrot.slane %v176_v59, 2  ;;  %v208_v6 = vor.u32 %v207_v62, %v204_v58  ;;  %v213_v7 = vrot.slane %v211_v63, 7  ;;  %v15786_v58 = vld [vmem:[%s24234_s1 + $0x34] sm:$0xf0] }
  0x1e   :  { %v24252_v11 = vshrl.u32 %v16990_v17, 16  ;;  %v304_v0 = vld.sshfl [vmem:[#allocation1] sm:$0xff pattern:$0x73625140]  ;;  %v17036_v12 = vsel %vm67_vm0, %v16958_v61, %v65_v8  ;;  %v187_v13 = vrot.slane %v186_v1, 2  ;;  %v196_v14 = vrot.slane %v195_v2, 2 }
  0x1f   :  { %v217_v18 = vrot.slane %v215_v3, 6  ;;  %11450 = vmatmul.msk.bf16.vlgmr.msra.gmra.mxu0 %vm24304_vm9, %v304_v0  ;;  %11454 = vmatmul.msk.bf16.vlgmr.msra.gmra.mxu1 %vm24304_vm9, %v304_v0  ;;  %v182_v19 = vsel %vm16949_vm8, %v177_v5, %v181_v49  ;;  %v209_v21 = vrot.slane %v208_v6, 2  ;;  %v222_v22 = vrot.slane %v24248_v4, 7 }
  0x20   :  { %v226_v8 = vrot.slane %v24252_v11, 6  ;;  %11458 = vmatmul.msk.bf16.vlgmr.msra.gmra.mxu2 %vm24304_vm9, %v304_v0  ;;  %11462 = vmatmul.msk.bf16.vlgmr.msra.gmra.mxu3 %vm24304_vm9, %v304_v0  ;;  %v191_v48 = vsel %vm16949_vm8, %v187_v13, %v190_v55  ;;  %v201_v52 = vsel %vm16949_vm8, %v196_v14, %v200_v60  ;;  %v24247_v49 = vshll.u32 %v16996_v20, 16  ;;  %294 = vst [vmem:[#allocation1 + $0x20] ss:$4 sm:$0xff] %v182_v19  ;;  %v15784_v60 = vld [vmem:[%s24234_s1 + $0x2c] sm:$0xf] }
  0x21   :  { %v218_v53 = vor.u32 %v217_v18, %v213_v7  ;;  %v214_v59 = vsel %vm16949_vm8, %v209_v21, %v213_v7  ;;  %v24251_v55 = vshrl.u32 %v16996_v20, 16  ;;  %v24246_v1 = vshll.u32 %v17036_v12, 16  ;;  %297 = vst [vmem:[#allocation1 + $0x21] ss:$4 sm:$0xff] %v191_v48  ;;  %v17075_v7 = vld [vmem:[%s24233_s0 + $0x1c] sm:$0xf] }
  0x22   :  { %v227_v62 = vor.u32 %v226_v8, %v222_v22  ;;  %v232_v5 = vrot.slane %v24247_v49, 7  ;;  %v24250_v6 = vshrl.u32 %v17036_v12, 16  ;;  %v24249_v0 = vshll.u32 %v17002_v25, 16  ;;  %300 = vst [vmem:[#allocation1 + $0x22] ss:$4 sm:$0xff] %v201_v52 }
  0x23   :  { %v219_v2 = vrot.slane %v218_v53, 2  ;;  %v236_v14 = vrot.slane %v24251_v55, 6  ;;  %v241_v18 = vrot.slane %v24246_v1, 7  ;;  %v11493_v19 = vor.u32 %v15786_v58, %v11492_v56  ;;  %303 = vst [vmem:[#allocation1 + $0x23] ss:$4 sm:$0xff] %v214_v59 }
  0x24   :  { %v228_v13 = vrot.slane %v227_v62, 2  ;;  %v245_v8 = vrot.slane %v24250_v6, 6  ;;  %v251_v48 = vrot.slane %v24249_v0, 7  ;;  %v11494_v53 = vld [vmem:[%s24234_s1 + $0x38] sm:$0xf0]  ;;  %vm24257_vm10 = vcmask 1040384  }
  0x25   :  { %v223_v21 = vsel %vm16949_vm8, %v219_v2, %v222_v22  ;;  %v237_v1 = vor.u32 %v236_v14, %v232_v5  ;;  %616 = vmatpush.bf16.msrb.mxu2 %v11493_v19  ;;  %v11497_v52 = vor.u32 %v15784_v60, %v11494_v53  ;;  %v15783_v22 = vld [vmem:[%s24234_s1 + $0x24] sm:$0xf]  ;;  %v11486_v56 = vld [vmem:[%s24234_s1 + $0x30] sm:$0xf0]  ;;  %v11484_v2 = vld [vmem:[%s24234_s1 + $0x20] sm:$0xf] }
  0x26   :  { %v233_v62 = vsel %vm16949_vm8, %v228_v13, %v232_v5  ;;  %307 = vst [vmem:[#allocation1] ss:$4 sm:$0xff] %v223_v21  ;;  %v246_v58 = vor.u32 %v245_v8, %v241_v18  ;;  %v11489_v59 = vor.u32 %v15783_v22, %v11486_v56  ;;  %v15785_v5 = vld [vmem:[%s24234_s1 + $0x2c] sm:$0xf0]  ;;  %v66_v14 = vrot.slane %v17075_v7, 2 }
  0x27   :  { %309 = vst [vmem:[#allocation1 + $0x1] ss:$4 sm:$0xff] %v233_v62  ;;  %v238_v60 = vrot.slane %v237_v1, 2  ;;  %644 = vmatpush.bf16.msrb.mxu3 %v11497_v52  ;;  %v11485_v13 = vor.u32 %v15785_v5, %v11484_v2  ;;  %v24256_v19 = vshrl.u32 %v17002_v25, 16  ;;  %vm24258_vm11 = vcmask 1042434  }
  0x28   :  { %v247_v21 = vrot.slane %v246_v58, 2  ;;  %588 = vmatpush.bf16.msrb.mxu1 %v11489_v59  ;;  %v17110_v53 = vsel %vm67_vm0, %v17075_v7, %v66_v14  ;;  %v122_v62 = vsel %vm71_vm1, %v17075_v7, %v66_v14  ;;  %vm676_vm12 = vmor %vm24257_vm10, %vm24258_vm11  ;;  %vm677_vm13 = vcmask 1044484   ;;  %v15796_v0 = vld [vmem:[%s24234_s1 + $0x8c] sm:$0xf] }
  0x29   :  { %v242_v8 = vsel %vm16949_vm8, %v238_v60, %v241_v18  ;;  %560 = vmatpush.bf16.msrb.mxu0 %v11485_v13  ;;  %v255_v1 = vrot.slane %v24256_v19, 6  ;;  %v17118_v22 = vrot.slane %v122_v62, 2  ;;  %v24254_v56 = vshll.u32 %v17110_v53, 16  ;;  %v11468_v62 = vld [vmem:[%s24234_s1] sm:$0xf]  ;;  %vm678_vm14 = vmor %vm676_vm12, %vm677_vm13 }
  0x2a   :  { %v252_v52 = vsel %vm16949_vm8, %v247_v21, %v251_v48  ;;  %311 = vst [vmem:[#allocation1 + $0x2] ss:$4 sm:$0xff] %v242_v8  ;;  %v24255_v18 = vshrl.u32 %v17110_v53, 16  ;;  %v305_v59 = vld.sshfl [vmem:[#allocation1 + $0x20] sm:$0xff pattern:$0x73625140] }
  0x2b   :  { %313 = vst [vmem:[#allocation1 + $0x3] ss:$4 sm:$0xff] %v252_v52  ;;  %v256_v58 = vor.u32 %v255_v1, %v251_v48  ;;  %v260_v2 = vrot.slane %v24254_v56, 7  ;;  %v24253_v60 = vshll.u32 %v17118_v22, 16  ;;  %v15781_v1 = vld [vmem:[%s24234_s1 + $0xc] sm:$0xf0] }
  0x2c   :  { %v264_v5 = vrot.slane %v24255_v18, 6  ;;  %v15779_v52 = vld [vmem:[%s24234_s1 + $0x4] sm:$0xf]  ;;  %vm24259_vm15 = vcmask 1046534   ;;  %v720_v11 = vrot.slane %v17110_v53, 7 }
  0x2d   :  { %v257_v13 = vrot.slane %v256_v58, 2  ;;  %v270_v8 = vrot.slane %v24253_v60, 7  ;;  %v11470_v58 = vld [vmem:[%s24234_s1 + $0x10] sm:$0xf0]  ;;  %vm17223_vm2 = vmor %vm678_vm14, %vm24259_vm15  ;;  %vm961_vm3 = vsmask.f32 256 }
  0x2e   :  { %v265_v14 = vor.u32 %v264_v5, %v260_v2  ;;  %v11473_v5 = vor.u32 %v15779_v52, %v11470_v58  ;;  %v11478_v52 = vld [vmem:[%s24234_s1 + $0x18] sm:$0xf0]  ;;  %v722_v56 = vrot.slane %v720_v11, 2  ;;  %vm962_vm4 = vsmask.f32 2312 }
  0x2f   :  { %11451 = vmatmul.msk.bf16.gmra.mxu0 %vm24304_vm9, %v305_v59  ;;  %11455 = vmatmul.msk.bf16.gmra.mxu1 %vm24304_vm9, %v305_v59  ;;  %v261_v21 = vsel %vm16949_vm8, %v257_v13, %v260_v2  ;;  %v11469_v2 = vor.u32 %v15781_v1, %v11468_v62  ;;  %v11476_v13 = vld [vmem:[%s24234_s1 + $0x8] sm:$0xf]  ;;  %vm963_vm5 = vmor %vm961_vm3, %vm962_vm4  ;;  %vm964_vm6 = vsmask.f32 4368  ;;  %vm3233_vm14 = vsmask.f32 1284 }
  0x30   :  { %11459 = vmatmul.msk.bf16.gmra.mxu2 %vm24304_vm9, %v305_v59  ;;  %11463 = vmatmul.msk.bf16.gmra.mxu3 %vm24304_vm9, %v305_v59  ;;  %v266_v48 = vrot.slane %v265_v14, 2  ;;  %315 = vst [vmem:[#allocation1 + $0x20] ss:$4 sm:$0xff] %v261_v21  ;;  %v15782_v14 = vld [vmem:[%s24234_s1 + $0x14] sm:$0xf0]  ;;  %vm965_vm7 = vmor %vm963_vm5, %vm964_vm6 }
  0x31   :  { %v15780_v21 = vld [vmem:[%s24234_s1 + $0xc] sm:$0xf]  ;;  %561 = vmatpush.bf16.msrb.mxu0 %v11469_v2  ;;  %589 = vmatpush.bf16.msrb.mxu1 %v11473_v5  ;;  %v11477_v1 = vor.u32 %v15782_v14, %v11476_v13  ;;  %v11552_v2 = vld [vmem:[%s24234_s1 + $0xb8] sm:$0xf0]  ;;  %v11544_v5 = vld [vmem:[%s24234_s1 + $0xb0] sm:$0xf0] }
  0x32   :  { %v318_v59 = vld.sshfl [vmem:[#allocation1] sm:$0xff pattern:$0x73625140]  ;;  %v271_v62 = vsel %vm16949_vm8, %v266_v48, %v270_v8  ;;  %v11481_v58 = vor.u32 %v15780_v21, %v11478_v52  ;;  %v11550_v48 = vld [vmem:[%s24234_s1 + $0xa8] sm:$0xf]  ;;  %v683_v52 = vrot.slane %v16901_v33, 7  ;;  %vm3234_vm5 = vmor %vm961_vm3, %vm3233_vm14 }
  0x33   :  { %481 = vst [vmem:[#allocation1] ss:$4 sm:$0xff] %v16893_v30  ;;  %617 = vmatpush.bf16.msrb.mxu2 %v11477_v1  ;;  %v15802_v8 = vld [vmem:[%s24234_s1 + $0xb4] sm:$0xf0]  ;;  %v11542_v21 = vld [vmem:[%s24234_s1 + $0xa0] sm:$0xf] }
  0x34   :  { %483 = vst [vmem:[#allocation1 + $0x1] ss:$4 sm:$0xff] %v16901_v33  ;;  %645 = vmatpush.bf16.msrb.mxu3 %v11481_v58  ;;  %v686_v58 = vrot.slane %v16899_v32, 7  ;;  %vm966_vm8 = vsmask.f32 6424  ;;  %vm2791_vm14 = vcmask 1043459  }
  0x35   :  { %485 = vst [vmem:[#allocation1 + $0x2] ss:$4 sm:$0xff] %v16899_v32  ;;  %vm17377_vm12 = vmor %vm965_vm7, %vm966_vm8  ;;  %vm3239_vm10 = vsmask.f32 5396 }
  0x36   :  { %487 = vst [vmem:[#allocation1 + $0x3] ss:$4 sm:$0xff] %v16909_v36  ;;  %vm3235_vm7 = vmor %vm3234_vm5, %vm962_vm4  ;;  %vm24309_vm5 = vcmask 1047559  }
  0x37   :  { %317 = vst [vmem:[#allocation1 + $0x21] ss:$4 sm:$0xff] %v271_v62  ;;  %v15801_v62 = vld [vmem:[%s24234_s1 + $0xac] sm:$0xf0] }
  0x38   :  { %v11543_v1 = vor.u32 %v15801_v62, %v11542_v21  ;;  %v11526_v62 = vld [vmem:[%s24234_s1 + $0x80] sm:$0xf] }
  0x3a   :  { %827 = vmatpush.bf16.msra.mxu0 %v11543_v1  ;;  %v15797_v1 = vld [vmem:[%s24234_s1 + $0x8c] sm:$0xf0] }
  0x3d   :  { %v496_v49 = vld.sshfl [vmem:[#allocation1] sm:$0xff pattern:$0x73625140] }
  0x3e   :  { %v319_v4 = vld.sshfl [vmem:[#allocation1 + $0x20] sm:$0xff pattern:$0x73625140]  ;;  %498 = vst [vmem:[#allocation1] ss:$4 sm:$0xff] %v16986_v16 }
  0x3f   :  { %11452 = vmatmul.msk.bf16.gmra.mxu0 %vm24304_vm9, %v318_v59  ;;  %11456 = vmatmul.msk.bf16.gmra.mxu1 %vm24304_vm9, %v318_v59  ;;  %489 = vst [vmem:[#allocation1 + $0x20] ss:$4 sm:$0xff] %v16907_v35 }
  0x40   :  { %11460 = vmatmul.msk.bf16.gmra.mxu2 %vm24304_vm9, %v318_v59  ;;  %11464 = vmatmul.msk.bf16.gmra.mxu3 %vm24304_vm9, %v318_v59  ;;  %491 = vst [vmem:[#allocation1 + $0x21] ss:$4 sm:$0xff] %v16970_v9  ;;  %v11551_v59 = vor.u32 %v15802_v8, %v11550_v48  ;;  %v689_v48 = vrot.slane %v16909_v36, 7  ;;  %v11514_v8 = vrot.slane %v16893_v30, 9  ;;  %v11584_v36 = vld [vmem:[%s24234_s1 + $0xc0] sm:$0xf] }
  0x41   :  { %493 = vst [vmem:[#allocation1 + $0x22] ss:$4 sm:$0xff] %v16974_v10 }
  0x42   :  { %495 = vst [vmem:[#allocation1 + $0x23] ss:$4 sm:$0xff] %v16984_v15  ;;  %883 = vmatpush.bf16.msra.mxu2 %v11551_v59  ;;  %v688_v59 = vrot.slane %v686_v58, 2 }
  0x43   :  { %499 = vst [vmem:[#allocation1 + $0x1] ss:$4 sm:$0xff] %v16990_v17 }
  0x44   :  { %500 = vst [vmem:[#allocation1 + $0x2] ss:$4 sm:$0xff] %v16996_v20  ;;  %v690_v21 = vsel %vm17223_vm2, %v688_v59, %v689_v48  ;;  %v15798_v59 = vld [vmem:[%s24234_s1 + $0x94] sm:$0xf0] }
  0x45   :  { %501 = vst [vmem:[#allocation1 + $0x3] ss:$4 sm:$0xff] %v17036_v12 }
  0x49   :  { %v497_v57 = vld.sshfl [vmem:[#allocation1 + $0x20] sm:$0xff pattern:$0x73625140] }
  0x4a   :  { %502 = vst [vmem:[#allocation1 + $0x20] ss:$4 sm:$0xff] %v17002_v25 }
  0x4b   :  { %503 = vst [vmem:[#allocation1 + $0x21] ss:$4 sm:$0xff] %v17110_v53 }
  0x4f   :  { %11453 = vmatmul.msk.bf16.gmra.mxu0 %vm24304_vm9, %v319_v4  ;;  %11457 = vmatmul.msk.bf16.gmra.mxu1 %vm24304_vm9, %v319_v4 }
  0x50   :  { %11461 = vmatmul.msk.bf16.gmra.mxu2 %vm24304_vm9, %v319_v4  ;;  %11465 = vmatmul.msk.bf16.gmra.mxu3 %vm24304_vm9, %v319_v4  ;;  %v15800_v4 = vld [vmem:[%s24234_s1 + $0xac] sm:$0xf] }
  0x51   :  { %v11555_v13 = vor.u32 %v15800_v4, %v11552_v2  ;;  %v685_v4 = vrot.slane %v683_v52, 2  ;;  %v691_v2 = vrot.slane %v689_v48, 2  ;;  %v11528_v48 = vld [vmem:[%s24234_s1 + $0x90] sm:$0xf0] }
  0x53   :  { %911 = vmatpush.bf16.msra.mxu3 %v11555_v13  ;;  %v684_v13 = vsel %vm17223_vm2, %v11514_v8, %v683_v52  ;;  %v15795_v52 = vld [vmem:[%s24234_s1 + $0x84] sm:$0xf]  ;;  %v11527_v8 = vor.u32 %v15797_v1, %v11526_v62  ;;  %v695_v1 = vrot.slane %v16970_v9, 7 }
  0x55   :  { %828 = vmatpush.bf16.msra.mxu0 %v11527_v8 }
  0x5f   :  { %11498 = vmatmul.msk.bf16.vlgmr.msrb.gmra.mxu0 %vm24304_vm9, %v496_v49  ;;  %11502 = vmatmul.msk.bf16.vlgmr.msrb.gmra.mxu1 %vm24304_vm9, %v496_v49 }
  0x60   :  { %11506 = vmatmul.msk.bf16.vlgmr.msrb.gmra.mxu2 %vm24304_vm9, %v496_v49  ;;  %11510 = vmatmul.msk.bf16.vlgmr.msrb.gmra.mxu3 %vm24304_vm9, %v496_v49  ;;  %v15799_v49 = vld [vmem:[%s24234_s1 + $0xa4] sm:$0xf] }
  0x61   :  { %v11547_v14 = vor.u32 %v15799_v49, %v11544_v5  ;;  %v692_v49 = vrot.slane %v16907_v35, 7  ;;  %v504_v5 = vld.sshfl [vmem:[#allocation1] sm:$0xff pattern:$0x73625140] }
  0x62   :  { %735 = vst [vmem:[#allocation1] ss:$4 sm:$0xff] %v684_v13  ;;  %v11531_v13 = vor.u32 %v15795_v52, %v11528_v48  ;;  %v698_v52 = vrot.slane %v16974_v10, 7  ;;  %v15803_v35 = vld [vmem:[%s24234_s1 + $0xc4] sm:$0xf] }
  0x63   :  { %855 = vmatpush.bf16.msra.mxu1 %v11547_v14  ;;  %v687_v14 = vsel %vm17223_vm2, %v685_v4, %v686_v58  ;;  %v693_v58 = vsel %vm17223_vm2, %v691_v2, %v692_v49  ;;  %v11534_v4 = vld [vmem:[%s24234_s1 + $0x88] sm:$0xf]  ;;  %v11536_v2 = vld [vmem:[%s24234_s1 + $0x98] sm:$0xf0]  ;;  %741 = vst [vmem:[#allocation1 + $0x2] ss:$4 sm:$0xff] %v690_v21 }
  0x64   :  { %738 = vst [vmem:[#allocation1 + $0x1] ss:$4 sm:$0xff] %v687_v14  ;;  %v11535_v14 = vor.u32 %v15798_v59, %v11534_v4  ;;  %v11539_v62 = vor.u32 %v15796_v0, %v11536_v2  ;;  %v694_v48 = vrot.slane %v692_v49, 2  ;;  %v697_v21 = vrot.slane %v695_v1, 2 }
  0x65   :  { %744 = vst [vmem:[#allocation1 + $0x3] ss:$4 sm:$0xff] %v693_v58  ;;  %v700_v8 = vrot.slane %v698_v52, 2  ;;  %v701_v0 = vrot.slane %v17004_v27, 7  ;;  %v11515_v58 = vrot.slane %v16984_v15, 9  ;;  %v705_v4 = vrot.slane %v16986_v16, 7 }
  0x66   :  { %884 = vmatpush.bf16.msra.mxu2 %v11535_v14  ;;  %912 = vmatpush.bf16.msra.mxu3 %v11539_v62  ;;  %v505_v59 = vld.sshfl [vmem:[#allocation1 + $0x20] sm:$0xff pattern:$0x73625140]  ;;  %v708_v62 = vrot.slane %v16990_v17, 7 }
  0x67   :  { %856 = vmatpush.bf16.msra.mxu1 %v11531_v13  ;;  %v696_v13 = vsel %vm17223_vm2, %v694_v48, %v695_v1  ;;  %v702_v14 = vsel %vm17223_vm2, %v700_v8, %v701_v0  ;;  %v706_v49 = vsel %vm17223_vm2, %v11515_v58, %v705_v4  ;;  %v707_v2 = vrot.slane %v705_v4, 2 }
  0x68   :  { %747 = vst [vmem:[#allocation1 + $0x20] ss:$4 sm:$0xff] %v696_v13  ;;  %v711_v1 = vrot.slane %v16996_v20, 7  ;;  %v710_v48 = vrot.slane %v708_v62, 2  ;;  %v717_v0 = vrot.slane %v17002_v25, 7 }
  0x69   :  { %753 = vst [vmem:[#allocation1 + $0x22] ss:$4 sm:$0xff] %v702_v14  ;;  %v709_v13 = vsel %vm17223_vm2, %v707_v2, %v708_v62 }
  0x6a   :  { %756 = vst [vmem:[#allocation1 + $0x23] ss:$4 sm:$0xff] %v706_v49  ;;  %v719_v55 = vrot.slane %v717_v0, 2 }
  0x6c   :  { %v757_v58 = vld.sshfl [vmem:[#allocation1] sm:$0xff pattern:$0x73625140]  ;;  %v721_v60 = vsel %vm17223_vm2, %v719_v55, %v720_v11 }
  0x6d   :  { %760 = vst [vmem:[#allocation1] ss:$4 sm:$0xff] %v709_v13  ;;  %v11610_v13 = vld [vmem:[%s24234_s1 + $0xf8] sm:$0xf0] }
  0x6f   :  { %11499 = vmatmul.msk.bf16.gmra.mxu0 %vm24304_vm9, %v497_v57  ;;  %11503 = vmatmul.msk.bf16.gmra.mxu1 %vm24304_vm9, %v497_v57 }
  0x70   :  { %11507 = vmatmul.msk.bf16.gmra.mxu2 %vm24304_vm9, %v497_v57  ;;  %11511 = vmatmul.msk.bf16.gmra.mxu3 %vm24304_vm9, %v497_v57  ;;  %v974_v57 = vrot.slane %v154_v43, 7 }
  0x7f   :  { %11500 = vmatmul.msk.bf16.gmra.mxu0 %vm24304_vm9, %v504_v5  ;;  %11504 = vmatmul.msk.bf16.gmra.mxu1 %vm24304_vm9, %v504_v5 }
  0x80   :  { %11508 = vmatmul.msk.bf16.gmra.mxu2 %vm24304_vm9, %v504_v5  ;;  %11512 = vmatmul.msk.bf16.gmra.mxu3 %vm24304_vm9, %v504_v5  ;;  %v699_v5 = vsel %vm17223_vm2, %v697_v21, %v698_v52  ;;  %v714_v52 = vrot.slane %v17036_v12, 7  ;;  %v713_v21 = vrot.slane %v711_v1, 2 }
  0x81   :  { %750 = vst [vmem:[#allocation1 + $0x21] ss:$4 sm:$0xff] %v699_v5  ;;  %v712_v5 = vsel %vm17223_vm2, %v710_v48, %v711_v1  ;;  %v11608_v1 = vld [vmem:[%s24234_s1 + $0xe8] sm:$0xf]  ;;  %v15808_v48 = vld [vmem:[%s24234_s1 + $0xec] sm:$0xf] }
  0x82   :  { %v716_v8 = vrot.slane %v714_v52, 2  ;;  %v715_v4 = vsel %vm17223_vm2, %v713_v21, %v714_v52  ;;  %762 = vst [vmem:[#allocation1 + $0x1] ss:$4 sm:$0xff] %v712_v5  ;;  %v15810_v52 = vld [vmem:[%s24234_s1 + $0xf4] sm:$0xf0] }
  0x83   :  { %764 = vst [vmem:[#allocation1 + $0x2] ss:$4 sm:$0xff] %v715_v4  ;;  %v15807_v5 = vld [vmem:[%s24234_s1 + $0xe4] sm:$0xf]  ;;  %v11602_v4 = vld [vmem:[%s24234_s1 + $0xf0] sm:$0xf0] }
  0x84   :  { %v11605_v6 = vor.u32 %v15807_v5, %v11602_v4 }
  0x86   :  { %1160 = vmatpush.bf16.msrb.mxu1 %v11605_v6  ;;  %v15809_v6 = vld [vmem:[%s24234_s1 + $0xec] sm:$0xf0] }
  0x8f   :  { %11501 = vmatmul.msk.bf16.gmra.mxu0 %vm24304_vm9, %v505_v59  ;;  %11505 = vmatmul.msk.bf16.gmra.mxu1 %vm24304_vm9, %v505_v59 }
  0x90   :  { %11509 = vmatmul.msk.bf16.gmra.mxu2 %vm24304_vm9, %v505_v59  ;;  %11513 = vmatmul.msk.bf16.gmra.mxu3 %vm24304_vm9, %v505_v59  ;;  %v718_v59 = vsel %vm17223_vm2, %v716_v8, %v717_v0 }
  0x91   :  { %766 = vst [vmem:[#allocation1 + $0x3] ss:$4 sm:$0xff] %v718_v59  ;;  %v11613_v59 = vor.u32 %v15808_v48, %v11610_v13 }
  0x93   :  { %1216 = vmatpush.bf16.msrb.mxu3 %v11613_v59  ;;  %v978_v59 = vrot.slane %v164_v54, 7  ;;  %v975_v54 = vor.u32 %v974_v57, %v150_v39  ;;  %v15805_v39 = vld [vmem:[%s24234_s1 + $0xcc] sm:$0xf0] }
  0x98   :  { %v771_v19 = vld.sshfl [vmem:[#allocation1] sm:$0xff pattern:$0x73625140] }
  0x9c   :  { %v17293_v14 = vpop.f32.mrf.mxu0  ;;  %v17295_v49 = vpop.f32.mrf.mxu1 }
  0x9f   :  { %11556 = vmatmul.msk.bf16.vlgmr.msra.gmra.mxu0 %vm24304_vm9, %v757_v58  ;;  %11560 = vmatmul.msk.bf16.vlgmr.msra.gmra.mxu1 %vm24304_vm9, %v757_v58 }
  0xa0   :  { %11564 = vmatmul.msk.bf16.vlgmr.msra.gmra.mxu2 %vm24304_vm9, %v757_v58  ;;  %11568 = vmatmul.msk.bf16.vlgmr.msra.gmra.mxu3 %vm24304_vm9, %v757_v58  ;;  %v11609_v58 = vor.u32 %v15810_v52, %v11608_v1  ;;  %v723_v1 = vrot.slane %v17118_v22, 7  ;;  %v758_v52 = vld.sshfl [vmem:[#allocation1 + $0x20] sm:$0xff pattern:$0x73625140] }
  0xa1   :  { %768 = vst [vmem:[#allocation1 + $0x20] ss:$4 sm:$0xff] %v721_v60  ;;  %v970_v60 = vrot.slane %v145_v42, 7  ;;  %v11572_v42 = vrot.slane %v132_v37, 9 }
  0xa2   :  { %1188 = vmatpush.bf16.msrb.mxu2 %v11609_v58  ;;  %v724_v18 = vsel %vm17223_vm2, %v722_v56, %v723_v1  ;;  %v11600_v58 = vld [vmem:[%s24234_s1 + $0xe0] sm:$0xf]  ;;  %v17369_v1 = vrot.slane %v173_v28, 7  ;;  %v977_v28 = vrot.slane %v974_v57, 2  ;;  %v11586_v57 = vld [vmem:[%s24234_s1 + $0xd0] sm:$0xf0] }
  0xa3   :  { %v17301_v2 = vpop.f32.mrf.mxu2  ;;  %v17303_v62 = vpop.f32.mrf.mxu3  ;;  %770 = vst [vmem:[#allocation1 + $0x21] ss:$4 sm:$0xff] %v724_v18  ;;  %v11601_v55 = vor.u32 %v15809_v6, %v11600_v58  ;;  %v971_v43 = vor.u32 %v970_v60, %v141_v41  ;;  %v979_v6 = vor.u32 %v978_v59, %v160_v50  ;;  %vm3236_vm2 = vsmask.f32 3340 }
  0xa4   :  { %v17314_v21 = vpop.f32.mrf.mxu0  ;;  %v17316_v8 = vpop.f32.mrf.mxu1  ;;  %v983_v33 = vor.u32 %v17369_v1, %v169_v44  ;;  %vm3237_vm11 = vmor %vm3235_vm7, %vm3236_vm2  ;;  %vm24312_vm2 = vcmask 1045509   ;;  %vm24308_vm7 = vcmask 1041409  }
  0xa5   :  { %1132 = vmatpush.bf16.msrb.mxu0 %v11601_v55  ;;  %v981_v55 = vrot.slane %v978_v59, 2  ;;  %v972_v30 = vsel %vm17377_vm12, %v11572_v42, %v971_v43  ;;  %v980_v32 = vsel %vm17377_vm12, %v977_v28, %v979_v6  ;;  %v11592_v59 = vld [vmem:[%s24234_s1 + $0xc8] sm:$0xf]  ;;  %v15806_v42 = vld [vmem:[%s24234_s1 + $0xd4] sm:$0xf0]  ;;  %vm3238_vm15 = vmor %vm3237_vm11, %vm964_vm6  ;;  %vm24306_vm11 = vcmask 916480  }
  0xa6   :  { %1040 = vst [vmem:[#allocation1] ss:$4 sm:$0xff] %v972_v30  ;;  %v11593_v28 = vor.u32 %v15806_v42, %v11592_v59  ;;  %v15804_v6 = vld [vmem:[%s24234_s1 + $0xcc] sm:$0xf]  ;;  %vm3240_vm3 = vmor %vm3238_vm15, %vm3239_vm10  ;;  %v985_v59 = vrot.slane %v17369_v1, 2  ;;  %vm24305_vm10 = vcmask 392192  }
  0xa7   :  { %v984_v41 = vsel %vm17377_vm12, %v981_v55, %v983_v33  ;;  %v11594_v55 = vld [vmem:[%s24234_s1 + $0xd8] sm:$0xf0]  ;;  %1046 = vst [vmem:[#allocation1 + $0x2] ss:$4 sm:$0xff] %v980_v32  ;;  %v994_v33 = vshrl.u32 %v17004_v27, 16  ;;  %vm17451_vm4 = vmor %vm3240_vm3, %vm966_vm8  ;;  %vm24307_vm15 = vcmask 1045508  }
  0xa8   :  { %v11597_v30 = vor.u32 %v15804_v6, %v11594_v55  ;;  %1049 = vst [vmem:[#allocation1 + $0x3] ss:$4 sm:$0xff] %v984_v41  ;;  %1189 = vmatpush.bf16.msrb.mxu2 %v11593_v28  ;;  %v11573_v28 = vrot.slane %v202_v47, 9  ;;  %v24338_v47 = vshrl.u32 %v17002_v25, 16  ;;  %vm1846_vm6 = vcmask 1045504  }
  0xa9   :  { %vm24310_vm8 = vcmask 1043456   ;;  %vm24427_vm3 = vcmask 1046534  }
  0xaa   :  { %1217 = vmatpush.bf16.msrb.mxu3 %v11597_v30  ;;  %v772_v55 = vld.sshfl [vmem:[#allocation1 + $0x20] sm:$0xff pattern:$0x73625140] }
  0xab   :  { %v17333_v48 = vpop.f32.mrf.mxu2  ;;  %v17335_v0 = vpop.f32.mrf.mxu3 }
  0xac   :  { %v17343_v13 = vpop.f32.mrf.mxu0  ;;  %v17345_v11 = vpop.f32.mrf.mxu1 }
  0xaf   :  { %11557 = vmatmul.msk.bf16.gmra.mxu0 %vm24304_vm9, %v758_v52  ;;  %11561 = vmatmul.msk.bf16.gmra.mxu1 %vm24304_vm9, %v758_v52 }
  0xb0   :  { %11565 = vmatmul.msk.bf16.gmra.mxu2 %vm24304_vm9, %v758_v52  ;;  %11569 = vmatmul.msk.bf16.gmra.mxu3 %vm24304_vm9, %v758_v52  ;;  %v973_v52 = vrot.slane %v970_v60, 2  ;;  %v11585_v60 = vor.u32 %v15805_v39, %v11584_v36  ;;  %v986_v36 = vrot.slane %v183_v31, 7  ;;  %v996_v39 = vrot.slane %v994_v33, 7 }
  0xb1   :  { %v1025_v33 = vshrl.u32 %v17118_v22, 16 }
  0xb2   :  { %v976_v37 = vsel %vm17377_vm12, %v973_v52, %v975_v54  ;;  %v11589_v54 = vor.u32 %v15803_v35, %v11586_v57  ;;  %1133 = vmatpush.bf16.msrb.mxu0 %v11585_v60  ;;  %v1001_v35 = vrot.slane %v215_v3, 7  ;;  %v24335_v57 = vmov 0 }
  0xb3   :  { %v17351_v56 = vpop.f32.mrf.mxu2  ;;  %v17353_v18 = vpop.f32.mrf.mxu3  ;;  %1043 = vst [vmem:[#allocation1 + $0x1] ss:$4 sm:$0xff] %v976_v37  ;;  %v24336_v57 = vsel %vm17451_vm4, 4294967295, %v24335_v57  ;;  %v987_v31 = vor.u32 %v986_v36, %v179_v29 }
  0xb4   :  { %v17359_v5 = vpop.f32.mrf.mxu0  ;;  %v17361_v4 = vpop.f32.mrf.mxu1  ;;  %1161 = vmatpush.bf16.msrb.mxu1 %v11589_v54  ;;  %24337 = vst [vmem:[#allocation8_spill] sm:$0xff] %v24336_v57  ;;  %v997_v54 = vor.u32 %v996_v39, %v198_v51  ;;  %v1002_v6 = vor.u32 %v1001_v35, %v211_v63  ;;  %v1017_v51 = vrot.slane %v24338_v47, 7  ;;  %v24339_v63 = vshrl.u32 %v17110_v53, 16 }
  0xb5   :  { %v988_v1 = vsel %vm17377_vm12, %v985_v59, %v987_v31  ;;  %v1027_v31 = vrot.slane %v1025_v33, 7 }
  0xb6   :  { %v1003_v27 = vsel %vm17377_vm12, %v11573_v28, %v1002_v6  ;;  %1052 = vst [vmem:[#allocation1 + $0x20] ss:$4 sm:$0xff] %v988_v1  ;;  %v1021_v30 = vrot.slane %v24339_v63, 7 }
  0xb7   :  { %1061 = vst [vmem:[#allocation1 + $0x23] ss:$4 sm:$0xff] %v1003_v27 }
  0xb8   :  { %v1024_v59 = vrot.slane %v1021_v30, 2 }
  0xbb   :  { %v17405_v44 = vpop.f32.mrf.mxu2  ;;  %v17407_v50 = vpop.f32.mrf.mxu3 }
  0xbc   :  { %v17418_v43 = vpop.f32.mrf.mxu0  ;;  %v17420_v52 = vpop.f32.mrf.mxu1 }
  0xbf   :  { %11558 = vmatmul.msk.bf16.gmra.mxu0 %vm24304_vm9, %v771_v19  ;;  %11562 = vmatmul.msk.bf16.gmra.mxu1 %vm24304_vm9, %v771_v19 }
  0xc0   :  { %11566 = vmatmul.msk.bf16.gmra.mxu2 %vm24304_vm9, %v771_v19  ;;  %11570 = vmatmul.msk.bf16.gmra.mxu3 %vm24304_vm9, %v771_v19  ;;  %v990_v19 = vrot.slane %v192_v38, 7  ;;  %v989_v38 = vrot.slane %v986_v36, 2  ;;  %v1020_v36 = vrot.slane %v1017_v51, 2 }
  0xc2   :  { %v991_v42 = vor.u32 %v990_v19, %v188_v34  ;;  %v993_v3 = vrot.slane %v990_v19, 2  ;;  %v24340_v19 = vshll.u32 %v17110_v53, 16  ;;  %v24342_v53 = vshrl.u32 %v16990_v17, 16 }
  0xc3   :  { %v17435_v37 = vpop.f32.mrf.mxu2  ;;  %v17437_v32 = vpop.f32.mrf.mxu3 }
  0xc4   :  { %v17446_v41 = vpop.f32.mrf.mxu0  ;;  %v17448_v60 = vpop.f32.mrf.mxu1  ;;  %v992_v9 = vsel %vm17377_vm12, %v989_v38, %v991_v42  ;;  %v998_v10 = vsel %vm17377_vm12, %v993_v3, %v997_v54  ;;  %v1022_v39 = vor.u32 %v1021_v30, %v24340_v19  ;;  %v24341_v42 = vshll.u32 %v17118_v22, 16 }
  0xc5   :  { %1055 = vst [vmem:[#allocation1 + $0x21] ss:$4 sm:$0xff] %v992_v9  ;;  %v1005_v1 = vrot.slane %v24342_v53, 7  ;;  %v24345_v22 = vshll.u32 %v17002_v25, 16  ;;  %v24346_v19 = vshll.u32 %v16990_v17, 16 }
  0xc6   :  { %1058 = vst [vmem:[#allocation1 + $0x22] ss:$4 sm:$0xff] %v998_v10  ;;  %v1023_v38 = vsel %vm17377_vm12, %v1020_v36, %v1022_v39  ;;  %v1028_v3 = vor.u32 %v1027_v31, %v24341_v42  ;;  %v24344_v10 = vshrl.u32 %v17036_v12, 16  ;;  %v1004_v36 = vrot.slane %v1001_v35, 2 }
  0xc7   :  { %v1018_v30 = vor.u32 %v1017_v51, %v24345_v22  ;;  %v1006_v39 = vor.u32 %v1005_v1, %v24346_v19  ;;  %v1008_v31 = vrot.slane %v1005_v1, 2  ;;  %v1062_v51 = vld.sshfl [vmem:[#allocation1] sm:$0xff pattern:$0x73625140] }
  0xc8   :  { %v1013_v27 = vrot.slane %v24344_v10, 7  ;;  %v1029_v33 = vsel %vm17377_vm12, %v1024_v59, %v1028_v3 }
  0xc9   :  { %v1007_v59 = vsel %vm17377_vm12, %v1004_v36, %v1006_v39 }
  0xca   :  { %v1016_v25 = vrot.slane %v1013_v27, 2  ;;  %1065 = vst [vmem:[#allocation1] ss:$4 sm:$0xff] %v1007_v59 }
  0xcb   :  { %v17474_v15 = vpop.f32.mrf.mxu2  ;;  %v17476_v16 = vpop.f32.mrf.mxu3 }
  0xcc   :  { %v17478_v29 = vpop.f32.mrf.mxu0  ;;  %v17480_v34 = vpop.f32.mrf.mxu1 }
  0xcd   :  { %v17497_v54 = vld.sshfl [vmem:[#allocation1 + $0x20] sm:$0xff pattern:$0x73625140] }
  0xce   :  { %1073 = vst [vmem:[#allocation1 + $0x20] ss:$4 sm:$0xff] %v1023_v38  ;;  %v24347_v38 = vshll.u32 %v16996_v20, 16 }
  0xcf   :  { %11559 = vmatmul.msk.bf16.gmra.mxu0 %vm24304_vm9, %v772_v55  ;;  %11563 = vmatmul.msk.bf16.gmra.mxu1 %vm24304_vm9, %v772_v55  ;;  %1075 = vst [vmem:[#allocation1 + $0x21] ss:$4 sm:$0xff] %v1029_v33 }
  0xd0   :  { %11567 = vmatmul.msk.bf16.gmra.mxu2 %vm24304_vm9, %v772_v55  ;;  %11571 = vmatmul.msk.bf16.gmra.mxu3 %vm24304_vm9, %v772_v55  ;;  %v24343_v55 = vshrl.u32 %v16996_v20, 16  ;;  %1269 = vst.sshfl [vmem:[#allocation1 + $0x30] sm:$0xff pattern:$0x75643120] %v16917_v40  ;;  %v1019_v20 = vsel %vm17377_vm12, %v1016_v25, %v1018_v30 }
  0xd1   :  { %1071 = vst [vmem:[#allocation1 + $0x3] ss:$4 sm:$0xff] %v1019_v20  ;;  %v11656_v20 = vld [vmem:[%s24234_s1 + $0x120] sm:$0xf] }
  0xd2   :  { %v1009_v9 = vrot.slane %v24343_v55, 7  ;;  %v24348_v55 = vshll.u32 %v17036_v12, 16 }
  0xd3   :  { %v17499_v28 = vpop.f32.mrf.mxu2  ;;  %v17501_v6 = vpop.f32.mrf.mxu3 }
  0xd4   :  { %v395_v47 = vpop.f32.mrf.mxu0  ;;  %v423_v63 = vpop.f32.mrf.mxu1  ;;  %v1010_v42 = vor.u32 %v1009_v9, %v24347_v38  ;;  %v1012_v53 = vrot.slane %v1009_v9, 2  ;;  %v1014_v10 = vor.u32 %v1013_v27, %v24348_v55 }
  0xd6   :  { %v1011_v35 = vsel %vm17377_vm12, %v1008_v31, %v1010_v42  ;;  %v1015_v17 = vsel %vm17377_vm12, %v1012_v53, %v1014_v10  ;;  %v17540_v63 = vld.sshfl [vmem:[#allocation1 + $0x20] sm:$0xff pattern:$0x73625140]  ;;  %vm24311_vm12 = vcmask 1045506  }
  0xd7   :  { %1067 = vst [vmem:[#allocation1 + $0x1] ss:$4 sm:$0xff] %v1011_v35  ;;  %v17535_v47 = vld [vmem:[#allocation1 + $0x30] ss:$2 sm:$0xff]  ;;  %v17537_v58 = vld [vmem:[#allocation1 + $0x31] ss:$2 sm:$0xff] }
  0xd8   :  { %1069 = vst [vmem:[#allocation1 + $0x2] ss:$4 sm:$0xff] %v1015_v17  ;;  %v15815_v42 = vld [vmem:[%s24234_s1 + $0x124] sm:$0xf] }
  0xd9   :  { %1267 = vst.sshfl [vmem:[#allocation1 + $0x10] sm:$0xff pattern:$0x75643120] %v16881_v24 }
  0xda   :  { %1287 = vst.sshfl [vmem:[#allocation1 + $0x30] sm:$0xff pattern:$0x75643120] %v17075_v7 }
  0xdb   :  { %v451_v40 = vpop.f32.mrf.mxu2  ;;  %v479_v12 = vpop.f32.mrf.mxu3  ;;  %1268 = vst.sshfl [vmem:[#allocation1 + $0x20] sm:$0xff pattern:$0x75643120] %v16886_v26 }
  0xdc   :  { %v563_v3 = vpop.f32.mrf.mxu0  ;;  %v591_v1 = vpop.f32.mrf.mxu1  ;;  %v15817_v40 = vld [vmem:[%s24234_s1 + $0x12c] sm:$0xf0] }
  0xdd   :  { %v17530_v9 = vadd.f32 %v563_v3, %v17293_v14  ;;  %v17533_v27 = vadd.f32 %v591_v1, %v17295_v49 }
  0xdf   :  { %11614 = vmatmul.msk.bf16.vlgmr.msrb.gmra.mxu0 %vm24304_vm9, %v1062_v51  ;;  %11618 = vmatmul.msk.bf16.vlgmr.msrb.gmra.mxu1 %vm24304_vm9, %v1062_v51  ;;  %v17547_v24 = vld.sshfl [vmem:[#allocation1] sm:$0xff pattern:$0x73625140] }
  0xe0   :  { %11622 = vmatmul.msk.bf16.vlgmr.msrb.gmra.mxu2 %vm24304_vm9, %v1062_v51  ;;  %11626 = vmatmul.msk.bf16.vlgmr.msrb.gmra.mxu3 %vm24304_vm9, %v1062_v51  ;;  %1266 = vst.sshfl [vmem:[#allocation1] sm:$0xff pattern:$0x75643120] %v16876_v23  ;;  %v1273_v36 = vld [vmem:[#allocation1 + $0x10] ss:$2 sm:$0xff] }
  0xe1   :  { %v1275_v26 = vld [vmem:[#allocation1 + $0x11] ss:$2 sm:$0xff]  ;;  %v11664_v23 = vld [vmem:[%s24234_s1 + $0x128] sm:$0xf]  ;;  %v1293_v12 = vld [vmem:[#allocation1 + $0x30] ss:$2 sm:$0xff] }
  0xe2   :  { %v1277_v31 = vld [vmem:[#allocation1 + $0x20] ss:$2 sm:$0xff]  ;;  %v1279_v38 = vld [vmem:[#allocation1 + $0x21] ss:$2 sm:$0xff]  ;;  %v1294_v3 = vld [vmem:[#allocation1 + $0x31] ss:$2 sm:$0xff] }
  0xe3   :  { %v619_v14 = vpop.f32.mrf.mxu2  ;;  %v647_v49 = vpop.f32.mrf.mxu3  ;;  %1285 = vst.sshfl [vmem:[#allocation1 + $0x10] sm:$0xff pattern:$0x75643120] %v16931_v46  ;;  %v11658_v46 = vld [vmem:[%s24234_s1 + $0x130] sm:$0xf0] }
  0xe4   :  { %v17551_v7 = vadd.f32 %v619_v14, %v17301_v2  ;;  %v17554_v22 = vadd.f32 %v647_v49, %v17303_v62  ;;  %v565_v30 = vpop.f32.mrf.mxu0  ;;  %v593_v33 = vpop.f32.mrf.mxu1  ;;  %v15818_v2 = vld [vmem:[%s24234_s1 + $0x134] sm:$0xf0]  ;;  %1286 = vst.sshfl [vmem:[#allocation1 + $0x20] sm:$0xff pattern:$0x75643120] %v16958_v61  ;;  %v11661_v55 = vor.u32 %v15815_v42, %v11658_v46 }
  0xe5   :  { %v17557_v19 = vadd.f32 %v565_v30, %v17314_v21  ;;  %v17560_v39 = vadd.f32 %v593_v33, %v17316_v8  ;;  %v11665_v62 = vor.u32 %v15818_v2, %v11664_v23  ;;  %v15816_v21 = vld [vmem:[%s24234_s1 + $0x12c] sm:$0xf]  ;;  %v11666_v8 = vld [vmem:[%s24234_s1 + $0x138] sm:$0xf0] }
  0xe6   :  { %v11669_v61 = vor.u32 %v15816_v21, %v11666_v8  ;;  %1411 = vmatpush.bf16.msra.mxu1 %v11661_v55  ;;  %v15814_v55 = vld [vmem:[%s24234_s1 + $0x114] sm:$0xf0] }
  0xe7   :  { %v1271_v53 = vld [vmem:[#allocation1 + $0x1] ss:$2 sm:$0xff]  ;;  %1439 = vmatpush.bf16.msra.mxu2 %v11665_v62 }
  0xe8   :  { %1284 = vst.sshfl [vmem:[#allocation1] sm:$0xff pattern:$0x75643120] %v16926_v45  ;;  %1467 = vmatpush.bf16.msra.mxu3 %v11669_v61  ;;  %v11648_v61 = vld [vmem:[%s24234_s1 + $0x108] sm:$0xf] }
  0xea   :  { %v1289_v1 = vld [vmem:[#allocation1 + $0x10] ss:$2 sm:$0xff] }
  0xeb   :  { %v621_v10 = vpop.f32.mrf.mxu2  ;;  %v649_v25 = vpop.f32.mrf.mxu3  ;;  %v1291_v14 = vld [vmem:[#allocation1 + $0x20] ss:$2 sm:$0xff]  ;;  %v1292_v49 = vld [vmem:[#allocation1 + $0x21] ss:$2 sm:$0xff]  ;;  %1304 = vst [vmem:[#allocation1] ss:$4 sm:$0xff] %v1271_v53 }
  0xec   :  { %v17584_v51 = vadd.f32 %v621_v10, %v17333_v48  ;;  %v17587_v59 = vadd.f32 %v649_v25, %v17335_v0  ;;  %v568_v35 = vpop.f32.mrf.mxu0  ;;  %v596_v17 = vpop.f32.mrf.mxu1  ;;  %v11657_v0 = vor.u32 %v15817_v40, %v11656_v20  ;;  %1308 = vst [vmem:[#allocation1 + $0x2] ss:$4 sm:$0xff] %v1275_v26  ;;  %v15812_v25 = vld [vmem:[%s24234_s1 + $0x10c] sm:$0xf] }
  0xed   :  { %v17596_v45 = vadd.f32 %v568_v35, %v17343_v13  ;;  %v17599_v48 = vadd.f32 %v596_v17, %v17345_v11  ;;  %v1290_v13 = vld [vmem:[#allocation1 + $0x11] ss:$2 sm:$0xff]  ;;  %1312 = vst [vmem:[#allocation1 + $0x20] ss:$4 sm:$0xff] %v1279_v38 }
  0xee   :  { %1383 = vmatpush.bf16.msra.mxu0 %v11657_v0  ;;  %1314 = vst [vmem:[#allocation1 + $0x21] ss:$4 sm:$0xff] %v17535_v47  ;;  %v15811_v47 = vld [vmem:[%s24234_s1 + $0x104] sm:$0xf]  ;;  %v11650_v35 = vld [vmem:[%s24234_s1 + $0x118] sm:$0xf0] }
  0xef   :  { %11615 = vmatmul.msk.bf16.gmra.mxu0 %vm24304_vm9, %v17497_v54  ;;  %11619 = vmatmul.msk.bf16.gmra.mxu1 %vm24304_vm9, %v17497_v54  ;;  %v1288_v11 = vld [vmem:[#allocation1 + $0x1] ss:$2 sm:$0xff]  ;;  %1316 = vst [vmem:[#allocation1 + $0x22] ss:$4 sm:$0xff] %v17537_v58  ;;  %v11642_v58 = vld [vmem:[%s24234_s1 + $0x110] sm:$0xf0] }
  0xf0   :  { %11623 = vmatmul.msk.bf16.gmra.mxu2 %vm24304_vm9, %v17497_v54  ;;  %11627 = vmatmul.msk.bf16.gmra.mxu3 %vm24304_vm9, %v17497_v54  ;;  %1306 = vst [vmem:[#allocation1 + $0x1] ss:$4 sm:$0xff] %v1273_v36  ;;  %v11645_v53 = vor.u32 %v15811_v47, %v11642_v58 }
  0xf1   :  { %1310 = vst [vmem:[#allocation1 + $0x3] ss:$4 sm:$0xff] %v1277_v31 }
  0xf2   :  { %1318 = vst [vmem:[#allocation1 + $0x23] ss:$4 sm:$0xff] %v1288_v11  ;;  %1412 = vmatpush.bf16.msra.mxu1 %v11645_v53 }
  0xf3   :  { %v624_v30 = vpop.f32.mrf.mxu2  ;;  %v652_v33 = vpop.f32.mrf.mxu3 }
  0xf4   :  { %v17611_v23 = vadd.f32 %v624_v30, %v17351_v56  ;;  %v17614_v2 = vadd.f32 %v652_v33, %v17353_v18  ;;  %v570_v62 = vpop.f32.mrf.mxu0  ;;  %v598_v21 = vpop.f32.mrf.mxu1  ;;  %v11640_v56 = vld [vmem:[%s24234_s1 + $0x100] sm:$0xf]  ;;  %v15813_v18 = vld [vmem:[%s24234_s1 + $0x10c] sm:$0xf0] }
  0xf5   :  { %v17617_v54 = vadd.f32 %v570_v62, %v17359_v5  ;;  %v17620_v26 = vadd.f32 %v598_v21, %v17361_v4  ;;  %v11641_v4 = vor.u32 %v15813_v18, %v11640_v56 }
  0xf7   :  { %1384 = vmatpush.bf16.msra.mxu0 %v11641_v4 }
  0xf8   :  { %v17632_v31 = vld.sshfl [vmem:[#allocation1] sm:$0xff pattern:$0x73625140] }
  0xf9   :  { %1321 = vst [vmem:[#allocation1] ss:$4 sm:$0xff] %v1289_v1 }
  0xfa   :  { %1322 = vst [vmem:[#allocation1 + $0x1] ss:$4 sm:$0xff] %v1290_v13 }
  0xfb   :  { %v626_v5 = vpop.f32.mrf.mxu2  ;;  %v654_v36 = vpop.f32.mrf.mxu3  ;;  %1323 = vst [vmem:[#allocation1 + $0x2] ss:$4 sm:$0xff] %v1291_v14 }
  0xfc   :  { %v17638_v38 = vadd.f32 %v626_v5, %v17405_v44  ;;  %v17641_v8 = vadd.f32 %v654_v36, %v17407_v50  ;;  %v573_v42 = vpop.f32.mrf.mxu0  ;;  %v601_v46 = vpop.f32.mrf.mxu1  ;;  %v11649_v50 = vor.u32 %v15814_v55, %v11648_v61  ;;  %1324 = vst [vmem:[#allocation1 + $0x3] ss:$4 sm:$0xff] %v1292_v49 }
  0xfd   :  { %v17650_v10 = vadd.f32 %v573_v42, %v17418_v43  ;;  %v17653_v44 = vadd.f32 %v601_v46, %v17420_v52  ;;  %v1320_v43 = vld.sshfl [vmem:[#allocation1 + $0x20] sm:$0xff pattern:$0x73625140]  ;;  %v11653_v52 = vor.u32 %v15812_v25, %v11650_v35 }
  0xfe   :  { %1325 = vst [vmem:[#allocation1 + $0x20] ss:$4 sm:$0xff] %v1293_v12  ;;  %1440 = vmatpush.bf16.msra.mxu2 %v11649_v50 }
  0xff   :  { %11616 = vmatmul.msk.bf16.gmra.mxu0 %vm24304_vm9, %v17547_v24  ;;  %11620 = vmatmul.msk.bf16.gmra.mxu1 %vm24304_vm9, %v17547_v24  ;;  %1326 = vst [vmem:[#allocation1 + $0x21] ss:$4 sm:$0xff] %v1294_v3 }
 0x100   :  { %11624 = vmatmul.msk.bf16.gmra.mxu2 %vm24304_vm9, %v17547_v24  ;;  %11628 = vmatmul.msk.bf16.gmra.mxu3 %vm24304_vm9, %v17547_v24 }
 0x101   :  { %1468 = vmatpush.bf16.msra.mxu3 %v11653_v52 }
 0x103   :  { %v629_v17 = vpop.f32.mrf.mxu2  ;;  %v657_v20 = vpop.f32.mrf.mxu3  ;;  %v1327_v35 = vld.sshfl [vmem:[#allocation1] sm:$0xff pattern:$0x73625140] }
 0x104   :  { %v17670_v40 = vadd.f32 %v629_v17, %v17435_v37  ;;  %v17673_v0 = vadd.f32 %v657_v20, %v17437_v32  ;;  %v575_v1 = vpop.f32.mrf.mxu0  ;;  %v603_v14 = vpop.f32.mrf.mxu1 }
 0x105   :  { %v17676_v49 = vadd.f32 %v575_v1, %v17446_v41  ;;  %v17679_v13 = vadd.f32 %v603_v14, %v17448_v60 }
 0x10b   :  { %v631_v24 = vpop.f32.mrf.mxu2  ;;  %v659_v12 = vpop.f32.mrf.mxu3 }
 0x10c   :  { %v17682_v3 = vadd.f32 %v631_v24, %v17474_v15  ;;  %v17685_v11 = vadd.f32 %v659_v12, %v17476_v16  ;;  %v578_v37 = vpop.f32.mrf.mxu0  ;;  %v606_v30 = vpop.f32.mrf.mxu1 }
 0x10d   :  { %v17688_v32 = vadd.f32 %v578_v37, %v17478_v29  ;;  %v17691_v33 = vadd.f32 %v606_v30, %v17480_v34  ;;  %v1328_v37 = vld.sshfl [vmem:[#allocation1 + $0x20] sm:$0xff pattern:$0x73625140] }
 0x10e   :  { %24349 = vst [vmem:[#allocation9_spill] sm:$0xff] %v17685_v11 }
 0x10f   :  { %11617 = vmatmul.msk.bf16.gmra.mxu0 %vm24304_vm9, %v17540_v63  ;;  %11621 = vmatmul.msk.bf16.gmra.mxu1 %vm24304_vm9, %v17540_v63 }
 0x110   :  { %11625 = vmatmul.msk.bf16.gmra.mxu2 %vm24304_vm9, %v17540_v63  ;;  %11629 = vmatmul.msk.bf16.gmra.mxu3 %vm24304_vm9, %v17540_v63 }
 0x113   :  { %v634_v41 = vpop.f32.mrf.mxu2  ;;  %v662_v60 = vpop.f32.mrf.mxu3 }
 0x114   :  { %v17702_v15 = vadd.f32 %v634_v41, %v17499_v28  ;;  %v17705_v16 = vadd.f32 %v662_v60, %v17501_v6  ;;  %v580_v29 = vpop.f32.mrf.mxu0  ;;  %v608_v34 = vpop.f32.mrf.mxu1 }
 0x11b   :  { %v636_v62 = vpop.f32.mrf.mxu2  ;;  %v664_v21 = vpop.f32.mrf.mxu3 }
 0x11c   :  { %v830_v56 = vpop.f32.mrf.mxu0  ;;  %v858_v18 = vpop.f32.mrf.mxu1 }
 0x11d   :  { %v17708_v47 = vadd.f32 %v830_v56, %v17530_v9  ;;  %v17711_v5 = vadd.f32 %v858_v18, %v17533_v27 }
 0x11f   :  { %11670 = vmatmul.msk.bf16.vlgmr.msra.gmra.mxu0 %vm24304_vm9, %v17632_v31  ;;  %11674 = vmatmul.msk.bf16.vlgmr.msra.gmra.mxu1 %vm24304_vm9, %v17632_v31 }
 0x120   :  { %11678 = vmatmul.msk.bf16.vlgmr.msra.gmra.mxu2 %vm24304_vm9, %v17632_v31  ;;  %11682 = vmatmul.msk.bf16.vlgmr.msra.gmra.mxu3 %vm24304_vm9, %v17632_v31 }
 0x123   :  { %v886_v28 = vpop.f32.mrf.mxu2  ;;  %v914_v6 = vpop.f32.mrf.mxu3 }
 0x124   :  { %v17722_v9 = vadd.f32 %v886_v28, %v17551_v7  ;;  %v17725_v27 = vadd.f32 %v914_v6, %v17554_v22  ;;  %v17727_v63 = vpop.f32.mrf.mxu0  ;;  %v17729_v36 = vpop.f32.mrf.mxu1 }
 0x12b   :  { %v17731_v4 = vpop.f32.mrf.mxu2  ;;  %v17733_v58 = vpop.f32.mrf.mxu3 }
 0x12c   :  { %v835_v42 = vpop.f32.mrf.mxu0  ;;  %v863_v46 = vpop.f32.mrf.mxu1 }
 0x12d   :  { %v941_v31 = vadd.f32 %v835_v42, %v17596_v45  ;;  %v942_v53 = vadd.f32 %v863_v46, %v17599_v48 }
 0x12f   :  { %11671 = vmatmul.msk.bf16.gmra.mxu0 %vm24304_vm9, %v1320_v43  ;;  %11675 = vmatmul.msk.bf16.gmra.mxu1 %vm24304_vm9, %v1320_v43 }
 0x130   :  { %11679 = vmatmul.msk.bf16.gmra.mxu2 %vm24304_vm9, %v1320_v43  ;;  %11683 = vmatmul.msk.bf16.gmra.mxu3 %vm24304_vm9, %v1320_v43 }
 0x133   :  { %v891_v7 = vpop.f32.mrf.mxu2  ;;  %v919_v22 = vpop.f32.mrf.mxu3 }
 0x134   :  { %v17742_v61 = vadd.f32 %v891_v7, %v17611_v23  ;;  %v17745_v55 = vadd.f32 %v919_v22, %v17614_v2  ;;  %v17747_v50 = vpop.f32.mrf.mxu0  ;;  %v17749_v45 = vpop.f32.mrf.mxu1 }
 0x13b   :  { %v17751_v48 = vpop.f32.mrf.mxu2  ;;  %v17753_v25 = vpop.f32.mrf.mxu3 }
 0x13c   :  { %v840_v52 = vpop.f32.mrf.mxu0  ;;  %v868_v17 = vpop.f32.mrf.mxu1 }
 0x13d   :  { %v949_v43 = vadd.f32 %v840_v52, %v17650_v10  ;;  %v950_v20 = vadd.f32 %v868_v17, %v17653_v44 }
 0x13f   :  { %11672 = vmatmul.msk.bf16.gmra.mxu0 %vm24304_vm9, %v1327_v35  ;;  %11676 = vmatmul.msk.bf16.gmra.mxu1 %vm24304_vm9, %v1327_v35 }
 0x140   :  { %11680 = vmatmul.msk.bf16.gmra.mxu2 %vm24304_vm9, %v1327_v35  ;;  %11684 = vmatmul.msk.bf16.gmra.mxu3 %vm24304_vm9, %v1327_v35 }
 0x143   :  { %v896_v23 = vpop.f32.mrf.mxu2  ;;  %v924_v2 = vpop.f32.mrf.mxu3 }
 0x144   :  { %v17762_v1 = vadd.f32 %v896_v23, %v17670_v40  ;;  %v952_v14 = vadd.f32 %v924_v2, %v17673_v0  ;;  %v17765_v24 = vpop.f32.mrf.mxu0  ;;  %v17767_v10 = vpop.f32.mrf.mxu1 }
 0x14b   :  { %v17769_v44 = vpop.f32.mrf.mxu2  ;;  %v17771_v12 = vpop.f32.mrf.mxu3 }
 0x14c   :  { %24350 = vst [vmem:[#allocation10_spill] sm:$0xff] %v17769_v44  ;;  %v845_v30 = vpop.f32.mrf.mxu0  ;;  %v873_v41 = vpop.f32.mrf.mxu1 }
 0x14d   :  { %24351 = vst [vmem:[#allocation11_spill] sm:$0xff] %v17771_v12  ;;  %v957_v60 = vadd.f32 %v845_v30, %v17688_v32  ;;  %v17775_v29 = vadd.f32 %v873_v41, %v17691_v33 }
 0x14f   :  { %24352 = vst [vmem:[#allocation12_spill] sm:$0xff] %v17775_v29  ;;  %11673 = vmatmul.msk.bf16.gmra.mxu0 %vm24304_vm9, %v1328_v37  ;;  %11677 = vmatmul.msk.bf16.gmra.mxu1 %vm24304_vm9, %v1328_v37 }
 0x150   :  { %11681 = vmatmul.msk.bf16.gmra.mxu2 %vm24304_vm9, %v1328_v37  ;;  %11685 = vmatmul.msk.bf16.gmra.mxu3 %vm24304_vm9, %v1328_v37  ;;  %vm24428_vm9 = vmmov %vm24427_vm3 }
 0x153   :  { %v901_v40 = vpop.f32.mrf.mxu2  ;;  %v929_v0 = vpop.f32.mrf.mxu3 }
 0x154   :  { %v17782_v34 = vadd.f32 %v901_v40, %v17702_v15  ;;  %v17785_v62 = vadd.f32 %v929_v0, %v17705_v16  ;;  %v847_v32 = vpop.f32.mrf.mxu0  ;;  %v875_v21 = vpop.f32.mrf.mxu1 }
 0x156   :  { %24353 = vst [vmem:[#allocation13_spill] sm:$0xff] %v17782_v34 }
 0x157   :  { %24354 = vst [vmem:[#allocation14_spill] sm:$0xff] %v17785_v62 }
 0x15b   :  { %v903_v33 = vpop.f32.mrf.mxu2  ;;  %v931_v56 = vpop.f32.mrf.mxu3 }
 0x15c   :  { %v1135_v18 = vpop.f32.mrf.mxu0  ;;  %v1163_v28 = vpop.f32.mrf.mxu1 }
 0x15d   :  { %v17788_v6 = vadd.f32 %v1135_v18, %v17708_v47  ;;  %v1239_v42 = vadd.f32 %v1163_v28, %v17711_v5 }
 0x163   :  { %v1191_v46 = vpop.f32.mrf.mxu2  ;;  %v1219_v7 = vpop.f32.mrf.mxu3 }
 0x164   :  { %v1137_v22 = vpop.f32.mrf.mxu0  ;;  %v1165_v35 = vpop.f32.mrf.mxu1 }
 0x16b   :  { %v17791_v15 = vpop.f32.mrf.mxu2  ;;  %v17793_v52 = vpop.f32.mrf.mxu3 }
 0x16c   :  { %v1140_v16 = vpop.f32.mrf.mxu0  ;;  %v1168_v17 = vpop.f32.mrf.mxu1 }
 0x16d   :  { %v17795_v23 = vadd.f32 %v1140_v16, %v941_v31  ;;  %v17797_v2 = vadd.f32 %v1168_v17, %v942_v53 }
 0x173   :  { %v17799_v37 = vpop.f32.mrf.mxu2  ;;  %v17801_v47 = vpop.f32.mrf.mxu3 }
 0x174   :  { %v17803_v30 = vpop.f32.mrf.mxu0  ;;  %v17805_v5 = vpop.f32.mrf.mxu1 }
 0x17b   :  { %v17807_v41 = vpop.f32.mrf.mxu2  ;;  %v17809_v40 = vpop.f32.mrf.mxu3 }
 0x17c   :  { %v1145_v0 = vpop.f32.mrf.mxu0  ;;  %v1173_v32 = vpop.f32.mrf.mxu1 }
 0x17d   :  { %v17811_v21 = vadd.f32 %v1145_v0, %v949_v43  ;;  %v17813_v31 = vadd.f32 %v1173_v32, %v950_v20 }
 0x17f   :  { %24355 = vst [vmem:[#allocation15_spill] sm:$0xff] %v17811_v21  ;;  %v1517_v21 = vld [vmem:[%s24235_s2] sm:$0xf]  ;;  %s16754_s2 = smov 112  }
 0x183   :  { %v17815_v53 = vpop.f32.mrf.mxu2  ;;  %v1229_v33 = vpop.f32.mrf.mxu3 }
 0x184   :  { %v17817_v56 = vadd.f32 %v1229_v33, %v952_v14  ;;  %v17819_v18 = vpop.f32.mrf.mxu0  ;;  %v17821_v28 = vpop.f32.mrf.mxu1 }
 0x186   :  { %24356 = vst [vmem:[#allocation16_spill] sm:$0xff] %v17817_v56  ;;  %v17840_v56 = vperm.slane %v1517_v21, 1 }
 0x18b   :  { %v17823_v16 = vpop.f32.mrf.mxu2  ;;  %v17825_v17 = vpop.f32.mrf.mxu3 }
 0x18c   :  { %24357 = vst [vmem:[#allocation17_spill] sm:$0xff] %v17823_v16  ;;  %v1150_v57 = vpop.f32.mrf.mxu0  ;;  %v17827_v62 = vpop.f32.mrf.mxu1 }
 0x18d   :  { %24358 = vst [vmem:[#allocation18_spill] sm:$0xff] %v17825_v17  ;;  %v17829_v43 = vadd.f32 %v1150_v57, %v957_v60  ;;  %v1555_v57 = vld [vmem:[%s24236_s3] sm:$0xf]  ;;  %v937_v60 = vadd.f32 %v17727_v63, %v17557_v19 }
 0x18e   :  { %24359 = vst [vmem:[#allocation19_spill] sm:$0xff] %v17827_v62 }
 0x18f   :  { %24360 = vst [vmem:[#allocation20_spill] sm:$0xff] %v17829_v43 }
 0x193   :  { %v17831_v20 = vpop.f32.mrf.mxu2  ;;  %v17833_v0 = vpop.f32.mrf.mxu3 }
 0x194   :  { %24361 = vst [vmem:[#allocation21_spill] sm:$0xff] %v17831_v20  ;;  %v1152_v32 = vpop.f32.mrf.mxu0  ;;  %v1180_v14 = vpop.f32.mrf.mxu1  ;;  %v1242_v20 = vadd.f32 %v1137_v22, %v937_v60 }
 0x195   :  { %24362 = vst [vmem:[#allocation22_spill] sm:$0xff] %v17833_v0  ;;  %v1240_v32 = vadd.f32 %v1191_v46, %v17722_v9  ;;  %v1241_v14 = vadd.f32 %v1219_v7, %v17725_v27  ;;  %v17852_v0 = vperm.slane %v1517_v21, 2  ;;  %v17860_v9 = vperm.slane %v1555_v57, 2 }
 0x196   :  { %v17862_v27 = vperm.slane %v1517_v21, 0 }
 0x19b   :  { %v1208_v33 = vpop.f32.mrf.mxu2  ;;  %v1236_v34 = vpop.f32.mrf.mxu3 }
 0x19c   :  { %v17838_v29 = vpop.f32.mrf.mxu0  ;;  %v1414_v17 = vpop.f32.mrf.mxu1  ;;  %v938_v34 = vadd.f32 %v17729_v36, %v17560_v39  ;;  %v17858_v36 = vperm.slane %v1555_v57, 3 }
 0x19d   :  { %v1490_v16 = vadd.f32 %v1414_v17, %v1239_v42  ;;  %v17854_v42 = vperm.slane %v1517_v21, 3  ;;  %v17856_v17 = vperm.slane %v1555_v57, 1 }
 0x19e   :  { %v1243_v43 = vadd.f32 %v1165_v35, %v938_v34  ;;  %v17869_v35 = vperm.slane %v1555_v57, 0 }
 0x19f   :  { %v1528_v33 = vmul.f32 %v17840_v56, %v1490_v16 }
 0x1a1   :  { %v17867_v22 = vadd.f32 %v17856_v17, %v1528_v33 }
 0x1a3   :  { %v1442_v62 = vpop.f32.mrf.mxu2  ;;  %v1470_v12 = vpop.f32.mrf.mxu3  ;;  %v1594_v57 = vmax.f32 %v17867_v22, 0.0 }
 0x1a4   :  { %v1491_v19 = vadd.f32 %v1442_v62, %v1240_v32  ;;  %v1492_v63 = vadd.f32 %v1470_v12, %v1241_v14  ;;  %v1388_v11 = vpop.f32.mrf.mxu0  ;;  %v1416_v39 = vpop.f32.mrf.mxu1  ;;  %v939_v62 = vadd.f32 %v17731_v4, %v17584_v51 }
 0x1a5   :  { %v1493_v46 = vadd.f32 %v1388_v11, %v1242_v20  ;;  %v1494_v44 = vadd.f32 %v1416_v39, %v1243_v43 }
 0x1a6   :  { %v1529_v7 = vmul.f32 %v17852_v0, %v1491_v19  ;;  %v1530_v16 = vmul.f32 %v17854_v42, %v1492_v63  ;;  %v1244_v43 = vadd.f32 %v17791_v15, %v939_v62  ;;  %v946_v62 = vadd.f32 %v17749_v45, %v17620_v26 }
 0x1a7   :  { %v1531_v12 = vmul.f32 %v17862_v27, %v1493_v46  ;;  %v1532_v20 = vmul.f32 %v17840_v56, %v1494_v44 }
 0x1a8   :  { %v17875_v60 = vadd.f32 %v17860_v9, %v1529_v7  ;;  %v17878_v11 = vadd.f32 %v17858_v36, %v1530_v16 }
 0x1a9   :  { %v17881_v21 = vadd.f32 %v17869_v35, %v1531_v12  ;;  %v17903_v7 = vadd.f32 %v17856_v17, %v1532_v20  ;;  %v945_v12 = vadd.f32 %v17747_v50, %v17617_v54 }
 0x1aa   :  { %v1595_v34 = vmax.f32 %v17875_v60, 0.0  ;;  %v1596_v51 = vmax.f32 %v17878_v11, 0.0 }
 0x1ab   :  { %v1444_v32 = vpop.f32.mrf.mxu2  ;;  %v17887_v14 = vpop.f32.mrf.mxu3  ;;  %v1597_v4 = vmax.f32 %v17881_v21, 0.0 }
 0x1ac   :  { %v1495_v33 = vadd.f32 %v1444_v32, %v1244_v43  ;;  %v1391_v19 = vpop.f32.mrf.mxu0  ;;  %v1419_v63 = vpop.f32.mrf.mxu1  ;;  %v16581_v15 = vpack.i.bf16 %v1595_v34, %v1594_v57  ;;  %v1249_v43 = vadd.f32 %v17801_v47, %v17745_v55  ;;  %v1598_v32 = vmax.f32 %v17903_v7, 0.0 }
 0x1ad   :  { %v16586_v44 = vpack.i.bf16 %v1597_v4, %v1596_v51  ;;  %v1498_v46 = vadd.f32 %v1419_v63, %v17797_v2  ;;  %v1248_v2 = vadd.f32 %v17799_v37, %v17742_v61  ;;  %v1250_v63 = vadd.f32 %v17803_v30, %v945_v12 }
 0x1ae   :  { %v1533_v39 = vmul.f32 %v17852_v0, %v1495_v33  ;;  %16582 = vrot.lane.b32.xlu1 %v16581_v15, %s16754_s2  ;;  %v1251_v15 = vadd.f32 %v17805_v5, %v946_v62  ;;  %v947_v62 = vadd.f32 %v17751_v48, %v17638_v38 }
 0x1af   :  { %16587 = vrot.lane.b32.xlu2 %v16586_v44, %s16754_s2  ;;  %v1536_v20 = vmul.f32 %v17840_v56, %v1498_v46  ;;  %v1497_v46 = vadd.f32 %v1391_v19, %v17795_v23 }
 0x1b0   :  { %v17907_v16 = vadd.f32 %v17860_v9, %v1533_v39  ;;  %v1252_v23 = vadd.f32 %v17807_v41, %v947_v62 }
 0x1b1   :  { %v17927_v47 = vadd.f32 %v17856_v17, %v1536_v20 }
 0x1b2   :  { %v24261_v33 = vmax.f32 %v17907_v16, 0.0 }
 0x1b3   :  { %v1447_v54 = vpop.f32.mrf.mxu2  ;;  %v1475_v50 = vpop.f32.mrf.mxu3  ;;  %v1602_v38 = vmax.f32 %v17927_v47, 0.0 }
 0x1b4   :  { %v1499_v44 = vadd.f32 %v1447_v54, %v1248_v2  ;;  %v1500_v26 = vadd.f32 %v1475_v50, %v1249_v43  ;;  %v1393_v45 = vpop.f32.mrf.mxu0  ;;  %v1421_v39 = vpop.f32.mrf.mxu1  ;;  %v16591_v61 = vpack.i.bf16 %v24261_v33, %v1598_v32  ;;  %v948_v2 = vadd.f32 %v17753_v25, %v17641_v8 }
 0x1b5   :  { %v1501_v55 = vadd.f32 %v1393_v45, %v1250_v63  ;;  %v1502_v37 = vadd.f32 %v1421_v39, %v1251_v15  ;;  %v940_v8 = vadd.f32 %v17733_v58, %v17587_v59  ;;  %v1535_v25 = vmul.f32 %v17862_v27, %v1497_v46 }
 0x1b6   :  { %v1537_v30 = vmul.f32 %v17852_v0, %v1499_v44  ;;  %v1538_v5 = vmul.f32 %v17854_v42, %v1500_v26  ;;  %16592 = vrot.lane.b32.xlu0 %v16591_v61, %s16754_s2  ;;  %v1253_v19 = vadd.f32 %v17809_v40, %v948_v2 }
 0x1b7   :  { %v1540_v12 = vmul.f32 %v17840_v56, %v1502_v37  ;;  %v1539_v63 = vmul.f32 %v17862_v27, %v1501_v55  ;;  %v1245_v59 = vadd.f32 %v17793_v52, %v940_v8  ;;  %v1489_v37 = vadd.f32 %v17838_v29, %v17788_v6 }
 0x1b8   :  { %v17939_v43 = vadd.f32 %v17860_v9, %v1537_v30  ;;  %v17942_v20 = vadd.f32 %v17858_v36, %v1538_v5  ;;  %v953_v6 = vadd.f32 %v17765_v24, %v17676_v49 }
 0x1b9   :  { %v17946_v15 = vadd.f32 %v17856_v17, %v1540_v12  ;;  %v17965_v58 = vadd.f32 %v17869_v35, %v1539_v63  ;;  %v1496_v52 = vadd.f32 %v17887_v14, %v1245_v59  ;;  %v17979_v12 = vadd.f32 %v17869_v35, %v1535_v25  ;;  %v24364_v59 = vld [vmem:[#allocation9_spill] sm:$0xff] }
 0x1ba   :  { %v1603_v48 = vmax.f32 %v17939_v43, 0.0  ;;  %v24278_v54 = vmax.f32 %v17942_v20, 0.0  ;;  %v1256_v14 = vadd.f32 %v17815_v53, %v17762_v1  ;;  %v1527_v63 = vmul.f32 %v17862_v27, %v1489_v37 }
 0x1bb   :  { %v1449_v50 = vpop.f32.mrf.mxu2  ;;  %v1477_v44 = vpop.f32.mrf.mxu3  ;;  %v24282_v26 = vmax.f32 %v17946_v15, 0.0  ;;  %v24279_v2 = vmax.f32 %v17965_v58, 0.0  ;;  %v1258_v25 = vadd.f32 %v17819_v18, %v953_v6  ;;  %v1534_v24 = vmul.f32 %v17854_v42, %v1496_v52  ;;  %v24366_v52 = vld [vmem:[#allocation16_spill] sm:$0xff] }
 0x1bc   :  { %v1503_v45 = vadd.f32 %v1449_v50, %v1252_v23  ;;  %v1504_v39 = vadd.f32 %v1477_v44, %v1253_v19  ;;  %v17957_v41 = vpop.f32.mrf.mxu0  ;;  %v1424_v40 = vpop.f32.mrf.mxu1  ;;  %v16596_v61 = vpack.i.bf16 %v1603_v48, %v1602_v38 }
 0x1bd   :  { %v16601_v55 = vpack.i.bf16 %v24282_v26, %v24278_v54  ;;  %v1506_v46 = vadd.f32 %v1424_v40, %v17813_v31  ;;  %v954_v31 = vadd.f32 %v17767_v10, %v17679_v13  ;;  %v24274_v13 = vmax.f32 %v17979_v12, 0.0 }
 0x1be   :  { %v1541_v30 = vmul.f32 %v17852_v0, %v1503_v45  ;;  %v1542_v5 = vmul.f32 %v17854_v42, %v1504_v39  ;;  %16597 = vrot.lane.b32.xlu2 %v16596_v61, %s16754_s2  ;;  %v24363_v39 = vld [vmem:[#allocation10_spill] sm:$0xff] }
 0x1bf   :  { %16602 = vrot.lane.b32.xlu0 %v16601_v55, %s16754_s2  ;;  %v1544_v23 = vmul.f32 %v17840_v56, %v1506_v46  ;;  %v1259_v49 = vadd.f32 %v17821_v28, %v954_v31  ;;  %v955_v40 = vadd.f32 %v24363_v39, %v17682_v3  ;;  %v16606_v28 = vpack.i.bf16 %v24279_v2, %v24274_v13  ;;  %v24365_v55 = vld [vmem:[#allocation11_spill] sm:$0xff] }
 0x1c0   :  { %v17983_v62 = vadd.f32 %v17860_v9, %v1541_v30  ;;  %v17986_v29 = vadd.f32 %v17858_v36, %v1542_v5  ;;  %v956_v37 = vadd.f32 %v24365_v55, %v24364_v59  ;;  %v18016_v30 = vadd.f32 %v17869_v35, %v1527_v63 }
 0x1c1   :  { %v18019_v5 = vadd.f32 %v17856_v17, %v1544_v23  ;;  %v18024_v3 = vadd.f32 %v17858_v36, %v1534_v24  ;;  %v24367_v23 = vld [vmem:[#allocation17_spill] sm:$0xff] }
 0x1c2   :  { %v24281_v19 = vmax.f32 %v17983_v62, 0.0  ;;  %v24283_v8 = vmax.f32 %v17986_v29, 0.0 }
 0x1c3   :  { %v1452_v10 = vpop.f32.mrf.mxu2  ;;  %v1480_v1 = vpop.f32.mrf.mxu3  ;;  %v24272_v39 = vmax.f32 %v18019_v5, 0.0  ;;  %v24271_v59 = vmax.f32 %v18024_v3, 0.0 }
 0x1c4   :  { %v1507_v53 = vadd.f32 %v1452_v10, %v1256_v14  ;;  %v1398_v50 = vpop.f32.mrf.mxu0  ;;  %v1426_v44 = vpop.f32.mrf.mxu1  ;;  %v16611_v45 = vpack.i.bf16 %v24283_v8, %v24281_v19  ;;  %v1508_v6 = vadd.f32 %v1480_v1, %v24366_v52  ;;  %v24369_v1 = vld [vmem:[#allocation12_spill] sm:$0xff] }
 0x1c5   :  { %v1509_v18 = vadd.f32 %v1398_v50, %v1258_v25  ;;  %v1510_v61 = vadd.f32 %v1426_v44, %v1259_v49  ;;  %v1260_v25 = vadd.f32 %v24367_v23, %v955_v40  ;;  %v24368_v49 = vld [vmem:[#allocation18_spill] sm:$0xff]  ;;  %v24370_v50 = vld [vmem:[#allocation19_spill] sm:$0xff] }
 0x1c6   :  { %v1545_v46 = vmul.f32 %v17852_v0, %v1507_v53  ;;  %16612 = vrot.lane.b32.xlu1 %v16611_v45, %s16754_s2  ;;  %v1261_v10 = vadd.f32 %v24368_v49, %v956_v37  ;;  %v1263_v44 = vadd.f32 %v24370_v50, %v24369_v1  ;;  %v1593_v45 = vmax.f32 %v18016_v30, 0.0  ;;  %v24371_v49 = vld [vmem:[#allocation20_spill] sm:$0xff] }
 0x1c7   :  { %v1547_v31 = vmul.f32 %v17862_v27, %v1509_v18  ;;  %v1548_v14 = vmul.f32 %v17840_v56, %v1510_v61  ;;  %16607 = vrot.lane.b32.xlu0 %v16606_v28, %s16754_s2  ;;  %v1546_v61 = vmul.f32 %v17854_v42, %v1508_v6 }
 0x1c8   :  { %v18031_v63 = vadd.f32 %v17860_v9, %v1545_v46 }
 0x1c9   :  { %v18036_v53 = vadd.f32 %v17869_v35, %v1547_v31  ;;  %v18039_v24 = vadd.f32 %v17856_v17, %v1548_v14 }
 0x1ca   :  { %v24273_v18 = vmax.f32 %v18031_v63, 0.0 }
 0x1cb   :  { %v1454_v40 = vpop.f32.mrf.mxu2  ;;  %v1482_v28 = vpop.f32.mrf.mxu3  ;;  %v24263_v55 = vmax.f32 %v18039_v24, 0.0  ;;  %v24262_v37 = vmax.f32 %v18036_v53, 0.0 }
 0x1cc   :  { %v1511_v46 = vadd.f32 %v1454_v40, %v1260_v25  ;;  %v1512_v52 = vadd.f32 %v1482_v28, %v1261_v10  ;;  %v1401_v31 = vpop.f32.mrf.mxu0  ;;  %v1429_v14 = vpop.f32.mrf.mxu1  ;;  %v16616_v23 = vpack.i.bf16 %v24273_v18, %v24272_v39  ;;  %v24372_v10 = vld [vmem:[#allocation15_spill] sm:$0xff] }
 0x1cd   :  { %v1513_v1 = vadd.f32 %v1401_v31, %v24371_v49  ;;  %v1514_v6 = vadd.f32 %v1429_v14, %v1263_v44  ;;  %v16621_v50 = vpack.i.bf16 %v24263_v55, %v24271_v59  ;;  %v16626_v25 = vpack.i.bf16 %v1593_v45, %v24262_v37  ;;  %v24375_v49 = vld [vmem:[#allocation21_spill] sm:$0xff] }
 0x1ce   :  { %v1505_v40 = vadd.f32 %v17957_v41, %v24372_v10  ;;  %v1549_v28 = vmul.f32 %v17852_v0, %v1511_v46  ;;  %v1550_v33 = vmul.f32 %v17854_v42, %v1512_v52  ;;  %16617 = vrot.lane.b32.xlu1 %v16616_v23, %s16754_s2  ;;  %v18069_v44 = vadd.f32 %v17858_v36, %v1546_v61  ;;  %v24374_v52 = vld [vmem:[#allocation13_spill] sm:$0xff]  ;;  %v24377_v10 = vld [vmem:[#allocation14_spill] sm:$0xff] }
 0x1cf   :  { %v1552_v31 = vmul.f32 %v17840_v56, %v1514_v6  ;;  %16622 = vrot.lane.b32.xlu0 %v16621_v50, %s16754_s2  ;;  %16627 = vrot.lane.b32.xlu2 %v16626_v25, %s16754_s2  ;;  %v1551_v46 = vmul.f32 %v17862_v27, %v1513_v1  ;;  %v1264_v23 = vadd.f32 %v24375_v49, %v24374_v52  ;;  %v24378_v56 = vld [vmem:[#allocation22_spill] sm:$0xff] }
 0x1d0   :  { %v18075_v14 = vadd.f32 %v17860_v9, %v1549_v28  ;;  %v18078_v41 = vadd.f32 %v17858_v36, %v1550_v33  ;;  %v1265_v6 = vadd.f32 %v24378_v56, %v24377_v10  ;;  %v1543_v50 = vmul.f32 %v17862_v27, %v1505_v40 }
 0x1d1   :  { %v18084_v61 = vadd.f32 %v17856_v17, %v1552_v31  ;;  %v24275_v33 = vmax.f32 %v18069_v44, 0.0  ;;  %v18094_v52 = vadd.f32 %v17869_v35, %v1551_v46 }
 0x1d2   :  { %24373 = vst [vmem:[#allocation10_spill] sm:$0xff] %v18075_v14  ;;  %v24269_v25 = vmax.f32 %v18075_v14, 0.0  ;;  %v24270_v28 = vmax.f32 %v18078_v41, 0.0  ;;  %v18105_v56 = vadd.f32 %v17869_v35, %v1543_v50 }
 0x1d3   :  { %24376 = vst [vmem:[#allocation9_spill] sm:$0xff] %v18084_v61  ;;  %v24265_v37 = vmax.f32 %v18084_v61, 0.0  ;;  %v1457_v1 = vpop.f32.mrf.mxu2  ;;  %v1485_v55 = vpop.f32.mrf.mxu3 }
 0x1d4   :  { %24379 = vst [vmem:[#allocation11_spill] sm:$0xff] %v18094_v52  ;;  %v1515_v17 = vadd.f32 %v1457_v1, %v1264_v23  ;;  %v1516_v31 = vadd.f32 %v1485_v55, %v1265_v6  ;;  %v1403_v49 = vpop.f32.mrf.mxu0  ;;  %v16631_v27 = vpack.i.bf16 %v24270_v28, %v24269_v25  ;;  %v1431_v40 = vpop.f32.mrf.mxu1  ;;  %v24267_v55 = vmax.f32 %v18094_v52, 0.0 }
 0x1d5   :  { %v16636_v10 = vpack.i.bf16 %v24265_v37, %v24275_v33  ;;  %24380 = vst [vmem:[#allocation16_spill] sm:$0xff] %v18105_v56  ;;  %v24268_v49 = vmax.f32 %v18105_v56, 0.0 }
 0x1d6   :  { %v1553_v46 = vmul.f32 %v17852_v0, %v1515_v17  ;;  %v1554_v23 = vmul.f32 %v17854_v42, %v1516_v31  ;;  %16632 = vrot.lane.b32.xlu1 %v16631_v27, %s16754_s2 }
 0x1d7   :  { %16637 = vrot.lane.b32.xlu2 %v16636_v10, %s16754_s2  ;;  %v16646_v17 = vpack.i.bf16 %v24267_v55, %v24268_v49 }
 0x1d8   :  { %v18113_v6 = vadd.f32 %v17860_v9, %v1553_v46  ;;  %v18116_v1 = vadd.f32 %v17858_v36, %v1554_v23 }
 0x1da   :  { %24381 = vst [vmem:[#allocation17_spill] sm:$0xff] %v18113_v6  ;;  %v24264_v35 = vmax.f32 %v18113_v6, 0.0  ;;  %v24266_v0 = vmax.f32 %v18116_v1, 0.0 }
 0x1db   :  { %24382 = vst [vmem:[#allocation18_spill] sm:$0xff] %v18116_v1  ;;  %v1459_v50 = vpop.f32.mrf.mxu2  ;;  %v1487_v42 = vpop.f32.mrf.mxu3 }
 0x1dc   :  { %v16641_v9 = vpack.i.bf16 %v24266_v0, %v24264_v35 }
 0x1de   :  { %16647 = vrot.lane.b32.xlu1 %v16646_v17, %s16754_s2  ;;  %16642 = vrot.lane.b32.xlu0 %v16641_v9, %s16754_s2 }
 0x209   :  { %v16588_v36 = vpop.permute.xlu2 %16587 }
 0x20a   :  { %v16589_v27 = vunpack.i.l.bf16 %v16588_v36  ;;  %v16590_v33 = vunpack.i.h.bf16 %v16588_v36 }
 0x20c   :  { %v1756_v50 = vsel %vm24305_vm10, %v16589_v27, 0.0 }
 0x20d   :  { %v1766_v9 = vmax.f32 %v1596_v51, %v1756_v50 }
 0x20f   :  { %v1821_v60 = vrot.slane %v1766_v9, 2 }
 0x218   :  { %v18131_v40 = vpop.permute.xlu2 %16597 }
 0x219   :  { %v24277_v55 = vunpack.i.l.bf16 %v18131_v40 }
 0x220   :  { %v16583_v31 = vpop.permute.xlu1 %16582 }
 0x221   :  { %v16585_v10 = vunpack.i.h.bf16 %v16583_v31  ;;  %v16584_v46 = vunpack.i.l.bf16 %v16583_v31  ;;  %v16600_v31 = vunpack.i.h.bf16 %v18131_v40 }
 0x223   :  { %v1708_v23 = vsel %vm24306_vm11, %v16585_v10, %v16589_v27  ;;  %v1707_v42 = vsel %vm24306_vm11, %v16584_v46, %v16585_v10 }
 0x224   :  { %v1765_v17 = vmax.f32 %v1595_v34, %v1708_v23  ;;  %v1764_v35 = vmax.f32 %v1594_v57, %v1707_v42  ;;  %v1713_v23 = vsel %vm24306_vm11, %v24277_v55, %v16600_v31 }
 0x225   :  { %v1772_v18 = vmax.f32 %v1602_v38, %v1713_v23 }
 0x226   :  { %v1820_v27 = vrot.slane %v1765_v17, 4  ;;  %v1819_v57 = vrot.slane %v1764_v35, 6 }
 0x228   :  { %v18142_v37 = vpop.permute.xlu0 %16592  ;;  %v1842_v50 = vsel %vm24307_vm15, %v1820_v27, %v1821_v60  ;;  %v1847_v30 = vsel %vm1846_vm6, %v1821_v60, %v1820_v27  ;;  %v1856_v9 = vsel %vm71_vm1, %v1820_v27, %v1821_v60 }
 0x229   :  { %v18144_v0 = vpop.permute.xlu2 %16627  ;;  %v24276_v34 = vunpack.i.h.bf16 %v18142_v37  ;;  %v16594_v11 = vunpack.i.l.bf16 %v18142_v37 }
 0x22a   :  { %v16630_v10 = vunpack.i.h.bf16 %v18144_v0 }
 0x22c   :  { %v1706_v22 = vsel %vm24306_vm11, %v16630_v10, %v16584_v46  ;;  %v1710_v10 = vsel %vm24306_vm11, %v16594_v11, %v24276_v34 }
 0x22d   :  { %v1763_v51 = vmax.f32 %v1593_v45, %v1706_v22  ;;  %v1852_v45 = vsel %vm67_vm0, %v1820_v27, %v1821_v60 }
 0x22f   :  { %v1840_v42 = vsel %vm67_vm0, %v1763_v51, %v1819_v57  ;;  %v1845_v17 = vsel %vm71_vm1, %v1763_v51, %v1819_v57  ;;  %v1851_v46 = vsel %vm24307_vm15, %v1763_v51, %v1819_v57  ;;  %v1855_v35 = vsel %vm1846_vm6, %v1819_v57, %v1763_v51 }
 0x230   :  { %v1844_v22 = vsel %vm24310_vm8, %v1840_v42, %v1842_v50  ;;  %v1849_v49 = vsel %vm24311_vm12, %v1845_v17, %v1847_v30  ;;  %v1853_v25 = vsel %vm24310_vm8, %v1852_v45, %v1851_v46  ;;  %v1857_v28 = vsel %vm24311_vm12, %v1856_v9, %v1855_v35 }
 0x231   :  { %v1850_v59 = vrot.slane %v1849_v49, 2  ;;  %v1854_v57 = vrot.slane %v1853_v25, 4  ;;  %v1858_v51 = vrot.slane %v1857_v28, 6  ;;  %v11686_v39 = vrot.slane %v1844_v22, 9  ;;  %v18179_v35 = vpop.permute.xlu0 %16602  ;;  %v18187_v9 = vpop.permute.xlu2 %16637 }
 0x232   :  { %v1768_v50 = vmax.f32 %v1598_v32, %v1710_v10  ;;  %v1709_v46 = vsel %vm24306_vm11, %v16590_v33, %v16594_v11  ;;  %v18181_v25 = vrot.slane %v1772_v18, 6  ;;  %24383 = vst [vmem:[#allocation12_spill] sm:$0xff] %v18187_v9 }
 0x233   :  { %v11687_v27 = vrot.slane %v1850_v59, 9  ;;  %v11688_v60 = vrot.slane %v1854_v57, 9  ;;  %v11689_v13 = vrot.slane %v1858_v51, 9  ;;  %v2061_v42 = vmax.f32 %v1844_v22, %v11686_v39 }
 0x234   :  { %v1822_v49 = vrot.slane %v1768_v50, 6  ;;  %v1767_v36 = vmax.f32 %v1597_v4, %v1709_v46  ;;  %v16604_v39 = vunpack.i.l.bf16 %v18179_v35 }
 0x235   :  { %v2062_v17 = vmax.f32 %v1850_v59, %v11687_v27  ;;  %v2063_v30 = vmax.f32 %v1854_v57, %v11688_v60  ;;  %v2064_v28 = vmax.f32 %v1858_v51, %v11689_v13  ;;  %v2117_v7 = vperm.slane %v2061_v42, 0 }
 0x236   :  { %v2118_v32 = vperm.slane %v2061_v42, 2  ;;  %v2119_v59 = vperm.slane %v2061_v42, 4  ;;  %v2120_v33 = vperm.slane %v2061_v42, 6  ;;  %v18190_v57 = vsel %vm67_vm0, %v1767_v36, %v1822_v49 }
 0x237   :  { %v2121_v47 = vperm.slane %v2062_v17, 0  ;;  %v2122_v38 = vperm.slane %v2062_v17, 2  ;;  %v2125_v11 = vperm.slane %v2063_v30, 0  ;;  %v2126_v45 = vperm.slane %v2063_v30, 2 }
 0x238   :  { %v2123_v18 = vperm.slane %v2062_v17, 4  ;;  %v2124_v13 = vperm.slane %v2062_v17, 6  ;;  %v2129_v10 = vperm.slane %v2064_v28, 0  ;;  %v2130_v22 = vperm.slane %v2064_v28, 2 }
 0x239   :  { %v2127_v51 = vperm.slane %v2063_v30, 4  ;;  %v2128_v21 = vperm.slane %v2063_v30, 6  ;;  %v2343_v4 = vpack.c.bf16 %v2122_v38, %v2121_v47  ;;  %v18193_v27 = vsel %vm71_vm1, %v1767_v36, %v1822_v49 }
 0x23a   :  { %v2131_v60 = vperm.slane %v2064_v28, 4  ;;  %v2132_v50 = vperm.slane %v2064_v28, 6  ;;  %v24280_v42 = vunpack.i.l.bf16 %v18187_v9  ;;  %v2341_v46 = vpack.c.bf16 %v2118_v32, %v2117_v7 }
 0x23b   :  { %v2342_v23 = vpack.c.bf16 %v2120_v33, %v2119_v59  ;;  %v2345_v34 = vpack.c.bf16 %v2126_v45, %v2125_v11  ;;  %v1714_v17 = vsel %vm24306_vm11, %v16600_v31, %v16604_v39  ;;  %v18200_v55 = vsel %vm24307_vm15, %v1767_v36, %v1822_v49 }
 0x23c   :  { %v18203_v30 = vsel %vm1846_vm6, %v1822_v49, %v1767_v36  ;;  %v2344_v47 = vpack.c.bf16 %v2124_v13, %v2123_v18  ;;  %v2347_v38 = vpack.c.bf16 %v2130_v22, %v2129_v10  ;;  %v2346_v54 = vpack.c.bf16 %v2128_v21, %v2127_v51 }
 0x23d   :  { %v2457_v2 = vunpack.c.l.b16 %v2343_v4  ;;  %v16605_v28 = vunpack.i.h.bf16 %v18179_v35  ;;  %v2348_v32 = vpack.c.bf16 %v2132_v50, %v2131_v60  ;;  %v18208_v59 = vsel %vm24305_vm10, %v16604_v39, 0.0 }
 0x23e   :  { %v18212_v31 = vmax.f32 %v1603_v48, %v1714_v17  ;;  %v18217_v49 = vsel %vm24305_vm10, %v24280_v42, 0.0  ;;  %v2453_v36 = vunpack.c.l.b16 %v2341_v46  ;;  %v2454_v33 = vunpack.c.h.b16 %v2341_v46 }
 0x23f   :  { %v2455_v11 = vunpack.c.l.b16 %v2342_v23  ;;  %v2461_v35 = vunpack.c.l.b16 %v2345_v34  ;;  %v2456_v45 = vunpack.c.h.b16 %v2342_v23  ;;  %v2458_v18 = vunpack.c.h.b16 %v2343_v4  ;;  %v16613_v4 = vpop.permute.xlu1 %16612 }
 0x240   :  { %v2459_v13 = vunpack.c.l.b16 %v2344_v47  ;;  %v2465_v10 = vunpack.c.l.b16 %v2347_v38  ;;  %v2460_v22 = vunpack.c.h.b16 %v2344_v47  ;;  %v2462_v39 = vunpack.c.h.b16 %v2345_v34  ;;  %v16608_v47 = vpop.permute.xlu0 %16607 }
 0x241   :  { %v2463_v51 = vunpack.c.l.b16 %v2346_v54  ;;  %v11718_v21 = vunpack.i.l.s16 %v2457_v2  ;;  %v2464_v43 = vunpack.c.h.b16 %v2346_v54  ;;  %v2466_v48 = vunpack.c.h.b16 %v2347_v38 }
 0x242   :  { %v2467_v60 = vunpack.c.l.b16 %v2348_v32  ;;  %v2468_v50 = vunpack.c.h.b16 %v2348_v32  ;;  %v11714_v17 = vunpack.i.l.s16 %v2453_v36  ;;  %v11715_v7 = vunpack.i.l.s16 %v2454_v33 }
 0x243   :  { %v11716_v42 = vunpack.i.l.s16 %v2455_v11  ;;  %v11722_v19 = vunpack.i.l.s16 %v2461_v35  ;;  %v18219_v26 = vunpack.i.l.s16 %v2456_v45  ;;  %v11719_v46 = vunpack.i.l.s16 %v2458_v18 }
 0x244   :  { %v11720_v8 = vunpack.i.l.s16 %v2459_v13  ;;  %v18221_v23 = vunpack.i.l.s16 %v2465_v10  ;;  %v18223_v6 = vunpack.i.l.s16 %v2460_v22  ;;  %v18225_v34 = vunpack.i.l.s16 %v2462_v39 }
 0x245   :  { %v18227_v2 = vunpack.i.l.s16 %v2463_v51  ;;  %v2790_v54 = vrot.slane %v11718_v21, 5  ;;  %v18229_v38 = vunpack.i.l.s16 %v2464_v43  ;;  %v18231_v32 = vunpack.i.l.s16 %v2466_v48 }
 0x246   :  { %v18233_v36 = vunpack.i.l.s16 %v2467_v60  ;;  %v18235_v33 = vunpack.i.l.s16 %v2468_v50  ;;  %v2789_v11 = vrot.slane %v11714_v17, 6  ;;  %v2793_v35 = vrot.slane %v11722_v19, 4 }
 0x247   :  { %v16615_v45 = vunpack.i.h.bf16 %v16613_v4  ;;  %v16614_v18 = vunpack.i.l.bf16 %v16613_v4  ;;  %v2805_v10 = vrot.slane %v11715_v7, 6  ;;  %v2806_v22 = vrot.slane %v11719_v46, 5 }
 0x248   :  { %v16610_v39 = vunpack.i.h.bf16 %v16608_v47  ;;  %v2792_v51 = vsel %vm2791_vm14, %v2790_v54, %v2789_v11  ;;  %v2808_v60 = vrot.slane %v18225_v34, 4  ;;  %v2816_v19 = vrot.slane %v11716_v42, 6 }
 0x249   :  { %v1759_v21 = vsel %vm24305_vm10, %v16615_v45, 0.0  ;;  %v1716_v43 = vsel %vm24306_vm11, %v16605_v28, %v16614_v18  ;;  %v1717_v48 = vsel %vm24306_vm11, %v16614_v18, %v16615_v45  ;;  %v2817_v17 = vrot.slane %v11720_v8, 5 }
 0x24a   :  { %v24384_v4 = vmax.f32 %v17986_v29, 0.0  ;;  %v24385_v7 = vmax.f32 %v17946_v15, 0.0  ;;  %v24386_v54 = vmax.f32 %v17983_v62, 0.0  ;;  %v1715_v61 = vsel %vm24306_vm11, %v16610_v39, %v16605_v28 }
 0x24b   :  { %v18252_v1 = vsel %vm677_vm13, %v2793_v35, %v2792_v51  ;;  %v2807_v34 = vsel %vm2791_vm14, %v2806_v22, %v2805_v10  ;;  %v2819_v45 = vrot.slane %v18227_v2, 4  ;;  %v24387_v8 = vmax.f32 %v17965_v58, 0.0 }
 0x24c   :  { %v1778_v13 = vmax.f32 %v24384_v4, %v1759_v21  ;;  %v1776_v46 = vmax.f32 %v24385_v7, %v1716_v43  ;;  %v1777_v11 = vmax.f32 %v24386_v54, %v1717_v48  ;;  %v2818_v62 = vsel %vm2791_vm14, %v2817_v17, %v2816_v19 }
 0x24d   :  { %v1775_v42 = vmax.f32 %v24387_v8, %v1715_v61  ;;  %v2828_v43 = vrot.slane %v18223_v6, 5  ;;  %v24388_v28 = vmax.f32 %v17942_v20, 0.0  ;;  %v16609_v39 = vunpack.i.l.bf16 %v16608_v47 }
 0x24e   :  { %v1830_v18 = vrot.slane %v1778_v13, 2  ;;  %v1828_v15 = vrot.slane %v1776_v46, 6  ;;  %v1829_v21 = vrot.slane %v1777_v11, 4  ;;  %v2827_v46 = vrot.slane %v18219_v26, 6 }
 0x24f   :  { %v1774_v35 = vmax.f32 %v24388_v28, %v18208_v59  ;;  %v1826_v54 = vrot.slane %v18212_v31, 4  ;;  %v24389_v8 = vunpack.i.l.bf16 %v18131_v40  ;;  %v24390_v40 = vmax.f32 %v18069_v44, 0.0 }
 0x250   :  { %v1890_v10 = vsel %vm24307_vm15, %v1829_v21, %v1830_v18  ;;  %v1893_v2 = vsel %vm1846_vm6, %v1830_v18, %v1829_v21  ;;  %v1897_v58 = vsel %vm67_vm0, %v1829_v21, %v1830_v18  ;;  %v1901_v61 = vsel %vm71_vm1, %v1829_v21, %v1830_v18 }
 0x251   :  { %v1889_v13 = vsel %vm67_vm0, %v1775_v42, %v1828_v15  ;;  %v1892_v22 = vsel %vm71_vm1, %v1775_v42, %v1828_v15  ;;  %v1896_v51 = vsel %vm24307_vm15, %v1775_v42, %v1828_v15  ;;  %v1900_v6 = vsel %vm1846_vm6, %v1828_v15, %v1775_v42 }
 0x252   :  { %v1891_v20 = vsel %vm24310_vm8, %v1889_v13, %v1890_v10  ;;  %v1894_v59 = vsel %vm24311_vm12, %v1892_v22, %v1893_v2  ;;  %v1898_v47 = vsel %vm24310_vm8, %v1897_v58, %v1896_v51  ;;  %v1902_v48 = vsel %vm24311_vm12, %v1901_v61, %v1900_v6 }
 0x253   :  { %v1895_v19 = vrot.slane %v1894_v59, 2  ;;  %v1899_v17 = vrot.slane %v1898_v47, 4  ;;  %v1903_v4 = vrot.slane %v1902_v48, 6  ;;  %v11698_v7 = vrot.slane %v1891_v20, 9 }
 0x254   :  { %v1827_v11 = vrot.slane %v1774_v35, 2  ;;  %v1712_v42 = vsel %vm24306_vm11, %v16609_v39, %v24389_v8  ;;  %v18282_v10 = vsel %vm677_vm13, %v2808_v60, %v2807_v34  ;;  %v18285_v2 = vsel %vm677_vm13, %v2819_v45, %v2818_v62 }
 0x255   :  { %v11699_v18 = vrot.slane %v1895_v19, 9  ;;  %v11700_v15 = vrot.slane %v1899_v17, 9  ;;  %v11701_v21 = vrot.slane %v1903_v4, 9  ;;  %v2073_v28 = vmax.f32 %v1891_v20, %v11698_v7 }
 0x256   :  { %v18290_v31 = vsel %vm2791_vm14, %v2828_v43, %v2827_v46  ;;  %v18295_v35 = vmax.f32 %v24390_v40, %v18217_v49  ;;  %v1875_v60 = vsel %vm24307_vm15, %v1826_v54, %v1827_v11  ;;  %v1878_v34 = vsel %vm1846_vm6, %v1827_v11, %v1826_v54 }
 0x257   :  { %v2075_v39 = vmax.f32 %v1899_v17, %v11700_v15  ;;  %v2076_v61 = vmax.f32 %v1903_v4, %v11701_v21  ;;  %v1882_v45 = vsel %vm67_vm0, %v1826_v54, %v1827_v11  ;;  %v24391_v62 = vmax.f32 %v17979_v12, 0.0 }
 0x258   :  { %v1886_v22 = vsel %vm71_vm1, %v1826_v54, %v1827_v11  ;;  %v2074_v43 = vmax.f32 %v1895_v19, %v11699_v18  ;;  %v2165_v51 = vperm.slane %v2073_v28, 0  ;;  %v2166_v6 = vperm.slane %v2073_v28, 2 }
 0x259   :  { %v1771_v13 = vmax.f32 %v24391_v62, %v1712_v42  ;;  %v2173_v20 = vperm.slane %v2075_v39, 0  ;;  %v2174_v44 = vperm.slane %v2075_v39, 2  ;;  %v2175_v49 = vperm.slane %v2075_v39, 4 }
 0x25a   :  { %v2176_v59 = vperm.slane %v2075_v39, 6  ;;  %v2177_v47 = vperm.slane %v2076_v61, 0  ;;  %v2178_v48 = vperm.slane %v2076_v61, 2  ;;  %v2179_v17 = vperm.slane %v2076_v61, 4 }
 0x25b   :  { %v2180_v4 = vperm.slane %v2076_v61, 6  ;;  %v1874_v7 = vsel %vm67_vm0, %v1771_v13, %v18181_v25  ;;  %v1877_v12 = vsel %vm71_vm1, %v1771_v13, %v18181_v25  ;;  %v1881_v46 = vsel %vm24307_vm15, %v1771_v13, %v18181_v25 }
 0x25c   :  { %v1885_v19 = vsel %vm1846_vm6, %v18181_v25, %v1771_v13  ;;  %v2369_v54 = vpack.c.bf16 %v2174_v44, %v2173_v20  ;;  %v2370_v11 = vpack.c.bf16 %v2176_v59, %v2175_v49  ;;  %v2371_v8 = vpack.c.bf16 %v2178_v48, %v2177_v47 }
 0x25d   :  { %v2372_v42 = vpack.c.bf16 %v2180_v4, %v2179_v17  ;;  %v2167_v18 = vperm.slane %v2073_v28, 4  ;;  %v2168_v15 = vperm.slane %v2073_v28, 6  ;;  %v2169_v21 = vperm.slane %v2074_v43, 0 }
 0x25e   :  { %v2170_v40 = vperm.slane %v2074_v43, 2  ;;  %v2171_v39 = vperm.slane %v2074_v43, 4  ;;  %v2172_v61 = vperm.slane %v2074_v43, 6  ;;  %v2365_v62 = vpack.c.bf16 %v2166_v6, %v2165_v51 }
 0x25f   :  { %v1879_v26 = vsel %vm24311_vm12, %v1877_v12, %v1878_v34  ;;  %v2509_v29 = vunpack.c.l.b16 %v2369_v54  ;;  %v2510_v50 = vunpack.c.h.b16 %v2369_v54  ;;  %v2511_v58 = vunpack.c.l.b16 %v2370_v11 }
 0x260   :  { %v2512_v52 = vunpack.c.h.b16 %v2370_v11  ;;  %v2513_v56 = vunpack.c.l.b16 %v2371_v8  ;;  %v2514_v14 = vunpack.c.h.b16 %v2371_v8  ;;  %v2515_v25 = vunpack.c.l.b16 %v2372_v42 }
 0x261   :  { %v2516_v13 = vunpack.c.h.b16 %v2372_v42  ;;  %v2366_v20 = vpack.c.bf16 %v2168_v15, %v2167_v18  ;;  %v2367_v44 = vpack.c.bf16 %v2170_v40, %v2169_v21  ;;  %v1876_v49 = vsel %vm24310_vm8, %v1874_v7, %v1875_v60 }
 0x262   :  { %v1883_v28 = vsel %vm24310_vm8, %v1882_v45, %v1881_v46  ;;  %v2368_v59 = vpack.c.bf16 %v2172_v61, %v2171_v39  ;;  %v2501_v47 = vunpack.c.l.b16 %v2365_v62  ;;  %v1880_v43 = vrot.slane %v1879_v26, 2 }
 0x263   :  { %v1887_v51 = vsel %vm24311_vm12, %v1886_v22, %v1885_v19  ;;  %v11770_v34 = vunpack.i.l.s16 %v2509_v29  ;;  %v11771_v6 = vunpack.i.l.s16 %v2510_v50  ;;  %v11772_v48 = vunpack.i.l.s16 %v2511_v58 }
 0x264   :  { %v11773_v17 = vunpack.i.l.s16 %v2512_v52  ;;  %v11774_v4 = vunpack.i.l.s16 %v2513_v56  ;;  %v11775_v12 = vunpack.i.l.s16 %v2514_v14  ;;  %v11776_v54 = vunpack.i.l.s16 %v2515_v25 }
 0x265   :  { %v11777_v11 = vunpack.i.l.s16 %v2516_v13  ;;  %v2502_v8 = vunpack.c.h.b16 %v2365_v62  ;;  %v2503_v42 = vunpack.c.l.b16 %v2366_v20  ;;  %v2504_v18 = vunpack.c.h.b16 %v2366_v20 }
 0x266   :  { %v2505_v15 = vunpack.c.l.b16 %v2367_v44  ;;  %v2506_v60 = vunpack.c.h.b16 %v2367_v44  ;;  %v2507_v7 = vunpack.c.l.b16 %v2368_v59  ;;  %v2508_v45 = vunpack.c.h.b16 %v2368_v59 }
 0x267   :  { %v18315_v46 = vunpack.i.l.s16 %v2501_v47  ;;  %v2896_v26 = vrot.slane %v11770_v34, 6  ;;  %v2897_v21 = vrot.slane %v11774_v4, 5  ;;  %v2907_v22 = vrot.slane %v11771_v6, 6 }
 0x268   :  { %v2908_v29 = vrot.slane %v11775_v12, 5  ;;  %v2918_v50 = vrot.slane %v11772_v48, 6  ;;  %v2919_v58 = vrot.slane %v11776_v54, 5  ;;  %v2929_v52 = vrot.slane %v11773_v17, 6 }
 0x269   :  { %v2930_v56 = vrot.slane %v11777_v11, 5  ;;  %v18318_v14 = vsel %vm2791_vm14, %v2897_v21, %v2896_v26  ;;  %v1884_v40 = vrot.slane %v1883_v28, 4  ;;  %v1888_v39 = vrot.slane %v1887_v51, 6 }
 0x26a   :  { %24392 = vst [vmem:[#allocation19_spill] sm:$0xff] %v18318_v14  ;;  %v18321_v19 = vsel %vm2791_vm14, %v2908_v29, %v2907_v22  ;;  %v18324_v61 = vsel %vm2791_vm14, %v2919_v58, %v2918_v50  ;;  %v11694_v25 = vrot.slane %v1876_v49, 9  ;;  %v11695_v13 = vrot.slane %v1880_v43, 9 }
 0x26b   :  { %24393 = vst [vmem:[#allocation20_spill] sm:$0xff] %v18321_v19  ;;  %v18327_v62 = vsel %vm2791_vm14, %v2930_v56, %v2929_v52  ;;  %v24396_v20 = vrot.slane %v18229_v38, 4  ;;  %v18336_v59 = vrot.slane %v18295_v35, 2  ;;  %v11696_v47 = vrot.slane %v1884_v40, 9 }
 0x26c   :  { %24394 = vst [vmem:[#allocation15_spill] sm:$0xff] %v18324_v61  ;;  %v11697_v28 = vrot.slane %v1888_v39, 9  ;;  %v18338_v51 = vunpack.i.l.s16 %v2502_v8  ;;  %v18340_v34 = vunpack.i.l.s16 %v2503_v42  ;;  %v2069_v6 = vmax.f32 %v1876_v49, %v11694_v25  ;;  %v18353_v8 = vpop.permute.xlu1 %16617 }
 0x26d   :  { %24395 = vst [vmem:[#allocation13_spill] sm:$0xff] %v18327_v62  ;;  %v18333_v44 = vsel %vm677_vm13, %v24396_v20, %v18290_v31  ;;  %v2070_v48 = vmax.f32 %v1880_v43, %v11695_v13  ;;  %v18342_v17 = vunpack.i.l.s16 %v2504_v18  ;;  %v18344_v4 = vunpack.i.l.s16 %v2505_v15 }
 0x26e   :  { %24397 = vst [vmem:[#allocation21_spill] sm:$0xff] %v18336_v59  ;;  %v2071_v12 = vmax.f32 %v1884_v40, %v11696_v47  ;;  %v2072_v38 = vmax.f32 %v1888_v39, %v11697_v28  ;;  %v18346_v54 = vunpack.i.l.s16 %v2506_v60  ;;  %v18348_v31 = vunpack.i.l.s16 %v2507_v7 }
 0x26f   :  { %24398 = vst [vmem:[#allocation14_spill] sm:$0xff] %v18340_v34  ;;  %v18350_v35 = vunpack.i.l.s16 %v2508_v45  ;;  %v2149_v42 = vperm.slane %v2069_v6, 0  ;;  %v2150_v26 = vperm.slane %v2069_v6, 2  ;;  %v2151_v49 = vperm.slane %v2069_v6, 4 }
 0x270   :  { %24399 = vst [vmem:[#allocation22_spill] sm:$0xff] %v18342_v17  ;;  %v2152_v43 = vperm.slane %v2069_v6, 6  ;;  %v2153_v18 = vperm.slane %v2070_v48, 0  ;;  %v2154_v21 = vperm.slane %v2070_v48, 2  ;;  %v2157_v15 = vperm.slane %v2071_v12, 0 }
 0x271   :  { %24400 = vst [vmem:[#allocation23_spill] sm:$0xff] %v18348_v31  ;;  %v2158_v22 = vperm.slane %v2071_v12, 2  ;;  %v2161_v60 = vperm.slane %v2072_v38, 0  ;;  %v2162_v50 = vperm.slane %v2072_v38, 2  ;;  %v16620_v7 = vunpack.i.h.bf16 %v18353_v8 }
 0x272   :  { %24401 = vst [vmem:[#allocation24_spill] sm:$0xff] %v18350_v35  ;;  %v2155_v45 = vperm.slane %v2070_v48, 4  ;;  %v2156_v58 = vperm.slane %v2070_v48, 6  ;;  %v2159_v52 = vperm.slane %v2071_v12, 4  ;;  %v2160_v56 = vperm.slane %v2071_v12, 6 }
 0x273   :  { %24402 = vst [vmem:[#allocation25_spill] sm:$0xff] %v18353_v8  ;;  %v2163_v40 = vperm.slane %v2072_v38, 4  ;;  %v2164_v39 = vperm.slane %v2072_v38, 6  ;;  %v2357_v25 = vpack.c.bf16 %v2150_v26, %v2149_v42  ;;  %v2358_v47 = vpack.c.bf16 %v2152_v43, %v2151_v49 }
 0x274   :  { %v2359_v28 = vpack.c.bf16 %v2154_v21, %v2153_v18  ;;  %v2361_v6 = vpack.c.bf16 %v2158_v22, %v2157_v15  ;;  %v2363_v61 = vpack.c.bf16 %v2162_v50, %v2161_v60  ;;  %v2360_v38 = vpack.c.bf16 %v2156_v58, %v2155_v45  ;;  %v16633_v14 = vpop.permute.xlu1 %16632 }
 0x275   :  { %v2362_v42 = vpack.c.bf16 %v2160_v56, %v2159_v52  ;;  %v2364_v26 = vpack.c.bf16 %v2164_v39, %v2163_v40  ;;  %v2485_v13 = vunpack.c.l.b16 %v2357_v25  ;;  %v24403_v20 = vunpack.i.l.bf16 %v18353_v8 }
 0x276   :  { %v24404_v43 = vunpack.i.l.bf16 %v18187_v9  ;;  %v2486_v21 = vunpack.c.h.b16 %v2357_v25  ;;  %v2487_v15 = vunpack.c.l.b16 %v2358_v47  ;;  %v2489_v22 = vunpack.c.l.b16 %v2359_v28 }
 0x277   :  { %v1719_v49 = vsel %vm24306_vm11, %v24403_v20, %v16620_v7  ;;  %v2493_v60 = vunpack.c.l.b16 %v2361_v6  ;;  %v2490_v50 = vunpack.c.h.b16 %v2359_v28  ;;  %v2494_v62 = vunpack.c.h.b16 %v2361_v6 }
 0x278   :  { %v1720_v18 = vsel %vm24306_vm11, %v16620_v7, %v24404_v43  ;;  %v2497_v48 = vunpack.c.l.b16 %v2363_v61  ;;  %v2498_v12 = vunpack.c.h.b16 %v2363_v61  ;;  %v2488_v45 = vunpack.c.h.b16 %v2358_v47 }
 0x279   :  { %v2491_v58 = vunpack.c.l.b16 %v2360_v38  ;;  %v2492_v52 = vunpack.c.h.b16 %v2360_v38  ;;  %v2495_v56 = vunpack.c.l.b16 %v2362_v42  ;;  %v2496_v40 = vunpack.c.h.b16 %v2362_v42 }
 0x27a   :  { %v2499_v39 = vunpack.c.l.b16 %v2364_v26  ;;  %v2500_v11 = vunpack.c.h.b16 %v2364_v26  ;;  %v18370_v20 = vunpack.i.l.s16 %v2485_v13  ;;  %v18372_v29 = vunpack.i.l.s16 %v2486_v21 }
 0x27b   :  { %v18374_v7 = vunpack.i.l.s16 %v2487_v15  ;;  %v18376_v25 = vunpack.i.l.s16 %v2489_v22  ;;  %v18378_v43 = vunpack.i.l.s16 %v2493_v60  ;;  %v18380_v28 = vunpack.i.l.s16 %v2490_v50 }
 0x27c   :  { %v18382_v61 = vunpack.i.l.s16 %v2494_v62  ;;  %v18384_v47 = vunpack.i.l.s16 %v2497_v48  ;;  %v18386_v6 = vunpack.i.l.s16 %v2498_v12  ;;  %v18388_v38 = vunpack.i.l.s16 %v2488_v45  ;;  %v16623_v48 = vpop.permute.xlu0 %16622 }
 0x27d   :  { %v18390_v13 = vunpack.i.l.s16 %v2491_v58  ;;  %v18392_v42 = vunpack.i.l.s16 %v2492_v52  ;;  %v18394_v26 = vunpack.i.l.s16 %v2495_v56  ;;  %v18396_v21 = vunpack.i.l.s16 %v2496_v40 }
 0x27e   :  { %v18398_v15 = vunpack.i.l.s16 %v2499_v39  ;;  %v18400_v22 = vunpack.i.l.s16 %v2500_v11  ;;  %v24405_v45 = vmax.f32 %v18031_v63, 0.0  ;;  %v24406_v62 = vmax.f32 %v18019_v5, 0.0 }
 0x27f   :  { %v16625_v19 = vunpack.i.h.bf16 %v16623_v48  ;;  %v16624_v60 = vunpack.i.l.bf16 %v16623_v48  ;;  %v24408_v5 = vunpack.i.h.bf16 %v18142_v37  ;;  %v16635_v63 = vunpack.i.h.bf16 %v16633_v14 }
 0x280   :  { %v1781_v58 = vmax.f32 %v24405_v45, %v1720_v18  ;;  %v1780_v12 = vmax.f32 %v24406_v62, %v1719_v49  ;;  %v24409_v62 = vunpack.i.l.bf16 %v18144_v0  ;;  %v24411_v52 = vmax.f32 %v17907_v16, 0.0 }
 0x281   :  { %v1711_v49 = vsel %vm24306_vm11, %v24408_v5, %v16624_v60  ;;  %v1757_v18 = vsel %vm24305_vm10, %v16624_v60, 0.0  ;;  %v24412_v39 = vmax.f32 %v18024_v3, 0.0  ;;  %v16634_v45 = vunpack.i.l.bf16 %v16633_v14 }
 0x282   :  { %v18422_v40 = vrot.slane %v1781_v58, 4  ;;  %v1721_v48 = vsel %vm24306_vm11, %v24409_v62, %v16625_v19  ;;  %v18431_v50 = vrot.slane %v1780_v12, 6  ;;  %v1769_v11 = vmax.f32 %v24411_v52, %v1711_v49 }
 0x283   :  { %v1770_v58 = vmax.f32 %v24412_v39, %v1757_v18  ;;  %v24413_v37 = vrot.slane %v18221_v23, 3  ;;  %v24414_v0 = vrot.slane %v18231_v32, 3  ;;  %v24415_v16 = vrot.slane %v18233_v36, 3 }
 0x284   :  { %24407 = vst [vmem:[#allocation26_spill] sm:$0xff] %v18422_v40  ;;  %v1761_v3 = vsel %vm24305_vm10, %v16635_v63, 0.0  ;;  %v1823_v14 = vrot.slane %v1769_v11, 4  ;;  %v1722_v32 = vsel %vm24306_vm11, %v16625_v19, %v16634_v45  ;;  %v24418_v36 = vmax.f32 %v18078_v41, 0.0  ;;  %vm24429_vm10 = vmmov %vm24427_vm3 }
 0x285   :  { %24410 = vst [vmem:[#allocation27_spill] sm:$0xff] %v18431_v50  ;;  %v18441_v5 = vsel %vm24312_vm2, %v24413_v37, %v18252_v1  ;;  %v18447_v60 = vsel %vm24312_vm2, %v24414_v0, %v18282_v10  ;;  %v18453_v12 = vsel %vm24312_vm2, %v24415_v16, %v18285_v2  ;;  %v1824_v52 = vrot.slane %v1770_v58, 2 }
 0x286   :  { %v24416_v1 = vrot.slane %v18235_v33, 3  ;;  %v18466_v10 = vsel %vm24307_vm15, %v18422_v40, %v18336_v59  ;;  %v1786_v2 = vmax.f32 %v24418_v36, %v1761_v3  ;;  %v1723_v39 = vsel %vm24306_vm11, %v16634_v45, %v16635_v63  ;;  %vm24430_vm11 = vmmov %vm24427_vm3 }
 0x287   :  { %24417 = vst [vmem:[#allocation28_spill] sm:$0xff] %v18466_v10  ;;  %v24419_v11 = vmax.f32 %v18039_v24, 0.0  ;;  %v1860_v33 = vsel %vm24307_vm15, %v1823_v14, %v1824_v52  ;;  %v1867_v49 = vsel %vm67_vm0, %v1823_v14, %v1824_v52  ;;  %v1871_v19 = vsel %vm71_vm1, %v1823_v14, %v1824_v52 }
 0x288   :  { %v18460_v23 = vsel %vm24312_vm2, %v24416_v1, %v18333_v44  ;;  %v1863_v44 = vsel %vm1846_vm6, %v1824_v52, %v1823_v14  ;;  %v1861_v62 = vsel %vm24310_vm8, %v18190_v57, %v1860_v33  ;;  %v1868_v63 = vsel %vm24310_vm8, %v1867_v49, %v18200_v55  ;;  %v24422_v57 = vld [vmem:[#allocation10_spill] sm:$0xff] }
 0x289   :  { %v1784_v18 = vmax.f32 %v24419_v11, %v1722_v32  ;;  %v1864_v41 = vsel %vm24311_vm12, %v18193_v27, %v1863_v44  ;;  %v1872_v24 = vsel %vm24311_vm12, %v1871_v19, %v18203_v30  ;;  %v1869_v58 = vrot.slane %v1868_v63, 4 }
 0x28a   :  { %v1865_v45 = vrot.slane %v1864_v41, 2  ;;  %v1873_v37 = vrot.slane %v1872_v24, 6  ;;  %v11690_v0 = vrot.slane %v1861_v62, 9  ;;  %v24420_v16 = vmax.f32 %v18036_v53, 0.0 }
 0x28b   :  { %v18489_v14 = vrot.slane %v1786_v2, 2  ;;  %v24423_v52 = vmax.f32 %v24422_v57, 0.0  ;;  %v18493_v27 = vrot.slane %v1784_v18, 6  ;;  %v11692_v55 = vrot.slane %v1869_v58, 9 }
 0x28c   :  { %v18487_v3 = vmax.f32 %v24420_v16, %v1721_v48  ;;  %v11691_v32 = vrot.slane %v1865_v45, 9  ;;  %v11693_v36 = vrot.slane %v1873_v37, 9  ;;  %v2065_v11 = vmax.f32 %v1861_v62, %v11690_v0 }
 0x28d   :  { %v1785_v1 = vmax.f32 %v24423_v52, %v1723_v39  ;;  %24424 = vst [vmem:[#allocation10_spill] sm:$0xff] %v18493_v27  ;;  %v2067_v39 = vmax.f32 %v1869_v58, %v11692_v55 }
 0x28e   :  { %24421 = vst [vmem:[#allocation29_spill] sm:$0xff] %v18487_v3  ;;  %v18500_v33 = vsel %vm67_vm0, %v18487_v3, %v18493_v27  ;;  %v18505_v53 = vsel %vm71_vm1, %v18487_v3, %v18493_v27  ;;  %v18510_v48 = vsel %vm24307_vm15, %v18487_v3, %v18493_v27  ;;  %v2066_v2 = vmax.f32 %v1865_v45, %v11691_v32 }
 0x28f   :  { %v18495_v30 = vrot.slane %v1785_v1, 4  ;;  %24425 = vst [vmem:[#allocation30_spill] sm:$0xff] %v18505_v53  ;;  %v2068_v18 = vmax.f32 %v1873_v37, %v11693_v36  ;;  %v2133_v44 = vperm.slane %v2065_v11, 0  ;;  %v2134_v49 = vperm.slane %v2065_v11, 2 }
 0x290   :  { %24426 = vst [vmem:[#allocation31_spill] sm:$0xff] %v18510_v48  ;;  %v2135_v19 = vperm.slane %v2065_v11, 4  ;;  %v2136_v62 = vperm.slane %v2065_v11, 6  ;;  %v2137_v63 = vperm.slane %v2066_v2, 0  ;;  %v2138_v24 = vperm.slane %v2066_v2, 2 }
 0x291   :  { %v18515_v41 = vsel %vm24307_vm15, %v18495_v30, %v18489_v14  ;;  %v2139_v0 = vperm.slane %v2066_v2, 4  ;;  %v2140_v16 = vperm.slane %v2066_v2, 6  ;;  %v2141_v57 = vperm.slane %v2067_v39, 0 }
 0x292   :  { %v2142_v52 = vperm.slane %v2067_v39, 2  ;;  %v2143_v1 = vperm.slane %v2067_v39, 4  ;;  %v2144_v56 = vperm.slane %v2067_v39, 6  ;;  %v2145_v45 = vperm.slane %v2068_v18, 0 }
 0x293   :  { %v2146_v58 = vperm.slane %v2068_v18, 2  ;;  %v2147_v37 = vperm.slane %v2068_v18, 4  ;;  %v2148_v32 = vperm.slane %v2068_v18, 6  ;;  %v2349_v55 = vpack.c.bf16 %v2134_v49, %v2133_v44 }
 0x294   :  { %v2350_v36 = vpack.c.bf16 %v2136_v62, %v2135_v19  ;;  %v2351_v11 = vpack.c.bf16 %v2138_v24, %v2137_v63  ;;  %v2352_v10 = vpack.c.bf16 %v2140_v16, %v2139_v0  ;;  %v2353_v50 = vpack.c.bf16 %v2142_v52, %v2141_v57 }
 0x295   :  { %v2354_v9 = vpack.c.bf16 %v2144_v56, %v2143_v1  ;;  %v2355_v59 = vpack.c.bf16 %v2146_v58, %v2145_v45  ;;  %v2356_v40 = vpack.c.bf16 %v2148_v32, %v2147_v37  ;;  %v2469_v8 = vunpack.c.l.b16 %v2349_v55 }
 0x296   :  { %v2470_v27 = vunpack.c.h.b16 %v2349_v55  ;;  %v2471_v2 = vunpack.c.l.b16 %v2350_v36  ;;  %v2472_v3 = vunpack.c.h.b16 %v2350_v36  ;;  %v2473_v48 = vunpack.c.l.b16 %v2351_v11 }
 0x297   :  { %v2474_v39 = vunpack.c.h.b16 %v2351_v11  ;;  %v2475_v35 = vunpack.c.l.b16 %v2352_v10  ;;  %v2476_v31 = vunpack.c.h.b16 %v2352_v10  ;;  %v2477_v53 = vunpack.c.l.b16 %v2353_v50 }
 0x298   :  { %v2478_v18 = vunpack.c.h.b16 %v2353_v50  ;;  %v2479_v44 = vunpack.c.l.b16 %v2354_v9  ;;  %v2480_v49 = vunpack.c.h.b16 %v2354_v9  ;;  %v2481_v19 = vunpack.c.l.b16 %v2355_v59 }
 0x299   :  { %v2482_v62 = vunpack.c.h.b16 %v2355_v59  ;;  %v2483_v63 = vunpack.c.l.b16 %v2356_v40  ;;  %v2484_v56 = vunpack.c.h.b16 %v2356_v40  ;;  %v11730_v24 = vunpack.i.l.s16 %v2469_v8 }
 0x29a   :  { %v11731_v0 = vunpack.i.l.s16 %v2470_v27  ;;  %v11732_v16 = vunpack.i.l.s16 %v2471_v2  ;;  %v11733_v57 = vunpack.i.l.s16 %v2472_v3  ;;  %v11734_v52 = vunpack.i.l.s16 %v2473_v48 }
 0x29b   :  { %v11735_v1 = vunpack.i.l.s16 %v2474_v39  ;;  %v11736_v45 = vunpack.i.l.s16 %v2475_v35  ;;  %v11737_v58 = vunpack.i.l.s16 %v2476_v31  ;;  %v11738_v37 = vunpack.i.l.s16 %v2477_v53 }
 0x29c   :  { %v11739_v32 = vunpack.i.l.s16 %v2478_v18  ;;  %v11740_v55 = vunpack.i.l.s16 %v2479_v44  ;;  %v11741_v10 = vunpack.i.l.s16 %v2480_v49  ;;  %v11742_v36 = vunpack.i.l.s16 %v2481_v19 }
 0x29d   :  { %v11743_v50 = vunpack.i.l.s16 %v2482_v62  ;;  %v11744_v11 = vunpack.i.l.s16 %v2483_v63  ;;  %v11745_v9 = vunpack.i.l.s16 %v2484_v56  ;;  %v2799_v17 = vrot.slane %v11730_v24, 2 }
 0x29e   :  { %v2802_v59 = vrot.slane %v11734_v52, 1  ;;  %v2812_v34 = vrot.slane %v11731_v0, 2  ;;  %v2814_v40 = vrot.slane %v11735_v1, 1  ;;  %v2823_v8 = vrot.slane %v11732_v16, 2 }
 0x29f   :  { %v2825_v27 = vrot.slane %v11736_v45, 1  ;;  %v2834_v2 = vrot.slane %v11733_v57, 2  ;;  %v2836_v3 = vrot.slane %v11737_v58, 1  ;;  %v2801_v35 = vsel %vm24427_vm3, %v2799_v17, %v18441_v5 }
 0x2a0   :  { %v2813_v31 = vsel %vm24428_vm9, %v2812_v34, %v18447_v60  ;;  %v2838_v53 = vrot.slane %v11742_v36, 7  ;;  %v2854_v48 = vrot.slane %v11743_v50, 7  ;;  %v2804_v39 = vsel %vm24309_vm5, %v2802_v59, %v2801_v35 }
 0x2a1   :  { %v2815_v18 = vsel %vm24309_vm5, %v2814_v40, %v2813_v31  ;;  %v2824_v44 = vsel %vm24429_vm10, %v2823_v8, %v18453_v12  ;;  %v2835_v49 = vsel %vm24430_vm11, %v2834_v2, %v18460_v23  ;;  %v24431_v5 = vrot.slane %v18370_v20, 6 }
 0x2a2   :  { %v2826_v19 = vsel %vm24309_vm5, %v2825_v27, %v2824_v44  ;;  %v2837_v62 = vsel %vm24309_vm5, %v2836_v3, %v2835_v49  ;;  %v2840_v17 = vsel %vm24308_vm7, %v2838_v53, %v11738_v37  ;;  %v2855_v34 = vsel %vm24308_vm7, %v2854_v48, %v11739_v32  ;;  %v24456_v53 = vld [vmem:[#allocation14_spill] sm:$0xff] }
 0x2a3   :  { %vm24432_vm9 = vcmask 1042434   ;;  %v24433_v63 = vrot.slane %v18372_v29, 6  ;;  %v2868_v12 = vrot.slane %v11744_v11, 7  ;;  %v2882_v24 = vrot.slane %v11745_v9, 7  ;;  %v24459_v44 = vld [vmem:[#allocation22_spill] sm:$0xff] }
 0x2a4   :  { %v2843_v60 = vsel %vm24432_vm9, %v24431_v5, %v2840_v17  ;;  %vm24434_vm3 = vmmov %vm24432_vm9  ;;  %v24435_v23 = vrot.slane %v18376_v25, 5  ;;  %v24436_v16 = vrot.slane %v18380_v28, 5  ;;  %v18546_v20 = vsel %vm24310_vm8, %v18500_v33, %v18515_v41  ;;  %v24462_v17 = vld [vmem:[#allocation30_spill] sm:$0xff]  ;;  %v24465_v5 = vld [vmem:[#allocation24_spill] sm:$0xff] }
 0x2a5   :  { %v2857_v56 = vsel %vm24434_vm3, %v24433_v63, %v2855_v34  ;;  %v1923_v29 = vsel %vm1846_vm6, %v18489_v14, %v18495_v30  ;;  %v24437_v52 = vrot.slane %v18378_v43, 4  ;;  %v24438_v1 = vrot.slane %v18382_v61, 4  ;;  %vm24442_vm11 = vmmov %vm24434_vm3 }
 0x2a6   :  { %v2845_v0 = vsel %vm2791_vm14, %v24435_v23, %v2843_v60  ;;  %v2859_v57 = vsel %vm2791_vm14, %v24436_v16, %v2857_v56  ;;  %v2869_v45 = vsel %vm24308_vm7, %v2868_v12, %v11740_v55  ;;  %v2883_v58 = vsel %vm24308_vm7, %v2882_v24, %v11741_v10  ;;  %vm24444_vm9 = vmmov %vm24434_vm3 }
 0x2a7   :  { %v2847_v25 = vsel %vm677_vm13, %v24437_v52, %v2845_v0  ;;  %v2861_v28 = vsel %vm677_vm13, %v24438_v1, %v2859_v57  ;;  %v24439_v33 = vrot.slane %v18384_v47, 3  ;;  %v24440_v37 = vrot.slane %v18386_v6, 3  ;;  %vm24447_vm7 = vmmov %vm24429_vm10  ;;  %v24469_v57 = vld [vmem:[#allocation31_spill] sm:$0xff]  ;;  %v24470_v52 = vld [vmem:[#allocation29_spill] sm:$0xff] }
 0x2a8   :  { %v24441_v43 = vrot.slane %v18374_v7, 6  ;;  %v24443_v61 = vrot.slane %v18388_v38, 6  ;;  %vm3042_vm3 = vcmask 1042433   ;;  %v24445_v55 = vrot.slane %v18315_v46, 2 }
 0x2a9   :  { %v2849_v41 = vsel %vm24312_vm2, %v24439_v33, %v2847_v25  ;;  %v2863_v32 = vsel %vm24312_vm2, %v24440_v37, %v2861_v28  ;;  %v24446_v10 = vrot.slane %v18338_v51, 2  ;;  %v24448_v11 = vrot.slane %v18390_v13, 5  ;;  %v24471_v25 = vld [vmem:[#allocation10_spill] sm:$0xff] }
 0x2aa   :  { %v2871_v36 = vsel %vm24442_vm11, %v24441_v43, %v2869_v45  ;;  %v2885_v50 = vsel %vm24444_vm9, %v24443_v61, %v2883_v58  ;;  %v2851_v47 = vsel %vm24429_vm10, %v24445_v55, %v2849_v41  ;;  %v24449_v9 = vrot.slane %v18392_v42, 5 }
 0x2ab   :  { %v2865_v6 = vsel %vm24447_vm7, %v24446_v10, %v2863_v32  ;;  %v2873_v7 = vsel %vm2791_vm14, %v24448_v11, %v2871_v36  ;;  %v24450_v59 = vrot.slane %v18344_v4, 1  ;;  %v24451_v46 = vrot.slane %v18346_v54, 1 }
 0x2ac   :  { %v2887_v38 = vsel %vm2791_vm14, %v24449_v9, %v2885_v50  ;;  %v24452_v51 = vrot.slane %v18394_v26, 4  ;;  %v24453_v13 = vrot.slane %v18396_v21, 4  ;;  %v24454_v42 = vrot.slane %v18398_v15, 3 }
 0x2ad   :  { %v2853_v40 = vsel %vm24309_vm5, %v24450_v59, %v2851_v47  ;;  %v2867_v8 = vsel %vm24309_vm5, %v24451_v46, %v2865_v6  ;;  %v24455_v4 = vrot.slane %v18400_v22, 3  ;;  %vm3065_vm7 = vcmask 1046533  }
 0x2ae   :  { %v2875_v27 = vsel %vm677_vm13, %v24452_v51, %v2873_v7  ;;  %v2889_v2 = vsel %vm677_vm13, %v24453_v13, %v2887_v38  ;;  %v2996_v31 = vpack.c.b16 %v2853_v40, %v2804_v39  ;;  %v2997_v54 = vpack.c.b16 %v2867_v8, %v2815_v18  ;;  %v24463_v39 = vld [vmem:[#allocation23_spill] sm:$0xff] }
 0x2af   :  { %v2877_v3 = vsel %vm24312_vm2, %v24454_v42, %v2875_v27  ;;  %v2891_v35 = vsel %vm24312_vm2, %v24455_v4, %v2889_v2  ;;  %vm3224_vm10 = vcmask 1046529   ;;  %v24457_v26 = vrot.slane %v24456_v53, 2 }
 0x2b0   :  { %vm24458_vm11 = vcmask 1046534   ;;  %v24460_v21 = vrot.slane %v24459_v44, 2  ;;  %v18609_v15 = vsel %vm24311_vm12, %v24462_v17, %v1923_v29  ;;  %v1927_v22 = vsel %vm67_vm0, %v18495_v30, %v18489_v14 }
 0x2b1   :  { %v2879_v48 = vsel %vm24458_vm11, %v24457_v26, %v2877_v3  ;;  %vm24461_vm9 = vmmov %vm24458_vm11  ;;  %vm3242_vm15 = vsmask.f32 7452  ;;  %v24464_v18 = vrot.slane %v24463_v39, 1  ;;  %v24466_v60 = vrot.slane %v24465_v5, 1 }
 0x2b2   :  { %v2893_v49 = vsel %vm24461_vm9, %v24460_v21, %v2891_v35  ;;  %vm24467_vm11 = vcmask 1040384   ;;  %v1925_v16 = vrot.slane %v18609_v15, 2  ;;  %v18630_v29 = vsel %vm24310_vm8, %v1927_v22, %v24469_v57 }
 0x2b3   :  { %v2881_v34 = vsel %vm24309_vm5, %v24464_v18, %v2879_v48  ;;  %v2895_v63 = vsel %vm24309_vm5, %v24466_v60, %v2893_v49  ;;  %v18621_v56 = vsel %vm24467_vm11, 0, %v2996_v31  ;;  %vm24468_vm9 = vmmov %vm24467_vm11  ;;  %v18635_v1 = vsel %vm1846_vm6, %v24471_v25, %v24470_v52  ;;  %v18723_v25 = vpop.permute.xlu1 %16647 }
 0x2b4   :  { %v18624_v12 = vsel %vm24468_vm9, 0, %v2997_v54  ;;  %v2998_v24 = vpack.c.b16 %v2881_v34, %v2826_v19  ;;  %v2999_v23 = vpack.c.b16 %v2895_v63, %v2837_v62  ;;  %v1931_v28 = vsel %vm71_vm1, %v18495_v30, %v18489_v14  ;;  %vm24472_vm11 = vmmov %vm24468_vm9 }
 0x2b5   :  { %v3028_v0 = vrot.slane %v18624_v12, 7  ;;  %v11706_v19 = vrot.slane %v18546_v20, 9  ;;  %vm24473_vm5 = vmmov %vm24468_vm9  ;;  %vm24474_vm8 = vcmask 1041409   ;;  %vm24475_vm12 = vcmask 1042434  }
 0x2b6   :  { %v18642_v62 = vsel %vm24472_vm11, 0, %v2998_v24  ;;  %v18645_v45 = vsel %vm24468_vm9, 0, %v2999_v23  ;;  %vm24478_vm11 = vmmov %vm24475_vm12 }
 0x2b7   :  { %v3035_v58 = vsel %vm24473_vm5, %v18621_v56, %v3028_v0  ;;  %v3040_v33 = vsel %vm24474_vm8, %v18621_v56, %v3028_v0  ;;  %v3029_v41 = vrot.slane %v18642_v62, 6  ;;  %v3030_v37 = vrot.slane %v18645_v45, 5 }
 0x2b8   :  { %v3046_v14 = vsel %vm24475_vm12, %v18621_v56, %v3028_v0  ;;  %v3051_v30 = vsel %vm2791_vm14, %v18621_v56, %v3028_v0  ;;  %v3057_v32 = vsel %vm677_vm13, %v18621_v56, %v3028_v0  ;;  %v3062_v43 = vsel %vm24312_vm2, %v18621_v56, %v3028_v0 }
 0x2b9   :  { %vm24476_vm5 = vcmask 1046534   ;;  %vm24477_vm8 = vcmask 1046528   ;;  %v3038_v50 = vsel %vm24478_vm11, %v3029_v41, %v3030_v37  ;;  %v3041_v55 = vsel %vm2791_vm14, %v3029_v41, %v3030_v37 }
 0x2ba   :  { %v3069_v36 = vsel %vm24476_vm5, %v18621_v56, %v3028_v0  ;;  %v3222_v61 = vsel %vm24477_vm8, %v3028_v0, %v18621_v56  ;;  %v3047_v47 = vsel %vm677_vm13, %v3029_v41, %v3030_v37  ;;  %v3052_v10 = vsel %vm24312_vm2, %v3029_v41, %v3030_v37  ;;  %vm24480_vm9 = vmmov %vm24476_vm5 }
 0x2bb   :  { %v18670_v6 = vsel %vm67_vm0, %v3035_v58, %v3038_v50  ;;  %v3043_v11 = vsel %vm3042_vm3, %v3040_v33, %v3041_v55  ;;  %v3048_v7 = vsel %vm71_vm1, %v3046_v14, %v3047_v47  ;;  %vm24479_vm12 = vcmask 1044483  }
 0x2bc   :  { %v3054_v9 = vsel %vm24479_vm12, %v3051_v30, %v3052_v10  ;;  %v18675_v38 = vrot.slane %v3043_v11, 1  ;;  %v18677_v59 = vrot.slane %v3048_v7, 2  ;;  %v3058_v46 = vsel %vm24480_vm9, %v3029_v41, %v3030_v37  ;;  %vm18694_vm12 = vmor %vm17451_vm4, %vm3242_vm15 }
 0x2bd   :  { %v18679_v40 = vrot.slane %v3054_v9, 3  ;;  %vm24481_vm5 = vcmask 1045508   ;;  %v3064_v51 = vsel %vm24477_vm8, %v3030_v37, %v3029_v41  ;;  %vm24482_vm11 = vcmask 1040384  }
 0x2be   :  { %v3059_v8 = vsel %vm24481_vm5, %v3057_v32, %v3058_v46  ;;  %v3070_v27 = vsel %vm24482_vm11, %v3029_v41, %v3030_v37  ;;  %vm24483_vm2 = vcmask 1041409   ;;  %v3066_v42 = vsel %vm3065_vm7, %v3062_v43, %v3064_v51 }
 0x2bf   :  { %v3223_v13 = vsel %vm24483_vm2, %v3029_v41, %v3030_v37  ;;  %v18686_v2 = vrot.slane %v3059_v8, 4  ;;  %v3071_v3 = vsel %vm1846_vm6, %v3070_v27, %v3069_v36  ;;  %v18698_v54 = vrot.slane %v3066_v42, 5  ;;  %vm24491_vm9 = vmmov %vm24483_vm2 }
 0x2c0   :  { %v3225_v4 = vsel %vm3224_vm10, %v3223_v13, %v3222_v61  ;;  %v18700_v53 = vrot.slane %v3071_v3, 6  ;;  %v3244_v48 = vshrl.u32 %v18670_v6, 16  ;;  %v3249_v44 = vshll.u32 %v18675_v38, 16  ;;  %vm24494_vm11 = vmmov %vm24483_vm2 }
 0x2c1   :  { %v3227_v26 = vrot.slane %v3225_v4, 7  ;;  %v3252_v21 = vshrl.u32 %v18675_v38, 16  ;;  %v3257_v49 = vshll.u32 %v18677_v59, 16  ;;  %v3260_v17 = vshrl.u32 %v18677_v59, 16 }
 0x2c2   :  { %v3265_v22 = vshll.u32 %v18679_v40, 16  ;;  %v3268_v39 = vshrl.u32 %v18679_v40, 16  ;;  %v3273_v18 = vshll.u32 %v18686_v2, 16  ;;  %v3276_v34 = vshrl.u32 %v18686_v2, 16 }
 0x2c3   :  { %v3251_v5 = vsel %vm18694_vm12, %v3244_v48, %v3249_v44  ;;  %v3259_v60 = vsel %vm18694_vm12, %v3252_v21, %v3257_v49  ;;  %v3281_v63 = vshll.u32 %v18698_v54, 16  ;;  %v3284_v24 = vshrl.u32 %v18698_v54, 16 }
 0x2c4   :  { %v3267_v23 = vsel %vm18694_vm12, %v3260_v17, %v3265_v22  ;;  %v3275_v0 = vsel %vm18694_vm12, %v3268_v39, %v3273_v18  ;;  %v3289_v57 = vshll.u32 %v18700_v53, 16  ;;  %v3292_v52 = vshrl.u32 %v18700_v53, 16  ;;  %3470 = vst [vmem:[#allocation1] ss:$9 sm:$0xff] %v3251_v5 }
 0x2c5   :  { %v3283_v58 = vsel %vm18694_vm12, %v3276_v34, %v3281_v63  ;;  %v3297_v33 = vshll.u32 %v3227_v26, 16  ;;  %3473 = vst [vmem:[#allocation1 + $0x1] ss:$9 sm:$0xff] %v3259_v60  ;;  %v1929_v41 = vrot.slane %v18630_v29, 4  ;;  %vm24487_vm4 = vcmask 1045506  }
 0x2c6   :  { %v1932_v37 = vsel %vm24487_vm4, %v1931_v28, %v18635_v1  ;;  %v3291_v14 = vsel %vm18694_vm12, %v3284_v24, %v3289_v57  ;;  %3476 = vst [vmem:[#allocation1 + $0x2] ss:$9 sm:$0xff] %v3267_v23  ;;  %v11707_v32 = vrot.slane %v1925_v16, 9  ;;  %v2081_v43 = vmax.f32 %v18546_v20, %v11706_v19  ;;  %v24488_v19 = vld [vmem:[#allocation25_spill] sm:$0xff] }
 0x2c7   :  { %v1933_v30 = vrot.slane %v1932_v37, 6  ;;  %v3299_v36 = vsel %vm18694_vm12, %v3292_v52, %v3297_v33  ;;  %3479 = vst [vmem:[#allocation1 + $0x3] ss:$9 sm:$0xff] %v3275_v0  ;;  %v11708_v29 = vrot.slane %v1929_v41, 9  ;;  %v16650_v61 = vunpack.i.h.bf16 %v18723_v25 }
 0x2c8   :  { %v16649_v1 = vunpack.i.l.bf16 %v18723_v25  ;;  %3482 = vst [vmem:[#allocation1 + $0x4] ss:$9 sm:$0xff] %v3283_v58  ;;  %v2082_v50 = vmax.f32 %v1925_v16, %v11707_v32  ;;  %v2197_v55 = vperm.slane %v2081_v43, 0  ;;  %v2198_v47 = vperm.slane %v2081_v43, 2 }
 0x2c9   :  { %v11709_v28 = vrot.slane %v1933_v30, 9  ;;  %3485 = vst [vmem:[#allocation1 + $0x5] ss:$9 sm:$0xff] %v3291_v14  ;;  %v2083_v10 = vmax.f32 %v1929_v41, %v11708_v29  ;;  %v2199_v11 = vperm.slane %v2081_v43, 4  ;;  %v2200_v20 = vperm.slane %v2081_v43, 6 }
 0x2ca   :  { %v24489_v7 = vunpack.i.l.bf16 %v24488_v19  ;;  %vm24490_vm15 = vcmask 916480   ;;  %3488 = vst [vmem:[#allocation1 + $0x6] ss:$9 sm:$0xff] %v3299_v36  ;;  %v2201_v8 = vperm.slane %v2082_v50, 0  ;;  %v2202_v51 = vperm.slane %v2082_v50, 2 }
 0x2cb   :  { %v2084_v46 = vmax.f32 %v1933_v30, %v11709_v28  ;;  %v2203_v27 = vperm.slane %v2082_v50, 4  ;;  %v2204_v13 = vperm.slane %v2082_v50, 6  ;;  %v2205_v42 = vperm.slane %v2083_v10, 0 }
 0x2cc   :  { %v18746_v9 = vsel %vm24490_vm15, %v16649_v1, %v24489_v7  ;;  %v2206_v15 = vperm.slane %v2083_v10, 2  ;;  %v2207_v16 = vperm.slane %v2083_v10, 4  ;;  %v2208_v3 = vperm.slane %v2083_v10, 6  ;;  %vm24498_vm15 = vmmov %vm24483_vm2 }
 0x2cd   :  { %v2209_v4 = vperm.slane %v2084_v46, 0  ;;  %v2210_v35 = vperm.slane %v2084_v46, 2  ;;  %v2211_v26 = vperm.slane %v2084_v46, 4  ;;  %v2212_v48 = vperm.slane %v2084_v46, 6 }
 0x2ce   :  { %v2381_v44 = vpack.c.bf16 %v2198_v47, %v2197_v55  ;;  %v2382_v21 = vpack.c.bf16 %v2200_v20, %v2199_v11  ;;  %v2383_v49 = vpack.c.bf16 %v2202_v51, %v2201_v8  ;;  %v2384_v17 = vpack.c.bf16 %v2204_v13, %v2203_v27 }
 0x2cf   :  { %v2385_v22 = vpack.c.bf16 %v2206_v15, %v2205_v42  ;;  %v2386_v39 = vpack.c.bf16 %v2208_v3, %v2207_v16  ;;  %v2387_v18 = vpack.c.bf16 %v2210_v35, %v2209_v4  ;;  %v2388_v34 = vpack.c.bf16 %v2212_v48, %v2211_v26 }
 0x2d0   :  { %v2533_v5 = vunpack.c.l.b16 %v2381_v44  ;;  %v2534_v60 = vunpack.c.h.b16 %v2381_v44  ;;  %v2535_v63 = vunpack.c.l.b16 %v2382_v21  ;;  %v2536_v24 = vunpack.c.h.b16 %v2382_v21 }
 0x2d1   :  { %v2537_v23 = vunpack.c.l.b16 %v2383_v49  ;;  %v2538_v0 = vunpack.c.h.b16 %v2383_v49  ;;  %v2539_v57 = vunpack.c.l.b16 %v2384_v17  ;;  %v2540_v52 = vunpack.c.h.b16 %v2384_v17 }
 0x2d2   :  { %v2541_v58 = vunpack.c.l.b16 %v2385_v22  ;;  %v2542_v33 = vunpack.c.h.b16 %v2385_v22  ;;  %v2543_v41 = vunpack.c.l.b16 %v2386_v39  ;;  %v2544_v37 = vunpack.c.h.b16 %v2386_v39 }
 0x2d3   :  { %v2545_v14 = vunpack.c.l.b16 %v2387_v18  ;;  %v2546_v30 = vunpack.c.h.b16 %v2387_v18  ;;  %v2547_v32 = vunpack.c.l.b16 %v2388_v34  ;;  %v2548_v43 = vunpack.c.h.b16 %v2388_v34 }
 0x2d4   :  { %v11794_v36 = vunpack.i.l.s16 %v2533_v5  ;;  %v11795_v29 = vunpack.i.l.s16 %v2534_v60  ;;  %v11796_v1 = vunpack.i.l.s16 %v2535_v63  ;;  %v11797_v28 = vunpack.i.l.s16 %v2536_v24  ;;  %v16643_v63 = vpop.permute.xlu0 %16642  ;;  %v24496_v24 = vld [vmem:[#allocation26_spill] sm:$0xff] }
 0x2d5   :  { %v11798_v50 = vunpack.i.l.s16 %v2537_v23  ;;  %v11799_v55 = vunpack.i.l.s16 %v2538_v0  ;;  %v11800_v47 = vunpack.i.l.s16 %v2539_v57  ;;  %v11801_v10 = vunpack.i.l.s16 %v2540_v52  ;;  %v24497_v23 = vld [vmem:[#allocation21_spill] sm:$0xff] }
 0x2d6   :  { %v11802_v11 = vunpack.i.l.s16 %v2541_v58  ;;  %v11803_v20 = vunpack.i.l.s16 %v2542_v33  ;;  %v11804_v19 = vunpack.i.l.s16 %v2543_v41  ;;  %v11805_v7 = vunpack.i.l.s16 %v2544_v37 }
 0x2d7   :  { %v11806_v46 = vunpack.i.l.s16 %v2545_v14  ;;  %v11807_v8 = vunpack.i.l.s16 %v2546_v30  ;;  %v11808_v51 = vunpack.i.l.s16 %v2547_v32  ;;  %v11809_v27 = vunpack.i.l.s16 %v2548_v43  ;;  %v24500_v14 = vld [vmem:[#allocation16_spill] sm:$0xff] }
 0x2d8   :  { %v2940_v13 = vrot.slane %v11798_v50, 7  ;;  %v2942_v42 = vrot.slane %v11802_v11, 6  ;;  %v2954_v15 = vrot.slane %v11799_v55, 7  ;;  %v2956_v3 = vrot.slane %v11803_v20, 6  ;;  %v24505_v55 = vld [vmem:[#allocation27_spill] sm:$0xff]  ;;  %v24507_v20 = vld [vmem:[#allocation28_spill] sm:$0xff] }
 0x2d9   :  { %v2944_v16 = vrot.slane %v11806_v46, 5  ;;  %v2958_v4 = vrot.slane %v11807_v8, 5  ;;  %v2968_v35 = vrot.slane %v11800_v47, 7  ;;  %v2970_v44 = vrot.slane %v11804_v19, 6 }
 0x2da   :  { %v2941_v26 = vsel %vm24483_vm2, %v2940_v13, %v11794_v36  ;;  %v2955_v48 = vsel %vm24491_vm9, %v2954_v15, %v11795_v29  ;;  %v2972_v21 = vrot.slane %v11808_v51, 5  ;;  %vm24492_vm5 = vcmask 1042434   ;;  %v24502_v36 = vld [vmem:[#allocation12_spill] sm:$0xff] }
 0x2db   :  { %v2943_v49 = vsel %vm24492_vm5, %v2942_v42, %v2941_v26  ;;  %vm24493_vm8 = vmmov %vm24492_vm5  ;;  %v2969_v22 = vsel %vm24494_vm11, %v2968_v35, %v11796_v1  ;;  %v2982_v39 = vrot.slane %v11801_v10, 7  ;;  %v2984_v60 = vrot.slane %v11805_v7, 6 }
 0x2dc   :  { %v2957_v17 = vsel %vm24493_vm8, %v2956_v3, %v2955_v48  ;;  %v18754_v18 = vsel %vm2791_vm14, %v2944_v16, %v2943_v49  ;;  %vm24495_vm4 = vmmov %vm24492_vm5  ;;  %v1908_v0 = vsel %vm1846_vm6, %v24497_v23, %v24496_v24  ;;  %v2986_v58 = vrot.slane %v11809_v27, 5  ;;  %v24515_v48 = vld [vmem:[#allocation11_spill] sm:$0xff]  ;;  %v24517_v49 = vld [vmem:[#allocation18_spill] sm:$0xff] }
 0x2dd   :  { %v18757_v34 = vsel %vm2791_vm14, %v2958_v4, %v2957_v17  ;;  %v2971_v5 = vsel %vm24495_vm4, %v2970_v44, %v2969_v22  ;;  %v2983_v52 = vsel %vm24498_vm15, %v2982_v39, %v11797_v28  ;;  %v1912_v33 = vsel %vm67_vm0, %v24496_v24, %v24497_v23  ;;  %vm24499_vm2 = vmmov %vm24495_vm4  ;;  %v24519_v39 = vld [vmem:[#allocation9_spill] sm:$0xff] }
 0x2de   :  { %v18764_v57 = vsel %vm2791_vm14, %v2972_v21, %v2971_v5  ;;  %v1916_v41 = vsel %vm71_vm1, %v24496_v24, %v24497_v23  ;;  %v2985_v37 = vsel %vm24499_vm2, %v2984_v60, %v2983_v52  ;;  %v24501_v30 = vmax.f32 %v24500_v14, 0.0 }
 0x2df   :  { %v18778_v43 = vsel %vm2791_vm14, %v2986_v58, %v2985_v37  ;;  %v24503_v29 = vunpack.i.h.bf16 %v24502_v36  ;;  %vm24504_vm9 = vcmask 916480   ;;  %v16645_v28 = vunpack.i.h.bf16 %v16643_v63 }
 0x2e0   :  { %v1779_v32 = vmax.f32 %v24501_v30, %v18746_v9  ;;  %v16644_v50 = vunpack.i.l.bf16 %v16643_v63  ;;  %vm24506_vm5 = vcmask 1045508   ;;  %vm24508_vm8 = vcmask 1043456  }
 0x2e1   :  { %v1724_v1 = vsel %vm24504_vm9, %v16650_v61, %v24503_v29  ;;  %vm24509_vm11 = vcmask 1045506   ;;  %vm24510_vm4 = vmmov %vm24508_vm8  ;;  %vm24512_vm2 = vcmask 392192   ;;  %v24513_v42 = vmov %v24503_v29 }
 0x2e2   :  { %v1904_v47 = vsel %vm67_vm0, %v1779_v32, %v24505_v55  ;;  %v1907_v10 = vsel %vm71_vm1, %v1779_v32, %v24505_v55  ;;  %v1911_v9 = vsel %vm24506_vm5, %v1779_v32, %v24505_v55  ;;  %v1915_v11 = vsel %vm1846_vm6, %v24505_v55, %v1779_v32  ;;  %vm24511_vm15 = vmmov %vm24509_vm11 }
 0x2e3   :  { %v1906_v19 = vsel %vm24508_vm8, %v1904_v47, %v24507_v20  ;;  %v1909_v25 = vsel %vm24509_vm11, %v1907_v10, %v1908_v0  ;;  %v1913_v61 = vsel %vm24510_vm4, %v1912_v33, %v1911_v9  ;;  %v1917_v7 = vsel %vm24511_vm15, %v1916_v41, %v1915_v11  ;;  %vm24514_vm5 = vmmov %vm24504_vm9  ;;  %v24521_v0 = vld [vmem:[#allocation17_spill] sm:$0xff] }
 0x2e4   :  { %v1910_v46 = vrot.slane %v1909_v25, 2  ;;  %v1914_v8 = vrot.slane %v1913_v61, 4  ;;  %v1918_v51 = vrot.slane %v1917_v7, 6  ;;  %v11702_v27 = vrot.slane %v1906_v19, 9 }
 0x2e5   :  { %v1762_v13 = vsel %vm24512_vm2, %v16645_v28, 0.0  ;;  %v1725_v15 = vsel %vm24504_vm9, %v24513_v42, %v16644_v50  ;;  %v1726_v16 = vsel %vm24514_vm5, %v16644_v50, %v16645_v28  ;;  %v24516_v44 = vmax.f32 %v24515_v48, 0.0 }
 0x2e6   :  { %v11703_v3 = vrot.slane %v1910_v46, 9  ;;  %v11704_v4 = vrot.slane %v1914_v8, 9  ;;  %v11705_v35 = vrot.slane %v1918_v51, 9  ;;  %v2077_v26 = vmax.f32 %v1906_v19, %v11702_v27 }
 0x2e7   :  { %v18805_v21 = vmax.f32 %v24516_v44, %v1724_v1  ;;  %v24518_v17 = vmax.f32 %v24517_v49, 0.0  ;;  %v24520_v5 = vmax.f32 %v24519_v39, 0.0  ;;  %v24522_v52 = vmax.f32 %v24521_v0, 0.0 }
 0x2e8   :  { %v2078_v63 = vmax.f32 %v1910_v46, %v11703_v3  ;;  %v2079_v24 = vmax.f32 %v1914_v8, %v11704_v4  ;;  %v2080_v23 = vmax.f32 %v1918_v51, %v11705_v35  ;;  %v2181_v33 = vperm.slane %v2077_v26, 0 }
 0x2e9   :  { %v1790_v22 = vmax.f32 %v24518_v17, %v1762_v13  ;;  %v18811_v60 = vmax.f32 %v24520_v5, %v1725_v15  ;;  %v18815_v58 = vmax.f32 %v24522_v52, %v1726_v16  ;;  %v2182_v41 = vperm.slane %v2077_v26, 2 }
 0x2ea   :  { %v2183_v37 = vperm.slane %v2077_v26, 4  ;;  %v2184_v14 = vperm.slane %v2077_v26, 6  ;;  %v2185_v30 = vperm.slane %v2078_v63, 0  ;;  %v2186_v32 = vperm.slane %v2078_v63, 2 }
 0x2eb   :  { %v2187_v36 = vperm.slane %v2078_v63, 4  ;;  %v2188_v29 = vperm.slane %v2078_v63, 6  ;;  %v2189_v1 = vperm.slane %v2079_v24, 0  ;;  %v2190_v28 = vperm.slane %v2079_v24, 2 }
 0x2ec   :  { %v2191_v50 = vperm.slane %v2079_v24, 4  ;;  %v2192_v55 = vperm.slane %v2079_v24, 6  ;;  %v2193_v47 = vperm.slane %v2080_v23, 0  ;;  %v2194_v10 = vperm.slane %v2080_v23, 2 }
 0x2ed   :  { %v2195_v9 = vperm.slane %v2080_v23, 4  ;;  %v2196_v11 = vperm.slane %v2080_v23, 6  ;;  %v2373_v20 = vpack.c.bf16 %v2182_v41, %v2181_v33  ;;  %v2374_v19 = vpack.c.bf16 %v2184_v14, %v2183_v37 }
 0x2ee   :  { %v2375_v25 = vpack.c.bf16 %v2186_v32, %v2185_v30  ;;  %v2376_v61 = vpack.c.bf16 %v2188_v29, %v2187_v36  ;;  %v2377_v7 = vpack.c.bf16 %v2190_v28, %v2189_v1  ;;  %v2378_v46 = vpack.c.bf16 %v2192_v55, %v2191_v50 }
 0x2ef   :  { %v2379_v8 = vpack.c.bf16 %v2194_v10, %v2193_v47  ;;  %v2380_v51 = vpack.c.bf16 %v2196_v11, %v2195_v9  ;;  %v2517_v27 = vunpack.c.l.b16 %v2373_v20  ;;  %v2518_v13 = vunpack.c.h.b16 %v2373_v20 }
 0x2f0   :  { %v2519_v42 = vunpack.c.l.b16 %v2374_v19  ;;  %v18817_v15 = vrot.slane %v1790_v22, 2  ;;  %v2520_v16 = vunpack.c.h.b16 %v2374_v19  ;;  %v2521_v3 = vunpack.c.l.b16 %v2375_v25 }
 0x2f1   :  { %v2522_v4 = vunpack.c.h.b16 %v2375_v25  ;;  %v2523_v35 = vunpack.c.l.b16 %v2376_v61  ;;  %v2524_v26 = vunpack.c.h.b16 %v2376_v61  ;;  %v2525_v48 = vunpack.c.l.b16 %v2377_v7  ;;  %v24523_v61 = vld [vmem:[#allocation19_spill] sm:$0xff] }
 0x2f2   :  { %v2526_v44 = vunpack.c.h.b16 %v2377_v7  ;;  %v2527_v49 = vunpack.c.l.b16 %v2378_v46  ;;  %v2528_v17 = vunpack.c.h.b16 %v2378_v46  ;;  %v2529_v39 = vunpack.c.l.b16 %v2379_v8  ;;  %v24524_v46 = vld [vmem:[#allocation20_spill] sm:$0xff] }
 0x2f3   :  { %v2530_v5 = vunpack.c.h.b16 %v2379_v8  ;;  %v2531_v63 = vunpack.c.l.b16 %v2380_v51  ;;  %v2532_v24 = vunpack.c.h.b16 %v2380_v51  ;;  %v11778_v23 = vunpack.i.l.s16 %v2517_v27 }
 0x2f4   :  { %v11779_v0 = vunpack.i.l.s16 %v2518_v13  ;;  %v11780_v52 = vunpack.i.l.s16 %v2519_v42  ;;  %v11781_v33 = vunpack.i.l.s16 %v2520_v16  ;;  %v11782_v41 = vunpack.i.l.s16 %v2521_v3 }
 0x2f5   :  { %v11783_v22 = vunpack.i.l.s16 %v2522_v4  ;;  %v11784_v37 = vunpack.i.l.s16 %v2523_v35  ;;  %v11785_v14 = vunpack.i.l.s16 %v2524_v26  ;;  %v11786_v30 = vunpack.i.l.s16 %v2525_v48  ;;  %v24529_v26 = vld [vmem:[#allocation15_spill] sm:$0xff] }
 0x2f6   :  { %v11787_v32 = vunpack.i.l.s16 %v2526_v44  ;;  %v11788_v36 = vunpack.i.l.s16 %v2527_v49  ;;  %v18819_v29 = vunpack.i.l.s16 %v2528_v17  ;;  %v11790_v1 = vunpack.i.l.s16 %v2529_v39 }
 0x2f7   :  { %v11791_v28 = vunpack.i.l.s16 %v2530_v5  ;;  %v11792_v50 = vunpack.i.l.s16 %v2531_v63  ;;  %v2899_v55 = vrot.slane %v11778_v23, 4  ;;  %v2901_v47 = vrot.slane %v11782_v41, 3 }
 0x2f8   :  { %v2903_v10 = vrot.slane %v11786_v30, 2  ;;  %v2910_v9 = vrot.slane %v11779_v0, 4  ;;  %v18821_v11 = vunpack.i.l.s16 %v2532_v24  ;;  %v2905_v20 = vrot.slane %v11790_v1, 1  ;;  %v24532_v24 = vld [vmem:[#allocation13_spill] sm:$0xff]  ;;  %v15993_v1 = vld [vmem:[%s24237_s4 + $0x56c] sm:$0xf0] }
 0x2f9   :  { %v2912_v19 = vrot.slane %v11783_v22, 3  ;;  %v2914_v25 = vrot.slane %v11787_v32, 2  ;;  %v2900_v7 = vsel %vm677_vm13, %v2899_v55, %v24523_v61  ;;  %v2921_v51 = vrot.slane %v11780_v52, 4 }
 0x2fa   :  { %v2911_v8 = vsel %vm677_vm13, %v2910_v9, %v24524_v46  ;;  %v2923_v27 = vrot.slane %v11784_v37, 3  ;;  %vm24525_vm8 = vcmask 1045509   ;;  %v2916_v16 = vrot.slane %v11791_v28, 1  ;;  %v12322_v28 = vld [vmem:[%s24237_s4 + $0x660] sm:$0xf] }
 0x2fb   :  { %v2902_v13 = vsel %vm24525_vm8, %v2901_v47, %v2900_v7  ;;  %vm24526_vm11 = vmmov %vm24525_vm8  ;;  %v2925_v3 = vrot.slane %v11788_v36, 2  ;;  %vm24527_vm4 = vcmask 1046534   ;;  %v2922_v48 = vsel %vm677_vm13, %v2921_v51, %v24529_v26  ;;  %v16025_v9 = vld [vmem:[%s24237_s4 + $0x66c] sm:$0xf0] }
 0x2fc   :  { %v2913_v42 = vsel %vm24526_vm11, %v2912_v19, %v2911_v8  ;;  %v2904_v4 = vsel %vm24527_vm4, %v2903_v10, %v2902_v13  ;;  %vm24528_vm15 = vmmov %vm24527_vm4  ;;  %v2932_v44 = vrot.slane %v11781_v33, 4  ;;  %v2927_v17 = vrot.slane %v11792_v50, 1  ;;  %v15957_v19 = vld [vmem:[%s24237_s4 + $0x44c] sm:$0xf0]  ;;  %v12178_v8 = vld [vmem:[%s24237_s4 + $0x540] sm:$0xf] }
 0x2fd   :  { %v2915_v35 = vsel %vm24528_vm15, %v2914_v25, %v2913_v42  ;;  %vm24530_vm2 = vmmov %vm24525_vm8  ;;  %v2934_v39 = vrot.slane %v11785_v14, 3  ;;  %v2936_v5 = vrot.slane %v18819_v29, 2  ;;  %v1837_v0 = vrot.slane %v18811_v60, 6  ;;  %v12066_v14 = vld [vmem:[%s24237_s4 + $0x460] sm:$0xf] }
 0x2fe   :  { %v2924_v49 = vsel %vm24530_vm2, %v2923_v27, %v2922_v48  ;;  %vm24531_vm9 = vmmov %vm24527_vm4  ;;  %v2933_v23 = vsel %vm677_vm13, %v2932_v44, %v24532_v24  ;;  %v1838_v52 = vrot.slane %v18815_v58, 4  ;;  %v2938_v22 = vrot.slane %v18821_v11, 1  ;;  %v15961_v60 = vld [vmem:[%s24237_s4 + $0x46c] sm:$0xf0]  ;;  %v12194_v29 = vld [vmem:[%s24237_s4 + $0x560] sm:$0xf] }
 0x2ff   :  { %v2926_v63 = vsel %vm24531_vm9, %v2925_v3, %v2924_v49  ;;  %vm24533_vm5 = vmmov %vm24530_vm2  ;;  %vm24534_vm8 = vcmask 1047559   ;;  %v1934_v58 = vsel %vm67_vm0, %v18805_v21, %v1837_v0  ;;  %vm24536_vm4 = vcmask 1045508   ;;  %v15989_v51 = vld [vmem:[%s24237_s4 + $0x54c] sm:$0xf0]  ;;  %v12306_v27 = vld [vmem:[%s24237_s4 + $0x640] sm:$0xf] }
 0x300   :  { %v2935_v41 = vsel %vm24533_vm5, %v2934_v39, %v2933_v23  ;;  %v18843_v33 = vsel %vm24534_vm8, %v2905_v20, %v2904_v4  ;;  %vm24535_vm11 = vmmov %vm24534_vm8  ;;  %v1935_v30 = vsel %vm24536_vm4, %v1838_v52, %v18817_v15  ;;  %v1937_v32 = vsel %vm71_vm1, %v18805_v21, %v1837_v0  ;;  %v12050_v20 = vld [vmem:[%s24237_s4 + $0x440] sm:$0xf] }
 0x301   :  { %v18846_v37 = vsel %vm24535_vm11, %v2916_v16, %v2915_v35  ;;  %vm24537_vm15 = vmmov %vm24534_vm8  ;;  %vm24538_vm2 = vcmask 1043456   ;;  %v1938_v55 = vsel %vm1846_vm6, %v18817_v15, %v1838_v52  ;;  %v1942_v10 = vsel %vm67_vm0, %v1838_v52, %v18817_v15  ;;  %v12034_v39 = vld [vmem:[%s24237_s4 + $0x420] sm:$0xf] }
 0x302   :  { %v18861_v36 = vsel %vm24537_vm15, %v2927_v17, %v2926_v63  ;;  %v1936_v50 = vsel %vm24538_vm2, %v1934_v58, %v1935_v30  ;;  %vm24539_vm9 = vmmov %vm24536_vm4  ;;  %vm24540_vm5 = vcmask 1045506   ;;  %v1945_v7 = vsel %vm1846_vm6, %v1837_v0, %v18805_v21  ;;  %v15953_v63 = vld [vmem:[%s24237_s4 + $0x42c] sm:$0xf0] }
 0x303   :  { %v1941_v47 = vsel %vm24539_vm9, %v18805_v21, %v1837_v0  ;;  %v1939_v25 = vsel %vm24540_vm5, %v1937_v32, %v1938_v55  ;;  %vm24541_vm8 = vmmov %vm24538_vm2  ;;  %v1946_v46 = vsel %vm71_vm1, %v1838_v52, %v18817_v15  ;;  %v11710_v21 = vrot.slane %v1936_v50, 9  ;;  %v16021_v15 = vld [vmem:[%s24237_s4 + $0x64c] sm:$0xf0] }
 0x304   :  { %v1943_v61 = vsel %vm24541_vm8, %v1942_v10, %v1941_v47  ;;  %v1940_v13 = vrot.slane %v1939_v25, 2  ;;  %vm24542_vm11 = vmmov %vm24540_vm5  ;;  %vm24543_vm4 = vcmask 1046534   ;;  %v12067_v35 = vor.u32 %v15961_v60, %v12066_v14 }
 0x305   :  { %v1944_v42 = vrot.slane %v1943_v61, 4  ;;  %v1947_v16 = vsel %vm24542_vm11, %v1946_v46, %v1945_v7  ;;  %v18908_v3 = vsel %vm24543_vm4, %v2936_v5, %v2935_v41  ;;  %v12195_v26 = vor.u32 %v15993_v1, %v12194_v29  ;;  %vm24546_vm9 = vmmov %vm24543_vm4 }
 0x306   :  { %v1948_v4 = vrot.slane %v1947_v16, 6  ;;  %v11711_v48 = vrot.slane %v1940_v13, 9  ;;  %v2085_v49 = vmax.f32 %v1936_v50, %v11710_v21  ;;  %v12323_v17 = vor.u32 %v16025_v9, %v12322_v28  ;;  %4083 = vmatpush.bf16.msrb.mxu0 %v12067_v35  ;;  %vm24547_vm5 = vmmov %vm24543_vm4 }
 0x307   :  { %v11712_v44 = vrot.slane %v1944_v42, 9  ;;  %4102 = vmatpush.bf16.msrb.mxu1 %v12195_v26  ;;  %v12051_v5 = vor.u32 %v15957_v19, %v12050_v20  ;;  %v12179_v23 = vor.u32 %v15989_v51, %v12178_v8  ;;  %v12307_v0 = vor.u32 %v16021_v15, %v12306_v27 }
 0x308   :  { %v11713_v24 = vrot.slane %v1948_v4, 9  ;;  %v2086_v52 = vmax.f32 %v1940_v13, %v11711_v48  ;;  %v2213_v14 = vperm.slane %v2085_v49, 0  ;;  %v2214_v60 = vperm.slane %v2085_v49, 2  ;;  %4121 = vmatpush.bf16.msrb.mxu2 %v12323_v17 }
 0x309   :  { %v2087_v41 = vmax.f32 %v1944_v42, %v11712_v44  ;;  %v2215_v30 = vperm.slane %v2085_v49, 4  ;;  %v2216_v32 = vperm.slane %v2085_v49, 6  ;;  %v12035_v29 = vor.u32 %v15953_v63, %v12034_v39 }
 0x30a   :  { %v2088_v58 = vmax.f32 %v1948_v4, %v11713_v24  ;;  %v2217_v1 = vperm.slane %v2086_v52, 0  ;;  %v2218_v28 = vperm.slane %v2086_v52, 2  ;;  %v2219_v50 = vperm.slane %v2086_v52, 4  ;;  %4084 = vmatpush.bf16.msrb.mxu0 %v12051_v5 }
 0x30b   :  { %v2220_v55 = vperm.slane %v2086_v52, 6  ;;  %v2221_v47 = vperm.slane %v2087_v41, 0  ;;  %v2222_v10 = vperm.slane %v2087_v41, 2  ;;  %v2223_v9 = vperm.slane %v2087_v41, 4  ;;  %4103 = vmatpush.bf16.msrb.mxu1 %v12179_v23 }
 0x30c   :  { %v2224_v25 = vperm.slane %v2087_v41, 6  ;;  %v2225_v20 = vperm.slane %v2088_v58, 0  ;;  %v2226_v19 = vperm.slane %v2088_v58, 2  ;;  %v2227_v61 = vperm.slane %v2088_v58, 4  ;;  %4122 = vmatpush.bf16.msrb.mxu2 %v12307_v0 }
 0x30d   :  { %v2228_v7 = vperm.slane %v2088_v58, 6  ;;  %v2389_v46 = vpack.c.bf16 %v2214_v60, %v2213_v14  ;;  %v2390_v8 = vpack.c.bf16 %v2216_v32, %v2215_v30  ;;  %v2391_v51 = vpack.c.bf16 %v2218_v28, %v2217_v1 }
 0x30e   :  { %v2392_v27 = vpack.c.bf16 %v2220_v55, %v2219_v50  ;;  %v2393_v13 = vpack.c.bf16 %v2222_v10, %v2221_v47  ;;  %v2394_v42 = vpack.c.bf16 %v2224_v25, %v2223_v9  ;;  %v2395_v16 = vpack.c.bf16 %v2226_v19, %v2225_v20  ;;  %4085 = vmatpush.bf16.msrb.mxu0 %v12035_v29 }
 0x30f   :  { %v2396_v21 = vpack.c.bf16 %v2228_v7, %v2227_v61  ;;  %v2549_v15 = vunpack.c.l.b16 %v2389_v46  ;;  %v2550_v4 = vunpack.c.h.b16 %v2389_v46  ;;  %v2551_v35 = vunpack.c.l.b16 %v2390_v8 }
 0x310   :  { %v2552_v26 = vunpack.c.h.b16 %v2390_v8  ;;  %v2553_v48 = vunpack.c.l.b16 %v2391_v51  ;;  %v2554_v44 = vunpack.c.h.b16 %v2391_v51  ;;  %v2555_v49 = vunpack.c.l.b16 %v2392_v27 }
 0x311   :  { %v2556_v17 = vunpack.c.h.b16 %v2392_v27  ;;  %v2557_v39 = vunpack.c.l.b16 %v2393_v13  ;;  %v2558_v63 = vunpack.c.h.b16 %v2393_v13  ;;  %v2559_v24 = vunpack.c.l.b16 %v2394_v42 }
 0x312   :  { %v2560_v5 = vunpack.c.h.b16 %v2394_v42  ;;  %v2561_v23 = vunpack.c.l.b16 %v2395_v16  ;;  %v2562_v0 = vunpack.c.h.b16 %v2395_v16  ;;  %v2563_v52 = vunpack.c.l.b16 %v2396_v21 }
 0x313   :  { %v2564_v41 = vunpack.c.h.b16 %v2396_v21  ;;  %v11810_v14 = vunpack.i.l.s16 %v2549_v15  ;;  %v11811_v60 = vunpack.i.l.s16 %v2550_v4  ;;  %v11812_v58 = vunpack.i.l.s16 %v2551_v35 }
 0x314   :  { %v11813_v30 = vunpack.i.l.s16 %v2552_v26  ;;  %v11814_v32 = vunpack.i.l.s16 %v2553_v48  ;;  %v11815_v1 = vunpack.i.l.s16 %v2554_v44  ;;  %v11816_v28 = vunpack.i.l.s16 %v2555_v49 }
 0x315   :  { %v11817_v29 = vunpack.i.l.s16 %v2556_v17  ;;  %v11818_v50 = vunpack.i.l.s16 %v2557_v39  ;;  %v11819_v55 = vunpack.i.l.s16 %v2558_v63  ;;  %v11820_v47 = vunpack.i.l.s16 %v2559_v24 }
 0x316   :  { %v11821_v10 = vunpack.i.l.s16 %v2560_v5  ;;  %v11822_v9 = vunpack.i.l.s16 %v2561_v23  ;;  %v11823_v25 = vunpack.i.l.s16 %v2562_v0  ;;  %v11824_v20 = vunpack.i.l.s16 %v2563_v52  ;;  %v16041_v52 = vld [vmem:[%s24237_s4 + $0x6ec] sm:$0xf0] }
 0x317   :  { %v11825_v19 = vunpack.i.l.s16 %v2564_v41  ;;  %v2946_v61 = vrot.slane %v11810_v14, 4  ;;  %v2948_v7 = vrot.slane %v11814_v32, 3  ;;  %v2950_v46 = vrot.slane %v11818_v50, 2  ;;  %v16017_v32 = vld [vmem:[%s24237_s4 + $0x62c] sm:$0xf0] }
 0x318   :  { %v2960_v8 = vrot.slane %v11811_v60, 4  ;;  %v2952_v51 = vrot.slane %v11822_v9, 1  ;;  %v2962_v27 = vrot.slane %v11815_v1, 3  ;;  %v2964_v13 = vrot.slane %v11819_v55, 2  ;;  %v15949_v55 = vld [vmem:[%s24237_s4 + $0x40c] sm:$0xf0] }
 0x319   :  { %v2966_v42 = vrot.slane %v11823_v25, 1  ;;  %v2947_v16 = vsel %vm677_vm13, %v2946_v61, %v18754_v18  ;;  %v2974_v15 = vrot.slane %v11812_v58, 4  ;;  %v2976_v4 = vrot.slane %v11816_v28, 3  ;;  %v12162_v18 = vld [vmem:[%s24237_s4 + $0x520] sm:$0xf] }
 0x31a   :  { %v2961_v21 = vsel %vm677_vm13, %v2960_v8, %v18757_v34  ;;  %vm24544_vm15 = vcmask 1045509   ;;  %v2978_v48 = vrot.slane %v11820_v47, 2  ;;  %v2980_v44 = vrot.slane %v11824_v20, 1  ;;  %v15985_v34 = vld [vmem:[%s24237_s4 + $0x52c] sm:$0xf0] }
 0x31b   :  { %v2949_v35 = vsel %vm24544_vm15, %v2948_v7, %v2947_v16  ;;  %vm24545_vm2 = vmmov %vm24544_vm15  ;;  %v2975_v39 = vsel %vm677_vm13, %v2974_v15, %v18764_v57  ;;  %v2988_v63 = vrot.slane %v11813_v30, 4  ;;  %vm24548_vm8 = vcmask 1047559   ;;  %v12386_v57 = vld [vmem:[%s24237_s4 + $0x6e0] sm:$0xf]  ;;  %v15977_v15 = vld [vmem:[%s24237_s4 + $0x4ec] sm:$0xf0] }
 0x31c   :  { %v2963_v26 = vsel %vm24545_vm2, %v2962_v27, %v2961_v21  ;;  %v2951_v49 = vsel %vm24546_vm9, %v2950_v46, %v2949_v35  ;;  %vm24549_vm11 = vmmov %vm24548_vm8  ;;  %v2990_v0 = vrot.slane %v11817_v29, 3  ;;  %v2992_v60 = vrot.slane %v11821_v10, 2  ;;  %v12290_v30 = vld [vmem:[%s24237_s4 + $0x620] sm:$0xf] }
 0x31d   :  { %v2965_v17 = vsel %vm24547_vm5, %v2964_v13, %v2963_v26  ;;  %v2953_v24 = vsel %vm24548_vm8, %v2952_v51, %v2951_v49  ;;  %vm24550_vm4 = vmmov %vm24545_vm2  ;;  %v2989_v14 = vsel %vm677_vm13, %v2988_v63, %v18778_v43  ;;  %v2994_v58 = vrot.slane %v11825_v19, 1  ;;  %v12018_v43 = vld [vmem:[%s24237_s4 + $0x400] sm:$0xf]  ;;  %v16013_v19 = vld [vmem:[%s24237_s4 + $0x60c] sm:$0xf0] }
 0x31e   :  { %v2967_v5 = vsel %vm24549_vm11, %v2966_v42, %v2965_v17  ;;  %v2977_v23 = vsel %vm24550_vm4, %v2976_v4, %v2975_v39  ;;  %vm24551_vm15 = vmmov %vm24547_vm5  ;;  %v3000_v29 = vpack.c.b16 %v2953_v24, %v18843_v33  ;;  %v12146_v47 = vld [vmem:[%s24237_s4 + $0x500] sm:$0xf]  ;;  %v12387_v25 = vor.u32 %v16041_v52, %v12386_v57  ;;  %v15945_v51 = vld [vmem:[%s24237_s4 + $0x3ec] sm:$0xf0] }
 0x31f   :  { %v2979_v41 = vsel %vm24551_vm15, %v2978_v48, %v2977_v23  ;;  %vm24552_vm2 = vmmov %vm24548_vm8  ;;  %v3001_v50 = vpack.c.b16 %v2967_v5, %v18846_v37  ;;  %v12163_v33 = vor.u32 %v15985_v34, %v12162_v18  ;;  %v15981_v37 = vld [vmem:[%s24237_s4 + $0x50c] sm:$0xf0]  ;;  %v12274_v20 = vld [vmem:[%s24237_s4 + $0x600] sm:$0xf]  ;;  %v12291_v46 = vor.u32 %v16017_v32, %v12290_v30 }
 0x320   :  { %v2981_v1 = vsel %vm24552_vm2, %v2980_v44, %v2979_v41  ;;  %vm24553_vm9 = vmmov %vm24550_vm4  ;;  %vm24556_vm4 = vcmask 1040384   ;;  %v12002_v8 = vld [vmem:[%s24237_s4 + $0x3e0] sm:$0xf]  ;;  %4144 = vmatpush.bf16.msrb.mxu3 %v12387_v25  ;;  %v12147_v42 = vor.u32 %v15981_v37, %v12146_v47  ;;  %v12275_v16 = vor.u32 %v16013_v19, %v12274_v20  ;;  %v16009_v44 = vld [vmem:[%s24237_s4 + $0x5ec] sm:$0xf0] }
 0x321   :  { %v2991_v28 = vsel %vm24553_vm9, %v2990_v0, %v2989_v14  ;;  %v3002_v9 = vpack.c.b16 %v2981_v1, %v18861_v36  ;;  %vm24554_vm8 = vmmov %vm24552_vm2  ;;  %v18980_v7 = vsel %vm24556_vm4, 0, %v3001_v50  ;;  %4104 = vmatpush.bf16.msrb.mxu1 %v12163_v33  ;;  %4123 = vmatpush.bf16.msrb.mxu2 %v12291_v46  ;;  %v12130_v21 = vld [vmem:[%s24237_s4 + $0x4e0] sm:$0xf]  ;;  %v12003_v26 = vor.u32 %v15945_v51, %v12002_v8  ;;  %v15973_v47 = vld [vmem:[%s24237_s4 + $0x4cc] sm:$0xf0] }
 0x322   :  { %v2993_v10 = vsel %vm24547_vm5, %v2992_v60, %v2991_v28  ;;  %v2939_v61 = vsel %vm24554_vm8, %v2938_v22, %v18908_v3  ;;  %vm24555_vm11 = vmmov %vm24552_vm2  ;;  %24557 = vst [vmem:[#allocation14_spill] sm:$0xff] %v18980_v7  ;;  %v3031_v11 = vrot.slane %v18980_v7, 7  ;;  %v12019_v22 = vor.u32 %v15949_v55, %v12018_v43  ;;  %v12258_v48 = vld [vmem:[%s24237_s4 + $0x5e0] sm:$0xf]  ;;  %v15941_v43 = vld [vmem:[%s24237_s4 + $0x3cc] sm:$0xf0] }
 0x323   :  { %v2995_v36 = vsel %vm24555_vm11, %v2994_v58, %v2993_v10  ;;  %vm24558_vm15 = vmmov %vm24556_vm4  ;;  %vm24563_vm5 = vcmask 1041409   ;;  %v12131_v39 = vor.u32 %v15977_v15, %v12130_v21  ;;  %vm24565_vm11 = vcmask 1042434   ;;  %v11986_v50 = vld [vmem:[%s24237_s4 + $0x3c0] sm:$0xf]  ;;  %v16005_v20 = vld [vmem:[%s24237_s4 + $0x5cc] sm:$0xf0] }
 0x324   :  { %v3003_v27 = vpack.c.b16 %v2995_v36, %v2939_v61  ;;  %v18989_v13 = vsel %vm24558_vm15, 0, %v3002_v9  ;;  %vm24560_vm2 = vmmov %vm24556_vm4  ;;  %4086 = vmatpush.bf16.msrb.mxu0 %v12019_v22  ;;  %v12259_v24 = vor.u32 %v16009_v44, %v12258_v48  ;;  %vm24567_vm15 = vcmask 1045509   ;;  %v12114_v55 = vld [vmem:[%s24237_s4 + $0x4c0] sm:$0xf]  ;;  %v16037_v61 = vld [vmem:[%s24237_s4 + $0x6cc] sm:$0xf0] }
 0x325   :  { %24559 = vst [vmem:[#allocation22_spill] sm:$0xff] %v18989_v13  ;;  %v3032_v3 = vrot.slane %v18989_v13, 6  ;;  %v19000_v4 = vsel %vm24560_vm2, 0, %v3000_v29  ;;  %vm24561_vm9 = vmmov %vm24560_vm2  ;;  %4105 = vmatpush.bf16.msrb.mxu1 %v12147_v42  ;;  %4124 = vmatpush.bf16.msrb.mxu2 %v12275_v16  ;;  %v12242_v37 = vld [vmem:[%s24237_s4 + $0x5c0] sm:$0xf] }
 0x326   :  { %v19003_v35 = vsel %vm24561_vm9, 0, %v3003_v27  ;;  %v3080_v17 = vsel %vm24563_vm5, %v19000_v4, %v3031_v11  ;;  %vm24564_vm8 = vmmov %vm24560_vm2  ;;  %v3090_v52 = vsel %vm2791_vm14, %v19000_v4, %v3031_v11  ;;  %v3095_v60 = vsel %vm677_vm13, %v19000_v4, %v3031_v11  ;;  %v12370_v19 = vld [vmem:[%s24237_s4 + $0x6c0] sm:$0xf]  ;;  %v15937_v22 = vld [vmem:[%s24237_s4 + $0x3ac] sm:$0xf0] }
 0x327   :  { %24562 = vst [vmem:[#allocation30_spill] sm:$0xff] %v19003_v35  ;;  %v3033_v49 = vrot.slane %v19003_v35, 5  ;;  %v3075_v63 = vsel %vm24564_vm8, %v19000_v4, %v3031_v11  ;;  %vm24566_vm4 = vmmov %vm24565_vm11  ;;  %vm24570_vm9 = vcmask 1046528   ;;  %v11970_v27 = vld [vmem:[%s24237_s4 + $0x3a0] sm:$0xf] }
 0x328   :  { %v3085_v23 = vsel %vm24566_vm4, %v19000_v4, %v3031_v11  ;;  %4087 = vmatpush.bf16.msrb.mxu0 %v12003_v26  ;;  %vm24569_vm2 = vmmov %vm24567_vm15  ;;  %vm24575_vm4 = vcmask 1041409   ;;  %v12098_v16 = vld [vmem:[%s24237_s4 + $0x4a0] sm:$0xf]  ;;  %v16001_v48 = vld [vmem:[%s24237_s4 + $0x5ac] sm:$0xf0] }
 0x329   :  { %v3078_v18 = vsel %vm24565_vm11, %v3032_v3, %v3033_v49  ;;  %v3081_v34 = vsel %vm2791_vm14, %v3032_v3, %v3033_v49  ;;  %v3086_v0 = vsel %vm677_vm13, %v3032_v3, %v3033_v49  ;;  %v3091_v41 = vsel %vm24567_vm15, %v3032_v3, %v3033_v49  ;;  %4106 = vmatpush.bf16.msrb.mxu1 %v12131_v39  ;;  %vm24574_vm11 = vmmov %vm24570_vm9 }
 0x32a   :  { %v3082_v5 = vsel %vm3042_vm3, %v3080_v17, %v3081_v34  ;;  %v19028_v14 = vsel %vm67_vm0, %v3075_v63, %v3078_v18  ;;  %vm24568_vm3 = vcmask 1046534   ;;  %v3087_v30 = vsel %vm71_vm1, %v3085_v23, %v3086_v0  ;;  %4125 = vmatpush.bf16.msrb.mxu2 %v12259_v24  ;;  %v12354_v63 = vld [vmem:[%s24237_s4 + $0x6a0] sm:$0xf]  ;;  %v16033_v18 = vld [vmem:[%s24237_s4 + $0x6ac] sm:$0xf0] }
 0x32b   :  { %v19022_v57 = vrot.slane %v3082_v5, 1  ;;  %v3096_v58 = vsel %vm24568_vm3, %v3032_v3, %v3033_v49  ;;  %v3100_v32 = vsel %vm24569_vm2, %v19000_v4, %v3031_v11  ;;  %v3101_v1 = vsel %vm24570_vm9, %v3033_v49, %v3032_v3  ;;  %vm24572_vm5 = vmmov %vm24568_vm3  ;;  %v11954_v0 = vld [vmem:[%s24237_s4 + $0x380] sm:$0xf] }
 0x32c   :  { %vm24571_vm14 = vcmask 1044483   ;;  %v3105_v29 = vsel %vm24572_vm5, %v19000_v4, %v3031_v11  ;;  %vm24573_vm13 = vcmask 1045508   ;;  %v3106_v9 = vsel %vm24564_vm8, %v3032_v3, %v3033_v49 }
 0x32d   :  { %v3092_v28 = vsel %vm24571_vm14, %v3090_v52, %v3091_v41  ;;  %v3097_v10 = vsel %vm24573_vm13, %v3095_v60, %v3096_v58  ;;  %v3300_v25 = vshrl.u32 %v19028_v14, 16  ;;  %v3305_v33 = vshll.u32 %v19022_v57, 16  ;;  %v15933_v52 = vld [vmem:[%s24237_s4 + $0x38c] sm:$0xf0]  ;;  %v12082_v41 = vld [vmem:[%s24237_s4 + $0x480] sm:$0xf]  ;;  %vm24636_vm2 = vmmov %vm24573_vm13 }
 0x32e   :  { %v19068_v36 = vrot.slane %v3087_v30, 2  ;;  %v3102_v46 = vsel %vm3065_vm7, %v3100_v32, %v3101_v1  ;;  %v3228_v8 = vsel %vm24574_vm11, %v3031_v11, %v19000_v4  ;;  %v3229_v51 = vsel %vm24575_vm4, %v3032_v3, %v3033_v49  ;;  %v15969_v11 = vld [vmem:[%s24237_s4 + $0x4ac] sm:$0xf0]  ;;  %v12226_v3 = vld [vmem:[%s24237_s4 + $0x5a0] sm:$0xf]  ;;  %vm24640_vm13 = vmmov %vm24636_vm2 }
 0x32f   :  { %v3307_v42 = vsel %vm18694_vm12, %v3300_v25, %v3305_v33  ;;  %v19091_v21 = vrot.slane %v3092_v28, 3  ;;  %v19093_v15 = vrot.slane %v3097_v10, 4  ;;  %v3107_v26 = vsel %vm1846_vm6, %v3106_v9, %v3105_v29  ;;  %v15965_v60 = vld [vmem:[%s24237_s4 + $0x48c] sm:$0xf0]  ;;  %v12210_v1 = vld [vmem:[%s24237_s4 + $0x580] sm:$0xf]  ;;  %vm24641_vm8 = vmmov %vm24636_vm2 }
 0x330   :  { %3491 = vst [vmem:[#allocation1 + $0x7] ss:$9 sm:$0xff] %v3307_v42  ;;  %v19099_v44 = vrot.slane %v3102_v46, 5  ;;  %v3230_v49 = vsel %vm3224_vm10, %v3229_v51, %v3228_v8  ;;  %v11987_v17 = vor.u32 %v15941_v43, %v11986_v50  ;;  %v12115_v39 = vor.u32 %v15973_v47, %v12114_v55  ;;  %v15997_v28 = vld [vmem:[%s24237_s4 + $0x58c] sm:$0xf0]  ;;  %vm24642_vm11 = vmmov %vm24636_vm2 }
 0x331   :  { %v3308_v34 = vshrl.u32 %v19022_v57, 16  ;;  %v3313_v24 = vshll.u32 %v19068_v36, 16  ;;  %v12243_v5 = vor.u32 %v16005_v20, %v12242_v37  ;;  %v12371_v23 = vor.u32 %v16037_v61, %v12370_v19  ;;  %v12338_v29 = vld [vmem:[%s24237_s4 + $0x680] sm:$0xf]  ;;  %v16029_v50 = vld [vmem:[%s24237_s4 + $0x68c] sm:$0xf0] }
 0x332   :  { %v19122_v58 = vrot.slane %v3107_v26, 6  ;;  %4088 = vmatpush.bf16.msrb.mxu0 %v11987_v17  ;;  %4107 = vmatpush.bf16.msrb.mxu1 %v12115_v39  ;;  %v11971_v30 = vor.u32 %v15937_v22, %v11970_v27  ;;  %v12099_v32 = vor.u32 %v15969_v11, %v12098_v16  ;;  %v3232_v43 = vrot.slane %v3230_v49, 7  ;;  %v15959_v10 = vld [vmem:[%s24237_s4 + $0x464] sm:$0xf]  ;;  %v12068_v9 = vld [vmem:[%s24237_s4 + $0x470] sm:$0xf0] }
 0x333   :  { %4126 = vmatpush.bf16.msrb.mxu2 %v12243_v5  ;;  %4145 = vmatpush.bf16.msrb.mxu3 %v12371_v23  ;;  %v12227_v55 = vor.u32 %v16001_v48, %v12226_v3  ;;  %v12355_v47 = vor.u32 %v16033_v18, %v12354_v63  ;;  %v3316_v25 = vshrl.u32 %v19068_v36, 16  ;;  %v3321_v33 = vshll.u32 %v19091_v21, 16  ;;  %v15991_v20 = vld [vmem:[%s24237_s4 + $0x564] sm:$0xf]  ;;  %v12196_v51 = vld [vmem:[%s24237_s4 + $0x570] sm:$0xf0] }
 0x334   :  { %v3324_v37 = vshrl.u32 %v19091_v21, 16  ;;  %v3315_v19 = vsel %vm18694_vm12, %v3308_v34, %v3313_v24  ;;  %v3329_v61 = vshll.u32 %v19093_v15, 16  ;;  %v3332_v46 = vshrl.u32 %v19093_v15, 16  ;;  %v16023_v48 = vld [vmem:[%s24237_s4 + $0x664] sm:$0xf] }
 0x335   :  { %v3337_v8 = vshll.u32 %v19099_v44, 16  ;;  %v3340_v27 = vshrl.u32 %v19099_v44, 16  ;;  %v3345_v22 = vshll.u32 %v19122_v58, 16  ;;  %v11955_v42 = vor.u32 %v15933_v52, %v11954_v0  ;;  %v12324_v49 = vld [vmem:[%s24237_s4 + $0x670] sm:$0xf0] }
 0x336   :  { %4089 = vmatpush.bf16.msrb.mxu0 %v11971_v30  ;;  %4108 = vmatpush.bf16.msrb.mxu1 %v12099_v32  ;;  %v12083_v16 = vor.u32 %v15965_v60, %v12082_v41  ;;  %v3348_v17 = vshrl.u32 %v19122_v58, 16  ;;  %v3353_v39 = vshll.u32 %v3232_v43, 16  ;;  %v12211_v63 = vor.u32 %v15997_v28, %v12210_v1  ;;  %v15955_v24 = vld [vmem:[%s24237_s4 + $0x444] sm:$0xf]  ;;  %v12052_v5 = vld [vmem:[%s24237_s4 + $0x450] sm:$0xf0] }
 0x337   :  { %v19158_v11 = vld [vmem:[#allocation1] sm:$0xff]  ;;  %v19160_v3 = vld [vmem:[#allocation1 + $0x9] sm:$0xff]  ;;  %v19162_v26 = vld [vmem:[#allocation1 + $0x12] sm:$0xff]  ;;  %4127 = vmatpush.bf16.msrb.mxu2 %v12227_v55  ;;  %4146 = vmatpush.bf16.msrb.mxu3 %v12355_v47  ;;  %v12339_v18 = vor.u32 %v16029_v50, %v12338_v29  ;;  %v3323_v23 = vsel %vm18694_vm12, %v3316_v25, %v3321_v33  ;;  %v12071_v0 = vor.u32 %v15959_v10, %v12068_v9  ;;  %vm4078_vm7 = vcmask 523264  }
 0x338   :  { %v19171_v34 = vld [vmem:[#allocation1 + $0x1b] sm:$0xff]  ;;  %v12199_v52 = vor.u32 %v15991_v20, %v12196_v51  ;;  %v16039_v41 = vld [vmem:[%s24237_s4 + $0x6e4] sm:$0xf]  ;;  %v12388_v60 = vld [vmem:[%s24237_s4 + $0x6f0] sm:$0xf0]  ;;  %v3331_v30 = vsel %vm18694_vm12, %v3324_v37, %v3329_v61  ;;  %v3339_v28 = vsel %vm18694_vm12, %v3332_v46, %v3337_v8  ;;  %v3347_v43 = vsel %vm18694_vm12, %v3340_v27, %v3345_v22 }
 0x339   :  { %3497 = vst [vmem:[#allocation1] ss:$9 sm:$0xff] %v3315_v19  ;;  %v15987_v32 = vld [vmem:[%s24237_s4 + $0x544] sm:$0xf]  ;;  %v12180_v1 = vld [vmem:[%s24237_s4 + $0x550] sm:$0xf0]  ;;  %v12327_v55 = vor.u32 %v16023_v48, %v12324_v49  ;;  %v12391_v9 = vor.u32 %v16039_v41, %v12388_v60  ;;  %v3355_v25 = vsel %vm18694_vm12, %v3348_v17, %v3353_v39  ;;  %v12055_v33 = vor.u32 %v15955_v24, %v12052_v5 }
 0x33a   :  { %3499 = vst [vmem:[#allocation1 + $0x1] ss:$9 sm:$0xff] %v3323_v23  ;;  %4090 = vmatpush.bf16.msrb.mxu0 %v11955_v42  ;;  %4109 = vmatpush.bf16.msrb.mxu1 %v12083_v16  ;;  %v16019_v29 = vld [vmem:[%s24237_s4 + $0x644] sm:$0xf]  ;;  %v12308_v50 = vld [vmem:[%s24237_s4 + $0x650] sm:$0xf0]  ;;  %v12183_v37 = vor.u32 %v15987_v32, %v12180_v1 }
 0x33b   :  { %3501 = vst [vmem:[#allocation1 + $0x2] ss:$9 sm:$0xff] %v3331_v30  ;;  %4128 = vmatpush.bf16.msrb.mxu2 %v12211_v63  ;;  %4147 = vmatpush.bf16.msrb.mxu3 %v12339_v18  ;;  %v15951_v47 = vld [vmem:[%s24237_s4 + $0x424] sm:$0xf]  ;;  %v12036_v10 = vld [vmem:[%s24237_s4 + $0x430] sm:$0xf0]  ;;  %v12311_v8 = vor.u32 %v16019_v29, %v12308_v50 }
 0x33c   :  { %3503 = vst [vmem:[#allocation1 + $0x3] ss:$9 sm:$0xff] %v3339_v28  ;;  %v16035_v20 = vld [vmem:[%s24237_s4 + $0x6c4] sm:$0xf]  ;;  %v12372_v19 = vld [vmem:[%s24237_s4 + $0x6d0] sm:$0xf0]  ;;  %v12039_v42 = vor.u32 %v15951_v47, %v12036_v10 }
 0x33d   :  { %3505 = vst [vmem:[#allocation1 + $0x4] ss:$9 sm:$0xff] %v3347_v43  ;;  %4091 = vmatmul.bf16.vlgmr.msrb.gmra.mxu0 %v19158_v11  ;;  %4110 = vmatmul.bf16.vlgmr.msrb.gmra.mxu1 %v19160_v3  ;;  %v15983_v61 = vld [vmem:[%s24237_s4 + $0x524] sm:$0xf]  ;;  %v12164_v46 = vld [vmem:[%s24237_s4 + $0x530] sm:$0xf0]  ;;  %v12375_v22 = vor.u32 %v16035_v20, %v12372_v19 }
 0x33e   :  { %4159 = vmatpush.bf16.msra.mxu0 %v12071_v0  ;;  %4178 = vmatpush.bf16.msra.mxu1 %v12199_v52  ;;  %3507 = vst [vmem:[#allocation1 + $0x5] ss:$9 sm:$0xff] %v3355_v25  ;;  %v16015_v51 = vld [vmem:[%s24237_s4 + $0x624] sm:$0xf]  ;;  %v12292_v27 = vld [vmem:[%s24237_s4 + $0x630] sm:$0xf0]  ;;  %v12167_v16 = vor.u32 %v15983_v61, %v12164_v46 }
 0x33f   :  { %4129 = vmatmul.bf16.vlgmr.msrb.gmra.mxu2 %v19162_v26  ;;  %12400 = vmatmul.msk.bf16.vlgmr.msrb.gmra.mxu3 %vm4078_vm7, %v19171_v34  ;;  %v15947_v48 = vld [vmem:[%s24237_s4 + $0x404] sm:$0xf]  ;;  %v12356_v17 = vld [vmem:[%s24237_s4 + $0x6b0] sm:$0xf0]  ;;  %v12295_v23 = vor.u32 %v16015_v51, %v12292_v27  ;;  %vm8718_vm10 = vcmask 785408   ;;  %vm24634_vm3 = vcmask 1045506  }
 0x340   :  { %4197 = vmatpush.bf16.msra.mxu2 %v12327_v55  ;;  %4220 = vmatpush.bf16.msra.mxu3 %v12391_v9  ;;  %v16031_v49 = vld [vmem:[%s24237_s4 + $0x6a4] sm:$0xf]  ;;  %v12020_v39 = vld [vmem:[%s24237_s4 + $0x410] sm:$0xf0]  ;;  %vm24637_vm9 = vcmask 1043456   ;;  %vm24638_vm14 = vmmov %vm24634_vm3 }
 0x341   :  { %v15979_v63 = vld [vmem:[%s24237_s4 + $0x504] sm:$0xf]  ;;  %v12148_v18 = vld [vmem:[%s24237_s4 + $0x510] sm:$0xf0]  ;;  %v12359_v41 = vor.u32 %v16031_v49, %v12356_v17  ;;  %v12023_v32 = vor.u32 %v15947_v48, %v12020_v39  ;;  %vm24643_vm4 = vmmov %vm24637_vm9 }
 0x342   :  { %4160 = vmatpush.bf16.msra.mxu0 %v12055_v33  ;;  %4179 = vmatpush.bf16.msra.mxu1 %v12183_v37  ;;  %v16011_v24 = vld [vmem:[%s24237_s4 + $0x604] sm:$0xf]  ;;  %v12276_v5 = vld [vmem:[%s24237_s4 + $0x610] sm:$0xf0]  ;;  %v12151_v1 = vor.u32 %v15979_v63, %v12148_v18  ;;  %v12394_v63 = vld [vmem:[%s24237_s4 + $0x6e8] sm:$0xf] }
 0x343   :  { %v15943_v0 = vld [vmem:[%s24237_s4 + $0x3e4] sm:$0xf]  ;;  %v12004_v52 = vld [vmem:[%s24237_s4 + $0x3f0] sm:$0xf0]  ;;  %v12279_v10 = vor.u32 %v16011_v24, %v12276_v5  ;;  %v16042_v18 = vld [vmem:[%s24237_s4 + $0x6f4] sm:$0xf0] }
 0x344   :  { %4198 = vmatpush.bf16.msra.mxu2 %v12311_v8  ;;  %4221 = vmatpush.bf16.msra.mxu3 %v12375_v22  ;;  %v16027_v60 = vld [vmem:[%s24237_s4 + $0x684] sm:$0xf]  ;;  %v12340_v30 = vld [vmem:[%s24237_s4 + $0x690] sm:$0xf0]  ;;  %v12007_v37 = vor.u32 %v15943_v0, %v12004_v52  ;;  %v12074_v5 = vld [vmem:[%s24237_s4 + $0x468] sm:$0xf]  ;;  %v12395_v0 = vor.u32 %v16042_v18, %v12394_v63 }
 0x345   :  { %v19272_v28 = vld [vmem:[#allocation1] sm:$0xff]  ;;  %v19274_v29 = vld [vmem:[#allocation1 + $0x9] sm:$0xff]  ;;  %v19276_v50 = vld [vmem:[#allocation1 + $0x12] sm:$0xff]  ;;  %v12343_v33 = vor.u32 %v16027_v60, %v12340_v30 }
 0x346   :  { %4161 = vmatpush.bf16.msra.mxu0 %v12039_v42  ;;  %4180 = vmatpush.bf16.msra.mxu1 %v12167_v16  ;;  %v19278_v43 = vld [vmem:[#allocation1 + $0x1b] sm:$0xff]  ;;  %v15975_v55 = vld [vmem:[%s24237_s4 + $0x4e4] sm:$0xf]  ;;  %v12132_v47 = vld [vmem:[%s24237_s4 + $0x4f0] sm:$0xf0] }
 0x347   :  { %4387 = vst [vmem:[#allocation1] ss:$9 sm:$0xff] %v18670_v6  ;;  %v16007_v9 = vld [vmem:[%s24237_s4 + $0x5e4] sm:$0xf]  ;;  %v12260_v25 = vld [vmem:[%s24237_s4 + $0x5f0] sm:$0xf0]  ;;  %v12135_v6 = vor.u32 %v15975_v55, %v12132_v47 }
 0x348   :  { %4199 = vmatpush.bf16.msra.mxu2 %v12295_v23  ;;  %4389 = vst [vmem:[#allocation1 + $0x1] ss:$9 sm:$0xff] %v18675_v38  ;;  %4222 = vmatpush.bf16.msra.mxu3 %v12359_v41  ;;  %v15939_v38 = vld [vmem:[%s24237_s4 + $0x3c4] sm:$0xf]  ;;  %v11988_v20 = vld [vmem:[%s24237_s4 + $0x3d0] sm:$0xf0]  ;;  %v12263_v61 = vor.u32 %v16007_v9, %v12260_v25 }
 0x349   :  { %4391 = vst [vmem:[#allocation1 + $0x2] ss:$9 sm:$0xff] %v18677_v59  ;;  %v15971_v19 = vld [vmem:[%s24237_s4 + $0x4c4] sm:$0xf]  ;;  %v12116_v59 = vld [vmem:[%s24237_s4 + $0x4d0] sm:$0xf0]  ;;  %v11991_v8 = vor.u32 %v15939_v38, %v11988_v20 }
 0x34a   :  { %4162 = vmatpush.bf16.msra.mxu0 %v12023_v32  ;;  %4181 = vmatpush.bf16.msra.mxu1 %v12151_v1  ;;  %4393 = vst [vmem:[#allocation1 + $0x3] ss:$9 sm:$0xff] %v18679_v40  ;;  %v16003_v46 = vld [vmem:[%s24237_s4 + $0x5c4] sm:$0xf]  ;;  %v12244_v40 = vld [vmem:[%s24237_s4 + $0x5d0] sm:$0xf0]  ;;  %v12119_v51 = vor.u32 %v15971_v19, %v12116_v59 }
 0x34b   :  { %4395 = vst [vmem:[#allocation1 + $0x4] ss:$9 sm:$0xff] %v18686_v2  ;;  %v15935_v2 = vld [vmem:[%s24237_s4 + $0x3a4] sm:$0xf]  ;;  %v12100_v27 = vld [vmem:[%s24237_s4 + $0x4b0] sm:$0xf0]  ;;  %v12247_v42 = vor.u32 %v16003_v46, %v12244_v40 }
 0x34c   :  { %4200 = vmatpush.bf16.msra.mxu2 %v12279_v10  ;;  %4397 = vst [vmem:[#allocation1 + $0x5] ss:$9 sm:$0xff] %v18698_v54  ;;  %4223 = vmatpush.bf16.msra.mxu3 %v12343_v33  ;;  %v11972_v54 = vld [vmem:[%s24237_s4 + $0x3b0] sm:$0xf0]  ;;  %v15999_v22 = vld [vmem:[%s24237_s4 + $0x5a4] sm:$0xf] }
 0x34d   :  { %4399 = vst [vmem:[#allocation1 + $0x6] ss:$9 sm:$0xff] %v18700_v53  ;;  %4096 = vmatmul.bf16.gmra.mxu0 %v19272_v28  ;;  %4115 = vmatmul.bf16.gmra.mxu1 %v19274_v29  ;;  %v15967_v53 = vld [vmem:[%s24237_s4 + $0x4a4] sm:$0xf]  ;;  %v11956_v48 = vld [vmem:[%s24237_s4 + $0x390] sm:$0xf0]  ;;  %v11975_v49 = vor.u32 %v15935_v2, %v11972_v54 }
 0x34e   :  { %4163 = vmatpush.bf16.msra.mxu0 %v12007_v37  ;;  %4182 = vmatpush.bf16.msra.mxu1 %v12135_v6  ;;  %4401 = vst [vmem:[#allocation1 + $0x7] ss:$9 sm:$0xff] %v19028_v14  ;;  %v12228_v14 = vld [vmem:[%s24237_s4 + $0x5b0] sm:$0xf0]  ;;  %v15931_v16 = vld [vmem:[%s24237_s4 + $0x384] sm:$0xf]  ;;  %v12103_v17 = vor.u32 %v15967_v53, %v12100_v27 }
 0x34f   :  { %4134 = vmatmul.bf16.gmra.mxu2 %v19276_v50  ;;  %12401 = vmatmul.msk.bf16.gmra.mxu3 %vm4078_vm7, %v19278_v43  ;;  %v15963_v39 = vld [vmem:[%s24237_s4 + $0x484] sm:$0xf]  ;;  %v12084_v24 = vld [vmem:[%s24237_s4 + $0x490] sm:$0xf0]  ;;  %v15962_v23 = vld [vmem:[%s24237_s4 + $0x474] sm:$0xf0]  ;;  %v12231_v30 = vor.u32 %v15999_v22, %v12228_v14  ;;  %v11959_v1 = vor.u32 %v15931_v16, %v11956_v48 }
 0x350   :  { %4201 = vmatpush.bf16.msra.mxu2 %v12263_v61  ;;  %v12202_v52 = vld [vmem:[%s24237_s4 + $0x568] sm:$0xf]  ;;  %v15994_v41 = vld [vmem:[%s24237_s4 + $0x574] sm:$0xf0]  ;;  %4296 = vmatpush.bf16.msrb.mxu3 %v12395_v0  ;;  %v12087_v55 = vor.u32 %v15963_v39, %v12084_v24  ;;  %v15995_v47 = vld [vmem:[%s24237_s4 + $0x584] sm:$0xf]  ;;  %v12075_v33 = vor.u32 %v15962_v23, %v12074_v5 }
 0x351   :  { %v12378_v60 = vld [vmem:[%s24237_s4 + $0x6c8] sm:$0xf]  ;;  %v16038_v32 = vld [vmem:[%s24237_s4 + $0x6d4] sm:$0xf0]  ;;  %v12212_v10 = vld [vmem:[%s24237_s4 + $0x590] sm:$0xf0]  ;;  %v12203_v37 = vor.u32 %v15994_v41, %v12202_v52 }
 0x352   :  { %4164 = vmatpush.bf16.msra.mxu0 %v11991_v8  ;;  %4183 = vmatpush.bf16.msra.mxu1 %v12119_v51  ;;  %v12330_v9 = vld [vmem:[%s24237_s4 + $0x668] sm:$0xf]  ;;  %v12379_v25 = vor.u32 %v16038_v32, %v12378_v60  ;;  %v16026_v6 = vld [vmem:[%s24237_s4 + $0x674] sm:$0xf0]  ;;  %v12215_v46 = vor.u32 %v15995_v47, %v12212_v10 }
 0x353   :  { %v12362_v38 = vld [vmem:[%s24237_s4 + $0x6a8] sm:$0xf]  ;;  %v16034_v20 = vld [vmem:[%s24237_s4 + $0x6b4] sm:$0xf0]  ;;  %v12331_v54 = vor.u32 %v16026_v6, %v12330_v9 }
 0x354   :  { %4202 = vmatpush.bf16.msra.mxu2 %v12247_v42  ;;  %v12058_v19 = vld [vmem:[%s24237_s4 + $0x448] sm:$0xf]  ;;  %v15958_v59 = vld [vmem:[%s24237_s4 + $0x454] sm:$0xf0]  ;;  %4297 = vmatpush.bf16.msrb.mxu3 %v12379_v25  ;;  %v12363_v51 = vor.u32 %v16034_v20, %v12362_v38 }
 0x355   :  { %v12186_v61 = vld [vmem:[%s24237_s4 + $0x548] sm:$0xf]  ;;  %v15990_v40 = vld [vmem:[%s24237_s4 + $0x554] sm:$0xf0]  ;;  %v19410_v2 = vld [vmem:[#allocation1] sm:$0xff]  ;;  %v12059_v48 = vor.u32 %v15958_v59, %v12058_v19 }
 0x356   :  { %4165 = vmatpush.bf16.msra.mxu0 %v11975_v49  ;;  %4184 = vmatpush.bf16.msra.mxu1 %v12103_v17  ;;  %v12314_v8 = vld [vmem:[%s24237_s4 + $0x648] sm:$0xf]  ;;  %v16022_v53 = vld [vmem:[%s24237_s4 + $0x654] sm:$0xf0]  ;;  %v12187_v49 = vor.u32 %v15990_v40, %v12186_v61 }
 0x357   :  { %v12346_v27 = vld [vmem:[%s24237_s4 + $0x688] sm:$0xf]  ;;  %v16030_v22 = vld [vmem:[%s24237_s4 + $0x694] sm:$0xf0]  ;;  %v12315_v63 = vor.u32 %v16022_v53, %v12314_v8 }
 0x358   :  { %4203 = vmatpush.bf16.msra.mxu2 %v12231_v30  ;;  %v19421_v42 = vld [vmem:[#allocation1 + $0x9] sm:$0xff]  ;;  %v19423_v14 = vld [vmem:[#allocation1 + $0x12] sm:$0xff]  ;;  %v19425_v16 = vld [vmem:[#allocation1 + $0x1b] sm:$0xff]  ;;  %4298 = vmatpush.bf16.msrb.mxu3 %v12363_v51  ;;  %v12347_v24 = vor.u32 %v16030_v22, %v12346_v27 }
 0x359   :  { %4406 = vst [vmem:[#allocation1] ss:$9 sm:$0xff] %v19022_v57  ;;  %v12042_v17 = vld [vmem:[%s24237_s4 + $0x428] sm:$0xf]  ;;  %v15954_v39 = vld [vmem:[%s24237_s4 + $0x434] sm:$0xf0] }
 0x35a   :  { %4166 = vmatpush.bf16.msra.mxu0 %v11959_v1  ;;  %4185 = vmatpush.bf16.msra.mxu1 %v12087_v55  ;;  %4407 = vst [vmem:[#allocation1 + $0x1] ss:$9 sm:$0xff] %v19068_v36  ;;  %v12170_v57 = vld [vmem:[%s24237_s4 + $0x528] sm:$0xf]  ;;  %v15986_v18 = vld [vmem:[%s24237_s4 + $0x534] sm:$0xf0] }
 0x35b   :  { %4408 = vst [vmem:[#allocation1 + $0x2] ss:$9 sm:$0xff] %v19091_v21  ;;  %v12298_v36 = vld [vmem:[%s24237_s4 + $0x628] sm:$0xf]  ;;  %v16018_v5 = vld [vmem:[%s24237_s4 + $0x634] sm:$0xf0]  ;;  %v12043_v21 = vor.u32 %v15954_v39, %v12042_v17  ;;  %v12171_v23 = vor.u32 %v15986_v18, %v12170_v57 }
 0x35c   :  { %4204 = vmatpush.bf16.msra.mxu2 %v12215_v46  ;;  %4409 = vst [vmem:[#allocation1 + $0x3] ss:$9 sm:$0xff] %v19093_v15  ;;  %v12026_v0 = vld [vmem:[%s24237_s4 + $0x408] sm:$0xf]  ;;  %v12299_v52 = vor.u32 %v16018_v5, %v12298_v36  ;;  %v15950_v41 = vld [vmem:[%s24237_s4 + $0x414] sm:$0xf0]  ;;  %4299 = vmatpush.bf16.msrb.mxu3 %v12347_v24 }
 0x35d   :  { %4167 = vmatmul.bf16.vlgmr.msra.gmra.mxu0 %v19158_v11  ;;  %4186 = vmatmul.bf16.vlgmr.msra.gmra.mxu1 %v19160_v3  ;;  %v12154_v15 = vld [vmem:[%s24237_s4 + $0x508] sm:$0xf]  ;;  %v15982_v60 = vld [vmem:[%s24237_s4 + $0x514] sm:$0xf0]  ;;  %v12027_v1 = vor.u32 %v15950_v41, %v12026_v0  ;;  %4410 = vst [vmem:[#allocation1 + $0x4] ss:$9 sm:$0xff] %v19099_v44 }
 0x35e   :  { %4235 = vmatpush.bf16.msrb.mxu0 %v12075_v33  ;;  %4254 = vmatpush.bf16.msrb.mxu1 %v12203_v37  ;;  %v12282_v30 = vld [vmem:[%s24237_s4 + $0x608] sm:$0xf]  ;;  %v16014_v32 = vld [vmem:[%s24237_s4 + $0x614] sm:$0xf0]  ;;  %v12155_v55 = vor.u32 %v15982_v60, %v12154_v15  ;;  %4411 = vst [vmem:[#allocation1 + $0x5] ss:$9 sm:$0xff] %v19122_v58 }
 0x35f   :  { %4205 = vmatmul.bf16.vlgmr.msra.gmra.mxu2 %v19162_v26  ;;  %12402 = vmatmul.msk.bf16.vlgmr.msra.gmra.mxu3 %vm4078_vm7, %v19171_v34  ;;  %v12010_v47 = vld [vmem:[%s24237_s4 + $0x3e8] sm:$0xf]  ;;  %v12283_v10 = vor.u32 %v16014_v32, %v12282_v30  ;;  %v15946_v9 = vld [vmem:[%s24237_s4 + $0x3f4] sm:$0xf0]  ;;  %v16040_v0 = vld [vmem:[%s24237_s4 + $0x6ec] sm:$0xf] }
 0x360   :  { %4273 = vmatpush.bf16.msrb.mxu2 %v12331_v54  ;;  %v12138_v25 = vld [vmem:[%s24237_s4 + $0x4e8] sm:$0xf]  ;;  %v15978_v33 = vld [vmem:[%s24237_s4 + $0x4f4] sm:$0xf0]  ;;  %v12011_v38 = vor.u32 %v15946_v9, %v12010_v47  ;;  %v15960_v41 = vld [vmem:[%s24237_s4 + $0x46c] sm:$0xf] }
 0x361   :  { %v12266_v37 = vld [vmem:[%s24237_s4 + $0x5e8] sm:$0xf]  ;;  %v16010_v6 = vld [vmem:[%s24237_s4 + $0x5f4] sm:$0xf0]  ;;  %v12139_v20 = vor.u32 %v15978_v33, %v12138_v25  ;;  %v12076_v15 = vld [vmem:[%s24237_s4 + $0x478] sm:$0xf0] }
 0x362   :  { %4236 = vmatpush.bf16.msrb.mxu0 %v12059_v48  ;;  %4255 = vmatpush.bf16.msrb.mxu1 %v12187_v49  ;;  %v11994_v19 = vld [vmem:[%s24237_s4 + $0x3c8] sm:$0xf]  ;;  %v12267_v59 = vor.u32 %v16010_v6, %v12266_v37  ;;  %v15942_v61 = vld [vmem:[%s24237_s4 + $0x3d4] sm:$0xf0]  ;;  %v15992_v60 = vld [vmem:[%s24237_s4 + $0x56c] sm:$0xf]  ;;  %v12079_v37 = vor.u32 %v15960_v41, %v12076_v15 }
 0x363   :  { %v12122_v44 = vld [vmem:[%s24237_s4 + $0x4c8] sm:$0xf]  ;;  %v15974_v58 = vld [vmem:[%s24237_s4 + $0x4d4] sm:$0xf0]  ;;  %v11995_v8 = vor.u32 %v15942_v61, %v11994_v19  ;;  %v12204_v32 = vld [vmem:[%s24237_s4 + $0x578] sm:$0xf0] }
 0x364   :  { %4274 = vmatpush.bf16.msrb.mxu2 %v12315_v63  ;;  %v12250_v46 = vld [vmem:[%s24237_s4 + $0x5c8] sm:$0xf]  ;;  %v16006_v40 = vld [vmem:[%s24237_s4 + $0x5d4] sm:$0xf0]  ;;  %v12123_v51 = vor.u32 %v15974_v58, %v12122_v44  ;;  %v16036_v9 = vld [vmem:[%s24237_s4 + $0x6cc] sm:$0xf]  ;;  %v12207_v6 = vor.u32 %v15992_v60, %v12204_v32 }
 0x365   :  { %v11978_v54 = vld [vmem:[%s24237_s4 + $0x3a8] sm:$0xf]  ;;  %v12251_v53 = vor.u32 %v16006_v40, %v12250_v46  ;;  %v15938_v27 = vld [vmem:[%s24237_s4 + $0x3b4] sm:$0xf0]  ;;  %v12380_v25 = vld [vmem:[%s24237_s4 + $0x6d8] sm:$0xf0] }
 0x366   :  { %4237 = vmatpush.bf16.msrb.mxu0 %v12043_v21  ;;  %4256 = vmatpush.bf16.msrb.mxu1 %v12171_v23  ;;  %v12106_v22 = vld [vmem:[%s24237_s4 + $0x4a8] sm:$0xf]  ;;  %v15970_v48 = vld [vmem:[%s24237_s4 + $0x4b4] sm:$0xf0]  ;;  %v11979_v57 = vor.u32 %v15938_v27, %v11978_v54  ;;  %v12060_v19 = vld [vmem:[%s24237_s4 + $0x458] sm:$0xf0]  ;;  %v12383_v58 = vor.u32 %v16036_v9, %v12380_v25 }
 0x367   :  { %v12234_v49 = vld [vmem:[%s24237_s4 + $0x5a8] sm:$0xf]  ;;  %v16002_v17 = vld [vmem:[%s24237_s4 + $0x5b4] sm:$0xf0]  ;;  %v12107_v18 = vor.u32 %v15970_v48, %v12106_v22  ;;  %v15988_v61 = vld [vmem:[%s24237_s4 + $0x54c] sm:$0xf] }
 0x368   :  { %4275 = vmatpush.bf16.msrb.mxu2 %v12299_v52  ;;  %v11962_v39 = vld [vmem:[%s24237_s4 + $0x388] sm:$0xf]  ;;  %v15934_v63 = vld [vmem:[%s24237_s4 + $0x394] sm:$0xf0]  ;;  %v12235_v21 = vor.u32 %v16002_v17, %v12234_v49  ;;  %v12396_v52 = vld [vmem:[%s24237_s4 + $0x6f8] sm:$0xf0] }
 0x369   :  { %v12090_v24 = vld [vmem:[%s24237_s4 + $0x488] sm:$0xf]  ;;  %v15966_v36 = vld [vmem:[%s24237_s4 + $0x494] sm:$0xf0]  ;;  %v12399_v30 = vor.u32 %v16040_v0, %v12396_v52  ;;  %v11963_v47 = vor.u32 %v15934_v63, %v11962_v39  ;;  %v12188_v44 = vld [vmem:[%s24237_s4 + $0x558] sm:$0xf0] }
 0x36a   :  { %4238 = vmatpush.bf16.msrb.mxu0 %v12027_v1  ;;  %4257 = vmatpush.bf16.msrb.mxu1 %v12155_v55  ;;  %v12218_v5 = vld [vmem:[%s24237_s4 + $0x588] sm:$0xf]  ;;  %v15998_v23 = vld [vmem:[%s24237_s4 + $0x594] sm:$0xf0]  ;;  %v16024_v1 = vld [vmem:[%s24237_s4 + $0x66c] sm:$0xf]  ;;  %v12191_v17 = vor.u32 %v15988_v61, %v12188_v44 }
 0x36b   :  { %v12332_v55 = vld [vmem:[%s24237_s4 + $0x678] sm:$0xf0]  ;;  %v12219_v33 = vor.u32 %v15998_v23, %v12218_v5  ;;  %4372 = vmatpush.bf16.msra.mxu3 %v12399_v30  ;;  %v19595_v46 = vld [vmem:[#allocation1 + $0x9] sm:$0xff] }
 0x36c   :  { %4276 = vmatpush.bf16.msrb.mxu2 %v12283_v10  ;;  %v12091_v10 = vor.u32 %v15966_v36, %v12090_v24  ;;  %v16020_v40 = vld [vmem:[%s24237_s4 + $0x64c] sm:$0xf]  ;;  %v12044_v27 = vld [vmem:[%s24237_s4 + $0x438] sm:$0xf0]  ;;  %5291 = vst [vmem:[#allocation1 + $0x9] sm:$0xff] %v18624_v12 }
 0x36d   :  { %4172 = vmatmul.bf16.gmra.mxu0 %v19272_v28  ;;  %4191 = vmatmul.bf16.gmra.mxu1 %v19274_v29  ;;  %v19611_v22 = vld [vmem:[#allocation1 + $0x1b] sm:$0xff]  ;;  %v16032_v48 = vld [vmem:[%s24237_s4 + $0x6ac] sm:$0xf] }
 0x36e   :  { %4239 = vmatpush.bf16.msrb.mxu0 %v12011_v38  ;;  %4258 = vmatpush.bf16.msrb.mxu1 %v12139_v20  ;;  %v12335_v38 = vor.u32 %v16024_v1, %v12332_v55  ;;  %v15956_v20 = vld [vmem:[%s24237_s4 + $0x44c] sm:$0xf]  ;;  %v12364_v49 = vld [vmem:[%s24237_s4 + $0x6b8] sm:$0xf0]  ;;  %5293 = vst [vmem:[#allocation1 + $0x1b] sm:$0xff] %v18645_v45 }
 0x36f   :  { %4210 = vmatmul.bf16.gmra.mxu2 %v19276_v50  ;;  %12403 = vmatmul.msk.bf16.gmra.mxu3 %vm4078_vm7, %v19278_v43  ;;  %v12063_v54 = vor.u32 %v15956_v20, %v12060_v19  ;;  %v15984_v63 = vld [vmem:[%s24237_s4 + $0x52c] sm:$0xf]  ;;  %v12300_v36 = vld [vmem:[%s24237_s4 + $0x638] sm:$0xf0] }
 0x370   :  { %4277 = vmatpush.bf16.msrb.mxu2 %v12267_v59  ;;  %v19587_v59 = vld [vmem:[#allocation1] sm:$0xff]  ;;  %4373 = vmatpush.bf16.msra.mxu3 %v12383_v58  ;;  %v16016_v24 = vld [vmem:[%s24237_s4 + $0x62c] sm:$0xf]  ;;  %v12028_v23 = vld [vmem:[%s24237_s4 + $0x418] sm:$0xf0] }
 0x371   :  { %5290 = vst [vmem:[#allocation1] sm:$0xff] %v18621_v56  ;;  %v15948_v5 = vld [vmem:[%s24237_s4 + $0x40c] sm:$0xf]  ;;  %v12348_v52 = vld [vmem:[%s24237_s4 + $0x698] sm:$0xf0]  ;;  %v12303_v15 = vor.u32 %v16016_v24, %v12300_v36 }
 0x372   :  { %4240 = vmatpush.bf16.msrb.mxu0 %v11995_v8  ;;  %4259 = vmatpush.bf16.msrb.mxu1 %v12123_v51  ;;  %v12316_v8 = vld [vmem:[%s24237_s4 + $0x658] sm:$0xf0]  ;;  %v19603_v51 = vld [vmem:[#allocation1 + $0x12] sm:$0xff]  ;;  %v16028_v0 = vld [vmem:[%s24237_s4 + $0x68c] sm:$0xf]  ;;  %v12031_v30 = vor.u32 %v15948_v5, %v12028_v23 }
 0x373   :  { %5292 = vst [vmem:[#allocation1 + $0x12] sm:$0xff] %v18642_v62  ;;  %v12319_v39 = vor.u32 %v16020_v40, %v12316_v8  ;;  %v15980_v60 = vld [vmem:[%s24237_s4 + $0x50c] sm:$0xf]  ;;  %v12156_v32 = vld [vmem:[%s24237_s4 + $0x518] sm:$0xf0] }
 0x374   :  { %4278 = vmatpush.bf16.msrb.mxu2 %v12251_v53  ;;  %v15952_v53 = vld [vmem:[%s24237_s4 + $0x42c] sm:$0xf]  ;;  %v12284_v55 = vld [vmem:[%s24237_s4 + $0x618] sm:$0xf0]  ;;  %v12159_v25 = vor.u32 %v15980_v60, %v12156_v32 }
 0x375   :  { %v16012_v1 = vld [vmem:[%s24237_s4 + $0x60c] sm:$0xf]  ;;  %v12012_v9 = vld [vmem:[%s24237_s4 + $0x3f8] sm:$0xf0] }
 0x376   :  { %4241 = vmatpush.bf16.msrb.mxu0 %v11979_v57  ;;  %4260 = vmatpush.bf16.msrb.mxu1 %v12107_v18  ;;  %v12172_v57 = vld [vmem:[%s24237_s4 + $0x538] sm:$0xf0]  ;;  %v12047_v18 = vor.u32 %v15952_v53, %v12044_v27  ;;  %v16008_v20 = vld [vmem:[%s24237_s4 + $0x5ec] sm:$0xf] }
 0x377   :  { %v12175_v41 = vor.u32 %v15984_v63, %v12172_v57  ;;  %v12268_v19 = vld [vmem:[%s24237_s4 + $0x5f8] sm:$0xf0]  ;;  %v15940_v61 = vld [vmem:[%s24237_s4 + $0x3cc] sm:$0xf] }
 0x378   :  { %4279 = vmatpush.bf16.msrb.mxu2 %v12235_v21  ;;  %v12367_v21 = vor.u32 %v16032_v48, %v12364_v49  ;;  %v11996_v44 = vld [vmem:[%s24237_s4 + $0x3d8] sm:$0xf0]  ;;  %v15972_v58 = vld [vmem:[%s24237_s4 + $0x4cc] sm:$0xf]  ;;  %v12271_v48 = vor.u32 %v16008_v20, %v12268_v19  ;;  %v12842_v20 = vld [vmem:[%s24237_s4 + $0x360] sm:$0xf] }
 0x379   :  { %v12124_v40 = vld [vmem:[%s24237_s4 + $0x4d8] sm:$0xf0]  ;;  %v11999_v63 = vor.u32 %v15940_v61, %v11996_v44  ;;  %v16004_v57 = vld [vmem:[%s24237_s4 + $0x5cc] sm:$0xf]  ;;  %v15929_v19 = vld [vmem:[%s24237_s4 + $0x36c] sm:$0xf0] }
 0x37a   :  { %4242 = vmatpush.bf16.msrb.mxu0 %v11963_v47  ;;  %4261 = vmatpush.bf16.msrb.mxu1 %v12091_v10  ;;  %v12351_v47 = vor.u32 %v16028_v0, %v12348_v52  ;;  %v15944_v10 = vld [vmem:[%s24237_s4 + $0x3ec] sm:$0xf]  ;;  %v19710_v24 = vld [vmem:[#allocation1 + $0x7] ss:$9 sm:$0xff] }
 0x37b   :  { %4374 = vmatpush.bf16.msra.mxu3 %v12367_v21  ;;  %v5295_v8 = vld [vmem:[#allocation1 + $0x1] ss:$9 sm:$0xff]  ;;  %v19696_v53 = vld [vmem:[#allocation1 + $0x3] ss:$9 sm:$0xff]  ;;  %v12127_v21 = vor.u32 %v15972_v58, %v12124_v40 }
 0x37c   :  { %4280 = vmatpush.bf16.msrb.mxu2 %v12219_v33  ;;  %v12287_v33 = vor.u32 %v16012_v1, %v12284_v55  ;;  %v19698_v49 = vld [vmem:[#allocation1 + $0x4] ss:$9 sm:$0xff] }
 0x37d   :  { %4243 = vmatmul.bf16.vlgmr.msrb.gmra.mxu0 %v19158_v11  ;;  %4262 = vmatmul.bf16.vlgmr.msrb.gmra.mxu1 %v19160_v3  ;;  %v15936_v36 = vld [vmem:[%s24237_s4 + $0x3ac] sm:$0xf]  ;;  %v11980_v5 = vld [vmem:[%s24237_s4 + $0x3b8] sm:$0xf0]  ;;  %v12522_v55 = vld [vmem:[%s24237_s4 + $0xe0] sm:$0xf] }
 0x37e   :  { %4311 = vmatpush.bf16.msra.mxu0 %v12079_v37  ;;  %4330 = vmatpush.bf16.msra.mxu1 %v12207_v6  ;;  %v15976_v37 = vld [vmem:[%s24237_s4 + $0x4ec] sm:$0xf]  ;;  %v12015_v6 = vor.u32 %v15944_v10, %v12012_v9  ;;  %v12108_v52 = vld [vmem:[%s24237_s4 + $0x4b8] sm:$0xf0]  ;;  %v15881_v44 = vld [vmem:[%s24237_s4 + $0x1ec] sm:$0xf0] }
 0x37f   :  { %4281 = vmatmul.bf16.vlgmr.msrb.gmra.mxu2 %v19162_v26  ;;  %12404 = vmatmul.msk.bf16.vlgmr.msrb.gmra.mxu3 %vm4078_vm7, %v19171_v34  ;;  %v15968_v0 = vld [vmem:[%s24237_s4 + $0x4ac] sm:$0xf]  ;;  %v12236_v60 = vld [vmem:[%s24237_s4 + $0x5b8] sm:$0xf0]  ;;  %v12778_v58 = vld [vmem:[%s24237_s4 + $0x2e0] sm:$0xf] }
 0x380   :  { %4349 = vmatpush.bf16.msra.mxu2 %v12335_v38  ;;  %v12140_v38 = vld [vmem:[%s24237_s4 + $0x4f8] sm:$0xf0]  ;;  %4375 = vmatpush.bf16.msra.mxu3 %v12351_v47  ;;  %v15964_v1 = vld [vmem:[%s24237_s4 + $0x48c] sm:$0xf]  ;;  %v15849_v47 = vld [vmem:[%s24237_s4 + $0xec] sm:$0xf0]  ;;  %v12111_v10 = vor.u32 %v15968_v0, %v12108_v52 }
 0x381   :  { %v12143_v27 = vor.u32 %v15976_v37, %v12140_v38  ;;  %v11964_v32 = vld [vmem:[%s24237_s4 + $0x398] sm:$0xf0]  ;;  %v12650_v38 = vld [vmem:[%s24237_s4 + $0x1e0] sm:$0xf]  ;;  %v12523_v61 = vor.u32 %v15849_v47, %v12522_v55  ;;  %v15913_v40 = vld [vmem:[%s24237_s4 + $0x2ec] sm:$0xf0] }
 0x382   :  { %4312 = vmatpush.bf16.msra.mxu0 %v12063_v54  ;;  %4331 = vmatpush.bf16.msra.mxu1 %v12191_v17  ;;  %v19694_v54 = vld [vmem:[#allocation1 + $0x2] ss:$9 sm:$0xff]  ;;  %v19700_v17 = vld [vmem:[#allocation1 + $0x5] ss:$9 sm:$0xff] }
 0x383   :  { %v12220_v37 = vld [vmem:[%s24237_s4 + $0x598] sm:$0xf0]  ;;  %v15877_v52 = vld [vmem:[%s24237_s4 + $0x1cc] sm:$0xf0]  ;;  %v12618_v47 = vld [vmem:[%s24237_s4 + $0x1a0] sm:$0xf] }
 0x384   :  { %4350 = vmatpush.bf16.msra.mxu2 %v12319_v39  ;;  %v19702_v39 = vld [vmem:[#allocation1 + $0x6] ss:$9 sm:$0xff] }
 0x385   :  { %5308 = vst [vmem:[#allocation1] sm:$0xff] %v19000_v4 }
 0x386   :  { %4313 = vmatpush.bf16.msra.mxu0 %v12047_v18  ;;  %4332 = vmatpush.bf16.msra.mxu1 %v12175_v41  ;;  %v12252_v18 = vld [vmem:[%s24237_s4 + $0x5d8] sm:$0xf0]  ;;  %5309 = vst [vmem:[#allocation1 + $0x9] sm:$0xff] %v18980_v7  ;;  %v11983_v41 = vor.u32 %v15936_v36, %v11980_v5  ;;  %v15925_v36 = vld [vmem:[%s24237_s4 + $0x34c] sm:$0xf0]  ;;  %v12651_v5 = vor.u32 %v15881_v44, %v12650_v38 }
 0x387   :  { %v12255_v23 = vor.u32 %v16004_v57, %v12252_v18  ;;  %5310 = vst [vmem:[#allocation1 + $0x12] sm:$0xff] %v18989_v13  ;;  %v12746_v38 = vld [vmem:[%s24237_s4 + $0x2a0] sm:$0xf]  ;;  %v15837_v44 = vld [vmem:[%s24237_s4 + $0x8c] sm:$0xf0] }
 0x388   :  { %4351 = vmatpush.bf16.msra.mxu2 %v12303_v15  ;;  %v16000_v15 = vld [vmem:[%s24237_s4 + $0x5ac] sm:$0xf]  ;;  %5311 = vst [vmem:[#allocation1 + $0x1b] sm:$0xff] %v19003_v35 }
 0x389   :  { %5432 = vst [vmem:[#allocation1] ss:$9 sm:$0xff] %v5295_v8  ;;  %v12239_v9 = vor.u32 %v16000_v15, %v12236_v60  ;;  %v12843_v8 = vor.u32 %v15929_v19, %v12842_v20  ;;  %v15909_v15 = vld [vmem:[%s24237_s4 + $0x2cc] sm:$0xf0]  ;;  %v12474_v19 = vld [vmem:[%s24237_s4 + $0x80] sm:$0xf] }
 0x38a   :  { %4314 = vmatpush.bf16.msra.mxu0 %v12031_v30  ;;  %4333 = vmatpush.bf16.msra.mxu1 %v12159_v25  ;;  %v15932_v30 = vld [vmem:[%s24237_s4 + $0x38c] sm:$0xf]  ;;  %v12092_v25 = vld [vmem:[%s24237_s4 + $0x498] sm:$0xf0]  ;;  %v15905_v20 = vld [vmem:[%s24237_s4 + $0x2ac] sm:$0xf0] }
 0x38b   :  { %v12095_v57 = vor.u32 %v15964_v1, %v12092_v25  ;;  %5047 = vmatpush.bf16.msrb.mxu3 %v12843_v8 }
 0x38c   :  { %4352 = vmatpush.bf16.msra.mxu2 %v12287_v33  ;;  %v15996_v33 = vld [vmem:[%s24237_s4 + $0x58c] sm:$0xf] }
 0x38d   :  { %4248 = vmatmul.bf16.gmra.mxu0 %v19272_v28  ;;  %4267 = vmatmul.bf16.gmra.mxu1 %v19274_v29  ;;  %v12223_v18 = vor.u32 %v15996_v33, %v12220_v37  ;;  %v12810_v37 = vld [vmem:[%s24237_s4 + $0x320] sm:$0xf] }
 0x38e   :  { %4315 = vmatpush.bf16.msra.mxu0 %v12015_v6  ;;  %4334 = vmatpush.bf16.msra.mxu1 %v12143_v27  ;;  %v11967_v6 = vor.u32 %v15932_v30, %v11964_v32  ;;  %v12506_v27 = vld [vmem:[%s24237_s4 + $0xc0] sm:$0xf]  ;;  %v15841_v32 = vld [vmem:[%s24237_s4 + $0xac] sm:$0xf0] }
 0x38f   :  { %4286 = vmatmul.bf16.gmra.mxu2 %v19276_v50  ;;  %12405 = vmatmul.msk.bf16.gmra.mxu3 %vm4078_vm7, %v19278_v43  ;;  %v12490_v30 = vld [vmem:[%s24237_s4 + $0xa0] sm:$0xf] }
 0x390   :  { %4353 = vmatpush.bf16.msra.mxu2 %v12271_v48  ;;  %v15845_v48 = vld [vmem:[%s24237_s4 + $0xcc] sm:$0xf0]  ;;  %v19811_v55 = vld [vmem:[#allocation1 + $0x2] ss:$9 sm:$0xff] }
 0x391   :  { %v12507_v0 = vor.u32 %v15845_v48, %v12506_v27  ;;  %v5312_v1 = vld [vmem:[#allocation1 + $0x1] ss:$9 sm:$0xff]  ;;  %5436 = vst [vmem:[#allocation1 + $0x2] ss:$9 sm:$0xff] %v19696_v53  ;;  %v12747_v27 = vor.u32 %v15905_v20, %v12746_v38 }
 0x392   :  { %4316 = vmatpush.bf16.msra.mxu0 %v11999_v63  ;;  %4335 = vmatpush.bf16.msra.mxu1 %v12127_v21  ;;  %v12826_v63 = vld [vmem:[%s24237_s4 + $0x340] sm:$0xf]  ;;  %v12779_v21 = vor.u32 %v15913_v40, %v12778_v58  ;;  %5434 = vst [vmem:[#allocation1 + $0x1] ss:$9 sm:$0xff] %v19694_v54  ;;  %v12491_v54 = vor.u32 %v15841_v32, %v12490_v30  ;;  %v15869_v53 = vld [vmem:[%s24237_s4 + $0x18c] sm:$0xf0] }
 0x393   :  { %v12827_v60 = vor.u32 %v15925_v36, %v12826_v63  ;;  %v12602_v58 = vld [vmem:[%s24237_s4 + $0x180] sm:$0xf]  ;;  %v15901_v48 = vld [vmem:[%s24237_s4 + $0x28c] sm:$0xf0] }
 0x394   :  { %4354 = vmatpush.bf16.msra.mxu2 %v12255_v23  ;;  %v12634_v23 = vld [vmem:[%s24237_s4 + $0x1c0] sm:$0xf]  ;;  %v15829_v32 = vld [vmem:[%s24237_s4 + $0x4c] sm:$0xf0] }
 0x395   :  { %v12635_v25 = vor.u32 %v15877_v52, %v12634_v23  ;;  %5048 = vmatpush.bf16.msrb.mxu3 %v12827_v60  ;;  %v19856_v63 = vld [vmem:[#allocation1 + $0x5] ss:$9 sm:$0xff] }
 0x396   :  { %4317 = vmatpush.bf16.msra.mxu0 %v11983_v41  ;;  %4336 = vmatpush.bf16.msra.mxu1 %v12111_v10  ;;  %v12762_v41 = vld [vmem:[%s24237_s4 + $0x2c0] sm:$0xf]  ;;  %v15873_v10 = vld [vmem:[%s24237_s4 + $0x1ac] sm:$0xf0]  ;;  %5442 = vst [vmem:[#allocation1 + $0x5] ss:$9 sm:$0xff] %v19702_v39 }
 0x397   :  { %v12763_v33 = vor.u32 %v15909_v15, %v12762_v41  ;;  %v12619_v8 = vor.u32 %v15873_v10, %v12618_v47  ;;  %v19870_v36 = vld [vmem:[#allocation1 + $0x6] ss:$9 sm:$0xff] }
 0x398   :  { %4355 = vmatpush.bf16.msra.mxu2 %v12239_v9  ;;  %v19819_v9 = vld [vmem:[#allocation1 + $0x3] ss:$9 sm:$0xff]  ;;  %5444 = vst [vmem:[#allocation1 + $0x6] ss:$9 sm:$0xff] %v19710_v24 }
 0x399   :  { %5438 = vst [vmem:[#allocation1 + $0x3] ss:$9 sm:$0xff] %v19698_v49  ;;  %v12730_v49 = vld [vmem:[%s24237_s4 + $0x280] sm:$0xf]  ;;  %v15897_v41 = vld [vmem:[%s24237_s4 + $0x26c] sm:$0xf0] }
 0x39a   :  { %4318 = vmatpush.bf16.msra.mxu0 %v11967_v6  ;;  %4337 = vmatpush.bf16.msra.mxu1 %v12095_v57  ;;  %v15921_v6 = vld [vmem:[%s24237_s4 + $0x32c] sm:$0xf0]  ;;  %v12794_v57 = vld [vmem:[%s24237_s4 + $0x300] sm:$0xf] }
 0x39b   :  { %v12811_v40 = vor.u32 %v15921_v6, %v12810_v37  ;;  %v12586_v23 = vld [vmem:[%s24237_s4 + $0x160] sm:$0xf]  ;;  %v15893_v10 = vld [vmem:[%s24237_s4 + $0x24c] sm:$0xf0] }
 0x39c   :  { %4356 = vmatpush.bf16.msra.mxu2 %v12223_v18  ;;  %v15917_v18 = vld [vmem:[%s24237_s4 + $0x30c] sm:$0xf0]  ;;  %v12714_v52 = vld [vmem:[%s24237_s4 + $0x260] sm:$0xf] }
 0x39d   :  { %4319 = vmatmul.bf16.vlgmr.msra.gmra.mxu0 %v19158_v11  ;;  %4338 = vmatmul.bf16.vlgmr.msra.gmra.mxu1 %v19160_v3  ;;  %v12475_v11 = vor.u32 %v15837_v44, %v12474_v19  ;;  %v12458_v3 = vld [vmem:[%s24237_s4 + $0x60] sm:$0xf]  ;;  %v12715_v30 = vor.u32 %v15897_v41, %v12714_v52  ;;  %v15825_v37 = vld [vmem:[%s24237_s4 + $0x2c] sm:$0xf0]  ;;  %v15927_v52 = vld [vmem:[%s24237_s4 + $0x364] sm:$0xf] }
 0x39e   :  { %4986 = vmatpush.bf16.msrb.mxu0 %v12523_v61  ;;  %5005 = vmatpush.bf16.msrb.mxu1 %v12651_v5  ;;  %v19838_v61 = vld [vmem:[#allocation1 + $0x4] ss:$9 sm:$0xff] }
 0x39f   :  { %5440 = vst [vmem:[#allocation1 + $0x4] ss:$9 sm:$0xff] %v19700_v17  ;;  %4357 = vmatmul.bf16.vlgmr.msra.gmra.mxu2 %v19162_v26  ;;  %12406 = vmatmul.msk.bf16.vlgmr.msra.gmra.mxu3 %vm4078_vm7, %v19171_v34  ;;  %v15833_v5 = vld [vmem:[%s24237_s4 + $0x6c] sm:$0xf0]  ;;  %v12603_v26 = vor.u32 %v15869_v53, %v12602_v58  ;;  %v12731_v34 = vor.u32 %v15901_v48, %v12730_v49  ;;  %v12442_v39 = vld [vmem:[%s24237_s4 + $0x40] sm:$0xf] }
 0x3a0   :  { %5024 = vmatpush.bf16.msrb.mxu2 %v12779_v21  ;;  %5049 = vmatpush.bf16.msrb.mxu3 %v12811_v40  ;;  %v12795_v21 = vor.u32 %v15917_v18, %v12794_v57  ;;  %v19878_v17 = vld [vmem:[#allocation1 + $0x7] ss:$9 sm:$0xff]  ;;  %v12459_v15 = vor.u32 %v15833_v5, %v12458_v3 }
 0x3a1   :  { %5446 = vst [vmem:[#allocation1 + $0x7] ss:$9 sm:$0xff] %v5312_v1  ;;  %v12570_v24 = vld [vmem:[%s24237_s4 + $0x140] sm:$0xf]  ;;  %v15861_v1 = vld [vmem:[%s24237_s4 + $0x14c] sm:$0xf0] }
 0x3a2   :  { %4987 = vmatpush.bf16.msrb.mxu0 %v12507_v0  ;;  %5006 = vmatpush.bf16.msrb.mxu1 %v12635_v25  ;;  %v15865_v0 = vld [vmem:[%s24237_s4 + $0x16c] sm:$0xf0]  ;;  %v12698_v47 = vld [vmem:[%s24237_s4 + $0x240] sm:$0xf]  ;;  %v12443_v25 = vor.u32 %v15829_v32, %v12442_v39  ;;  %v12571_v38 = vor.u32 %v15861_v1, %v12570_v24  ;;  %v12844_v41 = vld [vmem:[%s24237_s4 + $0x370] sm:$0xf0] }
 0x3a3   :  { %v12587_v60 = vor.u32 %v15865_v0, %v12586_v23  ;;  %v12554_v6 = vld [vmem:[%s24237_s4 + $0x120] sm:$0xf]  ;;  %v12699_v20 = vor.u32 %v15893_v10, %v12698_v47  ;;  %v15857_v19 = vld [vmem:[%s24237_s4 + $0x12c] sm:$0xf0]  ;;  %v12508_v39 = vld [vmem:[%s24237_s4 + $0xd0] sm:$0xf0]  ;;  %v12847_v32 = vor.u32 %v15927_v52, %v12844_v41 }
 0x3a4   :  { %5025 = vmatpush.bf16.msrb.mxu2 %v12763_v33  ;;  %5050 = vmatpush.bf16.msrb.mxu3 %v12795_v21  ;;  %v12426_v33 = vld [vmem:[%s24237_s4 + $0x20] sm:$0xf]  ;;  %v15889_v44 = vld [vmem:[%s24237_s4 + $0x22c] sm:$0xf0]  ;;  %v12555_v48 = vor.u32 %v15857_v19, %v12554_v6  ;;  %v15847_v21 = vld [vmem:[%s24237_s4 + $0xe4] sm:$0xf] }
 0x3a5   :  { %v12410_v49 = vld [vmem:[%s24237_s4] sm:$0xf]  ;;  %v15821_v18 = vld [vmem:[%s24237_s4 + $0xc] sm:$0xf0]  ;;  %v15875_v1 = vld [vmem:[%s24237_s4 + $0x1c4] sm:$0xf] }
 0x3a6   :  { %4988 = vmatpush.bf16.msrb.mxu0 %v12491_v54  ;;  %5007 = vmatpush.bf16.msrb.mxu1 %v12619_v8  ;;  %v12682_v54 = vld [vmem:[%s24237_s4 + $0x220] sm:$0xf]  ;;  %v15853_v3 = vld [vmem:[%s24237_s4 + $0x10c] sm:$0xf0]  ;;  %v15907_v47 = vld [vmem:[%s24237_s4 + $0x2c4] sm:$0xf] }
 0x3a7   :  { %v12683_v57 = vor.u32 %v15889_v44, %v12682_v54  ;;  %v15885_v5 = vld [vmem:[%s24237_s4 + $0x20c] sm:$0xf0]  ;;  %v12492_v6 = vld [vmem:[%s24237_s4 + $0xb0] sm:$0xf0]  ;;  %v15903_v54 = vld [vmem:[%s24237_s4 + $0x2a4] sm:$0xf] }
 0x3a8   :  { %5026 = vmatpush.bf16.msrb.mxu2 %v12747_v27  ;;  %v19930_v58 = vld [vmem:[#allocation1] sm:$0xff]  ;;  %v19932_v53 = vld [vmem:[#allocation1 + $0x9] sm:$0xff]  ;;  %v19934_v40 = vld [vmem:[#allocation1 + $0x12] sm:$0xff]  ;;  %v12427_v27 = vor.u32 %v15825_v37, %v12426_v33  ;;  %5123 = vmatpush.bf16.msra.mxu3 %v12847_v32 }
 0x3a9   :  { %v19936_v8 = vld [vmem:[#allocation1 + $0x1b] sm:$0xff]  ;;  %v15923_v33 = vld [vmem:[%s24237_s4 + $0x344] sm:$0xf]  ;;  %v12828_v37 = vld [vmem:[%s24237_s4 + $0x350] sm:$0xf0] }
 0x3aa   :  { %4989 = vmatpush.bf16.msrb.mxu0 %v12475_v11  ;;  %5008 = vmatpush.bf16.msrb.mxu1 %v12603_v26  ;;  %5451 = vst [vmem:[#allocation1] ss:$9 sm:$0xff] %v19811_v55  ;;  %v12538_v11 = vld [vmem:[%s24237_s4 + $0x100] sm:$0xf]  ;;  %v12652_v26 = vld [vmem:[%s24237_s4 + $0x1f0] sm:$0xf0] }
 0x3ab   :  { %v12666_v55 = vld [vmem:[%s24237_s4 + $0x200] sm:$0xf]  ;;  %v12539_v23 = vor.u32 %v15853_v3, %v12538_v11  ;;  %5452 = vst [vmem:[#allocation1 + $0x1] ss:$9 sm:$0xff] %v19819_v9  ;;  %v12636_v9 = vld [vmem:[%s24237_s4 + $0x1d0] sm:$0xf0] }
 0x3ac   :  { %5027 = vmatpush.bf16.msrb.mxu2 %v12731_v34  ;;  %v12411_v34 = vor.u32 %v15821_v18, %v12410_v49  ;;  %v12667_v0 = vor.u32 %v15885_v5, %v12666_v55  ;;  %5453 = vst [vmem:[#allocation1 + $0x2] ss:$9 sm:$0xff] %v19838_v61  ;;  %v12764_v61 = vld [vmem:[%s24237_s4 + $0x2d0] sm:$0xf0]  ;;  %v15835_v55 = vld [vmem:[%s24237_s4 + $0x84] sm:$0xf] }
 0x3ad   :  { %4324 = vmatmul.bf16.gmra.mxu0 %v19272_v28  ;;  %4343 = vmatmul.bf16.gmra.mxu1 %v19274_v29  ;;  %v12524_v28 = vld [vmem:[%s24237_s4 + $0xf0] sm:$0xf0]  ;;  %v15879_v29 = vld [vmem:[%s24237_s4 + $0x1e4] sm:$0xf]  ;;  %5454 = vst [vmem:[#allocation1 + $0x3] ss:$9 sm:$0xff] %v19856_v63  ;;  %v12767_v63 = vor.u32 %v15907_v47, %v12764_v61 }
 0x3ae   :  { %4990 = vmatpush.bf16.msrb.mxu0 %v12459_v15  ;;  %5009 = vmatpush.bf16.msrb.mxu1 %v12587_v60  ;;  %v12527_v15 = vor.u32 %v15847_v21, %v12524_v28  ;;  %v12655_v60 = vor.u32 %v15879_v29, %v12652_v26  ;;  %5455 = vst [vmem:[#allocation1 + $0x4] ss:$9 sm:$0xff] %v19870_v36  ;;  %v15839_v36 = vld [vmem:[%s24237_s4 + $0xa4] sm:$0xf]  ;;  %v12620_v19 = vld [vmem:[%s24237_s4 + $0x1b0] sm:$0xf0] }
 0x3af   :  { %4362 = vmatmul.bf16.gmra.mxu2 %v19276_v50  ;;  %12407 = vmatmul.msk.bf16.gmra.mxu3 %vm4078_vm7, %v19278_v43  ;;  %v15911_v50 = vld [vmem:[%s24237_s4 + $0x2e4] sm:$0xf]  ;;  %v12780_v43 = vld [vmem:[%s24237_s4 + $0x2f0] sm:$0xf0]  ;;  %5456 = vst [vmem:[#allocation1 + $0x5] ss:$9 sm:$0xff] %v19878_v17  ;;  %v12495_v11 = vor.u32 %v15839_v36, %v12492_v6 }
 0x3b0   :  { %5028 = vmatpush.bf16.msrb.mxu2 %v12715_v30  ;;  %v15843_v30 = vld [vmem:[%s24237_s4 + $0xc4] sm:$0xf]  ;;  %v12783_v24 = vor.u32 %v15911_v50, %v12780_v43  ;;  %v12748_v44 = vld [vmem:[%s24237_s4 + $0x2b0] sm:$0xf0] }
 0x3b1   :  { %v12511_v10 = vor.u32 %v15843_v30, %v12508_v39  ;;  %v12812_v49 = vld [vmem:[%s24237_s4 + $0x330] sm:$0xf0]  ;;  %v12751_v5 = vor.u32 %v15903_v54, %v12748_v44  ;;  %v15867_v17 = vld [vmem:[%s24237_s4 + $0x184] sm:$0xf] }
 0x3b2   :  { %4991 = vmatpush.bf16.msrb.mxu0 %v12443_v25  ;;  %5010 = vmatpush.bf16.msrb.mxu1 %v12571_v38  ;;  %v12639_v25 = vor.u32 %v15875_v1, %v12636_v9  ;;  %v15871_v38 = vld [vmem:[%s24237_s4 + $0x1a4] sm:$0xf]  ;;  %v12476_v21 = vld [vmem:[%s24237_s4 + $0x90] sm:$0xf0] }
 0x3b3   :  { %v12623_v3 = vor.u32 %v15871_v38, %v12620_v19  ;;  %v12604_v28 = vld [vmem:[%s24237_s4 + $0x190] sm:$0xf0]  ;;  %v15899_v26 = vld [vmem:[%s24237_s4 + $0x284] sm:$0xf] }
 0x3b4   :  { %5029 = vmatpush.bf16.msrb.mxu2 %v12699_v20  ;;  %v12831_v20 = vor.u32 %v15923_v33, %v12828_v37  ;;  %v15915_v50 = vld [vmem:[%s24237_s4 + $0x304] sm:$0xf]  ;;  %v12796_v43 = vld [vmem:[%s24237_s4 + $0x310] sm:$0xf0] }
 0x3b5   :  { %v15831_v52 = vld [vmem:[%s24237_s4 + $0x64] sm:$0xf]  ;;  %v12460_v41 = vld [vmem:[%s24237_s4 + $0x70] sm:$0xf0]  ;;  %v12799_v32 = vor.u32 %v15915_v50, %v12796_v43 }
 0x3b6   :  { %4992 = vmatpush.bf16.msrb.mxu0 %v12427_v27  ;;  %5011 = vmatpush.bf16.msrb.mxu1 %v12555_v48  ;;  %v15919_v27 = vld [vmem:[%s24237_s4 + $0x324] sm:$0xf]  ;;  %v12588_v30 = vld [vmem:[%s24237_s4 + $0x170] sm:$0xf0]  ;;  %v20089_v61 = vld [vmem:[#allocation1 + $0x9] sm:$0xff]  ;;  %v12463_v36 = vor.u32 %v15831_v52, %v12460_v41 }
 0x3b7   :  { %5124 = vmatpush.bf16.msra.mxu3 %v12831_v20  ;;  %v12815_v29 = vor.u32 %v15919_v27, %v12812_v49  ;;  %v15895_v39 = vld [vmem:[%s24237_s4 + $0x264] sm:$0xf]  ;;  %v12716_v47 = vld [vmem:[%s24237_s4 + $0x270] sm:$0xf0]  ;;  %24576 = vst [vmem:[#allocation23_spill] sm:$0xff] %v20089_v61 }
 0x3b8   :  { %5030 = vmatpush.bf16.msrb.mxu2 %v12683_v57  ;;  %6352 = vst [vmem:[#allocation1 + $0x9] sm:$0xff] %v18624_v12  ;;  %v15827_v38 = vld [vmem:[%s24237_s4 + $0x44] sm:$0xf]  ;;  %v12719_v19 = vor.u32 %v15895_v39, %v12716_v47  ;;  %v12444_v54 = vld [vmem:[%s24237_s4 + $0x50] sm:$0xf0] }
 0x3b9   :  { %v15859_v44 = vld [vmem:[%s24237_s4 + $0x144] sm:$0xf]  ;;  %v12572_v27 = vld [vmem:[%s24237_s4 + $0x150] sm:$0xf0] }
 0x3ba   :  { %4993 = vmatpush.bf16.msrb.mxu0 %v12411_v34  ;;  %5012 = vmatpush.bf16.msrb.mxu1 %v12539_v23  ;;  %v4092_v48 = vpop.f32.mrf.mxu0  ;;  %v4111_v57 = vpop.f32.mrf.mxu1  ;;  %v12732_v34 = vld [vmem:[%s24237_s4 + $0x290] sm:$0xf0]  ;;  %v12479_v23 = vor.u32 %v15835_v55, %v12476_v21  ;;  %v15891_v49 = vld [vmem:[%s24237_s4 + $0x244] sm:$0xf] }
 0x3bb   :  { %v4112_v18 = vadd.f32 %v4111_v57, %v4092_v48  ;;  %5125 = vmatpush.bf16.msra.mxu3 %v12815_v29  ;;  %v12700_v48 = vld [vmem:[%s24237_s4 + $0x250] sm:$0xf0]  ;;  %v20115_v57 = vld [vmem:[#allocation1 + $0x1b] sm:$0xff]  ;;  %v15855_v21 = vld [vmem:[%s24237_s4 + $0x124] sm:$0xf] }
 0x3bc   :  { %5031 = vmatpush.bf16.msrb.mxu2 %v12667_v0  ;;  %v12607_v0 = vor.u32 %v15867_v17, %v12604_v28  ;;  %24578 = vst [vmem:[#allocation31_spill] sm:$0xff] %v20115_v57  ;;  %v12428_v55 = vld [vmem:[%s24237_s4 + $0x30] sm:$0xf0] }
 0x3bd   :  { %4994 = vmatmul.bf16.vlgmr.msrb.gmra.mxu0 %v19410_v2  ;;  %5013 = vmatmul.bf16.vlgmr.msrb.gmra.mxu1 %v19421_v42  ;;  %v12556_v17 = vld [vmem:[%s24237_s4 + $0x130] sm:$0xf0]  ;;  %6354 = vst [vmem:[#allocation1 + $0x1b] sm:$0xff] %v18645_v45 }
 0x3be   :  { %5062 = vmatpush.bf16.msra.mxu0 %v12527_v15  ;;  %5081 = vmatpush.bf16.msra.mxu1 %v12655_v60  ;;  %v15863_v15 = vld [vmem:[%s24237_s4 + $0x164] sm:$0xf]  ;;  %v12735_v60 = vor.u32 %v15899_v26, %v12732_v34  ;;  %v12684_v34 = vld [vmem:[%s24237_s4 + $0x230] sm:$0xf0]  ;;  %v12559_v41 = vor.u32 %v15855_v21, %v12556_v17 }
 0x3bf   :  { %5032 = vmatmul.bf16.vlgmr.msrb.gmra.mxu2 %v19423_v14  ;;  %12856 = vmatmul.msk.bf16.vlgmr.msrb.gmra.mxu3 %vm4078_vm7, %v19425_v16  ;;  %v12591_v6 = vor.u32 %v15863_v15, %v12588_v30  ;;  %v15887_v26 = vld [vmem:[%s24237_s4 + $0x224] sm:$0xf]  ;;  %v12668_v47 = vld [vmem:[%s24237_s4 + $0x210] sm:$0xf0] }
 0x3c0   :  { %5100 = vmatpush.bf16.msra.mxu2 %v12783_v24  ;;  %v20083_v24 = vld [vmem:[#allocation1] sm:$0xff]  ;;  %5126 = vmatpush.bf16.msra.mxu3 %v12799_v32  ;;  %v12687_v32 = vor.u32 %v15887_v26, %v12684_v34 }
 0x3c1   :  { %6351 = vst [vmem:[#allocation1] sm:$0xff] %v18621_v56  ;;  %v15819_v15 = vld [vmem:[%s24237_s4 + $0x4] sm:$0xf] }
 0x3c2   :  { %5063 = vmatpush.bf16.msra.mxu0 %v12511_v10  ;;  %5082 = vmatpush.bf16.msra.mxu1 %v12639_v25  ;;  %v4130_v1 = vpop.f32.mrf.mxu2  ;;  %v4149_v9 = vpop.f32.mrf.mxu3  ;;  %v20091_v10 = vld [vmem:[#allocation1 + $0x12] sm:$0xff]  ;;  %v15851_v30 = vld [vmem:[%s24237_s4 + $0x104] sm:$0xf] }
 0x3c3   :  { %24577 = vst [vmem:[#allocation24_spill] sm:$0xff] %v20091_v10  ;;  %v4131_v25 = vadd.f32 %v4130_v1, %v4112_v18  ;;  %v4113_v33 = vpop.f32.mrf.mxu1  ;;  %v12447_v18 = vor.u32 %v15827_v38, %v12444_v54  ;;  %v12540_v1 = vld [vmem:[%s24237_s4 + $0x110] sm:$0xf0]  ;;  %v12514_v54 = vld [vmem:[%s24237_s4 + $0xc8] sm:$0xf] }
 0x3c4   :  { %5101 = vmatpush.bf16.msra.mxu2 %v12767_v63  ;;  %v4094_v63 = vpop.f32.mrf.mxu0  ;;  %6353 = vst [vmem:[#allocation1 + $0x12] sm:$0xff] %v18642_v62 }
 0x3c5   :  { %v4114_v37 = vadd.f32 %v4113_v33, %v4094_v63  ;;  %v20098_v20 = vadd.f32 %v4149_v9, %v4131_v25  ;;  %v15883_v9 = vld [vmem:[%s24237_s4 + $0x204] sm:$0xf]  ;;  %v12530_v25 = vld [vmem:[%s24237_s4 + $0xe8] sm:$0xf]  ;;  %v15850_v63 = vld [vmem:[%s24237_s4 + $0xf4] sm:$0xf0] }
 0x3c6   :  { %5064 = vmatpush.bf16.msra.mxu0 %v12495_v11  ;;  %5083 = vmatpush.bf16.msra.mxu1 %v12623_v3  ;;  %v12575_v11 = vor.u32 %v15859_v44, %v12572_v27  ;;  %v15823_v3 = vld [vmem:[%s24237_s4 + $0x24] sm:$0xf]  ;;  %v12658_v33 = vld [vmem:[%s24237_s4 + $0x1e8] sm:$0xf]  ;;  %v15846_v44 = vld [vmem:[%s24237_s4 + $0xd4] sm:$0xf0]  ;;  %v12671_v27 = vor.u32 %v15883_v9, %v12668_v47 }
 0x3c7   :  { %v12431_v52 = vor.u32 %v15823_v3, %v12428_v55  ;;  %v15910_v3 = vld [vmem:[%s24237_s4 + $0x2d4] sm:$0xf0]  ;;  %v12850_v55 = vld [vmem:[%s24237_s4 + $0x368] sm:$0xf]  ;;  %v24313_v9 = vmov 0  }
 0x3c8   :  { %5102 = vmatpush.bf16.msra.mxu2 %v12751_v5  ;;  %v12703_v5 = vor.u32 %v15891_v49, %v12700_v48  ;;  %v12531_v49 = vor.u32 %v15850_v63, %v12530_v25  ;;  %v12642_v48 = vld [vmem:[%s24237_s4 + $0x1c8] sm:$0xf] }
 0x3ca   :  { %5065 = vmatpush.bf16.msra.mxu0 %v12479_v23  ;;  %5084 = vmatpush.bf16.msra.mxu1 %v12607_v0  ;;  %v4132_v28 = vpop.f32.mrf.mxu2  ;;  %v4151_v29 = vpop.f32.mrf.mxu3 }
 0x3cb   :  { %v4133_v50 = vadd.f32 %v4132_v28, %v4114_v37  ;;  %v4116_v23 = vpop.f32.mrf.mxu1  ;;  %v15882_v37 = vld [vmem:[%s24237_s4 + $0x1f4] sm:$0xf0] }
 0x3cc   :  { %5103 = vmatpush.bf16.msra.mxu2 %v12735_v60  ;;  %v4097_v43 = vpop.f32.mrf.mxu0  ;;  %v12412_v60 = vld [vmem:[%s24237_s4 + $0x10] sm:$0xf0] }
 0x3cd   :  { %v4117_v0 = vadd.f32 %v4116_v23, %v4097_v43  ;;  %v20145_v39 = vadd.f32 %v4151_v29, %v4133_v50  ;;  %4999 = vmatmul.bf16.gmra.mxu0 %v19587_v59  ;;  %5018 = vmatmul.bf16.gmra.mxu1 %v19595_v46  ;;  %v12415_v38 = vor.u32 %v15819_v15, %v12412_v60  ;;  %v20203_v21 = vld [vmem:[#allocation1 + $0x2] ss:$9 sm:$0xff]  ;;  %v20207_v50 = vld [vmem:[#allocation1 + $0x4] ss:$9 sm:$0xff] }
 0x3ce   :  { %5066 = vmatpush.bf16.msra.mxu0 %v12463_v36  ;;  %5085 = vmatpush.bf16.msra.mxu1 %v12591_v6  ;;  %v12786_v36 = vld [vmem:[%s24237_s4 + $0x2e8] sm:$0xf]  ;;  %v15914_v6 = vld [vmem:[%s24237_s4 + $0x2f4] sm:$0xf0]  ;;  %v12659_v29 = vor.u32 %v15882_v37, %v12658_v33 }
 0x3cf   :  { %5037 = vmatmul.bf16.gmra.mxu2 %v19603_v51  ;;  %12857 = vmatmul.msk.bf16.gmra.mxu3 %vm4078_vm7, %v19611_v22  ;;  %v12787_v26 = vor.u32 %v15914_v6, %v12786_v36  ;;  %v20205_v34 = vld [vmem:[#allocation1 + $0x3] ss:$9 sm:$0xff]  ;;  %v20209_v43 = vld [vmem:[#allocation1 + $0x5] ss:$9 sm:$0xff] }
 0x3d0   :  { %5104 = vmatpush.bf16.msra.mxu2 %v12719_v19  ;;  %v12543_v19 = vor.u32 %v15851_v30, %v12540_v1  ;;  %v20211_v60 = vld [vmem:[#allocation1 + $0x1] ss:$9 sm:$0xff]  ;;  %v15842_v37 = vld [vmem:[%s24237_s4 + $0xb4] sm:$0xf0]  ;;  %v6415_v57 = vshll.u32 %v20209_v43, 16 }
 0x3d1   :  { %v20213_v30 = vld [vmem:[#allocation1 + $0x6] ss:$9 sm:$0xff] }
 0x3d2   :  { %5067 = vmatpush.bf16.msra.mxu0 %v12447_v18  ;;  %5086 = vmatpush.bf16.msra.mxu1 %v12575_v11  ;;  %v15878_v18 = vld [vmem:[%s24237_s4 + $0x1d4] sm:$0xf0]  ;;  %v12770_v11 = vld [vmem:[%s24237_s4 + $0x2c8] sm:$0xf]  ;;  %v4135_v17 = vpop.f32.mrf.mxu2  ;;  %v4154_v28 = vpop.f32.mrf.mxu3 }
 0x3d3   :  { %v4136_v23 = vadd.f32 %v4135_v17, %v4117_v0  ;;  %v12515_v0 = vor.u32 %v15846_v44, %v12514_v54  ;;  %v12643_v25 = vor.u32 %v15878_v18, %v12642_v48  ;;  %v12771_v63 = vor.u32 %v15910_v3, %v12770_v11  ;;  %v12498_v33 = vld [vmem:[%s24237_s4 + $0xa8] sm:$0xf]  ;;  %v15926_v6 = vld [vmem:[%s24237_s4 + $0x354] sm:$0xf0] }
 0x3d4   :  { %5105 = vmatpush.bf16.msra.mxu2 %v12703_v5  ;;  %v15930_v5 = vld [vmem:[%s24237_s4 + $0x374] sm:$0xf0]  ;;  %v12834_v36 = vld [vmem:[%s24237_s4 + $0x348] sm:$0xf] }
 0x3d5   :  { %v12851_v15 = vor.u32 %v15930_v5, %v12850_v55  ;;  %v20218_v47 = vadd.f32 %v4154_v28, %v4136_v23  ;;  %v12754_v54 = vld [vmem:[%s24237_s4 + $0x2a8] sm:$0xf]  ;;  %v12835_v44 = vor.u32 %v15926_v6, %v12834_v36  ;;  %v15838_v18 = vld [vmem:[%s24237_s4 + $0x94] sm:$0xf0] }
 0x3d6   :  { %5068 = vmatpush.bf16.msra.mxu0 %v12431_v52  ;;  %5087 = vmatpush.bf16.msra.mxu1 %v12559_v41  ;;  %v4099_v52 = vpop.f32.mrf.mxu0  ;;  %v4118_v41 = vpop.f32.mrf.mxu1  ;;  %v12482_v48 = vld [vmem:[%s24237_s4 + $0x88] sm:$0xf]  ;;  %v15922_v5 = vld [vmem:[%s24237_s4 + $0x334] sm:$0xf0] }
 0x3d7   :  { %v4119_v1 = vadd.f32 %v4118_v41, %v4099_v52  ;;  %5199 = vmatpush.bf16.msrb.mxu3 %v12851_v15  ;;  %v12818_v55 = vld [vmem:[%s24237_s4 + $0x328] sm:$0xf]  ;;  %v15834_v36 = vld [vmem:[%s24237_s4 + $0x74] sm:$0xf0] }
 0x3d8   :  { %5106 = vmatpush.bf16.msra.mxu2 %v12687_v32  ;;  %v20215_v32 = vld [vmem:[#allocation1 + $0x7] ss:$9 sm:$0xff] }
 0x3d9   :  { %6369 = vst [vmem:[#allocation1] sm:$0xff] %v24313_v9  ;;  %v12610_v41 = vld [vmem:[%s24237_s4 + $0x188] sm:$0xf] }
 0x3da   :  { %5069 = vmatpush.bf16.msra.mxu0 %v12415_v38  ;;  %5088 = vmatpush.bf16.msra.mxu1 %v12543_v19  ;;  %v12626_v38 = vld [vmem:[%s24237_s4 + $0x1a8] sm:$0xf]  ;;  %v15874_v19 = vld [vmem:[%s24237_s4 + $0x1b4] sm:$0xf0]  ;;  %v4137_v11 = vpop.f32.mrf.mxu2  ;;  %v4156_v3 = vpop.f32.mrf.mxu3  ;;  %6370 = vst [vmem:[#allocation1 + $0x9] sm:$0xff] %v24313_v9 }
 0x3db   :  { %v4138_v17 = vadd.f32 %v4137_v11, %v4119_v1  ;;  %5200 = vmatpush.bf16.msrb.mxu3 %v12835_v44  ;;  %6371 = vst [vmem:[#allocation1 + $0x12] sm:$0xff] %v24313_v9  ;;  %v12627_v23 = vor.u32 %v15874_v19, %v12626_v38  ;;  %v15870_v1 = vld [vmem:[%s24237_s4 + $0x194] sm:$0xf0]  ;;  %v12802_v6 = vld [vmem:[%s24237_s4 + $0x308] sm:$0xf] }
 0x3dc   :  { %5107 = vmatpush.bf16.msra.mxu2 %v12671_v27  ;;  %v12499_v27 = vor.u32 %v15842_v37, %v12498_v33  ;;  %6372 = vst [vmem:[#allocation1 + $0x1b] sm:$0xff] %v24313_v9  ;;  %v12819_v33 = vor.u32 %v15922_v5, %v12818_v55  ;;  %v12466_v37 = vld [vmem:[%s24237_s4 + $0x68] sm:$0xf]  ;;  %v15918_v38 = vld [vmem:[%s24237_s4 + $0x314] sm:$0xf0]  ;;  %v12611_v19 = vor.u32 %v15870_v1, %v12610_v41 }
 0x3dd   :  { %v20262_v15 = vadd.f32 %v4156_v3, %v4138_v17  ;;  %5070 = vmatmul.bf16.vlgmr.msra.gmra.mxu0 %v19410_v2  ;;  %5089 = vmatmul.bf16.vlgmr.msra.gmra.mxu1 %v19421_v42  ;;  %v12594_v44 = vld [vmem:[%s24237_s4 + $0x168] sm:$0xf]  ;;  %v12803_v11 = vor.u32 %v15918_v38, %v12802_v6  ;;  %v15830_v17 = vld [vmem:[%s24237_s4 + $0x54] sm:$0xf0] }
 0x3de   :  { %5138 = vmatpush.bf16.msrb.mxu0 %v12531_v49  ;;  %5157 = vmatpush.bf16.msrb.mxu1 %v12659_v29  ;;  %v15906_v49 = vld [vmem:[%s24237_s4 + $0x2b4] sm:$0xf0]  ;;  %v4168_v28 = vpop.f32.mrf.mxu0  ;;  %v4187_v29 = vpop.f32.mrf.mxu1  ;;  %v12450_v5 = vld [vmem:[%s24237_s4 + $0x48] sm:$0xf] }
 0x3df   :  { %v12755_v52 = vor.u32 %v15906_v49, %v12754_v54  ;;  %24579 = vst [vmem:[#allocation29_spill] sm:$0xff] %v20262_v15  ;;  %5108 = vmatmul.bf16.vlgmr.msra.gmra.mxu2 %v19423_v14  ;;  %12858 = vmatmul.msk.bf16.vlgmr.msra.gmra.mxu3 %vm4078_vm7, %v19425_v16  ;;  %v15866_v49 = vld [vmem:[%s24237_s4 + $0x174] sm:$0xf0]  ;;  %v12434_v6 = vld [vmem:[%s24237_s4 + $0x28] sm:$0xf]  ;;  %v6411_v15 = vshrl.u32 %v20207_v50, 16 }
 0x3e0   :  { %5176 = vmatpush.bf16.msrb.mxu2 %v12787_v26  ;;  %v4188_v26 = vadd.f32 %v4187_v29, %v4168_v28  ;;  %5201 = vmatpush.bf16.msrb.mxu3 %v12819_v33  ;;  %v12451_v33 = vor.u32 %v15830_v17, %v12450_v5  ;;  %v15826_v38 = vld [vmem:[%s24237_s4 + $0x34] sm:$0xf0] }
 0x3e1   :  { %v15822_v5 = vld [vmem:[%s24237_s4 + $0x14] sm:$0xf0] }
 0x3e2   :  { %5139 = vmatpush.bf16.msrb.mxu0 %v12515_v0  ;;  %5158 = vmatpush.bf16.msrb.mxu1 %v12643_v25  ;;  %v12483_v0 = vor.u32 %v15838_v18, %v12482_v48  ;;  %v12738_v25 = vld [vmem:[%s24237_s4 + $0x288] sm:$0xf]  ;;  %v15898_v18 = vld [vmem:[%s24237_s4 + $0x274] sm:$0xf0]  ;;  %v4206_v3 = vpop.f32.mrf.mxu2  ;;  %v4225_v55 = vpop.f32.mrf.mxu3 }
 0x3e3   :  { %v12722_v48 = vld [vmem:[%s24237_s4 + $0x268] sm:$0xf]  ;;  %v4207_v28 = vadd.f32 %v4206_v3, %v4188_v26  ;;  %v15862_v26 = vld [vmem:[%s24237_s4 + $0x154] sm:$0xf0] }
 0x3e4   :  { %5177 = vmatpush.bf16.msrb.mxu2 %v12771_v63  ;;  %v15902_v63 = vld [vmem:[%s24237_s4 + $0x294] sm:$0xf0]  ;;  %v12723_v1 = vor.u32 %v15898_v18, %v12722_v48  ;;  %5202 = vmatpush.bf16.msrb.mxu3 %v12803_v11  ;;  %v12690_v48 = vld [vmem:[%s24237_s4 + $0x228] sm:$0xf] }
 0x3e5   :  { %v12739_v54 = vor.u32 %v15902_v63, %v12738_v25  ;;  %v12578_v25 = vld [vmem:[%s24237_s4 + $0x148] sm:$0xf]  ;;  %v20314_v63 = vadd.f32 %v4225_v55, %v4207_v28  ;;  %v15890_v18 = vld [vmem:[%s24237_s4 + $0x234] sm:$0xf0] }
 0x3e6   :  { %5140 = vmatpush.bf16.msrb.mxu0 %v12499_v27  ;;  %5159 = vmatpush.bf16.msrb.mxu1 %v12627_v23  ;;  %v12467_v27 = vor.u32 %v15834_v36, %v12466_v37  ;;  %v4170_v29 = vpop.f32.mrf.mxu0  ;;  %v4189_v23 = vpop.f32.mrf.mxu1  ;;  %v12706_v37 = vld [vmem:[%s24237_s4 + $0x248] sm:$0xf]  ;;  %v15894_v36 = vld [vmem:[%s24237_s4 + $0x254] sm:$0xf0] }
 0x3e7   :  { %v4190_v41 = vadd.f32 %v4189_v23, %v4170_v29  ;;  %24580 = vst [vmem:[#allocation10_spill] sm:$0xff] %v20314_v63  ;;  %v12418_v55 = vld [vmem:[%s24237_s4 + $0x8] sm:$0xf]  ;;  %v15848_v23 = vld [vmem:[%s24237_s4 + $0xec] sm:$0xf] }
 0x3e8   :  { %5178 = vmatpush.bf16.msrb.mxu2 %v12755_v52  ;;  %v20308_v52 = vld [vmem:[#allocation1] ss:$9 sm:$0xff] }
 0x3e9   :  { %6374 = vst [vmem:[#allocation1] sm:$0xff] %v19000_v4 }
 0x3ea   :  { %5141 = vmatpush.bf16.msrb.mxu0 %v12483_v0  ;;  %5160 = vmatpush.bf16.msrb.mxu1 %v12611_v19  ;;  %v12595_v0 = vor.u32 %v15866_v49, %v12594_v44  ;;  %v12579_v19 = vor.u32 %v15862_v26, %v12578_v25  ;;  %v12562_v44 = vld [vmem:[%s24237_s4 + $0x128] sm:$0xf]  ;;  %v12435_v49 = vor.u32 %v15826_v38, %v12434_v6  ;;  %v4208_v11 = vpop.f32.mrf.mxu2  ;;  %v4227_v3 = vpop.f32.mrf.mxu3  ;;  %v15854_v26 = vld [vmem:[%s24237_s4 + $0x114] sm:$0xf0] }
 0x3eb   :  { %6375 = vst [vmem:[#allocation1 + $0x9] sm:$0xff] %v18980_v7  ;;  %v4209_v17 = vadd.f32 %v4208_v11, %v4190_v41  ;;  %v12546_v41 = vld [vmem:[%s24237_s4 + $0x108] sm:$0xf]  ;;  %v15886_v38 = vld [vmem:[%s24237_s4 + $0x214] sm:$0xf0] }
 0x3ec   :  { %5179 = vmatpush.bf16.msrb.mxu2 %v12739_v54  ;;  %v12707_v54 = vor.u32 %v15894_v36, %v12706_v37  ;;  %6376 = vst [vmem:[#allocation1 + $0x12] sm:$0xff] %v18989_v13  ;;  %v12419_v36 = vor.u32 %v15822_v5, %v12418_v55  ;;  %v12674_v6 = vld [vmem:[%s24237_s4 + $0x208] sm:$0xf]  ;;  %v12547_v11 = vor.u32 %v15854_v26, %v12546_v41  ;;  %v15908_v41 = vld [vmem:[%s24237_s4 + $0x2cc] sm:$0xf] }
 0x3ed   :  { %6377 = vst [vmem:[#allocation1 + $0x1b] sm:$0xff] %v19003_v35  ;;  %v20364_v37 = vadd.f32 %v4227_v3, %v4209_v17  ;;  %5075 = vmatmul.bf16.gmra.mxu0 %v19587_v59  ;;  %5094 = vmatmul.bf16.gmra.mxu1 %v19595_v46  ;;  %v12675_v3 = vor.u32 %v15886_v38, %v12674_v6  ;;  %v15876_v17 = vld [vmem:[%s24237_s4 + $0x1cc] sm:$0xf]  ;;  %v12772_v26 = vld [vmem:[%s24237_s4 + $0x2d8] sm:$0xf0] }
 0x3ee   :  { %5142 = vmatpush.bf16.msrb.mxu0 %v12467_v27  ;;  %5161 = vmatpush.bf16.msrb.mxu1 %v12595_v0  ;;  %v15858_v27 = vld [vmem:[%s24237_s4 + $0x134] sm:$0xf0]  ;;  %v4173_v28 = vpop.f32.mrf.mxu0  ;;  %v4192_v29 = vpop.f32.mrf.mxu1  ;;  %v12532_v0 = vld [vmem:[%s24237_s4 + $0xf8] sm:$0xf0] }
 0x3ef   :  { %v12563_v25 = vor.u32 %v15858_v27, %v12562_v44  ;;  %24581 = vst [vmem:[#allocation8_spill] sm:$0xff] %v20364_v37  ;;  %v12660_v44 = vld [vmem:[%s24237_s4 + $0x1f8] sm:$0xf0]  ;;  %v15912_v27 = vld [vmem:[%s24237_s4 + $0x2ec] sm:$0xf]  ;;  %5113 = vmatmul.bf16.gmra.mxu2 %v19603_v51  ;;  %12859 = vmatmul.msk.bf16.gmra.mxu3 %vm4078_vm7, %v19611_v22 }
 0x3f0   :  { %5180 = vmatpush.bf16.msrb.mxu2 %v12723_v1  ;;  %v4193_v1 = vadd.f32 %v4192_v29, %v4173_v28  ;;  %v15928_v28 = vld [vmem:[%s24237_s4 + $0x36c] sm:$0xf]  ;;  %v12852_v29 = vld [vmem:[%s24237_s4 + $0x378] sm:$0xf0] }
 0x3f2   :  { %5143 = vmatpush.bf16.msrb.mxu0 %v12451_v33  ;;  %5162 = vmatpush.bf16.msrb.mxu1 %v12579_v19  ;;  %v12691_v33 = vor.u32 %v15890_v18, %v12690_v48  ;;  %v15880_v19 = vld [vmem:[%s24237_s4 + $0x1ec] sm:$0xf]  ;;  %v12516_v18 = vld [vmem:[%s24237_s4 + $0xd8] sm:$0xf0] }
 0x3f3   :  { %v15844_v48 = vld [vmem:[%s24237_s4 + $0xcc] sm:$0xf]  ;;  %v12663_v55 = vor.u32 %v15880_v19, %v12660_v44  ;;  %v12500_v44 = vld [vmem:[%s24237_s4 + $0xb8] sm:$0xf0] }
 0x3f4   :  { %5181 = vmatpush.bf16.msrb.mxu2 %v12707_v54  ;;  %v12535_v54 = vor.u32 %v15848_v23, %v12532_v0  ;;  %v4211_v23 = vpop.f32.mrf.mxu2  ;;  %v4230_v0 = vpop.f32.mrf.mxu3  ;;  %v20440_v9 = vld [vmem:[#allocation1 + $0x4] ss:$9 sm:$0xff]  ;;  %v20444_v63 = vld [vmem:[#allocation1 + $0x6] ss:$9 sm:$0xff] }
 0x3f5   :  { %v4212_v6 = vadd.f32 %v4211_v23, %v4193_v1  ;;  %v12628_v1 = vld [vmem:[%s24237_s4 + $0x1b8] sm:$0xf0]  ;;  %v20442_v37 = vld [vmem:[#allocation1 + $0x5] ss:$9 sm:$0xff] }
 0x3f6   :  { %5144 = vmatpush.bf16.msrb.mxu0 %v12435_v49  ;;  %v12788_v49 = vld [vmem:[%s24237_s4 + $0x2f8] sm:$0xf0]  ;;  %5163 = vmatpush.bf16.msrb.mxu1 %v12563_v25  ;;  %v12519_v25 = vor.u32 %v15844_v48, %v12516_v18  ;;  %v4175_v38 = vpop.f32.mrf.mxu0  ;;  %v4194_v19 = vpop.f32.mrf.mxu1  ;;  %v15872_v48 = vld [vmem:[%s24237_s4 + $0x1ac] sm:$0xf] }
 0x3f7   :  { %v12791_v5 = vor.u32 %v15912_v27, %v12788_v49  ;;  %v4195_v49 = vadd.f32 %v4194_v19, %v4175_v38  ;;  %v15904_v18 = vld [vmem:[%s24237_s4 + $0x2ac] sm:$0xf] }
 0x3f8   :  { %5182 = vmatpush.bf16.msrb.mxu2 %v12691_v33  ;;  %v12644_v33 = vld [vmem:[%s24237_s4 + $0x1d8] sm:$0xf0] }
 0x3f9   :  { %v20434_v23 = vld [vmem:[#allocation1 + $0x1] ss:$9 sm:$0xff]  ;;  %v20438_v19 = vld [vmem:[#allocation1 + $0x3] ss:$9 sm:$0xff] }
 0x3fa   :  { %5145 = vmatpush.bf16.msrb.mxu0 %v12419_v36  ;;  %v12855_v36 = vor.u32 %v15928_v28, %v12852_v29  ;;  %5164 = vmatpush.bf16.msrb.mxu1 %v12547_v11  ;;  %v12756_v28 = vld [vmem:[%s24237_s4 + $0x2b8] sm:$0xf0]  ;;  %v20432_v29 = vadd.f32 %v4230_v0, %v4212_v6  ;;  %v12647_v11 = vor.u32 %v15876_v17, %v12644_v33  ;;  %v15836_v0 = vld [vmem:[%s24237_s4 + $0x8c] sm:$0xf] }
 0x3fb   :  { %v20436_v38 = vld [vmem:[#allocation1 + $0x2] ss:$9 sm:$0xff] }
 0x3fc   :  { %5183 = vmatpush.bf16.msrb.mxu2 %v12675_v3  ;;  %24582 = vst [vmem:[#allocation25_spill] sm:$0xff] %v20432_v29  ;;  %v12775_v3 = vor.u32 %v15908_v41, %v12772_v26  ;;  %5275 = vmatpush.bf16.msra.mxu3 %v12855_v36  ;;  %v20452_v17 = vld [vmem:[#allocation1 + $0x7] ss:$9 sm:$0xff]  ;;  %v15868_v33 = vld [vmem:[%s24237_s4 + $0x18c] sm:$0xf]  ;;  %v12631_v26 = vor.u32 %v15872_v48, %v12628_v1  ;;  %v4213_v29 = vpop.f32.mrf.mxu2  ;;  %v4232_v35 = vpop.f32.mrf.mxu3 }
 0x3fd   :  { %v12759_v36 = vor.u32 %v15904_v18, %v12756_v28  ;;  %v12612_v6 = vld [vmem:[%s24237_s4 + $0x198] sm:$0xf0]  ;;  %v24583_v18 = vmov 0   ;;  %v6401_v28 = vshll.u32 %v20205_v34, 16  ;;  %5146 = vmatmul.bf16.vlgmr.msrb.gmra.mxu0 %v19410_v2  ;;  %5165 = vmatmul.bf16.vlgmr.msrb.gmra.mxu1 %v19421_v42 }
 0x3fe   :  { %5214 = vmatpush.bf16.msra.mxu0 %v12535_v54  ;;  %v15840_v54 = vld [vmem:[%s24237_s4 + $0xac] sm:$0xf]  ;;  %5233 = vmatpush.bf16.msra.mxu1 %v12663_v55  ;;  %v12740_v48 = vld [vmem:[%s24237_s4 + $0x298] sm:$0xf0]  ;;  %6385 = vst [vmem:[#allocation1] sm:$0xff] %v24583_v18 }
 0x3ff   :  { %v12503_v27 = vor.u32 %v15840_v54, %v12500_v44  ;;  %v15924_v55 = vld [vmem:[%s24237_s4 + $0x34c] sm:$0xf]  ;;  %v12820_v1 = vld [vmem:[%s24237_s4 + $0x338] sm:$0xf0]  ;;  %6386 = vst [vmem:[#allocation1 + $0x9] sm:$0xff] %v24583_v18  ;;  %5184 = vmatmul.bf16.vlgmr.msrb.gmra.mxu2 %v19423_v14  ;;  %12860 = vmatmul.msk.bf16.vlgmr.msrb.gmra.mxu3 %vm4078_vm7, %v19425_v16 }
 0x400   :  { %5252 = vmatpush.bf16.msra.mxu2 %v12791_v5  ;;  %v12836_v5 = vld [vmem:[%s24237_s4 + $0x358] sm:$0xf0]  ;;  %v15900_v54 = vld [vmem:[%s24237_s4 + $0x28c] sm:$0xf]  ;;  %6387 = vst [vmem:[#allocation1 + $0x12] sm:$0xff] %v24583_v18 }
 0x401   :  { %v12839_v41 = vor.u32 %v15924_v55, %v12836_v5  ;;  %v15920_v44 = vld [vmem:[%s24237_s4 + $0x32c] sm:$0xf]  ;;  %v4263_v55 = vpop.f32.mrf.mxu1  ;;  %v6408_v5 = vshll.u32 %v20207_v50, 16  ;;  %v12468_v50 = vld [vmem:[%s24237_s4 + $0x78] sm:$0xf0]  ;;  %6388 = vst [vmem:[#allocation1 + $0x1b] sm:$0xff] %v24583_v18 }
 0x402   :  { %5215 = vmatpush.bf16.msra.mxu0 %v12519_v25  ;;  %v12484_v25 = vld [vmem:[%s24237_s4 + $0x98] sm:$0xf0]  ;;  %5234 = vmatpush.bf16.msra.mxu1 %v12647_v11  ;;  %v4214_v11 = vadd.f32 %v4213_v29, %v4195_v49  ;;  %v12823_v7 = vor.u32 %v15920_v44, %v12820_v1  ;;  %v12615_v49 = vor.u32 %v15868_v33, %v12612_v6  ;;  %v15828_v44 = vld [vmem:[%s24237_s4 + $0x4c] sm:$0xf]  ;;  %v6429_v6 = vshll.u32 %v20215_v32, 16 }
 0x403   :  { %5276 = vmatpush.bf16.msra.mxu3 %v12839_v41  ;;  %v12487_v13 = vor.u32 %v15836_v0, %v12484_v25  ;;  %v12743_v29 = vor.u32 %v15900_v54, %v12740_v48  ;;  %v15864_v0 = vld [vmem:[%s24237_s4 + $0x16c] sm:$0xf]  ;;  %v12724_v33 = vld [vmem:[%s24237_s4 + $0x278] sm:$0xf0] }
 0x404   :  { %5253 = vmatpush.bf16.msra.mxu2 %v12775_v3  ;;  %v4244_v3 = vpop.f32.mrf.mxu0  ;;  %v20486_v10 = vadd.f32 %v4232_v35, %v4214_v11  ;;  %v12596_v35 = vld [vmem:[%s24237_s4 + $0x178] sm:$0xf0]  ;;  %v15896_v25 = vld [vmem:[%s24237_s4 + $0x26c] sm:$0xf]  ;;  %v6394_v11 = vshll.u32 %v20203_v21, 16 }
 0x405   :  { %v4264_v41 = vadd.f32 %v4263_v55, %v4244_v3  ;;  %v12452_v48 = vld [vmem:[%s24237_s4 + $0x58] sm:$0xf0]  ;;  %v24585_v3 = vshrl.u32 %v20203_v21, 16  ;;  %v4282_v21 = vpop.f32.mrf.mxu2 }
 0x406   :  { %5216 = vmatpush.bf16.msra.mxu0 %v12503_v27  ;;  %v6404_v27 = vshrl.u32 %v20205_v34, 16  ;;  %24584 = vst [vmem:[#allocation26_spill] sm:$0xff] %v20486_v10  ;;  %5235 = vmatpush.bf16.msra.mxu1 %v12631_v26  ;;  %v15832_v34 = vld [vmem:[%s24237_s4 + $0x6c] sm:$0xf]  ;;  %v12455_v61 = vor.u32 %v15828_v44, %v12452_v48  ;;  %v12692_v48 = vld [vmem:[%s24237_s4 + $0x238] sm:$0xf0] }
 0x407   :  { %v15916_v26 = vld [vmem:[%s24237_s4 + $0x30c] sm:$0xf]  ;;  %v12471_v54 = vor.u32 %v15832_v34, %v12468_v50  ;;  %5277 = vmatpush.bf16.msra.mxu3 %v12823_v7  ;;  %v6403_v55 = vsel %vm18694_vm12, %v24585_v3, %v6401_v28  ;;  %v12727_v34 = vor.u32 %v15896_v25, %v12724_v33  ;;  %v12580_v7 = vld [vmem:[%s24237_s4 + $0x158] sm:$0xf0]  ;;  %v6422_v33 = vshll.u32 %v20213_v30, 16 }
 0x408   :  { %5254 = vmatpush.bf16.msra.mxu2 %v12759_v36  ;;  %v12804_v36 = vld [vmem:[%s24237_s4 + $0x318] sm:$0xf0]  ;;  %v15860_v50 = vld [vmem:[%s24237_s4 + $0x14c] sm:$0xf]  ;;  %6605 = vst [vmem:[#allocation1 + $0x1] ss:$9 sm:$0xff] %v6403_v55 }
 0x409   :  { %v12807_v1 = vor.u32 %v15916_v26, %v12804_v36  ;;  %v6418_v26 = vshrl.u32 %v20209_v43, 16  ;;  %v4301_v36 = vpop.f32.mrf.mxu3  ;;  %v15892_v28 = vld [vmem:[%s24237_s4 + $0x24c] sm:$0xf]  ;;  %v4265_v43 = vpop.f32.mrf.mxu1  ;;  %v6425_v3 = vshrl.u32 %v20213_v30, 16  ;;  %v12420_v55 = vld [vmem:[%s24237_s4 + $0x18] sm:$0xf0] }
 0x40a   :  { %5217 = vmatpush.bf16.msra.mxu0 %v12487_v13  ;;  %5236 = vmatpush.bf16.msra.mxu1 %v12615_v49  ;;  %v12599_v13 = vor.u32 %v15864_v0, %v12596_v35  ;;  %v12708_v49 = vld [vmem:[%s24237_s4 + $0x258] sm:$0xf0]  ;;  %v6417_v0 = vsel %vm18694_vm12, %v6411_v15, %v6415_v57  ;;  %v4283_v35 = vadd.f32 %v4282_v21, %v4264_v41  ;;  %v15824_v30 = vld [vmem:[%s24237_s4 + $0x2c] sm:$0xf] }
 0x40b   :  { %5278 = vmatpush.bf16.msra.mxu3 %v12807_v1  ;;  %6611 = vst [vmem:[#allocation1 + $0x3] ss:$9 sm:$0xff] %v6417_v0  ;;  %v12583_v15 = vor.u32 %v15860_v50, %v12580_v7  ;;  %v12711_v41 = vor.u32 %v15892_v28, %v12708_v49  ;;  %v15888_v44 = vld [vmem:[%s24237_s4 + $0x22c] sm:$0xf]  ;;  %v12548_v21 = vld [vmem:[%s24237_s4 + $0x118] sm:$0xf0]  ;;  %v6424_v28 = vsel %vm18694_vm12, %v6418_v26, %v6422_v33 }
 0x40c   :  { %5255 = vmatpush.bf16.msra.mxu2 %v12743_v29  ;;  %v6410_v29 = vsel %vm18694_vm12, %v6404_v27, %v6408_v5  ;;  %v4246_v25 = vpop.f32.mrf.mxu0  ;;  %v6432_v27 = vshrl.u32 %v20215_v32, 16  ;;  %v6436_v5 = vshll.u32 %v20308_v52, 16  ;;  %v20552_v57 = vadd.f32 %v4301_v36, %v4283_v35  ;;  %v15856_v32 = vld [vmem:[%s24237_s4 + $0x12c] sm:$0xf]  ;;  %v12564_v52 = vld [vmem:[%s24237_s4 + $0x138] sm:$0xf0] }
 0x40d   :  { %6608 = vst [vmem:[#allocation1 + $0x2] ss:$9 sm:$0xff] %v6410_v29  ;;  %v4266_v10 = vadd.f32 %v4265_v43, %v4246_v25  ;;  %v15820_v1 = vld [vmem:[%s24237_s4 + $0xc] sm:$0xf]  ;;  %v12676_v49 = vld [vmem:[%s24237_s4 + $0x218] sm:$0xf0]  ;;  %v4284_v25 = vpop.f32.mrf.mxu2  ;;  %5151 = vmatmul.bf16.gmra.mxu0 %v19587_v59  ;;  %5170 = vmatmul.bf16.gmra.mxu1 %v19595_v46 }
 0x40e   :  { %5218 = vmatpush.bf16.msra.mxu0 %v12471_v54  ;;  %5237 = vmatpush.bf16.msra.mxu1 %v12599_v13  ;;  %v12436_v54 = vld [vmem:[%s24237_s4 + $0x38] sm:$0xf0]  ;;  %v6439_v13 = vshrl.u32 %v20434_v23, 16  ;;  %v15852_v7 = vld [vmem:[%s24237_s4 + $0x10c] sm:$0xf]  ;;  %v12567_v23 = vor.u32 %v15856_v32, %v12564_v52  ;;  %v24586_v0 = vshrl.u32 %v20211_v60, 16  ;;  %v6438_v32 = vsel %vm18694_vm12, %v6432_v27, %v6436_v5 }
 0x40f   :  { %v12439_v50 = vor.u32 %v15824_v30, %v12436_v54  ;;  %v15884_v36 = vld [vmem:[%s24237_s4 + $0x20c] sm:$0xf]  ;;  %6614 = vst [vmem:[#allocation1 + $0x4] ss:$9 sm:$0xff] %v6424_v28  ;;  %v13090_v26 = vld [vmem:[%s24237_s4 + $0x7e0] sm:$0xf]  ;;  %5189 = vmatmul.bf16.gmra.mxu2 %v19603_v51  ;;  %12861 = vmatmul.msk.bf16.gmra.mxu3 %vm4078_vm7, %v19611_v22 }
 0x410   :  { %5256 = vmatpush.bf16.msra.mxu2 %v12727_v34  ;;  %v6443_v34 = vshll.u32 %v20436_v38, 16  ;;  %v20594_v29 = vld [vmem:[#allocation1] ss:$9 sm:$0xff]  ;;  %v6396_v35 = vsel %vm18694_vm12, %v24586_v0, %v6394_v11  ;;  %6620 = vst [vmem:[#allocation1 + $0x6] ss:$9 sm:$0xff] %v6438_v32  ;;  %v12679_v28 = vor.u32 %v15884_v36, %v12676_v49 }
 0x411   :  { %v4303_v43 = vpop.f32.mrf.mxu3  ;;  %v16073_v33 = vld [vmem:[%s24237_s4 + $0x7ec] sm:$0xf0]  ;;  %6602 = vst [vmem:[#allocation1] ss:$9 sm:$0xff] %v6396_v35  ;;  %v4268_v30 = vpop.f32.mrf.mxu1  ;;  %v13218_v11 = vld [vmem:[%s24237_s4 + $0x8e0] sm:$0xf] }
 0x412   :  { %5219 = vmatpush.bf16.msra.mxu0 %v12455_v61  ;;  %5238 = vmatpush.bf16.msra.mxu1 %v12583_v15  ;;  %v12695_v61 = vor.u32 %v15888_v44, %v12692_v48  ;;  %v6431_v15 = vsel %vm18694_vm12, %v6425_v3, %v6429_v6  ;;  %v16105_v54 = vld [vmem:[%s24237_s4 + $0x8ec] sm:$0xf0]  ;;  %v12423_v44 = vor.u32 %v15820_v1, %v12420_v55  ;;  %v13074_v1 = vld [vmem:[%s24237_s4 + $0x7c0] sm:$0xf] }
 0x413   :  { %6617 = vst [vmem:[#allocation1 + $0x5] ss:$9 sm:$0xff] %v6431_v15  ;;  %v16137_v6 = vld [vmem:[%s24237_s4 + $0x9ec] sm:$0xf0]  ;;  %v12551_v48 = vor.u32 %v15852_v7, %v12548_v21  ;;  %v13091_v27 = vor.u32 %v16073_v33, %v13090_v26  ;;  %v13219_v5 = vor.u32 %v16105_v54, %v13218_v11  ;;  %v6445_v55 = vsel %vm18694_vm12, %v6439_v13, %v6443_v34  ;;  %v13202_v21 = vld [vmem:[%s24237_s4 + $0x8c0] sm:$0xf] }
 0x414   :  { %5257 = vmatpush.bf16.msra.mxu2 %v12711_v41  ;;  %v4285_v41 = vadd.f32 %v4284_v25, %v4266_v10  ;;  %v4249_v60 = vpop.f32.mrf.mxu0  ;;  %v13346_v10 = vld [vmem:[%s24237_s4 + $0x9e0] sm:$0xf]  ;;  %v16069_v7 = vld [vmem:[%s24237_s4 + $0x7cc] sm:$0xf0]  ;;  %6623 = vst [vmem:[#allocation1 + $0x7] ss:$9 sm:$0xff] %v6445_v55 }
 0x415   :  { %v4269_v52 = vadd.f32 %v4268_v30, %v4249_v60  ;;  %v16101_v36 = vld [vmem:[%s24237_s4 + $0x8cc] sm:$0xf0]  ;;  %v13330_v13 = vld [vmem:[%s24237_s4 + $0x9c0] sm:$0xf]  ;;  %v4287_v49 = vpop.f32.mrf.mxu2  ;;  %v13075_v35 = vor.u32 %v16069_v7, %v13074_v1  ;;  %v6450_v1 = vshll.u32 %v20438_v19, 16 }
 0x416   :  { %5220 = vmatpush.bf16.msra.mxu0 %v12439_v50  ;;  %v20622_v3 = vadd.f32 %v4303_v43, %v4285_v41  ;;  %5239 = vmatpush.bf16.msra.mxu1 %v12567_v23  ;;  %v13347_v50 = vor.u32 %v16137_v6, %v13346_v10  ;;  %v16133_v34 = vld [vmem:[%s24237_s4 + $0x9cc] sm:$0xf0]  ;;  %v13410_v23 = vld [vmem:[%s24237_s4 + $0xa60] sm:$0xf]  ;;  %v13203_v25 = vor.u32 %v16101_v36, %v13202_v21  ;;  %v6481_v6 = vshrl.u32 %v20452_v17, 16 }
 0x417   :  { %v13058_v43 = vld [vmem:[%s24237_s4 + $0x7a0] sm:$0xf]  ;;  %v4288_v33 = vadd.f32 %v4287_v49, %v4269_v52  ;;  %v13331_v60 = vor.u32 %v16133_v34, %v13330_v13  ;;  %v16065_v30 = vld [vmem:[%s24237_s4 + $0x7ac] sm:$0xf0] }
 0x418   :  { %5258 = vmatpush.bf16.msra.mxu2 %v12695_v61  ;;  %v16153_v61 = vld [vmem:[%s24237_s4 + $0xa6c] sm:$0xf0]  ;;  %v13186_v11 = vld [vmem:[%s24237_s4 + $0x8a0] sm:$0xf] }
 0x419   :  { %v4306_v0 = vpop.f32.mrf.mxu3  ;;  %v13411_v26 = vor.u32 %v16153_v61, %v13410_v23  ;;  %v4270_v41 = vpop.f32.mrf.mxu1  ;;  %v16097_v54 = vld [vmem:[%s24237_s4 + $0x8ac] sm:$0xf0]  ;;  %v13314_v52 = vld [vmem:[%s24237_s4 + $0x9a0] sm:$0xf] }
 0x41a   :  { %5221 = vmatpush.bf16.msra.mxu0 %v12423_v44  ;;  %5240 = vmatpush.bf16.msra.mxu1 %v12551_v48  ;;  %v16129_v44 = vld [vmem:[%s24237_s4 + $0x9ac] sm:$0xf0]  ;;  %v20673_v10 = vadd.f32 %v4306_v0, %v4288_v33  ;;  %v6446_v48 = vshrl.u32 %v20436_v38, 16  ;;  %v13394_v7 = vld [vmem:[%s24237_s4 + $0xa40] sm:$0xf] }
 0x41b   :  { %6092 = vmatpush.bf16.msrb.mxu3 %v13411_v26  ;;  %v13315_v55 = vor.u32 %v16129_v44, %v13314_v52  ;;  %v16149_v38 = vld [vmem:[%s24237_s4 + $0xa4c] sm:$0xf0]  ;;  %v13170_v21 = vld [vmem:[%s24237_s4 + $0x880] sm:$0xf] }
 0x41c   :  { %5259 = vmatpush.bf16.msra.mxu2 %v12679_v28  ;;  %v4251_v15 = vpop.f32.mrf.mxu0  ;;  %v13059_v28 = vor.u32 %v16065_v30, %v13058_v43  ;;  %v16093_v36 = vld [vmem:[%s24237_s4 + $0x88c] sm:$0xf0]  ;;  %v13395_v13 = vor.u32 %v16149_v38, %v13394_v7  ;;  %v13298_v34 = vld [vmem:[%s24237_s4 + $0x980] sm:$0xf]  ;;  %v6460_v38 = vshrl.u32 %v20440_v9, 16 }
 0x41d   :  { %v4271_v32 = vadd.f32 %v4270_v41, %v4251_v15  ;;  %v16125_v23 = vld [vmem:[%s24237_s4 + $0x98c] sm:$0xf0]  ;;  %v13378_v61 = vld [vmem:[%s24237_s4 + $0xa20] sm:$0xf]  ;;  %v4289_v49 = vpop.f32.mrf.mxu2  ;;  %5222 = vmatmul.bf16.vlgmr.msra.gmra.mxu0 %v19410_v2  ;;  %5241 = vmatmul.bf16.vlgmr.msra.gmra.mxu1 %v19421_v42  ;;  %v6467_v2 = vshrl.u32 %v20442_v37, 16  ;;  %v6471_v42 = vshll.u32 %v20444_v63, 16 }
 0x41e   :  { %6031 = vmatpush.bf16.msrb.mxu0 %v13091_v27  ;;  %6050 = vmatpush.bf16.msrb.mxu1 %v13219_v5  ;;  %v13187_v27 = vor.u32 %v16097_v54, %v13186_v11  ;;  %v6485_v5 = vshll.u32 %v20594_v29, 16  ;;  %v16061_v29 = vld [vmem:[%s24237_s4 + $0x78c] sm:$0xf0]  ;;  %v20717_v30 = vld [vmem:[#allocation1 + $0x1b] sm:$0xff]  ;;  %v6453_v11 = vshrl.u32 %v20438_v19, 16  ;;  %v6457_v54 = vshll.u32 %v20440_v9, 16 }
 0x41f   :  { %v20711_v43 = vld [vmem:[#allocation1 + $0x9] sm:$0xff]  ;;  %v4290_v26 = vadd.f32 %v4289_v49, %v4271_v32  ;;  %6093 = vmatpush.bf16.msrb.mxu3 %v13395_v13  ;;  %v13026_v32 = vld [vmem:[%s24237_s4 + $0x760] sm:$0xf]  ;;  %v13299_v19 = vor.u32 %v16125_v23, %v13298_v34  ;;  %5260 = vmatmul.bf16.vlgmr.msra.gmra.mxu2 %v19423_v14 }
 0x420   :  { %6069 = vmatpush.bf16.msrb.mxu2 %v13347_v50  ;;  %v13042_v50 = vld [vmem:[%s24237_s4 + $0x780] sm:$0xf]  ;;  %v6487_v41 = vsel %vm18694_vm12, %v6481_v6, %v6485_v5  ;;  %v6452_v6 = vsel %vm18694_vm12, %v6446_v48, %v6450_v1  ;;  %v16121_v1 = vld [vmem:[%s24237_s4 + $0x96c] sm:$0xf0]  ;;  %12862 = vmatmul.msk.bf16.vlgmr.msra.gmra.mxu3 %vm4078_vm7, %v19425_v16  ;;  %v6459_v49 = vsel %vm18694_vm12, %v6453_v11, %v6457_v54 }
 0x421   :  { %v4308_v0 = vpop.f32.mrf.mxu3  ;;  %v4339_v15 = vpop.f32.mrf.mxu1  ;;  %v13043_v44 = vor.u32 %v16061_v29, %v13042_v50  ;;  %v16089_v50 = vld [vmem:[%s24237_s4 + $0x86c] sm:$0xf0]  ;;  %v13282_v48 = vld [vmem:[%s24237_s4 + $0x960] sm:$0xf]  ;;  %v6464_v29 = vshll.u32 %v20442_v37, 16  ;;  %v6473_v11 = vsel %vm18694_vm12, %v6467_v2, %v6471_v42 }
 0x422   :  { %6032 = vmatpush.bf16.msrb.mxu0 %v13075_v35  ;;  %6051 = vmatpush.bf16.msrb.mxu1 %v13203_v25  ;;  %v16145_v35 = vld [vmem:[%s24237_s4 + $0xa2c] sm:$0xf0]  ;;  %v20709_v25 = vld [vmem:[#allocation1] sm:$0xff]  ;;  %v20729_v5 = vadd.f32 %v4308_v0, %v4290_v26 }
 0x423   :  { %v13379_v7 = vor.u32 %v16145_v35, %v13378_v61  ;;  %v13010_v9 = vld [vmem:[%s24237_s4 + $0x740] sm:$0xf]  ;;  %v16141_v16 = vld [vmem:[%s24237_s4 + $0xa0c] sm:$0xf0] }
 0x424   :  { %6070 = vmatpush.bf16.msrb.mxu2 %v13331_v60  ;;  %v4320_v33 = vpop.f32.mrf.mxu0  ;;  %v20715_v60 = vld [vmem:[#allocation1 + $0x12] sm:$0xff]  ;;  %v13362_v14 = vld [vmem:[%s24237_s4 + $0xa00] sm:$0xf] }
 0x425   :  { %v4340_v52 = vadd.f32 %v4339_v15, %v4320_v33  ;;  %6639 = vst [vmem:[#allocation1 + $0x5] ss:$9 sm:$0xff] %v6487_v41  ;;  %v16053_v37 = vld [vmem:[%s24237_s4 + $0x74c] sm:$0xf0]  ;;  %6094 = vmatpush.bf16.msrb.mxu3 %v13379_v7  ;;  %v13363_v61 = vor.u32 %v16141_v16, %v13362_v14  ;;  %v4358_v0 = vpop.f32.mrf.mxu2  ;;  %v13266_v26 = vld [vmem:[%s24237_s4 + $0x940] sm:$0xf]  ;;  %v6466_v15 = vsel %vm18694_vm12, %v6460_v38, %v6464_v29 }
 0x426   :  { %6033 = vmatpush.bf16.msrb.mxu0 %v13059_v28  ;;  %6052 = vmatpush.bf16.msrb.mxu1 %v13187_v27  ;;  %v13171_v28 = vor.u32 %v16093_v36, %v13170_v21  ;;  %v16057_v27 = vld [vmem:[%s24237_s4 + $0x76c] sm:$0xf0]  ;;  %6629 = vst [vmem:[#allocation1] ss:$9 sm:$0xff] %v6452_v6  ;;  %v6474_v21 = vshrl.u32 %v20444_v63, 16  ;;  %v6478_v36 = vshll.u32 %v20452_v17, 16  ;;  %v13283_v63 = vor.u32 %v16121_v1, %v13282_v48 }
 0x427   :  { %v13027_v13 = vor.u32 %v16057_v27, %v13026_v32  ;;  %v13138_v17 = vld [vmem:[%s24237_s4 + $0x840] sm:$0xf]  ;;  %v16085_v23 = vld [vmem:[%s24237_s4 + $0x84c] sm:$0xf0]  ;;  %6631 = vst [vmem:[#allocation1 + $0x1] ss:$9 sm:$0xff] %v6459_v49  ;;  %v4359_v41 = vadd.f32 %v4358_v0, %v4340_v52  ;;  %v13011_v27 = vor.u32 %v16053_v37, %v13010_v9 }
 0x428   :  { %6071 = vmatpush.bf16.msrb.mxu2 %v13315_v55  ;;  %v13154_v55 = vld [vmem:[%s24237_s4 + $0x860] sm:$0xf]  ;;  %v16117_v33 = vld [vmem:[%s24237_s4 + $0x94c] sm:$0xf0]  ;;  %v6480_v54 = vsel %vm18694_vm12, %v6474_v21, %v6478_v36  ;;  %6633 = vst [vmem:[#allocation1 + $0x2] ss:$9 sm:$0xff] %v6466_v15  ;;  %v13139_v6 = vor.u32 %v16085_v23, %v13138_v17 }
 0x429   :  { %v13155_v34 = vor.u32 %v16089_v50, %v13154_v55  ;;  %v4377_v35 = vpop.f32.mrf.mxu3  ;;  %v16049_v52 = vld [vmem:[%s24237_s4 + $0x72c] sm:$0xf0]  ;;  %6635 = vst [vmem:[#allocation1 + $0x3] ss:$9 sm:$0xff] %v6473_v11  ;;  %v13267_v31 = vor.u32 %v16117_v33, %v13266_v26  ;;  %v13122_v50 = vld [vmem:[%s24237_s4 + $0x820] sm:$0xf]  ;;  %6095 = vmatpush.bf16.msrb.mxu3 %v13363_v61 }
 0x42a   :  { %6034 = vmatpush.bf16.msrb.mxu0 %v13043_v44  ;;  %6053 = vmatpush.bf16.msrb.mxu1 %v13171_v28  ;;  %v4341_v28 = vpop.f32.mrf.mxu1  ;;  %v20792_v55 = vadd.f32 %v4377_v35, %v4359_v41  ;;  %v16081_v7 = vld [vmem:[%s24237_s4 + $0x82c] sm:$0xf0]  ;;  %6637 = vst [vmem:[#allocation1 + $0x4] ss:$9 sm:$0xff] %v6480_v54  ;;  %v13250_v48 = vld [vmem:[%s24237_s4 + $0x920] sm:$0xf] }
 0x42b   :  { %v16113_v1 = vld [vmem:[%s24237_s4 + $0x92c] sm:$0xf0]  ;;  %v13123_v29 = vor.u32 %v16081_v7, %v13122_v50  ;;  %v12978_v2 = vld [vmem:[%s24237_s4 + $0x700] sm:$0xf]  ;;  %v13092_v37 = vld [vmem:[%s24237_s4 + $0x7f0] sm:$0xf0] }
 0x42c   :  { %6072 = vmatpush.bf16.msrb.mxu2 %v13299_v19  ;;  %v4322_v44 = vpop.f32.mrf.mxu0  ;;  %v12994_v19 = vld [vmem:[%s24237_s4 + $0x720] sm:$0xf]  ;;  %v16045_v42 = vld [vmem:[%s24237_s4 + $0x70c] sm:$0xf0]  ;;  %v13251_v36 = vor.u32 %v16113_v1, %v13250_v48  ;;  %v16103_v17 = vld [vmem:[%s24237_s4 + $0x8e4] sm:$0xf] }
 0x42d   :  { %v4342_v32 = vadd.f32 %v4341_v28, %v4322_v44  ;;  %v12995_v38 = vor.u32 %v16049_v52, %v12994_v19  ;;  %v13106_v21 = vld [vmem:[%s24237_s4 + $0x800] sm:$0xf]  ;;  %v16109_v9 = vld [vmem:[%s24237_s4 + $0x90c] sm:$0xf0]  ;;  %v4360_v14 = vpop.f32.mrf.mxu2  ;;  %v13220_v0 = vld [vmem:[%s24237_s4 + $0x8f0] sm:$0xf0]  ;;  %v12979_v15 = vor.u32 %v16045_v42, %v12978_v2  ;;  %5227 = vmatmul.bf16.gmra.mxu0 %v19587_v59  ;;  %5246 = vmatmul.bf16.gmra.mxu1 %v19595_v46 }
 0x42e   :  { %6035 = vmatpush.bf16.msrb.mxu0 %v13027_v13  ;;  %6054 = vmatpush.bf16.msrb.mxu1 %v13155_v34  ;;  %v16077_v13 = vld [vmem:[%s24237_s4 + $0x80c] sm:$0xf0]  ;;  %v13234_v34 = vld [vmem:[%s24237_s4 + $0x900] sm:$0xf]  ;;  %v16135_v35 = vld [vmem:[%s24237_s4 + $0x9e4] sm:$0xf] }
 0x42f   :  { %v4361_v23 = vadd.f32 %v4360_v14, %v4342_v32  ;;  %v13348_v26 = vld [vmem:[%s24237_s4 + $0x9f0] sm:$0xf0]  ;;  %v13107_v41 = vor.u32 %v16077_v13, %v13106_v21  ;;  %v13235_v11 = vor.u32 %v16109_v9, %v13234_v34  ;;  %v16067_v32 = vld [vmem:[%s24237_s4 + $0x7c4] sm:$0xf]  ;;  %5265 = vmatmul.bf16.gmra.mxu2 %v19603_v51  ;;  %vm24627_vm12 = vcmask 261120  }
 0x430   :  { %6073 = vmatpush.bf16.msrb.mxu2 %v13283_v63  ;;  %v16071_v63 = vld [vmem:[%s24237_s4 + $0x7e4] sm:$0xf]  ;;  %v13076_v19 = vld [vmem:[%s24237_s4 + $0x7d0] sm:$0xf0]  ;;  %12863 = vmatmul.msk.bf16.gmra.mxu3 %vm4078_vm7, %v19611_v22  ;;  %vm24633_vm15 = vmmov %vm24627_vm12 }
 0x431   :  { %v4379_v16 = vpop.f32.mrf.mxu3  ;;  %v20842_v44 = vld [vmem:[#allocation1] sm:$0xff]  ;;  %v13095_v54 = vor.u32 %v16071_v63, %v13092_v37  ;;  %v13332_v59 = vld [vmem:[%s24237_s4 + $0x9d0] sm:$0xf0]  ;;  %v20870_v46 = vld [vmem:[#allocation1 + $0x9] sm:$0xff]  ;;  %v13079_v7 = vor.u32 %v16067_v32, %v13076_v19 }
 0x432   :  { %6036 = vmatpush.bf16.msrb.mxu0 %v13011_v27  ;;  %6055 = vmatpush.bf16.msrb.mxu1 %v13139_v6  ;;  %v4344_v49 = vpop.f32.mrf.mxu1  ;;  %v20844_v28 = vadd.f32 %v4379_v16, %v4361_v23  ;;  %7534 = vst [vmem:[#allocation1] sm:$0xff] %v18621_v56  ;;  %v13223_v27 = vor.u32 %v16103_v17, %v13220_v0  ;;  %v16099_v52 = vld [vmem:[%s24237_s4 + $0x8c4] sm:$0xf]  ;;  %v13060_v51 = vld [vmem:[%s24237_s4 + $0x7b0] sm:$0xf0]  ;;  %vm24639_vm5 = vmmov %vm24627_vm12 }
 0x433   :  { %v13351_v6 = vor.u32 %v16135_v35, %v13348_v26  ;;  %v16131_v56 = vld [vmem:[%s24237_s4 + $0x9c4] sm:$0xf]  ;;  %v20878_v22 = vld [vmem:[#allocation1 + $0x12] sm:$0xff]  ;;  %7535 = vst [vmem:[#allocation1 + $0x9] sm:$0xff] %v18624_v12 }
 0x434   :  { %6074 = vmatpush.bf16.msrb.mxu2 %v13267_v31  ;;  %v4325_v61 = vpop.f32.mrf.mxu0  ;;  %v13204_v31 = vld [vmem:[%s24237_s4 + $0x8d0] sm:$0xf0]  ;;  %v16063_v50 = vld [vmem:[%s24237_s4 + $0x7a4] sm:$0xf]  ;;  %v13335_v21 = vor.u32 %v16131_v56, %v13332_v59  ;;  %7536 = vst [vmem:[#allocation1 + $0x12] sm:$0xff] %v18642_v62 }
 0x435   :  { %v4345_v33 = vadd.f32 %v4344_v49, %v4325_v61  ;;  %v16095_v48 = vld [vmem:[%s24237_s4 + $0x8a4] sm:$0xf]  ;;  %v13188_v1 = vld [vmem:[%s24237_s4 + $0x8b0] sm:$0xf0]  ;;  %v13207_v42 = vor.u32 %v16099_v52, %v13204_v31  ;;  %v13063_v12 = vor.u32 %v16063_v50, %v13060_v51 }
 0x436   :  { %6037 = vmatpush.bf16.msrb.mxu0 %v12995_v38  ;;  %6056 = vmatpush.bf16.msrb.mxu1 %v13123_v29  ;;  %v20886_v38 = vld [vmem:[#allocation1 + $0x1b] sm:$0xff]  ;;  %v4363_v29 = vpop.f32.mrf.mxu2  ;;  %v13412_v13 = vld [vmem:[%s24237_s4 + $0xa70] sm:$0xf0]  ;;  %v16127_v16 = vld [vmem:[%s24237_s4 + $0x9a4] sm:$0xf]  ;;  %v13191_v61 = vor.u32 %v16095_v48, %v13188_v1 }
 0x437   :  { %v4364_v34 = vadd.f32 %v4363_v29, %v4345_v33  ;;  %v13316_v63 = vld [vmem:[%s24237_s4 + $0x9b0] sm:$0xf0]  ;;  %7537 = vst [vmem:[#allocation1 + $0x1b] sm:$0xff] %v18645_v45  ;;  %v16059_v0 = vld [vmem:[%s24237_s4 + $0x784] sm:$0xf] }
 0x438   :  { %6075 = vmatpush.bf16.msrb.mxu2 %v13251_v36  ;;  %v16151_v36 = vld [vmem:[%s24237_s4 + $0xa64] sm:$0xf]  ;;  %v13319_v49 = vor.u32 %v16127_v16, %v13316_v63  ;;  %v13044_v62 = vld [vmem:[%s24237_s4 + $0x790] sm:$0xf0] }
 0x439   :  { %v4382_v2 = vpop.f32.mrf.mxu3  ;;  %v13415_v37 = vor.u32 %v16151_v36, %v13412_v13  ;;  %v16091_v45 = vld [vmem:[%s24237_s4 + $0x884] sm:$0xf]  ;;  %v13396_v26 = vld [vmem:[%s24237_s4 + $0xa50] sm:$0xf0]  ;;  %v13047_v33 = vor.u32 %v16059_v0, %v13044_v62 }
 0x43a   :  { %6038 = vmatpush.bf16.msrb.mxu0 %v12979_v15  ;;  %6057 = vmatpush.bf16.msrb.mxu1 %v13107_v41  ;;  %v4346_v14 = vpop.f32.mrf.mxu1  ;;  %v20903_v23 = vadd.f32 %v4382_v2, %v4364_v34  ;;  %v16147_v35 = vld [vmem:[%s24237_s4 + $0xa44] sm:$0xf]  ;;  %v13172_v15 = vld [vmem:[%s24237_s4 + $0x890] sm:$0xf0] }
 0x43b   :  { %6168 = vmatpush.bf16.msra.mxu3 %v13415_v37  ;;  %v16123_v41 = vld [vmem:[%s24237_s4 + $0x984] sm:$0xf]  ;;  %v13028_v19 = vld [vmem:[%s24237_s4 + $0x770] sm:$0xf0] }
 0x43c   :  { %6076 = vmatpush.bf16.msrb.mxu2 %v13235_v11  ;;  %v4327_v9 = vpop.f32.mrf.mxu0  ;;  %v13300_v11 = vld [vmem:[%s24237_s4 + $0x990] sm:$0xf0]  ;;  %v16143_v52 = vld [vmem:[%s24237_s4 + $0xa24] sm:$0xf] }
 0x43d   :  { %v4347_v17 = vadd.f32 %v4346_v14, %v4327_v9  ;;  %v13380_v50 = vld [vmem:[%s24237_s4 + $0xa30] sm:$0xf0]  ;;  %v13303_v48 = vor.u32 %v16123_v41, %v13300_v11  ;;  %v16087_v1 = vld [vmem:[%s24237_s4 + $0x864] sm:$0xf]  ;;  %6039 = vmatmul.bf16.vlgmr.msrb.gmra.mxu0 %v19930_v58  ;;  %6058 = vmatmul.bf16.vlgmr.msrb.gmra.mxu1 %v19932_v53 }
 0x43e   :  { %6107 = vmatpush.bf16.msra.mxu0 %v13095_v54  ;;  %6126 = vmatpush.bf16.msra.mxu1 %v13223_v27  ;;  %v13399_v54 = vor.u32 %v16147_v35, %v13396_v26  ;;  %v4365_v32 = vpop.f32.mrf.mxu2  ;;  %v13156_v29 = vld [vmem:[%s24237_s4 + $0x870] sm:$0xf0]  ;;  %v16119_v2 = vld [vmem:[%s24237_s4 + $0x964] sm:$0xf]  ;;  %v13383_v34 = vor.u32 %v16143_v52, %v13380_v50 }
 0x43f   :  { %v4366_v31 = vadd.f32 %v4365_v32, %v4347_v17  ;;  %v16051_v36 = vld [vmem:[%s24237_s4 + $0x744] sm:$0xf]  ;;  %v13012_v13 = vld [vmem:[%s24237_s4 + $0x750] sm:$0xf0]  ;;  %6077 = vmatmul.bf16.vlgmr.msrb.gmra.mxu2 %v19934_v40 }
 0x440   :  { %6145 = vmatpush.bf16.msra.mxu2 %v13351_v6  ;;  %v16055_v6 = vld [vmem:[%s24237_s4 + $0x764] sm:$0xf]  ;;  %6169 = vmatpush.bf16.msra.mxu3 %v13399_v54  ;;  %v13015_v35 = vor.u32 %v16051_v36, %v13012_v13  ;;  %v13140_v26 = vld [vmem:[%s24237_s4 + $0x850] sm:$0xf0] }
 0x441   :  { %v4384_v27 = vpop.f32.mrf.mxu3  ;;  %v20964_v14 = vld [vmem:[#allocation1 + $0x2] ss:$9 sm:$0xff]  ;;  %v20968_v63 = vld [vmem:[#allocation1 + $0x4] ss:$9 sm:$0xff]  ;;  %13424 = vmatmul.msk.bf16.vlgmr.msrb.gmra.mxu3 %vm4078_vm7, %v19936_v8 }
 0x442   :  { %6108 = vmatpush.bf16.msra.mxu0 %v13079_v7  ;;  %6127 = vmatpush.bf16.msra.mxu1 %v13207_v42  ;;  %v5014_v59 = vpop.f32.mrf.mxu1  ;;  %v13175_v7 = vor.u32 %v16091_v45, %v13172_v15  ;;  %v20951_v42 = vadd.f32 %v4384_v27, %v4366_v31  ;;  %v20966_v16 = vld [vmem:[#allocation1 + $0x3] ss:$9 sm:$0xff]  ;;  %v20973_v37 = vld [vmem:[#allocation1 + $0x5] ss:$9 sm:$0xff] }
 0x443   :  { %v20975_v17 = vld [vmem:[#allocation1 + $0x6] ss:$9 sm:$0xff]  ;;  %v13364_v45 = vld [vmem:[%s24237_s4 + $0xa10] sm:$0xf0] }
 0x444   :  { %6146 = vmatpush.bf16.msra.mxu2 %v13335_v21  ;;  %v4995_v56 = vpop.f32.mrf.mxu0  ;;  %v13031_v21 = vor.u32 %v16055_v6, %v13028_v19  ;;  %v16083_v0 = vld [vmem:[%s24237_s4 + $0x844] sm:$0xf]  ;;  %v13268_v15 = vld [vmem:[%s24237_s4 + $0x950] sm:$0xf0]  ;;  %6170 = vmatpush.bf16.msra.mxu3 %v13383_v34 }
 0x445   :  { %v4996_v51 = vadd.f32 %v4995_v56, %v20098_v20  ;;  %v13284_v20 = vld [vmem:[%s24237_s4 + $0x970] sm:$0xf0]  ;;  %v16139_v62 = vld [vmem:[%s24237_s4 + $0xa04] sm:$0xf]  ;;  %v13143_v56 = vor.u32 %v16083_v0, %v13140_v26  ;;  %v13098_v0 = vld [vmem:[%s24237_s4 + $0x7e8] sm:$0xf] }
 0x446   :  { %6109 = vmatpush.bf16.msra.mxu0 %v13063_v12  ;;  %6128 = vmatpush.bf16.msra.mxu1 %v13191_v61  ;;  %v20977_v12 = vld [vmem:[#allocation1 + $0x7] ss:$9 sm:$0xff]  ;;  %v13159_v61 = vor.u32 %v16087_v1, %v13156_v29  ;;  %v13367_v41 = vor.u32 %v16139_v62, %v13364_v45  ;;  %v5033_v11 = vpop.f32.mrf.mxu2 }
 0x447   :  { %v5015_v9 = vadd.f32 %v5014_v59, %v4996_v51  ;;  %v16047_v32 = vld [vmem:[%s24237_s4 + $0x724] sm:$0xf]  ;;  %v12996_v27 = vld [vmem:[%s24237_s4 + $0x730] sm:$0xf0]  ;;  %7550 = vst [vmem:[#allocation1] sm:$0xff] %v24583_v18 }
 0x448   :  { %6147 = vmatpush.bf16.msra.mxu2 %v13319_v49  ;;  %v13287_v49 = vor.u32 %v16119_v2, %v13284_v20  ;;  %7551 = vst [vmem:[#allocation1 + $0x9] sm:$0xff] %v24583_v18  ;;  %v16079_v50 = vld [vmem:[%s24237_s4 + $0x824] sm:$0xf]  ;;  %v13124_v51 = vld [vmem:[%s24237_s4 + $0x830] sm:$0xf0]  ;;  %6171 = vmatpush.bf16.msra.mxu3 %v13367_v41 }
 0x449   :  { %v5052_v54 = vpop.f32.mrf.mxu3  ;;  %v5034_v6 = vadd.f32 %v5033_v11, %v5015_v9  ;;  %7552 = vst [vmem:[#allocation1 + $0x12] sm:$0xff] %v24583_v18  ;;  %v13252_v1 = vld [vmem:[%s24237_s4 + $0x930] sm:$0xf0]  ;;  %v16043_v2 = vld [vmem:[%s24237_s4 + $0x704] sm:$0xf]  ;;  %v13127_v20 = vor.u32 %v16079_v50, %v13124_v51 }
 0x44a   :  { %6110 = vmatpush.bf16.msra.mxu0 %v13047_v33  ;;  %6129 = vmatpush.bf16.msra.mxu1 %v13175_v7  ;;  %v16115_v33 = vld [vmem:[%s24237_s4 + $0x944] sm:$0xf]  ;;  %v5016_v52 = vpop.f32.mrf.mxu1  ;;  %7553 = vst [vmem:[#allocation1 + $0x1b] sm:$0xff] %v24583_v18  ;;  %v13108_v34 = vld [vmem:[%s24237_s4 + $0x810] sm:$0xf0] }
 0x44b   :  { %v13271_v59 = vor.u32 %v16115_v33, %v13268_v15  ;;  %v21013_v7 = vadd.f32 %v5052_v54, %v5034_v6  ;;  %v16075_v13 = vld [vmem:[%s24237_s4 + $0x804] sm:$0xf]  ;;  %v13226_v26 = vld [vmem:[%s24237_s4 + $0x8e8] sm:$0xf]  ;;  %v16106_v33 = vld [vmem:[%s24237_s4 + $0x8f4] sm:$0xf0] }
 0x44c   :  { %6148 = vmatpush.bf16.msra.mxu2 %v13303_v48  ;;  %v4997_v19 = vpop.f32.mrf.mxu0  ;;  %v12999_v48 = vor.u32 %v16047_v32, %v12996_v27  ;;  %v13354_v54 = vld [vmem:[%s24237_s4 + $0x9e8] sm:$0xf]  ;;  %v16138_v32 = vld [vmem:[%s24237_s4 + $0x9f4] sm:$0xf0]  ;;  %v13111_v6 = vor.u32 %v16075_v13, %v13108_v34 }
 0x44d   :  { %v4998_v31 = vadd.f32 %v4997_v19, %v20145_v39  ;;  %v16111_v39 = vld [vmem:[%s24237_s4 + $0x924] sm:$0xf]  ;;  %v13082_v50 = vld [vmem:[%s24237_s4 + $0x7c8] sm:$0xf]  ;;  %6044 = vmatmul.bf16.gmra.mxu0 %v20083_v24 }
 0x44e   :  { %6111 = vmatpush.bf16.msra.mxu0 %v13031_v21  ;;  %6130 = vmatpush.bf16.msra.mxu1 %v13159_v61  ;;  %v12980_v21 = vld [vmem:[%s24237_s4 + $0x710] sm:$0xf0]  ;;  %v13255_v36 = vor.u32 %v16111_v39, %v13252_v1  ;;  %v16107_v61 = vld [vmem:[%s24237_s4 + $0x904] sm:$0xf]  ;;  %v5035_v62 = vpop.f32.mrf.mxu2  ;;  %v16070_v39 = vld [vmem:[%s24237_s4 + $0x7d4] sm:$0xf0] }
 0x44f   :  { %v5017_v29 = vadd.f32 %v5016_v52, %v4998_v31  ;;  %v12983_v9 = vor.u32 %v16043_v2, %v12980_v21  ;;  %v13210_v1 = vld [vmem:[%s24237_s4 + $0x8c8] sm:$0xf]  ;;  %v24588_v2 = vld [vmem:[#allocation24_spill] sm:$0xff]  ;;  %v13083_v13 = vor.u32 %v16070_v39, %v13082_v50 }
 0x450   :  { %6149 = vmatpush.bf16.msra.mxu2 %v13287_v49  ;;  %v13236_v49 = vld [vmem:[%s24237_s4 + $0x910] sm:$0xf0]  ;;  %v13338_v21 = vld [vmem:[%s24237_s4 + $0x9c8] sm:$0xf] }
 0x451   :  { %v5054_v45 = vpop.f32.mrf.mxu3  ;;  %v5036_v15 = vadd.f32 %v5035_v62, %v5017_v29  ;;  %v13239_v19 = vor.u32 %v16107_v61, %v13236_v49  ;;  %v21059_v52 = vld [vmem:[#allocation1] ss:$9 sm:$0xff]  ;;  %6082 = vmatmul.bf16.gmra.mxu2 %v24588_v2 }
 0x452   :  { %6112 = vmatpush.bf16.msra.mxu0 %v13015_v35  ;;  %6131 = vmatpush.bf16.msra.mxu1 %v13143_v56  ;;  %v16074_v35 = vld [vmem:[%s24237_s4 + $0x7f4] sm:$0xf0]  ;;  %v5019_v11 = vpop.f32.mrf.mxu1  ;;  %7555 = vst [vmem:[#allocation1] sm:$0xff] %v19000_v4  ;;  %v24589_v4 = vld [vmem:[#allocation31_spill] sm:$0xff] }
 0x453   :  { %v21061_v31 = vadd.f32 %v5054_v45, %v5036_v15  ;;  %v13099_v56 = vor.u32 %v16074_v35, %v13098_v0  ;;  %v16102_v29 = vld [vmem:[%s24237_s4 + $0x8d4] sm:$0xf0]  ;;  %13425 = vmatmul.msk.bf16.gmra.mxu3 %vm4078_vm7, %v24589_v4  ;;  %v13194_v61 = vld [vmem:[%s24237_s4 + $0x8a8] sm:$0xf] }
 0x454   :  { %6150 = vmatpush.bf16.msra.mxu2 %v13271_v59  ;;  %v5000_v41 = vpop.f32.mrf.mxu0  ;;  %v13227_v59 = vor.u32 %v16106_v33, %v13226_v26  ;;  %v13211_v34 = vor.u32 %v16102_v29, %v13210_v1  ;;  %v16098_v49 = vld [vmem:[%s24237_s4 + $0x8b4] sm:$0xf0]  ;;  %v13418_v35 = vld [vmem:[%s24237_s4 + $0xa68] sm:$0xf]  ;;  %v24590_v33 = vld [vmem:[#allocation14_spill] sm:$0xff] }
 0x455   :  { %v5001_v27 = vadd.f32 %v5000_v41, %v20218_v47  ;;  %v24587_v47 = vld [vmem:[#allocation23_spill] sm:$0xff]  ;;  %v16154_v26 = vld [vmem:[%s24237_s4 + $0xa74] sm:$0xf0]  ;;  %7556 = vst [vmem:[#allocation1 + $0x9] sm:$0xff] %v24590_v33 }
 0x456   :  { %6113 = vmatpush.bf16.msra.mxu0 %v12999_v48  ;;  %6132 = vmatpush.bf16.msra.mxu1 %v13127_v20  ;;  %v13355_v48 = vor.u32 %v16138_v32, %v13354_v54  ;;  %v16134_v20 = vld [vmem:[%s24237_s4 + $0x9d4] sm:$0xf0]  ;;  %v5038_v0 = vpop.f32.mrf.mxu2  ;;  %v13322_v54 = vld [vmem:[%s24237_s4 + $0x9a8] sm:$0xf] }
 0x457   :  { %v5020_v51 = vadd.f32 %v5019_v11, %v5001_v27  ;;  %6063 = vmatmul.bf16.gmra.mxu1 %v24587_v47  ;;  %v13339_v45 = vor.u32 %v16134_v20, %v13338_v21  ;;  %v16130_v32 = vld [vmem:[%s24237_s4 + $0x9b4] sm:$0xf0]  ;;  %v13419_v27 = vor.u32 %v16154_v26, %v13418_v35  ;;  %v13050_v39 = vld [vmem:[%s24237_s4 + $0x788] sm:$0xf] }
 0x458   :  { %6151 = vmatpush.bf16.msra.mxu2 %v13255_v36  ;;  %v13066_v36 = vld [vmem:[%s24237_s4 + $0x7a8] sm:$0xf]  ;;  %v13323_v29 = vor.u32 %v16130_v32, %v13322_v54  ;;  %v16062_v21 = vld [vmem:[%s24237_s4 + $0x794] sm:$0xf0] }
 0x459   :  { %v5057_v62 = vpop.f32.mrf.mxu3  ;;  %v5039_v15 = vadd.f32 %v5038_v0, %v5020_v51  ;;  %v13178_v20 = vld [vmem:[%s24237_s4 + $0x888] sm:$0xf]  ;;  %6244 = vmatpush.bf16.msrb.mxu3 %v13419_v27  ;;  %v16126_v0 = vld [vmem:[%s24237_s4 + $0x994] sm:$0xf0] }
 0x45a   :  { %6114 = vmatpush.bf16.msra.mxu0 %v12983_v9  ;;  %6133 = vmatpush.bf16.msra.mxu1 %v13111_v6  ;;  %v16066_v9 = vld [vmem:[%s24237_s4 + $0x7b4] sm:$0xf0]  ;;  %v5021_v11 = vpop.f32.mrf.mxu1  ;;  %v24591_v6 = vld [vmem:[#allocation22_spill] sm:$0xff] }
 0x45b   :  { %7557 = vst [vmem:[#allocation1 + $0x12] sm:$0xff] %v24591_v6  ;;  %v21115_v50 = vadd.f32 %v5057_v62, %v5039_v15  ;;  %v13067_v51 = vor.u32 %v16066_v9, %v13066_v36  ;;  %v16094_v36 = vld [vmem:[%s24237_s4 + $0x894] sm:$0xf0]  ;;  %v13034_v62 = vld [vmem:[%s24237_s4 + $0x768] sm:$0xf] }
 0x45c   :  { %6152 = vmatpush.bf16.msra.mxu2 %v13239_v19  ;;  %v5002_v41 = vpop.f32.mrf.mxu0  ;;  %v24592_v19 = vld [vmem:[#allocation29_spill] sm:$0xff]  ;;  %v13162_v15 = vld [vmem:[%s24237_s4 + $0x868] sm:$0xf] }
 0x45d   :  { %v16150_v9 = vld [vmem:[%s24237_s4 + $0xa54] sm:$0xf0]  ;;  %6115 = vmatmul.bf16.vlgmr.msra.gmra.mxu0 %v19930_v58 }
 0x45e   :  { %6183 = vmatpush.bf16.msrb.mxu0 %v13099_v56  ;;  %6202 = vmatpush.bf16.msrb.mxu1 %v13227_v59  ;;  %v5003_v56 = vadd.f32 %v5002_v41, %v24592_v19  ;;  %v24593_v59 = vld [vmem:[#allocation30_spill] sm:$0xff]  ;;  %v5040_v26 = vpop.f32.mrf.mxu2  ;;  %v16090_v41 = vld [vmem:[%s24237_s4 + $0x874] sm:$0xf0] }
 0x45f   :  { %7558 = vst [vmem:[#allocation1 + $0x1b] sm:$0xff] %v24593_v59  ;;  %v16146_v6 = vld [vmem:[%s24237_s4 + $0xa34] sm:$0xf0]  ;;  %v24594_v19 = vld [vmem:[#allocation10_spill] sm:$0xff] }
 0x460   :  { %6221 = vmatpush.bf16.msrb.mxu2 %v13355_v48  ;;  %v13195_v48 = vor.u32 %v16098_v49, %v13194_v61  ;;  %v5022_v1 = vadd.f32 %v5021_v11, %v5003_v56  ;;  %v13051_v61 = vor.u32 %v16062_v21, %v13050_v39  ;;  %v13179_v49 = vor.u32 %v16094_v36, %v13178_v20  ;;  %v13386_v11 = vld [vmem:[%s24237_s4 + $0xa28] sm:$0xf]  ;;  %v16054_v36 = vld [vmem:[%s24237_s4 + $0x754] sm:$0xf0] }
 0x461   :  { %v5059_v33 = vpop.f32.mrf.mxu3  ;;  %v13018_v39 = vld [vmem:[%s24237_s4 + $0x748] sm:$0xf]  ;;  %v13163_v20 = vor.u32 %v16090_v41, %v13162_v15  ;;  %6153 = vmatmul.bf16.vlgmr.msra.gmra.mxu2 %v19934_v40  ;;  %v16142_v41 = vld [vmem:[%s24237_s4 + $0xa14] sm:$0xf0] }
 0x462   :  { %6184 = vmatpush.bf16.msrb.mxu0 %v13083_v13  ;;  %6203 = vmatpush.bf16.msrb.mxu1 %v13211_v34  ;;  %v13306_v13 = vld [vmem:[%s24237_s4 + $0x988] sm:$0xf]  ;;  %v5041_v54 = vadd.f32 %v5040_v26, %v5022_v1  ;;  %v5090_v27 = vpop.f32.mrf.mxu1  ;;  %v13387_v1 = vor.u32 %v16146_v6, %v13386_v11  ;;  %v13019_v11 = vor.u32 %v16054_v36, %v13018_v39  ;;  %v16050_v6 = vld [vmem:[%s24237_s4 + $0x734] sm:$0xf0] }
 0x463   :  { %v13402_v34 = vld [vmem:[%s24237_s4 + $0xa48] sm:$0xf]  ;;  %v13307_v59 = vor.u32 %v16126_v0, %v13306_v13  ;;  %13426 = vmatmul.msk.bf16.vlgmr.msra.gmra.mxu3 %vm4078_vm7, %v19936_v8 }
 0x464   :  { %6222 = vmatpush.bf16.msrb.mxu2 %v13339_v45  ;;  %v16058_v45 = vld [vmem:[%s24237_s4 + $0x774] sm:$0xf0]  ;;  %v13403_v35 = vor.u32 %v16150_v9, %v13402_v34  ;;  %v5071_v32 = vpop.f32.mrf.mxu0  ;;  %v13146_v13 = vld [vmem:[%s24237_s4 + $0x848] sm:$0xf] }
 0x465   :  { %v5072_v56 = vadd.f32 %v5071_v32, %v24594_v19  ;;  %v13035_v21 = vor.u32 %v16058_v45, %v13034_v62  ;;  %v16086_v34 = vld [vmem:[%s24237_s4 + $0x854] sm:$0xf0]  ;;  %v13370_v15 = vld [vmem:[%s24237_s4 + $0xa08] sm:$0xf] }
 0x466   :  { %6185 = vmatpush.bf16.msrb.mxu0 %v13067_v51  ;;  %6204 = vmatpush.bf16.msrb.mxu1 %v13195_v48  ;;  %v13290_v51 = vld [vmem:[%s24237_s4 + $0x968] sm:$0xf]  ;;  %v16122_v48 = vld [vmem:[%s24237_s4 + $0x974] sm:$0xf0]  ;;  %v13371_v19 = vor.u32 %v16142_v41, %v13370_v15 }
 0x467   :  { %6245 = vmatpush.bf16.msrb.mxu3 %v13403_v35  ;;  %v5091_v9 = vadd.f32 %v5090_v27, %v5072_v56  ;;  %6134 = vmatmul.bf16.vlgmr.msra.gmra.mxu1 %v19932_v53  ;;  %v21186_v0 = vld [vmem:[#allocation1 + $0x4] ss:$9 sm:$0xff]  ;;  %v21193_v45 = vld [vmem:[#allocation1 + $0x6] ss:$9 sm:$0xff]  ;;  %v13291_v26 = vor.u32 %v16122_v48, %v13290_v51  ;;  %v5109_v56 = vpop.f32.mrf.mxu2 }
 0x468   :  { %6223 = vmatpush.bf16.msrb.mxu2 %v13323_v29  ;;  %v21169_v29 = vadd.f32 %v5059_v33, %v5041_v54  ;;  %v21191_v62 = vld [vmem:[#allocation1 + $0x5] ss:$9 sm:$0xff]  ;;  %v21195_v35 = vld [vmem:[#allocation1 + $0x7] ss:$9 sm:$0xff]  ;;  %v13147_v54 = vor.u32 %v16086_v34, %v13146_v13 }
 0x469   :  { %v13274_v33 = vld [vmem:[%s24237_s4 + $0x948] sm:$0xf]  ;;  %v16118_v32 = vld [vmem:[%s24237_s4 + $0x954] sm:$0xf0]  ;;  %v5110_v39 = vadd.f32 %v5109_v56, %v5091_v9 }
 0x46a   :  { %24595 = vst [vmem:[#allocation21_spill] sm:$0xff] %v21169_v29  ;;  %6186 = vmatpush.bf16.msrb.mxu0 %v13051_v61  ;;  %6205 = vmatpush.bf16.msrb.mxu1 %v13179_v49  ;;  %v21182_v61 = vld [vmem:[#allocation1 + $0x2] ss:$9 sm:$0xff]  ;;  %v13275_v13 = vor.u32 %v16118_v32, %v13274_v33 }
 0x46b   :  { %v21184_v49 = vld [vmem:[#allocation1 + $0x3] ss:$9 sm:$0xff]  ;;  %6246 = vmatpush.bf16.msrb.mxu3 %v13387_v1  ;;  %v13002_v27 = vld [vmem:[%s24237_s4 + $0x728] sm:$0xf] }
 0x46c   :  { %6224 = vmatpush.bf16.msrb.mxu2 %v13307_v59  ;;  %v5128_v59 = vpop.f32.mrf.mxu3  ;;  %v13130_v51 = vld [vmem:[%s24237_s4 + $0x828] sm:$0xf]  ;;  %v16082_v48 = vld [vmem:[%s24237_s4 + $0x834] sm:$0xf0]  ;;  %7565 = vst [vmem:[#allocation1] sm:$0xff] %v24583_v18  ;;  %v5073_v1 = vpop.f32.mrf.mxu0  ;;  %v13003_v9 = vor.u32 %v16050_v6, %v13002_v27 }
 0x46d   :  { %7566 = vst [vmem:[#allocation1 + $0x9] sm:$0xff] %v24583_v18  ;;  %v13258_v34 = vld [vmem:[%s24237_s4 + $0x928] sm:$0xf]  ;;  %v21228_v15 = vadd.f32 %v5128_v59, %v5110_v39  ;;  %v13131_v41 = vor.u32 %v16082_v48, %v13130_v51  ;;  %v16114_v56 = vld [vmem:[%s24237_s4 + $0x934] sm:$0xf0]  ;;  %6120 = vmatmul.bf16.gmra.mxu0 %v20083_v24 }
 0x46e   :  { %6187 = vmatpush.bf16.msrb.mxu0 %v13035_v21  ;;  %6206 = vmatpush.bf16.msrb.mxu1 %v13163_v20  ;;  %v5092_v21 = vpop.f32.mrf.mxu1  ;;  %v24596_v20 = vld [vmem:[#allocation8_spill] sm:$0xff]  ;;  %7567 = vst [vmem:[#allocation1 + $0x12] sm:$0xff] %v24583_v18  ;;  %v16046_v32 = vld [vmem:[%s24237_s4 + $0x714] sm:$0xf0]  ;;  %v13259_v27 = vor.u32 %v16114_v56, %v13258_v34  ;;  %v13242_v6 = vld [vmem:[%s24237_s4 + $0x908] sm:$0xf] }
 0x46f   :  { %v5074_v36 = vadd.f32 %v5073_v1, %v24596_v20  ;;  %6247 = vmatpush.bf16.msrb.mxu3 %v13371_v19  ;;  %24597 = vst [vmem:[#allocation16_spill] sm:$0xff] %v21228_v15  ;;  %v16072_v19 = vld [vmem:[%s24237_s4 + $0x7ec] sm:$0xf]  ;;  %v13100_v48 = vld [vmem:[%s24237_s4 + $0x7f8] sm:$0xf0]  ;;  %v24598_v56 = vld [vmem:[#allocation25_spill] sm:$0xff] }
 0x470   :  { %6225 = vmatpush.bf16.msrb.mxu2 %v13291_v26  ;;  %v12986_v26 = vld [vmem:[%s24237_s4 + $0x708] sm:$0xf]  ;;  %7568 = vst [vmem:[#allocation1 + $0x1b] sm:$0xff] %v24583_v18  ;;  %v16110_v18 = vld [vmem:[%s24237_s4 + $0x914] sm:$0xf0] }
 0x471   :  { %v5093_v33 = vadd.f32 %v5092_v21, %v5074_v36  ;;  %v12987_v59 = vor.u32 %v16046_v32, %v12986_v26  ;;  %v16104_v39 = vld [vmem:[%s24237_s4 + $0x8ec] sm:$0xf]  ;;  %v13228_v1 = vld [vmem:[%s24237_s4 + $0x8f8] sm:$0xf0]  ;;  %v5111_v21 = vpop.f32.mrf.mxu2  ;;  %7685 = vst [vmem:[#allocation1 + $0x1] ss:$9 sm:$0xff] %v20966_v16  ;;  %v13243_v32 = vor.u32 %v16110_v18, %v13242_v6  ;;  %6158 = vmatmul.bf16.gmra.mxu2 %v24588_v2 }
 0x472   :  { %6188 = vmatpush.bf16.msrb.mxu0 %v13019_v11  ;;  %6207 = vmatpush.bf16.msrb.mxu1 %v13147_v54  ;;  %v13114_v11 = vld [vmem:[%s24237_s4 + $0x808] sm:$0xf]  ;;  %v16078_v54 = vld [vmem:[%s24237_s4 + $0x814] sm:$0xf0]  ;;  %v16136_v36 = vld [vmem:[%s24237_s4 + $0x9ec] sm:$0xf]  ;;  %v13231_v16 = vor.u32 %v16104_v39, %v13228_v1 }
 0x473   :  { %v13115_v51 = vor.u32 %v16078_v54, %v13114_v11  ;;  %v5112_v34 = vadd.f32 %v5111_v21, %v5093_v33  ;;  %7687 = vst [vmem:[#allocation1 + $0x2] ss:$9 sm:$0xff] %v20968_v63  ;;  %v13103_v11 = vor.u32 %v16072_v19, %v13100_v48  ;;  %v16068_v54 = vld [vmem:[%s24237_s4 + $0x7cc] sm:$0xf]  ;;  %v13084_v63 = vld [vmem:[%s24237_s4 + $0x7d8] sm:$0xf0]  ;;  %13427 = vmatmul.msk.bf16.gmra.mxu3 %vm4078_vm7, %v24589_v4 }
 0x474   :  { %6226 = vmatpush.bf16.msrb.mxu2 %v13275_v13  ;;  %v5130_v20 = vpop.f32.mrf.mxu3  ;;  %v13356_v13 = vld [vmem:[%s24237_s4 + $0x9f8] sm:$0xf0]  ;;  %7689 = vst [vmem:[#allocation1 + $0x3] ss:$9 sm:$0xff] %v20973_v37  ;;  %v16132_v18 = vld [vmem:[%s24237_s4 + $0x9cc] sm:$0xf] }
 0x475   :  { %v21279_v29 = vadd.f32 %v5130_v20, %v5112_v34  ;;  %v13359_v33 = vor.u32 %v16136_v36, %v13356_v13  ;;  %v13212_v37 = vld [vmem:[%s24237_s4 + $0x8d8] sm:$0xf0]  ;;  %v16096_v48 = vld [vmem:[%s24237_s4 + $0x8ac] sm:$0xf]  ;;  %7691 = vst [vmem:[#allocation1 + $0x4] ss:$9 sm:$0xff] %v20975_v17 }
 0x476   :  { %6189 = vmatpush.bf16.msrb.mxu0 %v13003_v9  ;;  %6208 = vmatpush.bf16.msrb.mxu1 %v13131_v41  ;;  %v5076_v9 = vpop.f32.mrf.mxu0  ;;  %v5095_v41 = vpop.f32.mrf.mxu1  ;;  %v13340_v19 = vld [vmem:[%s24237_s4 + $0x9d8] sm:$0xf0]  ;;  %v16128_v20 = vld [vmem:[%s24237_s4 + $0x9ac] sm:$0xf]  ;;  %7693 = vst [vmem:[#allocation1 + $0x5] ss:$9 sm:$0xff] %v20977_v12 }
 0x477   :  { %v5077_v26 = vadd.f32 %v5076_v9, %v24598_v56  ;;  %v21276_v15 = vld [vmem:[#allocation1] ss:$9 sm:$0xff]  ;;  %6139 = vmatmul.bf16.gmra.mxu1 %v24587_v47  ;;  %v13343_v1 = vor.u32 %v16132_v18, %v13340_v19  ;;  %7695 = vst [vmem:[#allocation1 + $0x6] ss:$9 sm:$0xff] %v21059_v52 }
 0x478   :  { %6227 = vmatpush.bf16.msrb.mxu2 %v13259_v27  ;;  %v16100_v27 = vld [vmem:[%s24237_s4 + $0x8cc] sm:$0xf]  ;;  %7683 = vst [vmem:[#allocation1] ss:$9 sm:$0xff] %v20964_v14  ;;  %v13087_v14 = vor.u32 %v16068_v54, %v13084_v63  ;;  %v13196_v21 = vld [vmem:[%s24237_s4 + $0x8b8] sm:$0xf0] }
 0x479   :  { %v5096_v6 = vadd.f32 %v5095_v41, %v5077_v26  ;;  %v13215_v39 = vor.u32 %v16100_v27, %v13212_v37  ;;  %v13324_v36 = vld [vmem:[%s24237_s4 + $0x9b8] sm:$0xf0]  ;;  %v5114_v13 = vpop.f32.mrf.mxu2  ;;  %v16152_v9 = vld [vmem:[%s24237_s4 + $0xa6c] sm:$0xf]  ;;  %v13199_v17 = vor.u32 %v16096_v48, %v13196_v21  ;;  %7697 = vst [vmem:[#allocation1 + $0x7] ss:$9 sm:$0xff] %v21182_v61 }
 0x47a   :  { %6190 = vmatpush.bf16.msrb.mxu0 %v12987_v59  ;;  %6209 = vmatpush.bf16.msrb.mxu1 %v13115_v51  ;;  %v16064_v59 = vld [vmem:[%s24237_s4 + $0x7ac] sm:$0xf]  ;;  %v13068_v51 = vld [vmem:[%s24237_s4 + $0x7b8] sm:$0xf0] }
 0x47b   :  { %v13420_v41 = vld [vmem:[%s24237_s4 + $0xa78] sm:$0xf0]  ;;  %v5115_v56 = vadd.f32 %v5114_v13, %v5096_v6  ;;  %v16060_v63 = vld [vmem:[%s24237_s4 + $0x78c] sm:$0xf]  ;;  %v13327_v6 = vor.u32 %v16128_v20, %v13324_v36 }
 0x47c   :  { %6228 = vmatpush.bf16.msrb.mxu2 %v13243_v32  ;;  %v5133_v34 = vpop.f32.mrf.mxu3  ;;  %v24599_v54 = vld [vmem:[#allocation26_spill] sm:$0xff]  ;;  %v16092_v37 = vld [vmem:[%s24237_s4 + $0x88c] sm:$0xf] }
 0x47d   :  { %v21333_v27 = vadd.f32 %v5133_v34, %v5115_v56  ;;  %v13052_v12 = vld [vmem:[%s24237_s4 + $0x798] sm:$0xf0]  ;;  %v16124_v19 = vld [vmem:[%s24237_s4 + $0x98c] sm:$0xf]  ;;  %6191 = vmatmul.bf16.vlgmr.msrb.gmra.mxu0 %v19930_v58 }
 0x47e   :  { %6259 = vmatpush.bf16.msra.mxu0 %v13103_v11  ;;  %6278 = vmatpush.bf16.msra.mxu1 %v13231_v16  ;;  %v5078_v26 = vpop.f32.mrf.mxu0  ;;  %v5097_v32 = vpop.f32.mrf.mxu1  ;;  %v13423_v11 = vor.u32 %v16152_v9, %v13420_v41  ;;  %v13180_v52 = vld [vmem:[%s24237_s4 + $0x898] sm:$0xf0]  ;;  %v16056_v61 = vld [vmem:[%s24237_s4 + $0x76c] sm:$0xf] }
 0x47f   :  { %v5079_v16 = vadd.f32 %v5078_v26, %v24599_v54  ;;  %v13404_v48 = vld [vmem:[%s24237_s4 + $0xa58] sm:$0xf0]  ;;  %v16088_v20 = vld [vmem:[%s24237_s4 + $0x86c] sm:$0xf] }
 0x480   :  { %6297 = vmatpush.bf16.msra.mxu2 %v13359_v33  ;;  %v13071_v33 = vor.u32 %v16064_v59, %v13068_v51  ;;  %6320 = vmatpush.bf16.msra.mxu3 %v13423_v11  ;;  %v13055_v59 = vor.u32 %v16060_v63, %v13052_v12  ;;  %v16148_v51 = vld [vmem:[%s24237_s4 + $0xa4c] sm:$0xf]  ;;  %v13036_v21 = vld [vmem:[%s24237_s4 + $0x778] sm:$0xf0] }
 0x481   :  { %v5098_v18 = vadd.f32 %v5097_v32, %v5079_v16  ;;  %v13164_v36 = vld [vmem:[%s24237_s4 + $0x878] sm:$0xf0]  ;;  %v13407_v13 = vor.u32 %v16148_v51, %v13404_v48  ;;  %v5116_v34 = vpop.f32.mrf.mxu2  ;;  %v16120_v41 = vld [vmem:[%s24237_s4 + $0x96c] sm:$0xf]  ;;  %v13039_v63 = vor.u32 %v16056_v61, %v13036_v21  ;;  %v21404_v51 = vld [vmem:[#allocation1] sm:$0xff]  ;;  %6229 = vmatmul.bf16.vlgmr.msrb.gmra.mxu2 %v19934_v40 }
 0x482   :  { %6260 = vmatpush.bf16.msra.mxu0 %v13087_v14  ;;  %6279 = vmatpush.bf16.msra.mxu1 %v13215_v39  ;;  %v13308_v14 = vld [vmem:[%s24237_s4 + $0x998] sm:$0xf0]  ;;  %v13183_v39 = vor.u32 %v16092_v37, %v13180_v52  ;;  %v16144_v26 = vld [vmem:[%s24237_s4 + $0xa2c] sm:$0xf]  ;;  %v13167_v37 = vor.u32 %v16088_v20, %v13164_v36 }
 0x483   :  { %v13292_v56 = vld [vmem:[%s24237_s4 + $0x978] sm:$0xf0]  ;;  %v5117_v32 = vadd.f32 %v5116_v34, %v5098_v18  ;;  %13428 = vmatmul.msk.bf16.vlgmr.msrb.gmra.mxu3 %vm4078_vm7, %v19936_v8  ;;  %v21409_v48 = vld [vmem:[#allocation1 + $0x9] sm:$0xff] }
 0x484   :  { %6298 = vmatpush.bf16.msra.mxu2 %v13343_v1  ;;  %v13311_v1 = vor.u32 %v16124_v19, %v13308_v14  ;;  %v5135_v9 = vpop.f32.mrf.mxu3  ;;  %6321 = vmatpush.bf16.msra.mxu3 %v13407_v13  ;;  %v13388_v16 = vld [vmem:[%s24237_s4 + $0xa38] sm:$0xf0]  ;;  %v13295_v18 = vor.u32 %v16120_v41, %v13292_v56  ;;  %v16048_v20 = vld [vmem:[%s24237_s4 + $0x72c] sm:$0xf] }
 0x485   :  { %v21385_v12 = vadd.f32 %v5135_v9, %v5117_v32  ;;  %v13020_v52 = vld [vmem:[%s24237_s4 + $0x758] sm:$0xf0]  ;;  %v16140_v36 = vld [vmem:[%s24237_s4 + $0xa0c] sm:$0xf] }
 0x486   :  { %6261 = vmatpush.bf16.msra.mxu0 %v13071_v33  ;;  %6280 = vmatpush.bf16.msra.mxu1 %v13199_v17  ;;  %v5147_v11 = vpop.f32.mrf.mxu0  ;;  %v5166_v54 = vpop.f32.mrf.mxu1  ;;  %v16052_v17 = vld [vmem:[%s24237_s4 + $0x74c] sm:$0xf]  ;;  %v13148_v19 = vld [vmem:[%s24237_s4 + $0x858] sm:$0xf0] }
 0x487   :  { %v5148_v33 = vadd.f32 %v5147_v11, %v20552_v57  ;;  %v16084_v57 = vld [vmem:[%s24237_s4 + $0x84c] sm:$0xf]  ;;  %6210 = vmatmul.bf16.vlgmr.msrb.gmra.mxu1 %v19932_v53  ;;  %v13276_v61 = vld [vmem:[%s24237_s4 + $0x958] sm:$0xf0]  ;;  %v13023_v21 = vor.u32 %v16052_v17, %v13020_v52 }
 0x488   :  { %6299 = vmatpush.bf16.msra.mxu2 %v13327_v6  ;;  %v13391_v6 = vor.u32 %v16144_v26, %v13388_v16  ;;  %v13372_v13 = vld [vmem:[%s24237_s4 + $0xa18] sm:$0xf0]  ;;  %v13151_v34 = vor.u32 %v16084_v57, %v13148_v19  ;;  %v16080_v56 = vld [vmem:[%s24237_s4 + $0x82c] sm:$0xf] }
 0x489   :  { %v5167_v14 = vadd.f32 %v5166_v54, %v5148_v33  ;;  %v13004_v41 = vld [vmem:[%s24237_s4 + $0x738] sm:$0xf0]  ;;  %v13375_v32 = vor.u32 %v16140_v36, %v13372_v13  ;;  %v5185_v11 = vpop.f32.mrf.mxu2  ;;  %v16112_v16 = vld [vmem:[%s24237_s4 + $0x92c] sm:$0xf]  ;;  %v16185_v13 = vld [vmem:[%s24237_s4 + $0xb6c] sm:$0xf0] }
 0x48a   :  { %6262 = vmatpush.bf16.msra.mxu0 %v13055_v59  ;;  %6281 = vmatpush.bf16.msra.mxu1 %v13183_v39  ;;  %v16116_v59 = vld [vmem:[%s24237_s4 + $0x94c] sm:$0xf]  ;;  %v21411_v39 = vld [vmem:[#allocation1 + $0x12] sm:$0xff]  ;;  %v13132_v26 = vld [vmem:[%s24237_s4 + $0x838] sm:$0xf0] }
 0x48b   :  { %6322 = vmatpush.bf16.msra.mxu3 %v13391_v6  ;;  %v13279_v9 = vor.u32 %v16116_v59, %v13276_v61  ;;  %v13260_v33 = vld [vmem:[%s24237_s4 + $0x938] sm:$0xf0]  ;;  %v16044_v52 = vld [vmem:[%s24237_s4 + $0x70c] sm:$0xf] }
 0x48c   :  { %6300 = vmatpush.bf16.msra.mxu2 %v13311_v1  ;;  %v21413_v1 = vld [vmem:[#allocation1 + $0x1b] sm:$0xff]  ;;  %v5204_v54 = vpop.f32.mrf.mxu3  ;;  %v13263_v19 = vor.u32 %v16112_v16, %v13260_v33  ;;  %v16108_v59 = vld [vmem:[%s24237_s4 + $0x90c] sm:$0xf] }
 0x48d   :  { %7702 = vst [vmem:[#allocation1] ss:$9 sm:$0xff] %v21184_v49  ;;  %v13135_v49 = vor.u32 %v16080_v56, %v13132_v26  ;;  %v13244_v61 = vld [vmem:[%s24237_s4 + $0x918] sm:$0xf0]  ;;  %v13928_v26 = vld [vmem:[%s24237_s4 + $0xd60] sm:$0xf]  ;;  %6196 = vmatmul.bf16.gmra.mxu0 %v20083_v24 }
 0x48e   :  { %6263 = vmatpush.bf16.msra.mxu0 %v13039_v63  ;;  %6282 = vmatpush.bf16.msra.mxu1 %v13167_v37  ;;  %v5186_v63 = vadd.f32 %v5185_v11, %v5167_v14  ;;  %v5149_v17 = vpop.f32.mrf.mxu0  ;;  %v5168_v6 = vpop.f32.mrf.mxu1  ;;  %7703 = vst [vmem:[#allocation1 + $0x1] ss:$9 sm:$0xff] %v21186_v0  ;;  %v12988_v0 = vld [vmem:[%s24237_s4 + $0x718] sm:$0xf0]  ;;  %v13247_v36 = vor.u32 %v16108_v59, %v13244_v61  ;;  %v13768_v61 = vld [vmem:[%s24237_s4 + $0xc20] sm:$0xf] }
 0x48f   :  { %v5150_v37 = vadd.f32 %v5149_v17, %v20622_v3  ;;  %6323 = vmatpush.bf16.msra.mxu3 %v13375_v32  ;;  %7704 = vst [vmem:[#allocation1 + $0x2] ss:$9 sm:$0xff] %v21191_v62  ;;  %v16076_v3 = vld [vmem:[%s24237_s4 + $0x80c] sm:$0xf]  ;;  %v13116_v62 = vld [vmem:[%s24237_s4 + $0x818] sm:$0xf0] }
 0x490   :  { %6301 = vmatpush.bf16.msra.mxu2 %v13295_v18  ;;  %v13007_v18 = vor.u32 %v16048_v20, %v13004_v41  ;;  %v21446_v57 = vadd.f32 %v5204_v54, %v5186_v63  ;;  %7705 = vst [vmem:[#allocation1 + $0x3] ss:$9 sm:$0xff] %v21193_v45  ;;  %v13672_v20 = vld [vmem:[%s24237_s4 + $0xb60] sm:$0xf]  ;;  %v13119_v45 = vor.u32 %v16076_v3, %v13116_v62  ;;  %v16249_v32 = vld [vmem:[%s24237_s4 + $0xd6c] sm:$0xf0] }
 0x491   :  { %v5169_v14 = vadd.f32 %v5168_v6, %v5150_v37  ;;  %v5187_v41 = vpop.f32.mrf.mxu2  ;;  %7706 = vst [vmem:[#allocation1 + $0x4] ss:$9 sm:$0xff] %v21195_v35  ;;  %v13673_v63 = vor.u32 %v16185_v13, %v13672_v20  ;;  %v13656_v6 = vld [vmem:[%s24237_s4 + $0xb40] sm:$0xf]  ;;  %v16181_v35 = vld [vmem:[%s24237_s4 + $0xb4c] sm:$0xf0]  ;;  %6234 = vmatmul.bf16.gmra.mxu2 %v24588_v2 }
 0x492   :  { %6264 = vmatpush.bf16.msra.mxu0 %v13023_v21  ;;  %6283 = vmatpush.bf16.msra.mxu1 %v13151_v34  ;;  %v12991_v21 = vor.u32 %v16044_v52, %v12988_v0  ;;  %v13800_v34 = vld [vmem:[%s24237_s4 + $0xc60] sm:$0xf]  ;;  %7707 = vst [vmem:[#allocation1 + $0x5] ss:$9 sm:$0xff] %v21276_v15  ;;  %v16213_v15 = vld [vmem:[%s24237_s4 + $0xc4c] sm:$0xf0]  ;;  %v13657_v0 = vor.u32 %v16181_v35, %v13656_v6 }
 0x493   :  { %v5188_v11 = vadd.f32 %v5187_v41, %v5169_v14  ;;  %13429 = vmatmul.msk.bf16.gmra.mxu3 %vm4078_vm7, %v24589_v4  ;;  %v13640_v14 = vld [vmem:[%s24237_s4 + $0xb20] sm:$0xf]  ;;  %v16177_v62 = vld [vmem:[%s24237_s4 + $0xb2c] sm:$0xf0] }
 0x494   :  { %6302 = vmatpush.bf16.msra.mxu2 %v13279_v9  ;;  %v16217_v9 = vld [vmem:[%s24237_s4 + $0xc6c] sm:$0xf0]  ;;  %v5206_v56 = vpop.f32.mrf.mxu3  ;;  %v13896_v20 = vld [vmem:[%s24237_s4 + $0xd20] sm:$0xf] }
 0x495   :  { %v13801_v17 = vor.u32 %v16217_v9, %v13800_v34  ;;  %v21488_v37 = vadd.f32 %v5206_v56, %v5188_v11  ;;  %v16241_v13 = vld [vmem:[%s24237_s4 + $0xd2c] sm:$0xf0]  ;;  %v13992_v34 = vld [vmem:[%s24237_s4 + $0xde0] sm:$0xf] }
 0x496   :  { %6265 = vmatpush.bf16.msra.mxu0 %v13007_v18  ;;  %6284 = vmatpush.bf16.msra.mxu1 %v13135_v49  ;;  %v5152_v54 = vpop.f32.mrf.mxu0  ;;  %v5171_v16 = vpop.f32.mrf.mxu1  ;;  %v13929_v18 = vor.u32 %v16249_v32, %v13928_v26  ;;  %v13912_v49 = vld [vmem:[%s24237_s4 + $0xd40] sm:$0xf]  ;;  %v16265_v9 = vld [vmem:[%s24237_s4 + $0xdec] sm:$0xf0] }
 0x497   :  { %v5153_v33 = vadd.f32 %v5152_v54, %v20673_v10  ;;  %v13784_v10 = vld [vmem:[%s24237_s4 + $0xc40] sm:$0xf]  ;;  %6215 = vmatmul.bf16.gmra.mxu1 %v24587_v47  ;;  %v13993_v32 = vor.u32 %v16265_v9, %v13992_v34  ;;  %v13641_v54 = vor.u32 %v16177_v62, %v13640_v14  ;;  %v16173_v6 = vld [vmem:[%s24237_s4 + $0xb0c] sm:$0xf0] }
 0x498   :  { %6303 = vmatpush.bf16.msra.mxu2 %v13263_v19  ;;  %v16245_v19 = vld [vmem:[%s24237_s4 + $0xd4c] sm:$0xf0]  ;;  %v13785_v3 = vor.u32 %v16213_v15, %v13784_v10  ;;  %v13880_v10 = vld [vmem:[%s24237_s4 + $0xd00] sm:$0xf] }
 0x499   :  { %v5172_v52 = vadd.f32 %v5171_v16, %v5153_v33  ;;  %v13913_v59 = vor.u32 %v16245_v19, %v13912_v49  ;;  %v13624_v33 = vld [vmem:[%s24237_s4 + $0xb00] sm:$0xf]  ;;  %7275 = vmatpush.bf16.msrb.mxu3 %v13993_v32  ;;  %v16237_v15 = vld [vmem:[%s24237_s4 + $0xd0c] sm:$0xf0] }
 0x49a   :  { %6266 = vmatpush.bf16.msra.mxu0 %v12991_v21  ;;  %6285 = vmatpush.bf16.msra.mxu1 %v13119_v45  ;;  %v16209_v21 = vld [vmem:[%s24237_s4 + $0xc2c] sm:$0xf0]  ;;  %v5190_v45 = vpop.f32.mrf.mxu2  ;;  %v13608_v19 = vld [vmem:[%s24237_s4 + $0xae0] sm:$0xf]  ;;  %v13881_v14 = vor.u32 %v16237_v15, %v13880_v10 }
 0x49b   :  { %v5191_v41 = vadd.f32 %v5190_v45, %v5172_v52  ;;  %v13769_v16 = vor.u32 %v16209_v21, %v13768_v61  ;;  %v13625_v52 = vor.u32 %v16173_v6, %v13624_v33  ;;  %v16169_v62 = vld [vmem:[%s24237_s4 + $0xaec] sm:$0xf0]  ;;  %v13960_v34 = vld [vmem:[%s24237_s4 + $0xda0] sm:$0xf] }
 0x49c   :  { %6304 = vmatpush.bf16.msra.mxu2 %v13247_v36  ;;  %v5209_v36 = vpop.f32.mrf.mxu3  ;;  %v16201_v61 = vld [vmem:[%s24237_s4 + $0xbec] sm:$0xf0]  ;;  %v13848_v10 = vld [vmem:[%s24237_s4 + $0xcc0] sm:$0xf] }
 0x49d   :  { %v16165_v6 = vld [vmem:[%s24237_s4 + $0xacc] sm:$0xf0]  ;;  %6267 = vmatmul.bf16.vlgmr.msra.gmra.mxu0 %v19930_v58 }
 0x49e   :  { %7214 = vmatpush.bf16.msrb.mxu0 %v13673_v63  ;;  %7233 = vmatpush.bf16.msrb.mxu1 %v13801_v17  ;;  %v5154_v56 = vpop.f32.mrf.mxu0  ;;  %v5173_v26 = vpop.f32.mrf.mxu1  ;;  %v21538_v63 = vadd.f32 %v5209_v36, %v5191_v41  ;;  %v13897_v17 = vor.u32 %v16241_v13, %v13896_v20  ;;  %v13864_v36 = vld [vmem:[%s24237_s4 + $0xce0] sm:$0xf]  ;;  %v16233_v13 = vld [vmem:[%s24237_s4 + $0xcec] sm:$0xf0] }
 0x49f   :  { %v5155_v11 = vadd.f32 %v5154_v56, %v20729_v5  ;;  %v13752_v5 = vld [vmem:[%s24237_s4 + $0xc00] sm:$0xf]  ;;  %v16229_v15 = vld [vmem:[%s24237_s4 + $0xccc] sm:$0xf0] }
 0x4a0   :  { %7252 = vmatpush.bf16.msrb.mxu2 %v13929_v18  ;;  %v16205_v18 = vld [vmem:[%s24237_s4 + $0xc0c] sm:$0xf0] }
 0x4a1   :  { %v5174_v35 = vadd.f32 %v5173_v26, %v5155_v11  ;;  %v13753_v49 = vor.u32 %v16205_v18, %v13752_v5  ;;  %v16257_v26 = vld [vmem:[%s24237_s4 + $0xdac] sm:$0xf0]  ;;  %v13609_v11 = vor.u32 %v16169_v62, %v13608_v19  ;;  %6305 = vmatmul.bf16.vlgmr.msra.gmra.mxu2 %v19934_v40  ;;  %v13576_v19 = vld [vmem:[%s24237_s4 + $0xaa0] sm:$0xf]  ;;  %v13849_v40 = vor.u32 %v16229_v15, %v13848_v10 }
 0x4a2   :  { %7215 = vmatpush.bf16.msrb.mxu0 %v13657_v0  ;;  %7234 = vmatpush.bf16.msrb.mxu1 %v13785_v3  ;;  %v13976_v0 = vld [vmem:[%s24237_s4 + $0xdc0] sm:$0xf]  ;;  %v16261_v3 = vld [vmem:[%s24237_s4 + $0xdcc] sm:$0xf0]  ;;  %v5192_v20 = vpop.f32.mrf.mxu2  ;;  %v13961_v18 = vor.u32 %v16257_v26, %v13960_v34 }
 0x4a3   :  { %v13977_v21 = vor.u32 %v16261_v3, %v13976_v0  ;;  %v5193_v9 = vadd.f32 %v5192_v20, %v5174_v35  ;;  %v16197_v5 = vld [vmem:[%s24237_s4 + $0xbcc] sm:$0xf0]  ;;  %13430 = vmatmul.msk.bf16.vlgmr.msra.gmra.mxu3 %vm4078_vm7, %v19936_v8  ;;  %v13704_v0 = vld [vmem:[%s24237_s4 + $0xba0] sm:$0xf] }
 0x4a4   :  { %7253 = vmatpush.bf16.msrb.mxu2 %v13913_v59  ;;  %v13736_v59 = vld [vmem:[%s24237_s4 + $0xbe0] sm:$0xf]  ;;  %v5211_v45 = vpop.f32.mrf.mxu3  ;;  %v16253_v58 = vld [vmem:[%s24237_s4 + $0xd8c] sm:$0xf0] }
 0x4a5   :  { %7276 = vmatpush.bf16.msrb.mxu3 %v13977_v21  ;;  %v21589_v33 = vadd.f32 %v5211_v45, %v5193_v9  ;;  %v16161_v8 = vld [vmem:[%s24237_s4 + $0xaac] sm:$0xf0] }
 0x4a6   :  { %7216 = vmatpush.bf16.msrb.mxu0 %v13641_v54  ;;  %7235 = vmatpush.bf16.msrb.mxu1 %v13769_v16  ;;  %v5223_v41 = vpop.f32.mrf.mxu0  ;;  %v5242_v56 = vpop.f32.mrf.mxu1  ;;  %v13737_v54 = vor.u32 %v16201_v61, %v13736_v59  ;;  %v13592_v16 = vld [vmem:[%s24237_s4 + $0xac0] sm:$0xf]  ;;  %v16193_v3 = vld [vmem:[%s24237_s4 + $0xbac] sm:$0xf0]  ;;  %v13577_v34 = vor.u32 %v16161_v8, %v13576_v19  ;;  %v13658_v8 = vld [vmem:[%s24237_s4 + $0xb50] sm:$0xf0] }
 0x4a7   :  { %v5224_v32 = vadd.f32 %v5223_v41, %v20792_v55  ;;  %v13720_v55 = vld [vmem:[%s24237_s4 + $0xbc0] sm:$0xf]  ;;  %6286 = vmatmul.bf16.vlgmr.msra.gmra.mxu1 %v19932_v53  ;;  %v13593_v53 = vor.u32 %v16165_v6, %v13592_v16  ;;  %v16225_v21 = vld [vmem:[%s24237_s4 + $0xcac] sm:$0xf0]  ;;  %v13705_v9 = vor.u32 %v16193_v3, %v13704_v0  ;;  %v16183_v6 = vld [vmem:[%s24237_s4 + $0xb64] sm:$0xf] }
 0x4a8   :  { %7254 = vmatpush.bf16.msrb.mxu2 %v13897_v17  ;;  %v13865_v17 = vor.u32 %v16233_v13, %v13864_v36  ;;  %v13832_v61 = vld [vmem:[%s24237_s4 + $0xca0] sm:$0xf] }
 0x4a9   :  { %v5243_v35 = vadd.f32 %v5242_v56, %v5224_v32  ;;  %7277 = vmatpush.bf16.msrb.mxu3 %v13961_v18  ;;  %v13560_v41 = vld [vmem:[%s24237_s4 + $0xa80] sm:$0xf]  ;;  %v16157_v56 = vld [vmem:[%s24237_s4 + $0xa8c] sm:$0xf0]  ;;  %v13833_v32 = vor.u32 %v16225_v21, %v13832_v61  ;;  %v16211_v21 = vld [vmem:[%s24237_s4 + $0xc44] sm:$0xf] }
 0x4aa   :  { %7217 = vmatpush.bf16.msrb.mxu0 %v13625_v52  ;;  %7236 = vmatpush.bf16.msrb.mxu1 %v13753_v49  ;;  %v13944_v52 = vld [vmem:[%s24237_s4 + $0xd80] sm:$0xf]  ;;  %v13721_v49 = vor.u32 %v16197_v5, %v13720_v55  ;;  %v5261_v62 = vpop.f32.mrf.mxu2  ;;  %v13674_v55 = vld [vmem:[%s24237_s4 + $0xb70] sm:$0xf0]  ;;  %v13561_v5 = vor.u32 %v16157_v56, %v13560_v41 }
 0x4ab   :  { %v5262_v20 = vadd.f32 %v5261_v62, %v5243_v35  ;;  %v16215_v35 = vld [vmem:[%s24237_s4 + $0xc64] sm:$0xf]  ;;  %v13677_v15 = vor.u32 %v16183_v6, %v13674_v55  ;;  %v13642_v41 = vld [vmem:[%s24237_s4 + $0xb30] sm:$0xf0] }
 0x4ac   :  { %7255 = vmatpush.bf16.msrb.mxu2 %v13881_v14  ;;  %v13945_v14 = vor.u32 %v16253_v58, %v13944_v52  ;;  %v5280_v59 = vpop.f32.mrf.mxu3  ;;  %v13802_v52 = vld [vmem:[%s24237_s4 + $0xc70] sm:$0xf0]  ;;  %v16247_v58 = vld [vmem:[%s24237_s4 + $0xd64] sm:$0xf] }
 0x4ad   :  { %v21642_v26 = vadd.f32 %v5280_v59, %v5262_v20  ;;  %v13805_v59 = vor.u32 %v16215_v35, %v13802_v52  ;;  %6272 = vmatmul.bf16.gmra.mxu0 %v20083_v24  ;;  %v16207_v24 = vld [vmem:[%s24237_s4 + $0xc24] sm:$0xf] }
 0x4ae   :  { %7218 = vmatpush.bf16.msrb.mxu0 %v13609_v11  ;;  %7237 = vmatpush.bf16.msrb.mxu1 %v13737_v54  ;;  %v5225_v45 = vpop.f32.mrf.mxu0  ;;  %v5244_v36 = vpop.f32.mrf.mxu1  ;;  %v16189_v11 = vld [vmem:[%s24237_s4 + $0xb8c] sm:$0xf0]  ;;  %v13816_v54 = vld [vmem:[%s24237_s4 + $0xc80] sm:$0xf]  ;;  %v16263_v35 = vld [vmem:[%s24237_s4 + $0xde4] sm:$0xf] }
 0x4af   :  { %v5226_v13 = vadd.f32 %v5225_v45, %v20844_v28  ;;  %v13688_v28 = vld [vmem:[%s24237_s4 + $0xb80] sm:$0xf]  ;;  %7278 = vmatpush.bf16.msrb.mxu3 %v13945_v14 }
 0x4b0   :  { %7256 = vmatpush.bf16.msrb.mxu2 %v13865_v17  ;;  %v16221_v17 = vld [vmem:[%s24237_s4 + $0xc8c] sm:$0xf0]  ;;  %v13689_v18 = vor.u32 %v16189_v11, %v13688_v28 }
 0x4b1   :  { %v5245_v16 = vadd.f32 %v5244_v36, %v5226_v13  ;;  %v13817_v10 = vor.u32 %v16221_v17, %v13816_v54  ;;  %v13786_v36 = vld [vmem:[%s24237_s4 + $0xc50] sm:$0xf0]  ;;  %6310 = vmatmul.bf16.gmra.mxu2 %v24588_v2  ;;  %v16239_v2 = vld [vmem:[%s24237_s4 + $0xd24] sm:$0xf] }
 0x4b2   :  { %7219 = vmatpush.bf16.msrb.mxu0 %v13593_v53  ;;  %7238 = vmatpush.bf16.msrb.mxu1 %v13721_v49  ;;  %v13930_v53 = vld [vmem:[%s24237_s4 + $0xd70] sm:$0xf0]  ;;  %v5263_v49 = vpop.f32.mrf.mxu2  ;;  %v13789_v56 = vor.u32 %v16211_v21, %v13786_v36 }
 0x4b3   :  { %v5264_v0 = vadd.f32 %v5263_v49, %v5245_v16  ;;  %v13933_v61 = vor.u32 %v16247_v58, %v13930_v53  ;;  %v13914_v13 = vld [vmem:[%s24237_s4 + $0xd50] sm:$0xf0]  ;;  %13431 = vmatmul.msk.bf16.gmra.mxu3 %vm4078_vm7, %v24589_v4  ;;  %v16171_v16 = vld [vmem:[%s24237_s4 + $0xb04] sm:$0xf] }
 0x4b4   :  { %7257 = vmatpush.bf16.msrb.mxu2 %v13849_v40  ;;  %v5282_v19 = vpop.f32.mrf.mxu3  ;;  %v16179_v40 = vld [vmem:[%s24237_s4 + $0xb44] sm:$0xf]  ;;  %v13898_v4 = vld [vmem:[%s24237_s4 + $0xd30] sm:$0xf0] }
 0x4b5   :  { %v21684_v20 = vadd.f32 %v5282_v19, %v5264_v0  ;;  %v13661_v45 = vor.u32 %v16179_v40, %v13658_v8  ;;  %v13626_v17 = vld [vmem:[%s24237_s4 + $0xb10] sm:$0xf0]  ;;  %v13901_v52 = vor.u32 %v16239_v2, %v13898_v4  ;;  %v16203_v58 = vld [vmem:[%s24237_s4 + $0xc04] sm:$0xf] }
 0x4b6   :  { %7220 = vmatpush.bf16.msrb.mxu0 %v13577_v34  ;;  %7239 = vmatpush.bf16.msrb.mxu1 %v13705_v9  ;;  %v5228_v3 = vpop.f32.mrf.mxu0  ;;  %v5247_v14 = vpop.f32.mrf.mxu1  ;;  %v16175_v9 = vld [vmem:[%s24237_s4 + $0xb24] sm:$0xf]  ;;  %v13629_v19 = vor.u32 %v16171_v16, %v13626_v17  ;;  %v13754_v40 = vld [vmem:[%s24237_s4 + $0xc10] sm:$0xf0] }
 0x4b7   :  { %v5229_v62 = vadd.f32 %v5228_v3, %v20903_v23  ;;  %v16243_v23 = vld [vmem:[%s24237_s4 + $0xd44] sm:$0xf]  ;;  %6291 = vmatmul.bf16.gmra.mxu1 %v24587_v47  ;;  %v13770_v47 = vld [vmem:[%s24237_s4 + $0xc30] sm:$0xf0]  ;;  %v13645_v28 = vor.u32 %v16175_v9, %v13642_v41 }
 0x4b8   :  { %7258 = vmatpush.bf16.msrb.mxu2 %v13833_v32  ;;  %v13917_v32 = vor.u32 %v16243_v23, %v13914_v13  ;;  %v13882_v8 = vld [vmem:[%s24237_s4 + $0xd10] sm:$0xf0]  ;;  %v16167_v3 = vld [vmem:[%s24237_s4 + $0xae4] sm:$0xf] }
 0x4b9   :  { %v5248_v34 = vadd.f32 %v5247_v14, %v5229_v62  ;;  %v13610_v14 = vld [vmem:[%s24237_s4 + $0xaf0] sm:$0xf0]  ;;  %v13757_v62 = vor.u32 %v16203_v58, %v13754_v40  ;;  %v16259_v13 = vld [vmem:[%s24237_s4 + $0xdc4] sm:$0xf] }
 0x4ba   :  { %7221 = vmatpush.bf16.msrb.mxu0 %v13561_v5  ;;  %7240 = vmatpush.bf16.msrb.mxu1 %v13689_v18  ;;  %v5266_v11 = vpop.f32.mrf.mxu2  ;;  %v13773_v18 = vor.u32 %v16207_v24, %v13770_v47  ;;  %v13738_v21 = vld [vmem:[%s24237_s4 + $0xbf0] sm:$0xf0]  ;;  %v13613_v36 = vor.u32 %v16167_v3, %v13610_v14  ;;  %v16255_v4 = vld [vmem:[%s24237_s4 + $0xda4] sm:$0xf] }
 0x4bb   :  { %v5267_v6 = vadd.f32 %v5266_v11, %v5248_v34  ;;  %v13866_v23 = vld [vmem:[%s24237_s4 + $0xcf0] sm:$0xf0]  ;;  %v16195_v17 = vld [vmem:[%s24237_s4 + $0xbc4] sm:$0xf] }
 0x4bc   :  { %7259 = vmatpush.bf16.msrb.mxu2 %v13817_v10  ;;  %v5285_v54 = vpop.f32.mrf.mxu3  ;;  %v13994_v10 = vld [vmem:[%s24237_s4 + $0xdf0] sm:$0xf0]  ;;  %v16191_v40 = vld [vmem:[%s24237_s4 + $0xba4] sm:$0xf] }
 0x4bd   :  { %v13997_v53 = vor.u32 %v16263_v35, %v13994_v10  ;;  %v21734_v49 = vadd.f32 %v5285_v54, %v5267_v6  ;;  %v13978_v34 = vld [vmem:[%s24237_s4 + $0xdd0] sm:$0xf0]  ;;  %v16227_v35 = vld [vmem:[%s24237_s4 + $0xcc4] sm:$0xf]  ;;  %7222 = vmatmul.bf16.vlgmr.msrb.gmra.mxu0 %v20709_v25 }
 0x4be   :  { %7290 = vmatpush.bf16.msra.mxu0 %v13677_v15  ;;  %7309 = vmatpush.bf16.msra.mxu1 %v13805_v59  ;;  %v5230_v55 = vpop.f32.mrf.mxu0  ;;  %v5249_v5 = vpop.f32.mrf.mxu1  ;;  %v13981_v24 = vor.u32 %v16259_v13, %v13978_v34  ;;  %v13962_v6 = vld [vmem:[%s24237_s4 + $0xdb0] sm:$0xf0]  ;;  %v16251_v14 = vld [vmem:[%s24237_s4 + $0xd84] sm:$0xf] }
 0x4bf   :  { %v5231_v15 = vadd.f32 %v5230_v55, %v20951_v42  ;;  %v16235_v42 = vld [vmem:[%s24237_s4 + $0xd04] sm:$0xf]  ;;  %7351 = vmatpush.bf16.msra.mxu3 %v13997_v53  ;;  %v13850_v10 = vld [vmem:[%s24237_s4 + $0xcd0] sm:$0xf0] }
 0x4c0   :  { %7328 = vmatpush.bf16.msra.mxu2 %v13933_v61  ;;  %v13885_v59 = vor.u32 %v16235_v42, %v13882_v8  ;;  %v16199_v61 = vld [vmem:[%s24237_s4 + $0xbe4] sm:$0xf]  ;;  %v13578_v58 = vld [vmem:[%s24237_s4 + $0xab0] sm:$0xf0] }
 0x4c1   :  { %v5250_v0 = vadd.f32 %v5249_v5, %v5231_v15  ;;  %v13741_v54 = vor.u32 %v16199_v61, %v13738_v21  ;;  %v13965_v15 = vor.u32 %v16255_v4, %v13962_v6  ;;  %7260 = vmatmul.bf16.vlgmr.msrb.gmra.mxu2 %v20715_v60  ;;  %v13706_v42 = vld [vmem:[%s24237_s4 + $0xbb0] sm:$0xf0]  ;;  %v16223_v8 = vld [vmem:[%s24237_s4 + $0xca4] sm:$0xf]  ;;  %v16218_v6 = vld [vmem:[%s24237_s4 + $0xc74] sm:$0xf0] }
 0x4c2   :  { %7291 = vmatpush.bf16.msra.mxu0 %v13661_v45  ;;  %7310 = vmatpush.bf16.msra.mxu1 %v13789_v56  ;;  %v16231_v45 = vld [vmem:[%s24237_s4 + $0xce4] sm:$0xf]  ;;  %v5268_v9 = vpop.f32.mrf.mxu2  ;;  %v13834_v3 = vld [vmem:[%s24237_s4 + $0xcb0] sm:$0xf0] }
 0x4c3   :  { %v16163_v56 = vld [vmem:[%s24237_s4 + $0xac4] sm:$0xf]  ;;  %v5269_v47 = vadd.f32 %v5268_v9, %v5250_v0  ;;  %v13869_v16 = vor.u32 %v16231_v45, %v13866_v23  ;;  %7352 = vmatpush.bf16.msra.mxu3 %v13981_v24  ;;  %v13562_v45 = vld [vmem:[%s24237_s4 + $0xa90] sm:$0xf0]  ;;  %v13680_v9 = vld [vmem:[%s24237_s4 + $0xb68] sm:$0xf]  ;;  %v13837_v24 = vor.u32 %v16223_v8, %v13834_v3 }
 0x4c4   :  { %7329 = vmatpush.bf16.msra.mxu2 %v13917_v32  ;;  %v5287_v41 = vpop.f32.mrf.mxu3  ;;  %v13594_v32 = vld [vmem:[%s24237_s4 + $0xad0] sm:$0xf0]  ;;  %14006 = vmatmul.msk.bf16.vlgmr.msrb.gmra.mxu3 %vm4078_vm7, %v20717_v30  ;;  %v16155_v21 = vld [vmem:[%s24237_s4 + $0xa84] sm:$0xf]  ;;  %v16214_v8 = vld [vmem:[%s24237_s4 + $0xc54] sm:$0xf0] }
 0x4c5   :  { %v21784_v55 = vadd.f32 %v5287_v41, %v5269_v47  ;;  %v13597_v5 = vor.u32 %v16163_v56, %v13594_v32  ;;  %v16186_v41 = vld [vmem:[%s24237_s4 + $0xb74] sm:$0xf0]  ;;  %v13709_v32 = vor.u32 %v16191_v40, %v13706_v42  ;;  %v16187_v47 = vld [vmem:[%s24237_s4 + $0xb84] sm:$0xf]  ;;  %v13565_v4 = vor.u32 %v16155_v21, %v13562_v45 }
 0x4c6   :  { %7292 = vmatpush.bf16.msra.mxu0 %v13645_v28  ;;  %7311 = vmatpush.bf16.msra.mxu1 %v13773_v18  ;;  %v6040_v28 = vpop.f32.mrf.mxu0  ;;  %v6059_v2 = vpop.f32.mrf.mxu1  ;;  %v13722_v18 = vld [vmem:[%s24237_s4 + $0xbd0] sm:$0xf0]  ;;  %v16246_v3 = vld [vmem:[%s24237_s4 + $0xd54] sm:$0xf0] }
 0x4c7   :  { %v6060_v11 = vadd.f32 %v6059_v2, %v6040_v28  ;;  %7241 = vmatmul.bf16.vlgmr.msrb.gmra.mxu1 %v20711_v43  ;;  %v13725_v53 = vor.u32 %v16195_v17, %v13722_v18  ;;  %7353 = vmatpush.bf16.msra.mxu3 %v13965_v15  ;;  %v13690_v28 = vld [vmem:[%s24237_s4 + $0xb90] sm:$0xf0]  ;;  %v13681_v17 = vor.u32 %v16186_v41, %v13680_v9  ;;  %v16250_v18 = vld [vmem:[%s24237_s4 + $0xd74] sm:$0xf0]  ;;  %v13776_v9 = vld [vmem:[%s24237_s4 + $0xc28] sm:$0xf] }
 0x4c8   :  { %7330 = vmatpush.bf16.msra.mxu2 %v13901_v52  ;;  %v16159_v52 = vld [vmem:[%s24237_s4 + $0xaa4] sm:$0xf]  ;;  %v16210_v41 = vld [vmem:[%s24237_s4 + $0xc34] sm:$0xf0] }
 0x4c9   :  { %v13581_v0 = vor.u32 %v16159_v52, %v13578_v58 }
 0x4ca   :  { %7293 = vmatpush.bf16.msra.mxu0 %v13629_v19  ;;  %7312 = vmatpush.bf16.msra.mxu1 %v13757_v62  ;;  %v13853_v19 = vor.u32 %v16227_v35, %v13850_v10  ;;  %v13946_v62 = vld [vmem:[%s24237_s4 + $0xd90] sm:$0xf0]  ;;  %v13693_v10 = vor.u32 %v16187_v47, %v13690_v28  ;;  %v13777_v28 = vor.u32 %v16210_v41, %v13776_v9  ;;  %v13984_v41 = vld [vmem:[%s24237_s4 + $0xdc8] sm:$0xf] }
 0x4cc   :  { %7331 = vmatpush.bf16.msra.mxu2 %v13885_v59  ;;  %v6078_v59 = vpop.f32.mrf.mxu2  ;;  %v6097_v61 = vpop.f32.mrf.mxu3 }
 0x4cd   :  { %v6079_v23 = vadd.f32 %v6078_v59, %v6060_v11  ;;  %v16219_v11 = vld [vmem:[%s24237_s4 + $0xc84] sm:$0xf]  ;;  %7227 = vmatmul.bf16.gmra.mxu0 %v20842_v44 }
 0x4ce   :  { %7294 = vmatpush.bf16.msra.mxu0 %v13613_v36  ;;  %7313 = vmatpush.bf16.msra.mxu1 %v13741_v54  ;;  %v13949_v36 = vor.u32 %v16251_v14, %v13946_v62  ;;  %v6042_v13 = vpop.f32.mrf.mxu0  ;;  %v6061_v34 = vpop.f32.mrf.mxu1  ;;  %v13818_v54 = vld [vmem:[%s24237_s4 + $0xc90] sm:$0xf0] }
 0x4cf   :  { %v6062_v56 = vadd.f32 %v6061_v34, %v6042_v13  ;;  %v6098_v2 = vadd.f32 %v6097_v61, %v6079_v23  ;;  %v13821_v15 = vor.u32 %v16219_v11, %v13818_v54  ;;  %v13648_v13 = vld [vmem:[%s24237_s4 + $0xb28] sm:$0xf]  ;;  %v16178_v34 = vld [vmem:[%s24237_s4 + $0xb34] sm:$0xf0] }
 0x4d0   :  { %7332 = vmatpush.bf16.msra.mxu2 %v13869_v16  ;;  %7354 = vmatpush.bf16.msra.mxu3 %v13949_v36  ;;  %v13808_v16 = vld [vmem:[%s24237_s4 + $0xc68] sm:$0xf]  ;;  %v13649_v47 = vor.u32 %v16178_v34, %v13648_v13 }
 0x4d1   :  { %v21861_v35 = vadd.f32 %v6098_v2, %v21013_v7  ;;  %v13809_v52 = vor.u32 %v16218_v6, %v13808_v16  ;;  %v13792_v7 = vld [vmem:[%s24237_s4 + $0xc48] sm:$0xf]  ;;  %7265 = vmatmul.bf16.gmra.mxu2 %v20878_v22 }
 0x4d2   :  { %7295 = vmatpush.bf16.msra.mxu0 %v13597_v5  ;;  %7314 = vmatpush.bf16.msra.mxu1 %v13725_v53  ;;  %v13936_v5 = vld [vmem:[%s24237_s4 + $0xd68] sm:$0xf]  ;;  %v13793_v36 = vor.u32 %v16214_v8, %v13792_v7 }
 0x4d3   :  { %v13937_v58 = vor.u32 %v16250_v18, %v13936_v5  ;;  %v13664_v53 = vld [vmem:[%s24237_s4 + $0xb48] sm:$0xf]  ;;  %v16238_v5 = vld [vmem:[%s24237_s4 + $0xd14] sm:$0xf0] }
 0x4d4   :  { %7333 = vmatpush.bf16.msra.mxu2 %v13853_v19  ;;  %v16182_v19 = vld [vmem:[%s24237_s4 + $0xb54] sm:$0xf0]  ;;  %v6080_v40 = vpop.f32.mrf.mxu2  ;;  %v6099_v42 = vpop.f32.mrf.mxu3  ;;  %14007 = vmatmul.msk.bf16.gmra.mxu3 %vm4078_vm7, %v20886_v38  ;;  %v13760_v11 = vld [vmem:[%s24237_s4 + $0xc08] sm:$0xf] }
 0x4d5   :  { %v6081_v14 = vadd.f32 %v6080_v40, %v6062_v56  ;;  %v13665_v21 = vor.u32 %v16182_v19, %v13664_v53  ;;  %v13904_v56 = vld [vmem:[%s24237_s4 + $0xd28] sm:$0xf] }
 0x4d6   :  { %7296 = vmatpush.bf16.msra.mxu0 %v13581_v0  ;;  %7315 = vmatpush.bf16.msra.mxu1 %v13709_v32  ;;  %v13920_v0 = vld [vmem:[%s24237_s4 + $0xd48] sm:$0xf]  ;;  %v6045_v62 = vpop.f32.mrf.mxu0  ;;  %v6064_v59 = vpop.f32.mrf.mxu1  ;;  %v16242_v32 = vld [vmem:[%s24237_s4 + $0xd34] sm:$0xf0] }
 0x4d7   :  { %v6065_v61 = vadd.f32 %v6064_v59, %v6045_v62  ;;  %v6100_v45 = vadd.f32 %v6099_v42, %v6081_v14  ;;  %v13921_v23 = vor.u32 %v16246_v3, %v13920_v0  ;;  %7246 = vmatmul.bf16.gmra.mxu1 %v20870_v46  ;;  %v13905_v2 = vor.u32 %v16242_v32, %v13904_v56  ;;  %v13888_v6 = vld [vmem:[%s24237_s4 + $0xd08] sm:$0xf]  ;;  %v16170_v3 = vld [vmem:[%s24237_s4 + $0xaf4] sm:$0xf0] }
 0x4d8   :  { %7334 = vmatpush.bf16.msra.mxu2 %v13837_v24  ;;  %v13889_v8 = vor.u32 %v16238_v5, %v13888_v6  ;;  %v13616_v0 = vld [vmem:[%s24237_s4 + $0xae8] sm:$0xf]  ;;  %v16202_v62 = vld [vmem:[%s24237_s4 + $0xbf4] sm:$0xf0] }
 0x4d9   :  { %v21902_v24 = vadd.f32 %v6100_v45, %v21061_v31  ;;  %v16174_v31 = vld [vmem:[%s24237_s4 + $0xb14] sm:$0xf0]  ;;  %v13744_v14 = vld [vmem:[%s24237_s4 + $0xbe8] sm:$0xf]  ;;  %v13617_v45 = vor.u32 %v16170_v3, %v13616_v0 }
 0x4da   :  { %7297 = vmatpush.bf16.msra.mxu0 %v13565_v4  ;;  %7316 = vmatpush.bf16.msra.mxu1 %v13693_v10  ;;  %v13632_v4 = vld [vmem:[%s24237_s4 + $0xb08] sm:$0xf]  ;;  %v13745_v34 = vor.u32 %v16202_v62, %v13744_v14  ;;  %v16262_v56 = vld [vmem:[%s24237_s4 + $0xdd4] sm:$0xf0] }
 0x4db   :  { %v13633_v19 = vor.u32 %v16174_v31, %v13632_v4  ;;  %v13872_v59 = vld [vmem:[%s24237_s4 + $0xce8] sm:$0xf]  ;;  %v13985_v4 = vor.u32 %v16262_v56, %v13984_v41  ;;  %v16158_v62 = vld [vmem:[%s24237_s4 + $0xa94] sm:$0xf0] }
 0x4dc   :  { %7335 = vmatpush.bf16.msra.mxu2 %v13821_v15  ;;  %v6083_v54 = vpop.f32.mrf.mxu2  ;;  %v6102_v16 = vpop.f32.mrf.mxu3  ;;  %v13728_v13 = vld [vmem:[%s24237_s4 + $0xbc8] sm:$0xf]  ;;  %v16222_v41 = vld [vmem:[%s24237_s4 + $0xc94] sm:$0xf0] }
 0x4dd   :  { %v6084_v18 = vadd.f32 %v6083_v54, %v6065_v61  ;;  %v16234_v61 = vld [vmem:[%s24237_s4 + $0xcf4] sm:$0xf0]  ;;  %7298 = vmatmul.bf16.vlgmr.msra.gmra.mxu0 %v20709_v25  ;;  %v13568_v14 = vld [vmem:[%s24237_s4 + $0xa88] sm:$0xf] }
 0x4de   :  { %7366 = vmatpush.bf16.msrb.mxu0 %v13681_v17  ;;  %7385 = vmatpush.bf16.msrb.mxu1 %v13809_v52  ;;  %v16206_v17 = vld [vmem:[%s24237_s4 + $0xc14] sm:$0xf0]  ;;  %v6047_v10 = vpop.f32.mrf.mxu0  ;;  %v6066_v15 = vpop.f32.mrf.mxu1  ;;  %v14000_v52 = vld [vmem:[%s24237_s4 + $0xde8] sm:$0xf]  ;;  %v13873_v9 = vor.u32 %v16234_v61, %v13872_v59 }
 0x4df   :  { %v6067_v53 = vadd.f32 %v6066_v15, %v6047_v10  ;;  %v6103_v40 = vadd.f32 %v6102_v16, %v6084_v18  ;;  %v13761_v42 = vor.u32 %v16206_v17, %v13760_v11  ;;  %v13968_v16 = vld [vmem:[%s24237_s4 + $0xda8] sm:$0xf]  ;;  %v16258_v18 = vld [vmem:[%s24237_s4 + $0xdb4] sm:$0xf0] }
 0x4e0   :  { %7404 = vmatpush.bf16.msrb.mxu2 %v13937_v58  ;;  %v16266_v58 = vld [vmem:[%s24237_s4 + $0xdf4] sm:$0xf0]  ;;  %v13696_v59 = vld [vmem:[%s24237_s4 + $0xb88] sm:$0xf] }
 0x4e1   :  { %v14001_v7 = vor.u32 %v16266_v58, %v14000_v52  ;;  %v13584_v52 = vld [vmem:[%s24237_s4 + $0xaa8] sm:$0xf]  ;;  %v16162_v58 = vld [vmem:[%s24237_s4 + $0xab4] sm:$0xf0]  ;;  %7336 = vmatmul.bf16.vlgmr.msra.gmra.mxu2 %v20715_v60 }
 0x4e2   :  { %7367 = vmatpush.bf16.msrb.mxu0 %v13665_v21  ;;  %7386 = vmatpush.bf16.msrb.mxu1 %v13793_v36  ;;  %v21950_v21 = vadd.f32 %v6103_v40, %v21115_v50  ;;  %v13600_v36 = vld [vmem:[%s24237_s4 + $0xac8] sm:$0xf]  ;;  %v16198_v50 = vld [vmem:[%s24237_s4 + $0xbd4] sm:$0xf0]  ;;  %v13585_v3 = vor.u32 %v16162_v58, %v13584_v52  ;;  %v24601_v58 = vld [vmem:[#allocation16_spill] sm:$0xff] }
 0x4e3   :  { %7427 = vmatpush.bf16.msrb.mxu3 %v14001_v7  ;;  %v13729_v5 = vor.u32 %v16198_v50, %v13728_v13  ;;  %v16194_v7 = vld [vmem:[%s24237_s4 + $0xbb4] sm:$0xf0]  ;;  %v13840_v40 = vld [vmem:[%s24237_s4 + $0xca8] sm:$0xf] }
 0x4e4   :  { %7405 = vmatpush.bf16.msrb.mxu2 %v13921_v23  ;;  %v16166_v23 = vld [vmem:[%s24237_s4 + $0xad4] sm:$0xf0]  ;;  %v6085_v32 = vpop.f32.mrf.mxu2  ;;  %14008 = vmatmul.msk.bf16.vlgmr.msra.gmra.mxu3 %vm4078_vm7, %v20717_v30  ;;  %v13824_v50 = vld [vmem:[%s24237_s4 + $0xc88] sm:$0xf] }
 0x4e5   :  { %v6086_v31 = vadd.f32 %v6085_v32, %v6067_v53  ;;  %v13601_v6 = vor.u32 %v16166_v23, %v13600_v36  ;;  %v13712_v53 = vld [vmem:[%s24237_s4 + $0xba8] sm:$0xf]  ;;  %v16190_v36 = vld [vmem:[%s24237_s4 + $0xb94] sm:$0xf0]  ;;  %v16184_v32 = vld [vmem:[%s24237_s4 + $0xb6c] sm:$0xf] }
 0x4e6   :  { %7368 = vmatpush.bf16.msrb.mxu0 %v13649_v47  ;;  %7387 = vmatpush.bf16.msrb.mxu1 %v13777_v28  ;;  %v6104_v47 = vpop.f32.mrf.mxu3  ;;  %v13856_v28 = vld [vmem:[%s24237_s4 + $0xcc8] sm:$0xf]  ;;  %v6116_v11 = vpop.f32.mrf.mxu0  ;;  %v13713_v61 = vor.u32 %v16194_v7, %v13712_v53  ;;  %v16254_v13 = vld [vmem:[%s24237_s4 + $0xd94] sm:$0xf0]  ;;  %v16180_v7 = vld [vmem:[%s24237_s4 + $0xb4c] sm:$0xf] }
 0x4e7   :  { %v6135_v54 = vpop.f32.mrf.mxu1  ;;  %7428 = vmatpush.bf16.msrb.mxu3 %v13985_v4  ;;  %v6105_v10 = vadd.f32 %v6104_v47, %v6086_v31  ;;  %7317 = vmatmul.bf16.vlgmr.msra.gmra.mxu1 %v20711_v43  ;;  %v13952_v23 = vld [vmem:[%s24237_s4 + $0xd88] sm:$0xf]  ;;  %v13682_v4 = vld [vmem:[%s24237_s4 + $0xb78] sm:$0xf0]  ;;  %v16216_v31 = vld [vmem:[%s24237_s4 + $0xc6c] sm:$0xf] }
 0x4e8   :  { %7406 = vmatpush.bf16.msrb.mxu2 %v13905_v2  ;;  %v16230_v2 = vld [vmem:[%s24237_s4 + $0xcd4] sm:$0xf0]  ;;  %v6136_v17 = vadd.f32 %v6135_v54, %v6116_v11  ;;  %v13953_v56 = vor.u32 %v16254_v13, %v13952_v23  ;;  %v13810_v11 = vld [vmem:[%s24237_s4 + $0xc78] sm:$0xf0] }
 0x4e9   :  { %v13857_v15 = vor.u32 %v16230_v2, %v13856_v28  ;;  %v13813_v52 = vor.u32 %v16216_v31, %v13810_v11 }
 0x4ea   :  { %7369 = vmatpush.bf16.msrb.mxu0 %v13633_v19  ;;  %7388 = vmatpush.bf16.msrb.mxu1 %v13761_v42  ;;  %v13969_v19 = vor.u32 %v16258_v18, %v13968_v16  ;;  %v16226_v42 = vld [vmem:[%s24237_s4 + $0xcb4] sm:$0xf0]  ;;  %v13569_v16 = vor.u32 %v16158_v62, %v13568_v14  ;;  %v13697_v18 = vor.u32 %v16190_v36, %v13696_v59  ;;  %v16244_v62 = vld [vmem:[%s24237_s4 + $0xd4c] sm:$0xf]  ;;  %v13922_v59 = vld [vmem:[%s24237_s4 + $0xd58] sm:$0xf0] }
 0x4ec   :  { %7407 = vmatpush.bf16.msrb.mxu2 %v13889_v8  ;;  %v24600_v8 = vld [vmem:[#allocation21_spill] sm:$0xff]  ;;  %7429 = vmatpush.bf16.msrb.mxu3 %v13969_v19 }
 0x4ed   :  { %v22003_v0 = vadd.f32 %v6105_v10, %v24600_v8  ;;  %v13825_v10 = vor.u32 %v16222_v41, %v13824_v50  ;;  %v13794_v8 = vld [vmem:[%s24237_s4 + $0xc58] sm:$0xf0]  ;;  %v13925_v41 = vor.u32 %v16244_v62, %v13922_v59  ;;  %7303 = vmatmul.bf16.gmra.mxu0 %v20842_v44 }
 0x4ee   :  { %7370 = vmatpush.bf16.msrb.mxu0 %v13617_v45  ;;  %7389 = vmatpush.bf16.msrb.mxu1 %v13745_v34  ;;  %v13841_v45 = vor.u32 %v16226_v42, %v13840_v40  ;;  %v6154_v34 = vpop.f32.mrf.mxu2  ;;  %v6118_v28 = vpop.f32.mrf.mxu0  ;;  %v13666_v40 = vld [vmem:[%s24237_s4 + $0xb58] sm:$0xf0]  ;;  %v16212_v42 = vld [vmem:[%s24237_s4 + $0xc4c] sm:$0xf] }
 0x4ef   :  { %v6155_v47 = vadd.f32 %v6154_v34, %v6136_v17  ;;  %v6137_v2 = vpop.f32.mrf.mxu1  ;;  %v16248_v17 = vld [vmem:[%s24237_s4 + $0xd6c] sm:$0xf]  ;;  %v13669_v13 = vor.u32 %v16180_v7, %v13666_v40  ;;  %v13797_v34 = vor.u32 %v16212_v42, %v13794_v8  ;;  %v14002_v42 = vld [vmem:[%s24237_s4 + $0xdf8] sm:$0xf0] }
 0x4f0   :  { %7408 = vmatpush.bf16.msrb.mxu2 %v13873_v9  ;;  %v6173_v9 = vpop.f32.mrf.mxu3  ;;  %v6138_v54 = vadd.f32 %v6137_v2, %v6118_v28  ;;  %7430 = vmatpush.bf16.msrb.mxu3 %v13953_v56  ;;  %v13650_v56 = vld [vmem:[%s24237_s4 + $0xb38] sm:$0xf0]  ;;  %v16240_v28 = vld [vmem:[%s24237_s4 + $0xd2c] sm:$0xf] }
 0x4f1   :  { %v13906_v2 = vld [vmem:[%s24237_s4 + $0xd38] sm:$0xf0]  ;;  %7341 = vmatmul.bf16.gmra.mxu2 %v20878_v22  ;;  %v16264_v40 = vld [vmem:[%s24237_s4 + $0xdec] sm:$0xf] }
 0x4f2   :  { %7371 = vmatpush.bf16.msrb.mxu0 %v13601_v6  ;;  %7390 = vmatpush.bf16.msrb.mxu1 %v13729_v5  ;;  %v13938_v6 = vld [vmem:[%s24237_s4 + $0xd78] sm:$0xf0]  ;;  %v6174_v5 = vadd.f32 %v6173_v9, %v6155_v47  ;;  %v16176_v9 = vld [vmem:[%s24237_s4 + $0xb2c] sm:$0xf]  ;;  %v14005_v62 = vor.u32 %v16264_v40, %v14002_v42 }
 0x4f3   :  { %v13941_v19 = vor.u32 %v16248_v17, %v13938_v6  ;;  %v13778_v47 = vld [vmem:[%s24237_s4 + $0xc38] sm:$0xf0]  ;;  %v13653_v31 = vor.u32 %v16176_v9, %v13650_v56  ;;  %v16204_v17 = vld [vmem:[%s24237_s4 + $0xc0c] sm:$0xf] }
 0x4f4   :  { %7409 = vmatpush.bf16.msrb.mxu2 %v13857_v15  ;;  %v13685_v15 = vor.u32 %v16184_v32, %v13682_v4  ;;  %v22051_v53 = vadd.f32 %v6174_v5, %v24601_v58  ;;  %v16208_v32 = vld [vmem:[%s24237_s4 + $0xc2c] sm:$0xf]  ;;  %14009 = vmatmul.msk.bf16.gmra.mxu3 %vm4078_vm7, %v20886_v38  ;;  %v13762_v6 = vld [vmem:[%s24237_s4 + $0xc18] sm:$0xf0] }
 0x4f5   :  { %v13781_v11 = vor.u32 %v16208_v32, %v13778_v47  ;;  %7503 = vmatpush.bf16.msra.mxu3 %v14005_v62  ;;  %v16164_v56 = vld [vmem:[%s24237_s4 + $0xacc] sm:$0xf]  ;;  %v13602_v32 = vld [vmem:[%s24237_s4 + $0xad8] sm:$0xf0] }
 0x4f6   :  { %7372 = vmatpush.bf16.msrb.mxu0 %v13585_v3  ;;  %7391 = vmatpush.bf16.msrb.mxu1 %v13713_v61  ;;  %v6156_v3 = vpop.f32.mrf.mxu2  ;;  %v16196_v47 = vld [vmem:[%s24237_s4 + $0xbcc] sm:$0xf] }
 0x4f7   :  { %v6157_v61 = vadd.f32 %v6156_v3, %v6138_v54  ;;  %v6140_v36 = vpop.f32.mrf.mxu1  ;;  %7322 = vmatmul.bf16.gmra.mxu1 %v20870_v46  ;;  %v16172_v54 = vld [vmem:[%s24237_s4 + $0xb0c] sm:$0xf]  ;;  %v13765_v3 = vor.u32 %v16204_v17, %v13762_v6 }
 0x4f8   :  { %7410 = vmatpush.bf16.msrb.mxu2 %v13841_v45  ;;  %v6175_v14 = vpop.f32.mrf.mxu3  ;;  %v6121_v45 = vpop.f32.mrf.mxu0 }
 0x4f9   :  { %v6141_v23 = vadd.f32 %v6140_v36, %v6121_v45  ;;  %v6176_v50 = vadd.f32 %v6175_v14, %v6157_v61  ;;  %v16168_v14 = vld [vmem:[%s24237_s4 + $0xaec] sm:$0xf]  ;;  %v13618_v45 = vld [vmem:[%s24237_s4 + $0xaf8] sm:$0xf0] }
 0x4fa   :  { %7373 = vmatpush.bf16.msrb.mxu0 %v13569_v16  ;;  %7392 = vmatpush.bf16.msrb.mxu1 %v13697_v18  ;;  %v13634_v16 = vld [vmem:[%s24237_s4 + $0xb18] sm:$0xf0]  ;;  %v16200_v36 = vld [vmem:[%s24237_s4 + $0xbec] sm:$0xf] }
 0x4fb   :  { %v22092_v4 = vadd.f32 %v6176_v50, %v21279_v29  ;;  %v13909_v29 = vor.u32 %v16240_v28, %v13906_v2  ;;  %v13637_v7 = vor.u32 %v16172_v54, %v13634_v16  ;;  %v13621_v50 = vor.u32 %v16168_v14, %v13618_v45  ;;  %v16260_v2 = vld [vmem:[%s24237_s4 + $0xdcc] sm:$0xf]  ;;  %v13714_v14 = vld [vmem:[%s24237_s4 + $0xbb8] sm:$0xf0] }
 0x4fc   :  { %7411 = vmatpush.bf16.msrb.mxu2 %v13825_v10  ;;  %v16236_v10 = vld [vmem:[%s24237_s4 + $0xd0c] sm:$0xf] }
 0x4fd   :  { %v16228_v16 = vld [vmem:[%s24237_s4 + $0xccc] sm:$0xf]  ;;  %7374 = vmatmul.bf16.vlgmr.msrb.gmra.mxu0 %v20709_v25 }
 0x4fe   :  { %7442 = vmatpush.bf16.msra.mxu0 %v13685_v15  ;;  %7461 = vmatpush.bf16.msra.mxu1 %v13813_v52  ;;  %v6159_v5 = vpop.f32.mrf.mxu2  ;;  %v13890_v15 = vld [vmem:[%s24237_s4 + $0xd18] sm:$0xf0] }
 0x4ff   :  { %v6160_v52 = vadd.f32 %v6159_v5, %v6141_v23  ;;  %v13893_v61 = vor.u32 %v16236_v10, %v13890_v15  ;;  %v13746_v23 = vld [vmem:[%s24237_s4 + $0xbf8] sm:$0xf0]  ;;  %v16256_v10 = vld [vmem:[%s24237_s4 + $0xdac] sm:$0xf] }
 0x500   :  { %7480 = vmatpush.bf16.msra.mxu2 %v13941_v19  ;;  %v6178_v18 = vpop.f32.mrf.mxu3  ;;  %v6123_v58 = vpop.f32.mrf.mxu0 }
 0x501   :  { %v6142_v19 = vpop.f32.mrf.mxu1  ;;  %v6179_v59 = vadd.f32 %v6178_v18, %v6160_v52  ;;  %v13605_v52 = vor.u32 %v16164_v56, %v13602_v32  ;;  %7412 = vmatmul.bf16.vlgmr.msrb.gmra.mxu2 %v20715_v60  ;;  %v13826_v32 = vld [vmem:[%s24237_s4 + $0xc98] sm:$0xf0] }
 0x502   :  { %7443 = vmatpush.bf16.msra.mxu0 %v13669_v13  ;;  %7462 = vmatpush.bf16.msra.mxu1 %v13797_v34  ;;  %v6143_v8 = vadd.f32 %v6142_v19, %v6123_v58  ;;  %v16232_v13 = vld [vmem:[%s24237_s4 + $0xcec] sm:$0xf]  ;;  %v13874_v34 = vld [vmem:[%s24237_s4 + $0xcf8] sm:$0xf0] }
 0x503   :  { %v22140_v9 = vadd.f32 %v6179_v59, %v21333_v27  ;;  %v13877_v28 = vor.u32 %v16232_v13, %v13874_v34  ;;  %v13730_v27 = vld [vmem:[%s24237_s4 + $0xbd8] sm:$0xf0]  ;;  %v16160_v19 = vld [vmem:[%s24237_s4 + $0xaac] sm:$0xf] }
 0x504   :  { %7481 = vmatpush.bf16.msra.mxu2 %v13925_v41  ;;  %v13749_v41 = vor.u32 %v16200_v36, %v13746_v23  ;;  %v13733_v58 = vor.u32 %v16196_v47, %v13730_v27  ;;  %v16224_v59 = vld [vmem:[%s24237_s4 + $0xcac] sm:$0xf]  ;;  %14010 = vmatmul.msk.bf16.vlgmr.msrb.gmra.mxu3 %vm4078_vm7, %v20717_v30  ;;  %v13570_v23 = vld [vmem:[%s24237_s4 + $0xa98] sm:$0xf0] }
 0x505   :  { %v16156_v36 = vld [vmem:[%s24237_s4 + $0xa8c] sm:$0xf] }
 0x506   :  { %7444 = vmatpush.bf16.msra.mxu0 %v13653_v31  ;;  %7463 = vmatpush.bf16.msra.mxu1 %v13781_v11  ;;  %v13986_v31 = vld [vmem:[%s24237_s4 + $0xdd8] sm:$0xf0]  ;;  %v6161_v11 = vpop.f32.mrf.mxu2  ;;  %v16252_v47 = vld [vmem:[%s24237_s4 + $0xd8c] sm:$0xf] }
 0x507   :  { %v13989_v17 = vor.u32 %v16260_v2, %v13986_v31  ;;  %v6162_v6 = vadd.f32 %v6161_v11, %v6143_v8  ;;  %v13586_v8 = vld [vmem:[%s24237_s4 + $0xab8] sm:$0xf0]  ;;  %7393 = vmatmul.bf16.vlgmr.msrb.gmra.mxu1 %v20711_v43  ;;  %v14240_v11 = vld [vmem:[%s24237_s4 + $0xee0] sm:$0xf] }
 0x508   :  { %7482 = vmatpush.bf16.msra.mxu2 %v13909_v29  ;;  %v6180_v54 = vpop.f32.mrf.mxu3  ;;  %v13858_v29 = vld [vmem:[%s24237_s4 + $0xcd8] sm:$0xf0]  ;;  %v6192_v5 = vpop.f32.mrf.mxu0  ;;  %v13589_v13 = vor.u32 %v16160_v19, %v13586_v8 }
 0x509   :  { %v6211_v18 = vpop.f32.mrf.mxu1  ;;  %v6181_v40 = vadd.f32 %v6180_v54, %v6162_v6  ;;  %v13861_v42 = vor.u32 %v16228_v16, %v13858_v29  ;;  %7504 = vmatpush.bf16.msra.mxu3 %v13989_v17  ;;  %v16297_v54 = vld [vmem:[%s24237_s4 + $0xeec] sm:$0xf0]  ;;  %v14368_v16 = vld [vmem:[%s24237_s4 + $0xfe0] sm:$0xf] }
 0x50a   :  { %7445 = vmatpush.bf16.msra.mxu0 %v13637_v7  ;;  %7464 = vmatpush.bf16.msra.mxu1 %v13765_v3  ;;  %v6212_v15 = vadd.f32 %v6211_v18, %v6192_v5  ;;  %v13970_v7 = vld [vmem:[%s24237_s4 + $0xdb8] sm:$0xf0]  ;;  %v16192_v3 = vld [vmem:[%s24237_s4 + $0xbac] sm:$0xf]  ;;  %v16329_v5 = vld [vmem:[%s24237_s4 + $0xfec] sm:$0xf0] }
 0x50b   :  { %v13973_v62 = vor.u32 %v16256_v10, %v13970_v7  ;;  %v22193_v45 = vadd.f32 %v6181_v40, %v21385_v12  ;;  %v13717_v34 = vor.u32 %v16192_v3, %v13714_v14  ;;  %v16188_v12 = vld [vmem:[%s24237_s4 + $0xb8c] sm:$0xf]  ;;  %v14496_v18 = vld [vmem:[%s24237_s4 + $0x10e0] sm:$0xf]  ;;  %v16361_v10 = vld [vmem:[%s24237_s4 + $0x10ec] sm:$0xf0]  ;;  %v14241_v40 = vor.u32 %v16297_v54, %v14240_v11 }
 0x50c   :  { %7483 = vmatpush.bf16.msra.mxu2 %v13893_v61  ;;  %v13842_v61 = vld [vmem:[%s24237_s4 + $0xcb8] sm:$0xf0]  ;;  %v14497_v8 = vor.u32 %v16361_v10, %v14496_v18  ;;  %v14224_v14 = vld [vmem:[%s24237_s4 + $0xec0] sm:$0xf]  ;;  %v16321_v54 = vld [vmem:[%s24237_s4 + $0xfac] sm:$0xf0] }
 0x50d   :  { %v13845_v56 = vor.u32 %v16224_v59, %v13842_v61  ;;  %7505 = vmatpush.bf16.msra.mxu3 %v13973_v62  ;;  %v16293_v62 = vld [vmem:[%s24237_s4 + $0xecc] sm:$0xf0]  ;;  %v14352_v59 = vld [vmem:[%s24237_s4 + $0xfc0] sm:$0xf]  ;;  %7379 = vmatmul.bf16.gmra.mxu0 %v20842_v44 }
 0x50e   :  { %7446 = vmatpush.bf16.msra.mxu0 %v13621_v50  ;;  %7465 = vmatpush.bf16.msra.mxu1 %v13749_v41  ;;  %v13698_v50 = vld [vmem:[%s24237_s4 + $0xb98] sm:$0xf0]  ;;  %v16220_v41 = vld [vmem:[%s24237_s4 + $0xc8c] sm:$0xf]  ;;  %v6230_v27 = vpop.f32.mrf.mxu2  ;;  %v14225_v61 = vor.u32 %v16293_v62, %v14224_v14 }
 0x50f   :  { %v6231_v29 = vadd.f32 %v6230_v27, %v6212_v15  ;;  %v13701_v19 = vor.u32 %v16188_v12, %v13698_v50  ;;  %v13829_v7 = vor.u32 %v16220_v41, %v13826_v32  ;;  %v14208_v12 = vld [vmem:[%s24237_s4 + $0xea0] sm:$0xf]  ;;  %v16289_v50 = vld [vmem:[%s24237_s4 + $0xeac] sm:$0xf0] }
 0x510   :  { %7484 = vmatpush.bf16.msra.mxu2 %v13877_v28  ;;  %v13954_v28 = vld [vmem:[%s24237_s4 + $0xd98] sm:$0xf0]  ;;  %v6249_v2 = vpop.f32.mrf.mxu3  ;;  %v6194_v17 = vpop.f32.mrf.mxu0  ;;  %v14209_v11 = vor.u32 %v16289_v50, %v14208_v12 }
 0x511   :  { %v13957_v31 = vor.u32 %v16252_v47, %v13954_v28  ;;  %v6213_v6 = vpop.f32.mrf.mxu1  ;;  %v6250_v15 = vadd.f32 %v6249_v2, %v6231_v29  ;;  %v14336_v2 = vld [vmem:[%s24237_s4 + $0xfa0] sm:$0xf]  ;;  %v16353_v29 = vld [vmem:[%s24237_s4 + $0x10ac] sm:$0xf0]  ;;  %7417 = vmatmul.bf16.gmra.mxu2 %v20878_v22 }
 0x512   :  { %7447 = vmatpush.bf16.msra.mxu0 %v13605_v52  ;;  %7466 = vmatpush.bf16.msra.mxu1 %v13733_v58  ;;  %v6214_v52 = vadd.f32 %v6213_v6, %v6194_v17  ;;  %v13573_v58 = vor.u32 %v16156_v36, %v13570_v23  ;;  %v14480_v36 = vld [vmem:[%s24237_s4 + $0x10c0] sm:$0xf]  ;;  %v16357_v23 = vld [vmem:[%s24237_s4 + $0x10cc] sm:$0xf0]  ;;  %v14337_v18 = vor.u32 %v16321_v54, %v14336_v2 }
 0x513   :  { %7506 = vmatpush.bf16.msra.mxu3 %v13957_v31  ;;  %v22241_v3 = vadd.f32 %v6250_v15, %v21446_v57  ;;  %v16325_v57 = vld [vmem:[%s24237_s4 + $0xfcc] sm:$0xf0]  ;;  %v14481_v27 = vor.u32 %v16357_v23, %v14480_v36  ;;  %v14192_v6 = vld [vmem:[%s24237_s4 + $0xe80] sm:$0xf] }
 0x514   :  { %7485 = vmatpush.bf16.msra.mxu2 %v13861_v42  ;;  %v14369_v42 = vor.u32 %v16329_v5, %v14368_v16  ;;  %v14353_v28 = vor.u32 %v16325_v57, %v14352_v59  ;;  %v14464_v16 = vld [vmem:[%s24237_s4 + $0x10a0] sm:$0xf]  ;;  %14011 = vmatmul.msk.bf16.gmra.mxu3 %vm4078_vm7, %v20886_v38  ;;  %v16285_v5 = vld [vmem:[%s24237_s4 + $0xe8c] sm:$0xf0] }
 0x515   :  { %v14465_v10 = vor.u32 %v16353_v29, %v14464_v16  ;;  %v16349_v15 = vld [vmem:[%s24237_s4 + $0x108c] sm:$0xf0]  ;;  %v14560_v57 = vld [vmem:[%s24237_s4 + $0x1160] sm:$0xf] }
 0x516   :  { %7448 = vmatpush.bf16.msra.mxu0 %v13589_v13  ;;  %7467 = vmatpush.bf16.msra.mxu1 %v13717_v34  ;;  %v6232_v13 = vpop.f32.mrf.mxu2  ;;  %v16377_v36 = vld [vmem:[%s24237_s4 + $0x116c] sm:$0xf0]  ;;  %v14288_v54 = vld [vmem:[%s24237_s4 + $0xf40] sm:$0xf] }
 0x517   :  { %v6233_v41 = vadd.f32 %v6232_v13, %v6214_v52  ;;  %7398 = vmatmul.bf16.gmra.mxu1 %v20870_v46  ;;  %v16317_v52 = vld [vmem:[%s24237_s4 + $0xf8c] sm:$0xf0]  ;;  %v14561_v12 = vor.u32 %v16377_v36, %v14560_v57  ;;  %v14416_v16 = vld [vmem:[%s24237_s4 + $0x1040] sm:$0xf] }
 0x518   :  { %7486 = vmatpush.bf16.msra.mxu2 %v13845_v56  ;;  %v6251_v34 = vpop.f32.mrf.mxu3  ;;  %v6197_v56 = vpop.f32.mrf.mxu0  ;;  %v16277_v2 = vld [vmem:[%s24237_s4 + $0xe4c] sm:$0xf0] }
 0x519   :  { %v6216_v32 = vpop.f32.mrf.mxu1  ;;  %v6252_v31 = vadd.f32 %v6251_v34, %v6233_v41  ;;  %v14304_v34 = vld [vmem:[%s24237_s4 + $0xf60] sm:$0xf]  ;;  %8343 = vmatpush.bf16.msrb.mxu3 %v14561_v12 }
 0x51a   :  { %7449 = vmatpush.bf16.msra.mxu0 %v13573_v58  ;;  %7468 = vmatpush.bf16.msra.mxu1 %v13701_v19  ;;  %v6217_v47 = vadd.f32 %v6216_v32, %v6197_v56  ;;  %v14193_v58 = vor.u32 %v16285_v5, %v14192_v6  ;;  %v14448_v19 = vld [vmem:[%s24237_s4 + $0x1080] sm:$0xf]  ;;  %v16313_v56 = vld [vmem:[%s24237_s4 + $0xf6c] sm:$0xf0] }
 0x51b   :  { %v22282_v17 = vadd.f32 %v6252_v31, %v21488_v37  ;;  %v14320_v37 = vld [vmem:[%s24237_s4 + $0xf80] sm:$0xf]  ;;  %v14449_v13 = vor.u32 %v16349_v15, %v14448_v19  ;;  %v14305_v31 = vor.u32 %v16313_v56, %v14304_v34  ;;  %v16341_v6 = vld [vmem:[%s24237_s4 + $0x104c] sm:$0xf0] }
 0x51c   :  { %7487 = vmatpush.bf16.msra.mxu2 %v13829_v7  ;;  %v14432_v32 = vld [vmem:[%s24237_s4 + $0x1060] sm:$0xf]  ;;  %v16273_v19 = vld [vmem:[%s24237_s4 + $0xe2c] sm:$0xf0] }
 0x51d   :  { %v14544_v5 = vld [vmem:[%s24237_s4 + $0x1140] sm:$0xf]  ;;  %v16337_v34 = vld [vmem:[%s24237_s4 + $0x102c] sm:$0xf0]  ;;  %7450 = vmatmul.bf16.vlgmr.msra.gmra.mxu0 %v20709_v25 }
 0x51e   :  { %8282 = vmatpush.bf16.msrb.mxu0 %v14241_v40  ;;  %8301 = vmatpush.bf16.msrb.mxu1 %v14369_v42  ;;  %v6235_v7 = vpop.f32.mrf.mxu2  ;;  %v14176_v42 = vld [vmem:[%s24237_s4 + $0xe60] sm:$0xf]  ;;  %v16269_v56 = vld [vmem:[%s24237_s4 + $0xe0c] sm:$0xf0] }
 0x51f   :  { %v6236_v14 = vadd.f32 %v6235_v7, %v6217_v47  ;;  %v16345_v47 = vld [vmem:[%s24237_s4 + $0x106c] sm:$0xf0]  ;;  %v14256_v25 = vld [vmem:[%s24237_s4 + $0xf00] sm:$0xf] }
 0x520   :  { %8320 = vmatpush.bf16.msrb.mxu2 %v14497_v8  ;;  %v6254_v40 = vpop.f32.mrf.mxu3  ;;  %v16281_v8 = vld [vmem:[%s24237_s4 + $0xe6c] sm:$0xf0]  ;;  %v6199_v62 = vpop.f32.mrf.mxu0 }
 0x521   :  { %v6218_v59 = vpop.f32.mrf.mxu1  ;;  %v6255_v50 = vadd.f32 %v6254_v40, %v6236_v14  ;;  %v14177_v41 = vor.u32 %v16281_v8, %v14176_v42  ;;  %v14528_v42 = vld [vmem:[%s24237_s4 + $0x1120] sm:$0xf]  ;;  %7488 = vmatmul.bf16.vlgmr.msra.gmra.mxu2 %v20715_v60  ;;  %v16301_v60 = vld [vmem:[%s24237_s4 + $0xf0c] sm:$0xf0] }
 0x522   :  { %8283 = vmatpush.bf16.msrb.mxu0 %v14225_v61  ;;  %8302 = vmatpush.bf16.msrb.mxu1 %v14353_v28  ;;  %v14321_v61 = vor.u32 %v16317_v52, %v14320_v37  ;;  %v6219_v23 = vadd.f32 %v6218_v59, %v6199_v62  ;;  %v14417_v62 = vor.u32 %v16341_v6, %v14416_v16  ;;  %v14272_v59 = vld [vmem:[%s24237_s4 + $0xf20] sm:$0xf]  ;;  %v14242_v16 = vld [vmem:[%s24237_s4 + $0xef0] sm:$0xf0] }
 0x523   :  { %v22330_v28 = vadd.f32 %v6255_v50, %v21538_v63  ;;  %v16309_v63 = vld [vmem:[%s24237_s4 + $0xf4c] sm:$0xf0]  ;;  %v14370_v6 = vld [vmem:[%s24237_s4 + $0xff0] sm:$0xf0] }
 0x524   :  { %8321 = vmatpush.bf16.msrb.mxu2 %v14481_v27  ;;  %v14160_v27 = vld [vmem:[%s24237_s4 + $0xe40] sm:$0xf]  ;;  %v14289_v14 = vor.u32 %v16309_v63, %v14288_v54  ;;  %14012 = vmatmul.msk.bf16.vlgmr.msra.gmra.mxu3 %vm4078_vm7, %v20717_v30 }
 0x525   :  { %v14161_v29 = vor.u32 %v16277_v2, %v14160_v27  ;;  %v14384_v30 = vld [vmem:[%s24237_s4 + $0x1000] sm:$0xf]  ;;  %v16365_v2 = vld [vmem:[%s24237_s4 + $0x110c] sm:$0xf0] }
 0x526   :  { %8284 = vmatpush.bf16.msrb.mxu0 %v14209_v11  ;;  %8303 = vmatpush.bf16.msrb.mxu1 %v14337_v18  ;;  %v14433_v11 = vor.u32 %v16345_v47, %v14432_v32  ;;  %v16373_v18 = vld [vmem:[%s24237_s4 + $0x114c] sm:$0xf0]  ;;  %v14512_v27 = vld [vmem:[%s24237_s4 + $0x1100] sm:$0xf] }
 0x527   :  { %v14545_v52 = vor.u32 %v16373_v18, %v14544_v5  ;;  %7469 = vmatmul.bf16.vlgmr.msra.gmra.mxu1 %v20711_v43  ;;  %v16333_v32 = vld [vmem:[%s24237_s4 + $0x100c] sm:$0xf0]  ;;  %v14513_v63 = vor.u32 %v16365_v2, %v14512_v27 }
 0x528   :  { %8322 = vmatpush.bf16.msrb.mxu2 %v14465_v10  ;;  %v6237_v10 = vpop.f32.mrf.mxu2  ;;  %v6256_v37 = vpop.f32.mrf.mxu3 }
 0x529   :  { %v6238_v15 = vadd.f32 %v6237_v10, %v6219_v23  ;;  %v6268_v7 = vpop.f32.mrf.mxu0  ;;  %v6287_v40 = vpop.f32.mrf.mxu1  ;;  %8344 = vmatpush.bf16.msrb.mxu3 %v14545_v52  ;;  %v16305_v23 = vld [vmem:[%s24237_s4 + $0xf2c] sm:$0xf0]  ;;  %v16359_v52 = vld [vmem:[%s24237_s4 + $0x10e4] sm:$0xf] }
 0x52a   :  { %8285 = vmatpush.bf16.msrb.mxu0 %v14193_v58  ;;  %8304 = vmatpush.bf16.msrb.mxu1 %v14321_v61  ;;  %v14144_v58 = vld [vmem:[%s24237_s4 + $0xe20] sm:$0xf]  ;;  %v6288_v8 = vadd.f32 %v6287_v40, %v6268_v7  ;;  %v16369_v61 = vld [vmem:[%s24237_s4 + $0x112c] sm:$0xf0]  ;;  %v14273_v43 = vor.u32 %v16305_v23, %v14272_v59  ;;  %v14385_v7 = vor.u32 %v16333_v32, %v14384_v30  ;;  %v14226_v59 = vld [vmem:[%s24237_s4 + $0xed0] sm:$0xf0] }
 0x52b   :  { %v6257_v57 = vadd.f32 %v6256_v37, %v6238_v15  ;;  %v14145_v36 = vor.u32 %v16273_v19, %v14144_v58  ;;  %v14529_v12 = vor.u32 %v16369_v61, %v14528_v42  ;;  %v14498_v58 = vld [vmem:[%s24237_s4 + $0x10f0] sm:$0xf0]  ;;  %v14257_v15 = vor.u32 %v16301_v60, %v14256_v25  ;;  %v16323_v61 = vld [vmem:[%s24237_s4 + $0xfc4] sm:$0xf] }
 0x52c   :  { %8323 = vmatpush.bf16.msrb.mxu2 %v14449_v13  ;;  %v14400_v13 = vld [vmem:[%s24237_s4 + $0x1020] sm:$0xf]  ;;  %v14482_v23 = vld [vmem:[%s24237_s4 + $0x10d0] sm:$0xf0]  ;;  %v16351_v60 = vld [vmem:[%s24237_s4 + $0x10a4] sm:$0xf] }
 0x52d   :  { %v22383_v50 = vadd.f32 %v6257_v57, %v21589_v33  ;;  %v14401_v33 = vor.u32 %v16337_v34, %v14400_v13  ;;  %8345 = vmatpush.bf16.msrb.mxu3 %v14529_v12  ;;  %v16287_v12 = vld [vmem:[%s24237_s4 + $0xea4] sm:$0xf]  ;;  %v14466_v30 = vld [vmem:[%s24237_s4 + $0x10b0] sm:$0xf0]  ;;  %7455 = vmatmul.bf16.gmra.mxu0 %v20842_v44 }
 0x52e   :  { %8286 = vmatpush.bf16.msrb.mxu0 %v14177_v41  ;;  %8305 = vmatpush.bf16.msrb.mxu1 %v14305_v31  ;;  %v14128_v41 = vld [vmem:[%s24237_s4 + $0xe00] sm:$0xf]  ;;  %v16295_v31 = vld [vmem:[%s24237_s4 + $0xee4] sm:$0xf] }
 0x52f   :  { %v14129_v47 = vor.u32 %v16269_v56, %v14128_v41  ;;  %v14245_v37 = vor.u32 %v16295_v31, %v14242_v16  ;;  %v14210_v41 = vld [vmem:[%s24237_s4 + $0xeb0] sm:$0xf0]  ;;  %v16319_v56 = vld [vmem:[%s24237_s4 + $0xfa4] sm:$0xf] }
 0x530   :  { %8324 = vmatpush.bf16.msrb.mxu2 %v14433_v11  ;;  %v6306_v11 = vpop.f32.mrf.mxu2  ;;  %v6325_v54 = vpop.f32.mrf.mxu3  ;;  %v14213_v31 = vor.u32 %v16287_v12, %v14210_v41  ;;  %v16315_v44 = vld [vmem:[%s24237_s4 + $0xf84] sm:$0xf] }
 0x531   :  { %v6307_v5 = vadd.f32 %v6306_v11, %v6288_v8  ;;  %v6270_v18 = vpop.f32.mrf.mxu0  ;;  %v6289_v10 = vpop.f32.mrf.mxu1  ;;  %8346 = vmatpush.bf16.msrb.mxu3 %v14513_v63  ;;  %v14501_v8 = vor.u32 %v16359_v52, %v14498_v58  ;;  %v14469_v63 = vor.u32 %v16351_v60, %v14466_v30  ;;  %7493 = vmatmul.bf16.gmra.mxu2 %v20878_v22  ;;  %v14322_v22 = vld [vmem:[%s24237_s4 + $0xf90] sm:$0xf0]  ;;  %v16311_v52 = vld [vmem:[%s24237_s4 + $0xf64] sm:$0xf] }
 0x532   :  { %8287 = vmatpush.bf16.msrb.mxu0 %v14161_v29  ;;  %8306 = vmatpush.bf16.msrb.mxu1 %v14289_v14  ;;  %v16327_v29 = vld [vmem:[%s24237_s4 + $0xfe4] sm:$0xf]  ;;  %v6290_v19 = vadd.f32 %v6289_v10, %v6270_v18  ;;  %v14418_v60 = vld [vmem:[%s24237_s4 + $0x1050] sm:$0xf0] }
 0x533   :  { %v6326_v40 = vadd.f32 %v6325_v54, %v6307_v5  ;;  %v14373_v42 = vor.u32 %v16327_v29, %v14370_v6  ;;  %v16283_v29 = vld [vmem:[%s24237_s4 + $0xe84] sm:$0xf]  ;;  %v14194_v6 = vld [vmem:[%s24237_s4 + $0xe90] sm:$0xf0]  ;;  %v14325_v5 = vor.u32 %v16315_v44, %v14322_v22 }
 0x534   :  { %8325 = vmatpush.bf16.msrb.mxu2 %v14417_v62  ;;  %v16291_v62 = vld [vmem:[%s24237_s4 + $0xec4] sm:$0xf]  ;;  %14013 = vmatmul.msk.bf16.gmra.mxu3 %vm4078_vm7, %v20886_v38 }
 0x535   :  { %v22431_v14 = vadd.f32 %v6326_v40, %v21642_v26  ;;  %v14229_v57 = vor.u32 %v16291_v62, %v14226_v59  ;;  %v14354_v26 = vld [vmem:[%s24237_s4 + $0xfd0] sm:$0xf0]  ;;  %v16347_v38 = vld [vmem:[%s24237_s4 + $0x1084] sm:$0xf] }
 0x536   :  { %8288 = vmatpush.bf16.msrb.mxu0 %v14145_v36  ;;  %8307 = vmatpush.bf16.msrb.mxu1 %v14273_v43  ;;  %v16355_v36 = vld [vmem:[%s24237_s4 + $0x10c4] sm:$0xf]  ;;  %v14357_v13 = vor.u32 %v16323_v61, %v14354_v26  ;;  %v14434_v40 = vld [vmem:[%s24237_s4 + $0x1070] sm:$0xf0] }
 0x537   :  { %v14485_v34 = vor.u32 %v16355_v36, %v14482_v23  ;;  %7474 = vmatmul.bf16.gmra.mxu1 %v20870_v46  ;;  %v14197_v46 = vor.u32 %v16283_v29, %v14194_v6  ;;  %v16279_v10 = vld [vmem:[%s24237_s4 + $0xe64] sm:$0xf]  ;;  %v14562_v61 = vld [vmem:[%s24237_s4 + $0x1170] sm:$0xf0] }
 0x538   :  { %8326 = vmatpush.bf16.msrb.mxu2 %v14401_v33  ;;  %v6308_v25 = vpop.f32.mrf.mxu2  ;;  %v6327_v43 = vpop.f32.mrf.mxu3  ;;  %v14338_v33 = vld [vmem:[%s24237_s4 + $0xfb0] sm:$0xf0]  ;;  %v16375_v59 = vld [vmem:[%s24237_s4 + $0x1164] sm:$0xf] }
 0x539   :  { %v6309_v32 = vadd.f32 %v6308_v25, %v6290_v19  ;;  %v6292_v27 = vpop.f32.mrf.mxu1  ;;  %v14341_v54 = vor.u32 %v16319_v56, %v14338_v33  ;;  %v14565_v36 = vor.u32 %v16375_v59, %v14562_v61  ;;  %v16275_v41 = vld [vmem:[%s24237_s4 + $0xe44] sm:$0xf]  ;;  %v14162_v56 = vld [vmem:[%s24237_s4 + $0xe50] sm:$0xf0] }
 0x53a   :  { %8289 = vmatpush.bf16.msrb.mxu0 %v14129_v47  ;;  %8308 = vmatpush.bf16.msrb.mxu1 %v14257_v15  ;;  %v6273_v47 = vpop.f32.mrf.mxu0  ;;  %v14306_v15 = vld [vmem:[%s24237_s4 + $0xf70] sm:$0xf0]  ;;  %v16307_v25 = vld [vmem:[%s24237_s4 + $0xf44] sm:$0xf] }
 0x53b   :  { %v6293_v2 = vadd.f32 %v6292_v27, %v6273_v47  ;;  %v6328_v11 = vadd.f32 %v6327_v43, %v6309_v32  ;;  %8419 = vmatpush.bf16.msra.mxu3 %v14565_v36  ;;  %v14165_v43 = vor.u32 %v16275_v41, %v14162_v56  ;;  %v14290_v33 = vld [vmem:[%s24237_s4 + $0xf50] sm:$0xf0]  ;;  %v16371_v47 = vld [vmem:[%s24237_s4 + $0x1144] sm:$0xf] }
 0x53c   :  { %8327 = vmatpush.bf16.msrb.mxu2 %v14385_v7  ;;  %v16343_v7 = vld [vmem:[%s24237_s4 + $0x1064] sm:$0xf]  ;;  %v14293_v30 = vor.u32 %v16307_v25, %v14290_v33  ;;  %v14546_v27 = vld [vmem:[%s24237_s4 + $0x1150] sm:$0xf0]  ;;  %v16298_v25 = vld [vmem:[%s24237_s4 + $0xef4] sm:$0xf0] }
 0x53d   :  { %v22472_v16 = vadd.f32 %v6328_v11, %v21684_v20  ;;  %v14450_v20 = vld [vmem:[%s24237_s4 + $0x1090] sm:$0xf0]  ;;  %v16303_v29 = vld [vmem:[%s24237_s4 + $0xf24] sm:$0xf]  ;;  %8290 = vmatmul.bf16.vlgmr.msrb.gmra.mxu0 %v21404_v51  ;;  %v16330_v33 = vld [vmem:[%s24237_s4 + $0xff4] sm:$0xf0] }
 0x53e   :  { %8358 = vmatpush.bf16.msra.mxu0 %v14245_v37  ;;  %8377 = vmatpush.bf16.msra.mxu1 %v14373_v42  ;;  %v14453_v18 = vor.u32 %v16347_v38, %v14450_v20  ;;  %v14178_v37 = vld [vmem:[%s24237_s4 + $0xe70] sm:$0xf0]  ;;  %v16335_v38 = vld [vmem:[%s24237_s4 + $0x1024] sm:$0xf] }
 0x53f   :  { %24602 = vst [vmem:[#allocation12_spill] sm:$0xff] %v22472_v16  ;;  %v14181_v26 = vor.u32 %v16279_v10, %v14178_v37  ;;  %v14274_v6 = vld [vmem:[%s24237_s4 + $0xf30] sm:$0xf0]  ;;  %v16331_v59 = vld [vmem:[%s24237_s4 + $0x1004] sm:$0xf] }
 0x540   :  { %8396 = vmatpush.bf16.msra.mxu2 %v14501_v8  ;;  %v6311_v58 = vpop.f32.mrf.mxu2  ;;  %v6330_v19 = vpop.f32.mrf.mxu3  ;;  %v14402_v20 = vld [vmem:[%s24237_s4 + $0x1030] sm:$0xf0]  ;;  %v14277_v37 = vor.u32 %v16303_v29, %v14274_v6  ;;  %v16363_v36 = vld [vmem:[%s24237_s4 + $0x1104] sm:$0xf]  ;;  %v14232_v29 = vld [vmem:[%s24237_s4 + $0xec8] sm:$0xf] }
 0x541   :  { %v6312_v42 = vadd.f32 %v6311_v58, %v6293_v2  ;;  %v6294_v62 = vpop.f32.mrf.mxu1  ;;  %v16271_v2 = vld [vmem:[%s24237_s4 + $0xe24] sm:$0xf]  ;;  %8328 = vmatmul.bf16.vlgmr.msrb.gmra.mxu2 %v21411_v39  ;;  %v14386_v61 = vld [vmem:[%s24237_s4 + $0x1010] sm:$0xf0]  ;;  %v16294_v6 = vld [vmem:[%s24237_s4 + $0xed4] sm:$0xf0] }
 0x542   :  { %8359 = vmatpush.bf16.msra.mxu0 %v14229_v57  ;;  %8378 = vmatpush.bf16.msra.mxu1 %v14357_v13  ;;  %v6275_v8 = vpop.f32.mrf.mxu0  ;;  %v14309_v13 = vor.u32 %v16311_v52, %v14306_v15  ;;  %v14530_v52 = vld [vmem:[%s24237_s4 + $0x1130] sm:$0xf0] }
 0x543   :  { %v6295_v57 = vadd.f32 %v6294_v62, %v6275_v8  ;;  %v6331_v23 = vadd.f32 %v6330_v19, %v6312_v42  ;;  %v14405_v19 = vor.u32 %v16335_v38, %v14402_v20  ;;  %v14130_v42 = vld [vmem:[%s24237_s4 + $0xe10] sm:$0xf0]  ;;  %v16299_v8 = vld [vmem:[%s24237_s4 + $0xf04] sm:$0xf]  ;;  %v16358_v38 = vld [vmem:[%s24237_s4 + $0x10d4] sm:$0xf0] }
 0x544   :  { %8397 = vmatpush.bf16.msra.mxu2 %v14485_v34  ;;  %v14437_v34 = vor.u32 %v16343_v7, %v14434_v40  ;;  %14574 = vmatmul.msk.bf16.vlgmr.msrb.gmra.mxu3 %vm4078_vm7, %v21413_v1  ;;  %v16267_v40 = vld [vmem:[%s24237_s4 + $0xe04] sm:$0xf]  ;;  %v14258_v62 = vld [vmem:[%s24237_s4 + $0xf10] sm:$0xf0] }
 0x545   :  { %v22520_v12 = vadd.f32 %v6331_v23, %v21734_v49  ;;  %v16339_v49 = vld [vmem:[%s24237_s4 + $0x1044] sm:$0xf]  ;;  %v14514_v23 = vld [vmem:[%s24237_s4 + $0x1110] sm:$0xf0] }
 0x546   :  { %8360 = vmatpush.bf16.msra.mxu0 %v14213_v31  ;;  %8379 = vmatpush.bf16.msra.mxu1 %v14341_v54  ;;  %v14421_v32 = vor.u32 %v16339_v49, %v14418_v60  ;;  %v14549_v54 = vor.u32 %v16371_v47, %v14546_v27  ;;  %v14517_v56 = vor.u32 %v16363_v36, %v14514_v23  ;;  %v14504_v27 = vld [vmem:[%s24237_s4 + $0x10e8] sm:$0xf] }
 0x547   :  { %8309 = vmatmul.bf16.vlgmr.msrb.gmra.mxu1 %v21409_v48  ;;  %v22661_v36 = vld [vmem:[#allocation1 + $0x9] sm:$0xff] }
 0x548   :  { %8398 = vmatpush.bf16.msra.mxu2 %v14469_v63  ;;  %v6313_v31 = vpop.f32.mrf.mxu2  ;;  %v6332_v11 = vpop.f32.mrf.mxu3  ;;  %v14146_v63 = vld [vmem:[%s24237_s4 + $0xe30] sm:$0xf0]  ;;  %8420 = vmatpush.bf16.msra.mxu3 %v14549_v54 }
 0x549   :  { %v6314_v44 = vadd.f32 %v6313_v31, %v6295_v57  ;;  %v7242_v22 = vpop.f32.mrf.mxu1  ;;  %v14149_v10 = vor.u32 %v16271_v2, %v14146_v63  ;;  %v14261_v57 = vor.u32 %v16299_v8, %v14258_v62  ;;  %v16362_v2 = vld [vmem:[%s24237_s4 + $0x10f4] sm:$0xf0] }
 0x54a   :  { %8361 = vmatpush.bf16.msra.mxu0 %v14197_v46  ;;  %8380 = vmatpush.bf16.msra.mxu1 %v14325_v5  ;;  %v7223_v46 = vpop.f32.mrf.mxu0  ;;  %v16367_v5 = vld [vmem:[%s24237_s4 + $0x1124] sm:$0xf] }
 0x54b   :  { %v6333_v58 = vadd.f32 %v6332_v11, %v6314_v44  ;;  %v14533_v15 = vor.u32 %v16367_v5, %v14530_v52  ;;  %v14505_v11 = vor.u32 %v16362_v2, %v14504_v27  ;;  %v14360_v44 = vld [vmem:[%s24237_s4 + $0xfc8] sm:$0xf]  ;;  %v16282_v27 = vld [vmem:[%s24237_s4 + $0xe74] sm:$0xf0] }
 0x54c   :  { %8399 = vmatpush.bf16.msra.mxu2 %v14453_v18  ;;  %v7243_v18 = vadd.f32 %v7242_v22, %v7223_v46  ;;  %v14233_v46 = vor.u32 %v16294_v6, %v14232_v29  ;;  %v16326_v22 = vld [vmem:[%s24237_s4 + $0xfd4] sm:$0xf0]  ;;  %v14312_v2 = vld [vmem:[%s24237_s4 + $0xf68] sm:$0xf] }
 0x54d   :  { %v22573_v7 = vadd.f32 %v6333_v58, %v21784_v55  ;;  %8421 = vmatpush.bf16.msra.mxu3 %v14533_v15  ;;  %v14133_v55 = vor.u32 %v16267_v40, %v14130_v42  ;;  %v14361_v20 = vor.u32 %v16326_v22, %v14360_v44  ;;  %v14472_v15 = vld [vmem:[%s24237_s4 + $0x10a8] sm:$0xf]  ;;  %v16354_v40 = vld [vmem:[%s24237_s4 + $0x10b4] sm:$0xf0] }
 0x54e   :  { %8362 = vmatpush.bf16.msra.mxu0 %v14181_v26  ;;  %8381 = vmatpush.bf16.msra.mxu1 %v14309_v13  ;;  %v14389_v26 = vor.u32 %v16331_v59, %v14386_v61  ;;  %v14248_v13 = vld [vmem:[%s24237_s4 + $0xee8] sm:$0xf]  ;;  %v14473_v23 = vor.u32 %v16354_v40, %v14472_v15  ;;  %v16346_v6 = vld [vmem:[%s24237_s4 + $0x1074] sm:$0xf0] }
 0x54f   :  { %24603 = vst [vmem:[#allocation27_spill] sm:$0xff] %v22573_v7  ;;  %v14440_v29 = vld [vmem:[%s24237_s4 + $0x1068] sm:$0xf]  ;;  %v16278_v15 = vld [vmem:[%s24237_s4 + $0xe54] sm:$0xf0] }
 0x550   :  { %8400 = vmatpush.bf16.msra.mxu2 %v14437_v34  ;;  %v7261_v34 = vpop.f32.mrf.mxu2  ;;  %v7280_v41 = vpop.f32.mrf.mxu3  ;;  %v14296_v40 = vld [vmem:[%s24237_s4 + $0xf48] sm:$0xf] }
 0x551   :  { %v7262_v49 = vadd.f32 %v7261_v34, %v7243_v18  ;;  %8422 = vmatpush.bf16.msra.mxu3 %v14517_v56  ;;  %v14216_v18 = vld [vmem:[%s24237_s4 + $0xea8] sm:$0xf]  ;;  %v22667_v34 = vld [vmem:[#allocation1 + $0x1b] sm:$0xff] }
 0x552   :  { %8363 = vmatpush.bf16.msra.mxu0 %v14165_v43  ;;  %8382 = vmatpush.bf16.msra.mxu1 %v14293_v30  ;;  %v14376_v43 = vld [vmem:[%s24237_s4 + $0xfe8] sm:$0xf]  ;;  %v7225_v60 = vpop.f32.mrf.mxu0  ;;  %v7244_v30 = vpop.f32.mrf.mxu1 }
 0x553   :  { %v14377_v47 = vor.u32 %v16330_v33, %v14376_v43  ;;  %v7245_v31 = vadd.f32 %v7244_v30, %v7225_v60  ;;  %v7281_v54 = vadd.f32 %v7280_v41, %v7262_v49  ;;  %v14200_v56 = vld [vmem:[%s24237_s4 + $0xe88] sm:$0xf]  ;;  %v16318_v33 = vld [vmem:[%s24237_s4 + $0xf94] sm:$0xf0] }
 0x554   :  { %8401 = vmatpush.bf16.msra.mxu2 %v14421_v32  ;;  %v14249_v32 = vor.u32 %v16298_v25, %v14248_v13  ;;  %v22665_v13 = vld [vmem:[#allocation1 + $0x12] sm:$0xff]  ;;  %14575 = vmatmul.msk.bf16.gmra.mxu3 %vm4078_vm7, %v22667_v34  ;;  %v14328_v43 = vld [vmem:[%s24237_s4 + $0xf88] sm:$0xf] }
 0x555   :  { %v22621_v63 = vadd.f32 %v7281_v54, %v21861_v35  ;;  %v14488_v35 = vld [vmem:[%s24237_s4 + $0x10c8] sm:$0xf]  ;;  %8333 = vmatmul.bf16.gmra.mxu2 %v22665_v13  ;;  %v16286_v25 = vld [vmem:[%s24237_s4 + $0xe94] sm:$0xf0]  ;;  %v14329_v30 = vor.u32 %v16318_v33, %v14328_v43 }
 0x556   :  { %8364 = vmatpush.bf16.msra.mxu0 %v14149_v10  ;;  %8383 = vmatpush.bf16.msra.mxu1 %v14277_v37  ;;  %v14489_v5 = vor.u32 %v16358_v38, %v14488_v35  ;;  %v16290_v10 = vld [vmem:[%s24237_s4 + $0xeb4] sm:$0xf0]  ;;  %v14344_v37 = vld [vmem:[%s24237_s4 + $0xfa8] sm:$0xf] }
 0x557   :  { %v14217_v59 = vor.u32 %v16290_v10, %v14216_v18  ;;  %8314 = vmatmul.bf16.gmra.mxu1 %v22661_v36  ;;  %v14456_v49 = vld [vmem:[%s24237_s4 + $0x1088] sm:$0xf]  ;;  %v16350_v60 = vld [vmem:[%s24237_s4 + $0x1094] sm:$0xf0] }
 0x558   :  { %8402 = vmatpush.bf16.msra.mxu2 %v14405_v19  ;;  %v7263_v52 = vpop.f32.mrf.mxu2  ;;  %v7282_v58 = vpop.f32.mrf.mxu3  ;;  %v16322_v19 = vld [vmem:[%s24237_s4 + $0xfb4] sm:$0xf0]  ;;  %v14568_v38 = vld [vmem:[%s24237_s4 + $0x1168] sm:$0xf] }
 0x559   :  { %v7264_v42 = vadd.f32 %v7263_v52, %v7245_v31  ;;  %v14345_v61 = vor.u32 %v16322_v19, %v14344_v37  ;;  %v16314_v54 = vld [vmem:[%s24237_s4 + $0xf74] sm:$0xf0]  ;;  %v14441_v52 = vor.u32 %v16346_v6, %v14440_v29  ;;  %v14168_v19 = vld [vmem:[%s24237_s4 + $0xe48] sm:$0xf] }
 0x55a   :  { %8365 = vmatpush.bf16.msra.mxu0 %v14133_v55  ;;  %8384 = vmatpush.bf16.msra.mxu1 %v14261_v57  ;;  %v7228_v8 = vpop.f32.mrf.mxu0  ;;  %v7247_v55 = vpop.f32.mrf.mxu1  ;;  %v14313_v18 = vor.u32 %v16314_v54, %v14312_v2  ;;  %v14280_v33 = vld [vmem:[%s24237_s4 + $0xf28] sm:$0xf]  ;;  %v16370_v29 = vld [vmem:[%s24237_s4 + $0x1134] sm:$0xf0] }
 0x55b   :  { %v7248_v62 = vadd.f32 %v7247_v55, %v7228_v8  ;;  %v7283_v57 = vadd.f32 %v7282_v58, %v7264_v42  ;;  %v14169_v42 = vor.u32 %v16278_v15, %v14168_v19  ;;  %v14424_v8 = vld [vmem:[%s24237_s4 + $0x1048] sm:$0xf]  ;;  %v16342_v55 = vld [vmem:[%s24237_s4 + $0x1054] sm:$0xf0] }
 0x55c   :  { %8403 = vmatpush.bf16.msra.mxu2 %v14389_v26  ;;  %v22659_v26 = vld [vmem:[#allocation1] sm:$0xff]  ;;  %v14536_v2 = vld [vmem:[%s24237_s4 + $0x1128] sm:$0xf]  ;;  %v16366_v15 = vld [vmem:[%s24237_s4 + $0x1114] sm:$0xf0] }
 0x55d   :  { %8295 = vmatmul.bf16.gmra.mxu0 %v22659_v26  ;;  %v22670_v41 = vadd.f32 %v7283_v57, %v21902_v24  ;;  %v14201_v24 = vor.u32 %v16286_v25, %v14200_v56  ;;  %v16374_v57 = vld [vmem:[%s24237_s4 + $0x1154] sm:$0xf0]  ;;  %v14520_v19 = vld [vmem:[%s24237_s4 + $0x1108] sm:$0xf] }
 0x55e   :  { %8434 = vmatpush.bf16.msrb.mxu0 %v14249_v32  ;;  %8453 = vmatpush.bf16.msrb.mxu1 %v14377_v47  ;;  %v14457_v32 = vor.u32 %v16350_v60, %v14456_v49  ;;  %v14184_v47 = vld [vmem:[%s24237_s4 + $0xe68] sm:$0xf]  ;;  %v16306_v49 = vld [vmem:[%s24237_s4 + $0xf34] sm:$0xf0] }
 0x55f   :  { %24604 = vst [vmem:[#allocation28_spill] sm:$0xff] %v22670_v41  ;;  %v14185_v35 = vor.u32 %v16282_v27, %v14184_v47  ;;  %v14408_v47 = vld [vmem:[%s24237_s4 + $0x1028] sm:$0xf]  ;;  %v16338_v27 = vld [vmem:[%s24237_s4 + $0x1034] sm:$0xf0]  ;;  %v14281_v54 = vor.u32 %v16306_v49, %v14280_v33 }
 0x560   :  { %8472 = vmatpush.bf16.msrb.mxu2 %v14505_v11  ;;  %v7266_v31 = vpop.f32.mrf.mxu2  ;;  %v7285_v11 = vpop.f32.mrf.mxu3 }
 0x561   :  { %v7267_v44 = vadd.f32 %v7266_v31, %v7248_v62 }
 0x562   :  { %8435 = vmatpush.bf16.msrb.mxu0 %v14233_v46  ;;  %8454 = vmatpush.bf16.msrb.mxu1 %v14361_v20  ;;  %v7230_v46 = vpop.f32.mrf.mxu0  ;;  %v7249_v22 = vpop.f32.mrf.mxu1  ;;  %v16378_v20 = vld [vmem:[%s24237_s4 + $0x1174] sm:$0xf0] }
 0x563   :  { %v14569_v10 = vor.u32 %v16378_v20, %v14568_v38  ;;  %v7286_v37 = vadd.f32 %v7285_v11, %v7267_v44  ;;  %v14409_v44 = vor.u32 %v16338_v27, %v14408_v47  ;;  %v16270_v38 = vld [vmem:[%s24237_s4 + $0xe14] sm:$0xf0]  ;;  %v14264_v20 = vld [vmem:[%s24237_s4 + $0xf08] sm:$0xf]  ;;  %v14234_v47 = vld [vmem:[%s24237_s4 + $0xed8] sm:$0xf0] }
 0x564   :  { %8473 = vmatpush.bf16.msrb.mxu2 %v14489_v5  ;;  %v7250_v5 = vadd.f32 %v7249_v22, %v7230_v46  ;;  %v14537_v46 = vor.u32 %v16370_v29, %v14536_v2  ;;  %14576 = vmatmul.msk.bf16.vlgmr.msra.gmra.mxu3 %vm4078_vm7, %v21413_v1  ;;  %v16324_v27 = vld [vmem:[%s24237_s4 + $0xfcc] sm:$0xf] }
 0x565   :  { %8495 = vmatpush.bf16.msrb.mxu3 %v14569_v10  ;;  %v22718_v58 = vadd.f32 %v7286_v37, %v21950_v21  ;;  %v16310_v21 = vld [vmem:[%s24237_s4 + $0xf54] sm:$0xf0]  ;;  %8404 = vmatmul.bf16.vlgmr.msra.gmra.mxu2 %v21411_v39 }
 0x566   :  { %8436 = vmatpush.bf16.msrb.mxu0 %v14217_v59  ;;  %8455 = vmatpush.bf16.msrb.mxu1 %v14345_v61  ;;  %v14297_v62 = vor.u32 %v16310_v21, %v14296_v40  ;;  %v14425_v59 = vor.u32 %v16342_v55, %v14424_v8  ;;  %v14552_v61 = vld [vmem:[%s24237_s4 + $0x1148] sm:$0xf]  ;;  %v16334_v10 = vld [vmem:[%s24237_s4 + $0x1014] sm:$0xf0]  ;;  %v16296_v40 = vld [vmem:[%s24237_s4 + $0xeec] sm:$0xf]  ;;  %v14521_v8 = vor.u32 %v16366_v15, %v14520_v19 }
 0x567   :  { %v14553_v43 = vor.u32 %v16374_v57, %v14552_v61  ;;  %8385 = vmatmul.bf16.vlgmr.msra.gmra.mxu1 %v21409_v48  ;;  %v14250_v55 = vld [vmem:[%s24237_s4 + $0xef8] sm:$0xf0] }
 0x568   :  { %8474 = vmatpush.bf16.msrb.mxu2 %v14473_v23  ;;  %v14152_v23 = vld [vmem:[%s24237_s4 + $0xe28] sm:$0xf]  ;;  %v7268_v56 = vpop.f32.mrf.mxu2  ;;  %v7287_v25 = vpop.f32.mrf.mxu3 }
 0x569   :  { %v7269_v60 = vadd.f32 %v7268_v56, %v7250_v5  ;;  %8496 = vmatpush.bf16.msrb.mxu3 %v14553_v43  ;;  %v16302_v5 = vld [vmem:[%s24237_s4 + $0xf14] sm:$0xf0]  ;;  %v14253_v56 = vor.u32 %v16296_v40, %v14250_v55  ;;  %v16360_v43 = vld [vmem:[%s24237_s4 + $0x10ec] sm:$0xf]  ;;  %v14202_v55 = vld [vmem:[%s24237_s4 + $0xe98] sm:$0xf0] }
 0x56a   :  { %8437 = vmatpush.bf16.msrb.mxu0 %v14201_v24  ;;  %8456 = vmatpush.bf16.msrb.mxu1 %v14329_v30  ;;  %v16274_v24 = vld [vmem:[%s24237_s4 + $0xe34] sm:$0xf0]  ;;  %v7299_v30 = vpop.f32.mrf.mxu0  ;;  %v14265_v37 = vor.u32 %v16302_v5, %v14264_v20  ;;  %v14346_v20 = vld [vmem:[%s24237_s4 + $0xfb8] sm:$0xf0] }
 0x56b   :  { %v14153_v11 = vor.u32 %v16274_v24, %v14152_v23  ;;  %v7288_v6 = vadd.f32 %v7287_v25, %v7269_v60  ;;  %v14506_v24 = vld [vmem:[%s24237_s4 + $0x10f8] sm:$0xf0] }
 0x56c   :  { %8475 = vmatpush.bf16.msrb.mxu2 %v14457_v32  ;;  %v7318_v32 = vpop.f32.mrf.mxu1  ;;  %v14509_v49 = vor.u32 %v16360_v43, %v14506_v24  ;;  %v14474_v5 = vld [vmem:[%s24237_s4 + $0x10b8] sm:$0xf0]  ;;  %v16312_v24 = vld [vmem:[%s24237_s4 + $0xf6c] sm:$0xf] }
 0x56d   :  { %v7319_v31 = vadd.f32 %v7318_v32, %v7299_v30  ;;  %8366 = vmatmul.bf16.vlgmr.msra.gmra.mxu0 %v21404_v51  ;;  %v22771_v22 = vadd.f32 %v7288_v6, %v22003_v0  ;;  %8497 = vmatpush.bf16.msrb.mxu3 %v14537_v46  ;;  %v16292_v32 = vld [vmem:[%s24237_s4 + $0xecc] sm:$0xf]  ;;  %v14186_v43 = vld [vmem:[%s24237_s4 + $0xe78] sm:$0xf0] }
 0x56e   :  { %8438 = vmatpush.bf16.msrb.mxu0 %v14185_v35  ;;  %8457 = vmatpush.bf16.msrb.mxu1 %v14313_v18  ;;  %v14136_v35 = vld [vmem:[%s24237_s4 + $0xe08] sm:$0xf]  ;;  %v14237_v2 = vor.u32 %v16292_v32, %v14234_v47  ;;  %v16288_v6 = vld [vmem:[%s24237_s4 + $0xeac] sm:$0xf]  ;;  %v14442_v47 = vld [vmem:[%s24237_s4 + $0x1078] sm:$0xf0] }
 0x56f   :  { %24605 = vst [vmem:[#allocation11_spill] sm:$0xff] %v22771_v22  ;;  %v14137_v0 = vor.u32 %v16270_v38, %v14136_v35  ;;  %v14392_v18 = vld [vmem:[%s24237_s4 + $0x1008] sm:$0xf]  ;;  %v16320_v46 = vld [vmem:[%s24237_s4 + $0xfac] sm:$0xf] }
 0x570   :  { %8476 = vmatpush.bf16.msrb.mxu2 %v14441_v52  ;;  %v14393_v52 = vor.u32 %v16334_v10, %v14392_v18  ;;  %v7356_v21 = vpop.f32.mrf.mxu3  ;;  %v14349_v15 = vor.u32 %v16320_v46, %v14346_v20  ;;  %v16344_v32 = vld [vmem:[%s24237_s4 + $0x106c] sm:$0xf] }
 0x571   :  { %8498 = vmatpush.bf16.msrb.mxu3 %v14521_v8  ;;  %v16284_v8 = vld [vmem:[%s24237_s4 + $0xe8c] sm:$0xf] }
 0x572   :  { %8439 = vmatpush.bf16.msrb.mxu0 %v14169_v42  ;;  %8458 = vmatpush.bf16.msrb.mxu1 %v14297_v62  ;;  %v7337_v42 = vpop.f32.mrf.mxu2  ;;  %v16328_v62 = vld [vmem:[%s24237_s4 + $0xfec] sm:$0xf]  ;;  %v7301_v57 = vpop.f32.mrf.mxu0 }
 0x573   :  { %v7338_v61 = vadd.f32 %v7337_v42, %v7319_v31  ;;  %v14362_v31 = vld [vmem:[%s24237_s4 + $0xfd8] sm:$0xf0]  ;;  %v16276_v20 = vld [vmem:[%s24237_s4 + $0xe4c] sm:$0xf] }
 0x574   :  { %8477 = vmatpush.bf16.msrb.mxu2 %v14425_v59  ;;  %v14378_v59 = vld [vmem:[%s24237_s4 + $0xff8] sm:$0xf0]  ;;  %v7320_v23 = vpop.f32.mrf.mxu1  ;;  %14577 = vmatmul.msk.bf16.gmra.mxu3 %vm4078_vm7, %v22667_v34 }
 0x575   :  { %v14381_v25 = vor.u32 %v16328_v62, %v14378_v59  ;;  %v7321_v33 = vadd.f32 %v7320_v23, %v7301_v57  ;;  %v7357_v60 = vadd.f32 %v7356_v21, %v7338_v61  ;;  %8409 = vmatmul.bf16.gmra.mxu2 %v22665_v13  ;;  %v16316_v62 = vld [vmem:[%s24237_s4 + $0xf8c] sm:$0xf]  ;;  %v14330_v59 = vld [vmem:[%s24237_s4 + $0xf98] sm:$0xf0] }
 0x576   :  { %8440 = vmatpush.bf16.msrb.mxu0 %v14153_v11  ;;  %8459 = vmatpush.bf16.msrb.mxu1 %v14281_v54  ;;  %v14490_v11 = vld [vmem:[%s24237_s4 + $0x10d8] sm:$0xf0]  ;;  %v14365_v54 = vor.u32 %v16324_v27, %v14362_v31  ;;  %v16348_v61 = vld [vmem:[%s24237_s4 + $0x108c] sm:$0xf]  ;;  %v14333_v23 = vor.u32 %v16316_v62, %v14330_v59 }
 0x577   :  { %v22819_v30 = vadd.f32 %v7357_v60, %v22051_v53  ;;  %v16356_v53 = vld [vmem:[%s24237_s4 + $0x10cc] sm:$0xf]  ;;  %8390 = vmatmul.bf16.gmra.mxu1 %v22661_v36  ;;  %v14458_v57 = vld [vmem:[%s24237_s4 + $0x1098] sm:$0xf0] }
 0x578   :  { %8478 = vmatpush.bf16.msrb.mxu2 %v14409_v44  ;;  %v14493_v29 = vor.u32 %v16356_v53, %v14490_v11  ;;  %v14218_v44 = vld [vmem:[%s24237_s4 + $0xeb8] sm:$0xf0]  ;;  %v7358_v38 = vpop.f32.mrf.mxu3  ;;  %v16376_v11 = vld [vmem:[%s24237_s4 + $0x116c] sm:$0xf] }
 0x579   :  { %v14221_v19 = vor.u32 %v16288_v6, %v14218_v44  ;;  %v14314_v60 = vld [vmem:[%s24237_s4 + $0xf78] sm:$0xf0]  ;;  %v16304_v59 = vld [vmem:[%s24237_s4 + $0xf2c] sm:$0xf] }
 0x57a   :  { %8441 = vmatpush.bf16.msrb.mxu0 %v14137_v0  ;;  %8460 = vmatpush.bf16.msrb.mxu1 %v14265_v37  ;;  %v7339_v35 = vpop.f32.mrf.mxu2  ;;  %v16352_v0 = vld [vmem:[%s24237_s4 + $0x10ac] sm:$0xf]  ;;  %v7304_v10 = vpop.f32.mrf.mxu0  ;;  %v14317_v6 = vor.u32 %v16312_v24, %v14314_v60 }
 0x57b   :  { %v7340_v18 = vadd.f32 %v7339_v35, %v7321_v33  ;;  %v14477_v42 = vor.u32 %v16352_v0, %v14474_v5  ;;  %v14445_v35 = vor.u32 %v16344_v32, %v14442_v47  ;;  %v14170_v0 = vld [vmem:[%s24237_s4 + $0xe58] sm:$0xf0]  ;;  %v16308_v5 = vld [vmem:[%s24237_s4 + $0xf4c] sm:$0xf] }
 0x57c   :  { %8479 = vmatpush.bf16.msrb.mxu2 %v14393_v52  ;;  %v7323_v37 = vpop.f32.mrf.mxu1  ;;  %v16368_v24 = vld [vmem:[%s24237_s4 + $0x112c] sm:$0xf]  ;;  %v14538_v32 = vld [vmem:[%s24237_s4 + $0x1138] sm:$0xf0] }
 0x57d   :  { %v7324_v52 = vadd.f32 %v7323_v37, %v7304_v10  ;;  %v7359_v40 = vadd.f32 %v7358_v38, %v7340_v18  ;;  %8371 = vmatmul.bf16.gmra.mxu0 %v22659_v26  ;;  %v14173_v18 = vor.u32 %v16276_v20, %v14170_v0  ;;  %v16340_v10 = vld [vmem:[%s24237_s4 + $0x104c] sm:$0xf]  ;;  %v14426_v37 = vld [vmem:[%s24237_s4 + $0x1058] sm:$0xf0] }
 0x57e   :  { %8510 = vmatpush.bf16.msra.mxu0 %v14253_v56  ;;  %8529 = vmatpush.bf16.msra.mxu1 %v14381_v25  ;;  %v14461_v56 = vor.u32 %v16348_v61, %v14458_v57  ;;  %v16280_v25 = vld [vmem:[%s24237_s4 + $0xe6c] sm:$0xf]  ;;  %v14282_v61 = vld [vmem:[%s24237_s4 + $0xf38] sm:$0xf0] }
 0x57f   :  { %v22860_v21 = vadd.f32 %v7359_v40, %v22092_v4  ;;  %v14205_v4 = vor.u32 %v16284_v8, %v14202_v55  ;;  %v14189_v53 = vor.u32 %v16280_v25, %v14186_v43  ;;  %v14554_v40 = vld [vmem:[%s24237_s4 + $0x1158] sm:$0xf0]  ;;  %v16336_v25 = vld [vmem:[%s24237_s4 + $0x102c] sm:$0xf]  ;;  %v14285_v60 = vor.u32 %v16304_v59, %v14282_v61 }
 0x580   :  { %8548 = vmatpush.bf16.msra.mxu2 %v14509_v49  ;;  %v7361_v49 = vpop.f32.mrf.mxu3  ;;  %v14410_v43 = vld [vmem:[%s24237_s4 + $0x1038] sm:$0xf0]  ;;  %v16364_v20 = vld [vmem:[%s24237_s4 + $0x110c] sm:$0xf] }
 0x581   :  { %v14522_v0 = vld [vmem:[%s24237_s4 + $0x1118] sm:$0xf0] }
 0x582   :  { %8511 = vmatpush.bf16.msra.mxu0 %v14237_v2  ;;  %8530 = vmatpush.bf16.msra.mxu1 %v14365_v54  ;;  %v7342_v33 = vpop.f32.mrf.mxu2  ;;  %v7306_v2 = vpop.f32.mrf.mxu0  ;;  %v14570_v54 = vld [vmem:[%s24237_s4 + $0x1178] sm:$0xf0] }
 0x583   :  { %v7343_v27 = vadd.f32 %v7342_v33, %v7324_v52  ;;  %v14573_v44 = vor.u32 %v16376_v11, %v14570_v54  ;;  %v14138_v11 = vld [vmem:[%s24237_s4 + $0xe18] sm:$0xf0]  ;;  %v16300_v54 = vld [vmem:[%s24237_s4 + $0xf0c] sm:$0xf] }
 0x584   :  { %8549 = vmatpush.bf16.msra.mxu2 %v14493_v29  ;;  %v7325_v31 = vpop.f32.mrf.mxu1  ;;  %14578 = vmatmul.msk.bf16.vlgmr.msrb.gmra.mxu3 %vm4078_vm7, %v21413_v1 }
 0x585   :  { %v7326_v29 = vadd.f32 %v7325_v31, %v7306_v2  ;;  %v7362_v46 = vadd.f32 %v7361_v49, %v7343_v27  ;;  %8571 = vmatpush.bf16.msra.mxu3 %v14573_v44  ;;  %v14413_v27 = vor.u32 %v16336_v25, %v14410_v43  ;;  %v14541_v2 = vor.u32 %v16368_v24, %v14538_v32  ;;  %v14394_v44 = vld [vmem:[%s24237_s4 + $0x1018] sm:$0xf0] }
 0x586   :  { %8512 = vmatpush.bf16.msra.mxu0 %v14221_v19  ;;  %8531 = vmatpush.bf16.msra.mxu1 %v14349_v15  ;;  %v14429_v19 = vor.u32 %v16340_v10, %v14426_v37  ;;  %v16372_v15 = vld [vmem:[%s24237_s4 + $0x114c] sm:$0xf] }
 0x587   :  { %v22908_v38 = vadd.f32 %v7362_v46, %v22140_v9  ;;  %v14298_v9 = vld [vmem:[%s24237_s4 + $0xf58] sm:$0xf0]  ;;  %v14557_v62 = vor.u32 %v16372_v15, %v14554_v40  ;;  %8461 = vmatmul.bf16.vlgmr.msrb.gmra.mxu1 %v21409_v48  ;;  %8480 = vmatmul.bf16.vlgmr.msrb.gmra.mxu2 %v21411_v39 }
 0x588   :  { %8550 = vmatpush.bf16.msra.mxu2 %v14477_v42  ;;  %v14301_v52 = vor.u32 %v16308_v5, %v14298_v9  ;;  %v16272_v42 = vld [vmem:[%s24237_s4 + $0xe2c] sm:$0xf]  ;;  %v7363_v55 = vpop.f32.mrf.mxu3  ;;  %v14525_v9 = vor.u32 %v16364_v20, %v14522_v0 }
 0x589   :  { %8572 = vmatpush.bf16.msra.mxu3 %v14557_v62 }
 0x58a   :  { %8513 = vmatpush.bf16.msra.mxu0 %v14205_v4  ;;  %8532 = vmatpush.bf16.msra.mxu1 %v14333_v23  ;;  %v7344_v8 = vpop.f32.mrf.mxu2  ;;  %v14154_v4 = vld [vmem:[%s24237_s4 + $0xe38] sm:$0xf0]  ;;  %v7375_v23 = vpop.f32.mrf.mxu0 }
 0x58b   :  { %v7345_v57 = vadd.f32 %v7344_v8, %v7326_v29  ;;  %v14157_v49 = vor.u32 %v16272_v42, %v14154_v4  ;;  %v14266_v29 = vld [vmem:[%s24237_s4 + $0xf18] sm:$0xf0] }
 0x58c   :  { %8551 = vmatpush.bf16.msra.mxu2 %v14461_v56  ;;  %v7394_v56 = vpop.f32.mrf.mxu1  ;;  %v14269_v46 = vor.u32 %v16300_v54, %v14266_v29 }
 0x58d   :  { %v7395_v33 = vadd.f32 %v7394_v56, %v7375_v23  ;;  %v7364_v47 = vadd.f32 %v7363_v55, %v7345_v57  ;;  %8442 = vmatmul.bf16.vlgmr.msrb.gmra.mxu0 %v21404_v51  ;;  %8573 = vmatpush.bf16.msra.mxu3 %v14541_v2 }
 0x58e   :  { %8514 = vmatpush.bf16.msra.mxu0 %v14189_v53  ;;  %8533 = vmatpush.bf16.msra.mxu1 %v14317_v6  ;;  %v16268_v53 = vld [vmem:[%s24237_s4 + $0xe0c] sm:$0xf] }
 0x58f   :  { %v22961_v31 = vadd.f32 %v7364_v47, %v22193_v45  ;;  %v14141_v45 = vor.u32 %v16268_v53, %v14138_v11  ;;  %v16332_v6 = vld [vmem:[%s24237_s4 + $0x100c] sm:$0xf] }
 0x590   :  { %8552 = vmatpush.bf16.msra.mxu2 %v14445_v35  ;;  %v14397_v35 = vor.u32 %v16332_v6, %v14394_v44 }
 0x591   :  { %8574 = vmatpush.bf16.msra.mxu3 %v14525_v9 }
 0x592   :  { %8515 = vmatpush.bf16.msra.mxu0 %v14173_v18  ;;  %8534 = vmatpush.bf16.msra.mxu1 %v14301_v52  ;;  %v7413_v5 = vpop.f32.mrf.mxu2  ;;  %v7432_v18 = vpop.f32.mrf.mxu3 }
 0x593   :  { %v7414_v10 = vadd.f32 %v7413_v5, %v7395_v33  ;;  %v22990_v37 = vpop.f32.mrf.mxu0 }
 0x594   :  { %8553 = vmatpush.bf16.msra.mxu2 %v14429_v19  ;;  %v22992_v52 = vpop.f32.mrf.mxu1  ;;  %14579 = vmatmul.msk.bf16.gmra.mxu3 %vm4078_vm7, %v22667_v34 }
 0x595   :  { %v7433_v19 = vadd.f32 %v7432_v18, %v7414_v10 }
 0x596   :  { %8516 = vmatpush.bf16.msra.mxu0 %v14157_v49  ;;  %8535 = vmatpush.bf16.msra.mxu1 %v14285_v60 }
 0x597   :  { %v22995_v15 = vadd.f32 %v7433_v19, %v22241_v3  ;;  %8466 = vmatmul.bf16.gmra.mxu1 %v22661_v36  ;;  %8485 = vmatmul.bf16.gmra.mxu2 %v22665_v13 }
 0x598   :  { %8554 = vmatpush.bf16.msra.mxu2 %v14413_v27 }
 0x59a   :  { %8517 = vmatpush.bf16.msra.mxu0 %v14141_v45  ;;  %8536 = vmatpush.bf16.msra.mxu1 %v14269_v46  ;;  %v22997_v40 = vpop.f32.mrf.mxu2  ;;  %v22999_v42 = vpop.f32.mrf.mxu3 }
 0x59b   :  { %v7380_v8 = vpop.f32.mrf.mxu0 }
 0x59c   :  { %8555 = vmatpush.bf16.msra.mxu2 %v14397_v35  ;;  %v7399_v55 = vpop.f32.mrf.mxu1 }
 0x59d   :  { %v7400_v62 = vadd.f32 %v7399_v55, %v7380_v8  ;;  %8447 = vmatmul.bf16.gmra.mxu0 %v22659_v26 }
 0x5a2   :  { %v7418_v4 = vpop.f32.mrf.mxu2  ;;  %v7437_v59 = vpop.f32.mrf.mxu3 }
 0x5a3   :  { %v7419_v3 = vadd.f32 %v7418_v4, %v7400_v62  ;;  %v23006_v61 = vpop.f32.mrf.mxu0 }
 0x5a4   :  { %v23008_v57 = vpop.f32.mrf.mxu1  ;;  %14580 = vmatmul.msk.bf16.vlgmr.msra.gmra.mxu3 %vm4078_vm7, %v21413_v1 }
 0x5a5   :  { %v7438_v23 = vadd.f32 %v7437_v59, %v7419_v3 }
 0x5a7   :  { %v23011_v56 = vadd.f32 %v7438_v23, %v22330_v28  ;;  %8537 = vmatmul.bf16.vlgmr.msra.gmra.mxu1 %v21409_v48  ;;  %8556 = vmatmul.bf16.vlgmr.msra.gmra.mxu2 %v21411_v39 }
 0x5aa   :  { %v23013_v25 = vpop.f32.mrf.mxu2  ;;  %v23015_v43 = vpop.f32.mrf.mxu3 }
 0x5ab   :  { %v7451_v24 = vpop.f32.mrf.mxu0 }
 0x5ac   :  { %v7470_v33 = vpop.f32.mrf.mxu1 }
 0x5ad   :  { %v7471_v49 = vadd.f32 %v7470_v33, %v7451_v24  ;;  %8518 = vmatmul.bf16.vlgmr.msra.gmra.mxu0 %v21404_v51 }
 0x5b2   :  { %v7489_v60 = vpop.f32.mrf.mxu2  ;;  %v7508_v32 = vpop.f32.mrf.mxu3 }
 0x5b3   :  { %v7490_v28 = vadd.f32 %v7489_v60, %v7471_v49  ;;  %v23022_v47 = vpop.f32.mrf.mxu0 }
 0x5b4   :  { %v23024_v27 = vpop.f32.mrf.mxu1  ;;  %14581 = vmatmul.msk.bf16.gmra.mxu3 %vm4078_vm7, %v22667_v34 }
 0x5b5   :  { %v7509_v2 = vadd.f32 %v7508_v32, %v7490_v28 }
 0x5b7   :  { %v23027_v53 = vadd.f32 %v7509_v2, %v22431_v14  ;;  %8542 = vmatmul.bf16.gmra.mxu1 %v22661_v36  ;;  %8561 = vmatmul.bf16.gmra.mxu2 %v22665_v13 }
 0x5ba   :  { %v23029_v11 = vpop.f32.mrf.mxu2  ;;  %v23031_v51 = vpop.f32.mrf.mxu3 }
 0x5bb   :  { %v7456_v48 = vpop.f32.mrf.mxu0 }
 0x5bc   :  { %v7475_v39 = vpop.f32.mrf.mxu1 }
 0x5bd   :  { %v7476_v54 = vadd.f32 %v7475_v39, %v7456_v48  ;;  %8523 = vmatmul.bf16.gmra.mxu0 %v22659_v26 }
 0x5c2   :  { %v7494_v1 = vpop.f32.mrf.mxu2  ;;  %v7513_v45 = vpop.f32.mrf.mxu3 }
 0x5c3   :  { %v7495_v14 = vadd.f32 %v7494_v1, %v7476_v54  ;;  %v23038_v29 = vpop.f32.mrf.mxu0 }
 0x5c4   :  { %v23040_v6 = vpop.f32.mrf.mxu1 }
 0x5c5   :  { %24606 = vst [vmem:[#allocation18_spill] sm:$0xff] %v23040_v6  ;;  %v7514_v44 = vadd.f32 %v7513_v45, %v7495_v14 }
 0x5c7   :  { %v23043_v46 = vadd.f32 %v7514_v44, %v22520_v12 }
 0x5c9   :  { %24607 = vst [vmem:[#allocation9_spill] sm:$0xff] %v23043_v46 }
 0x5ca   :  { %v23045_v35 = vpop.f32.mrf.mxu2  ;;  %v23047_v26 = vpop.f32.mrf.mxu3 }
 0x5cb   :  { %24608 = vst [vmem:[#allocation17_spill] sm:$0xff] %v23045_v35  ;;  %v8291_v36 = vpop.f32.mrf.mxu0 }
 0x5cc   :  { %24609 = vst [vmem:[#allocation19_spill] sm:$0xff] %v23047_v26  ;;  %v8310_v13 = vpop.f32.mrf.mxu1  ;;  %v23079_v26 = vld [vmem:[%s24238_s5] sm:$0xf]  ;;  %s16756_s5 = smov 96  }
 0x5cd   :  { %v8311_v20 = vadd.f32 %v8310_v13, %v8291_v36 }
 0x5d2   :  { %v8329_v0 = vpop.f32.mrf.mxu2  ;;  %v8348_v34 = vpop.f32.mrf.mxu3 }
 0x5d3   :  { %v8330_v5 = vadd.f32 %v8329_v0, %v8311_v20  ;;  %v23049_v18 = vpop.f32.mrf.mxu0 }
 0x5d4   :  { %v23051_v9 = vpop.f32.mrf.mxu1 }
 0x5d5   :  { %v8349_v10 = vadd.f32 %v8348_v34, %v8330_v5 }
 0x5d7   :  { %v8586_v19 = vadd.f32 %v8349_v10, %v22621_v63 }
 0x5da   :  { %v23054_v8 = vpop.f32.mrf.mxu2  ;;  %v23056_v12 = vpop.f32.mrf.mxu3 }
 0x5db   :  { %24610 = vst [vmem:[#allocation20_spill] sm:$0xff] %v23056_v12  ;;  %v8296_v55 = vpop.f32.mrf.mxu0 }
 0x5dc   :  { %v8315_v62 = vpop.f32.mrf.mxu1 }
 0x5dd   :  { %v8316_v7 = vadd.f32 %v8315_v62, %v8296_v55 }
 0x5e2   :  { %v8334_v4 = vpop.f32.mrf.mxu2  ;;  %v8353_v59 = vpop.f32.mrf.mxu3 }
 0x5e3   :  { %v23058_v3 = vpop.f32.mrf.mxu0  ;;  %v8335_v41 = vadd.f32 %v8334_v4, %v8316_v7  ;;  %v23088_v7 = vld [vmem:[%s24239_s6] sm:$0xf] }
 0x5e4   :  { %v23060_v23 = vpop.f32.mrf.mxu1 }
 0x5ea   :  { %v23062_v24 = vpop.f32.mrf.mxu2  ;;  %v23064_v33 = vpop.f32.mrf.mxu3 }
 0x5eb   :  { %24611 = vst [vmem:[#allocation15_spill] sm:$0xff] %v23064_v33  ;;  %v8367_v49 = vpop.f32.mrf.mxu0  ;;  %v23083_v33 = vperm.slane %v23079_v26, 1 }
 0x5ec   :  { %v8386_v60 = vpop.f32.mrf.mxu1 }
 0x5ed   :  { %v8387_v13 = vadd.f32 %v8386_v60, %v8367_v49 }
 0x5f2   :  { %v8405_v32 = vpop.f32.mrf.mxu2  ;;  %v8424_v63 = vpop.f32.mrf.mxu3 }
 0x5f3   :  { %v23066_v28 = vpop.f32.mrf.mxu0  ;;  %v8406_v20 = vadd.f32 %v8405_v32, %v8387_v13  ;;  %v8354_v32 = vadd.f32 %v8353_v59, %v8335_v41  ;;  %v23103_v59 = vperm.slane %v23079_v26, 0 }
 0x5f4   :  { %v23068_v2 = vpop.f32.mrf.mxu1 }
 0x5f5   :  { %v8425_v22 = vadd.f32 %v8424_v63, %v8406_v20  ;;  %v8594_v4 = vadd.f32 %v8354_v32, %v22718_v58  ;;  %24612 = vst [vmem:[#allocation13_spill] sm:$0xff] %v23103_v59 }
 0x5f7   :  { %v8587_v46 = vadd.f32 %v8425_v22, %v22819_v30  ;;  %v23092_v22 = vperm.slane %v23079_v26, 2  ;;  %v23095_v30 = vperm.slane %v23088_v7, 1 }
 0x5f9   :  { %v8613_v55 = vmul.f32 %v23083_v33, %v8587_v46 }
 0x5fa   :  { %v23070_v48 = vpop.f32.mrf.mxu2  ;;  %v23072_v39 = vpop.f32.mrf.mxu3 }
 0x5fb   :  { %v8372_v54 = vpop.f32.mrf.mxu0  ;;  %v23107_v46 = vadd.f32 %v23095_v30, %v8613_v55  ;;  %v23121_v55 = vperm.slane %v23088_v7, 0 }
 0x5fc   :  { %v8391_v1 = vpop.f32.mrf.mxu1 }
 0x5fd   :  { %24613 = vst [vmem:[#allocation23_spill] sm:$0xff] %v23107_v46  ;;  %v24324_v32 = vmax.f32 %v23107_v46, 0.0 }
 0x602   :  { %v8410_v45 = vpop.f32.mrf.mxu2  ;;  %v23074_v14 = vpop.f32.mrf.mxu3 }
 0x603   :  { %v8374_v44 = vpop.f32.mrf.mxu0 }
 0x604   :  { %v8393_v36 = vpop.f32.mrf.mxu1 }
 0x60a   :  { %v8412_v0 = vpop.f32.mrf.mxu2  ;;  %v8431_v34 = vpop.f32.mrf.mxu3 }
 0x60b   :  { %v8443_v5 = vpop.f32.mrf.mxu0 }
 0x60c   :  { %v8462_v10 = vpop.f32.mrf.mxu1 }
 0x60d   :  { %v8463_v12 = vadd.f32 %v8462_v10, %v8443_v5  ;;  %v8620_v10 = vmul.f32 %v23103_v59, %v8594_v4 }
 0x612   :  { %v8481_v49 = vpop.f32.mrf.mxu2  ;;  %v8500_v60 = vpop.f32.mrf.mxu3 }
 0x613   :  { %v8482_v13 = vadd.f32 %v8481_v49, %v8463_v12  ;;  %v8445_v35 = vpop.f32.mrf.mxu0  ;;  %v23100_v12 = vperm.slane %v23088_v7, 2 }
 0x614   :  { %v8464_v16 = vpop.f32.mrf.mxu1 }
 0x615   :  { %v8501_v62 = vadd.f32 %v8500_v60, %v8482_v13  ;;  %v8612_v60 = vmul.f32 %v23103_v59, %v8586_v19 }
 0x617   :  { %v8588_v41 = vadd.f32 %v8501_v62, %v22995_v15  ;;  %v8394_v62 = vadd.f32 %v8393_v36, %v8374_v44  ;;  %v23132_v19 = vadd.f32 %v23121_v55, %v8612_v60  ;;  %v7402_v44 = vadd.f32 %v23008_v57, %v23006_v61 }
 0x619   :  { %v8614_v63 = vmul.f32 %v23092_v22, %v8588_v41  ;;  %v23128_v41 = vadd.f32 %v23121_v55, %v8620_v10  ;;  %24615 = vst [vmem:[#allocation31_spill] sm:$0xff] %v23132_v19  ;;  %v7421_v10 = vadd.f32 %v23013_v25, %v7402_v44  ;;  %v7397_v25 = vadd.f32 %v22992_v52, %v22990_v37 }
 0x61a   :  { %v8483_v20 = vpop.f32.mrf.mxu2  ;;  %v8502_v5 = vpop.f32.mrf.mxu3 }
 0x61b   :  { %v23110_v49 = vpop.f32.mrf.mxu0  ;;  %v23115_v15 = vadd.f32 %v23100_v12, %v8614_v63  ;;  %v8413_v63 = vadd.f32 %v8412_v0, %v8394_v62  ;;  %v8654_v0 = vmax.f32 %v23132_v19, 0.0  ;;  %v8392_v62 = vadd.f32 %v8391_v1, %v8372_v54 }
 0x61c   :  { %v23112_v58 = vpop.f32.mrf.mxu1  ;;  %v7416_v19 = vadd.f32 %v22997_v40, %v7397_v25 }
 0x61d   :  { %24614 = vst [vmem:[#allocation24_spill] sm:$0xff] %v23115_v15  ;;  %v24325_v13 = vmax.f32 %v23115_v15, 0.0  ;;  %v7440_v15 = vadd.f32 %v23015_v43, %v7421_v10 }
 0x61e   :  { %v7435_v52 = vadd.f32 %v22999_v42, %v7416_v19 }
 0x61f   :  { %v16651_v4 = vpack.i.bf16 %v24325_v13, %v24324_v32  ;;  %v24328_v32 = vmax.f32 %v23128_v41, 0.0  ;;  %v8432_v13 = vadd.f32 %v8431_v34, %v8413_v63 }
 0x620   :  { %v7524_v42 = vadd.f32 %v7435_v52, %v22282_v17 }
 0x621   :  { %16652 = vrot.lane.b32.xlu2 %v16651_v4, %s16756_s5  ;;  %v16666_v60 = vpack.i.bf16 %v24328_v32, %v8654_v0  ;;  %v8411_v4 = vadd.f32 %v8410_v45, %v8392_v62  ;;  %v8599_v61 = vadd.f32 %v8432_v13, %v22961_v31  ;;  %v7532_v45 = vadd.f32 %v7440_v15, %v22383_v50 }
 0x622   :  { %v8486_v59 = vpop.f32.mrf.mxu2  ;;  %v23134_v6 = vpop.f32.mrf.mxu3  ;;  %v8465_v31 = vadd.f32 %v8464_v16, %v8445_v35  ;;  %v8389_v13 = vadd.f32 %v23068_v2, %v23066_v28 }
 0x623   :  { %v8450_v36 = vpop.f32.mrf.mxu0  ;;  %v8430_v32 = vadd.f32 %v23074_v14, %v8411_v4  ;;  %v8625_v43 = vmul.f32 %v23083_v33, %v8599_v61  ;;  %v8468_v61 = vadd.f32 %v23112_v58, %v23110_v49 }
 0x624   :  { %v8469_v46 = vpop.f32.mrf.mxu1  ;;  %v8408_v10 = vadd.f32 %v23070_v48, %v8389_v13  ;;  %v8318_v13 = vadd.f32 %v23060_v23, %v23058_v3  ;;  %v24616_v23 = vld [vmem:[#allocation18_spill] sm:$0xff] }
 0x625   :  { %v8470_v57 = vadd.f32 %v8469_v46, %v8450_v36  ;;  %v8484_v36 = vadd.f32 %v8483_v20, %v8465_v31  ;;  %v8595_v62 = vadd.f32 %v8430_v32, %v22908_v38  ;;  %v23161_v50 = vadd.f32 %v23095_v30, %v8625_v43 }
 0x626   :  { %v8427_v48 = vadd.f32 %v23072_v39, %v8408_v10  ;;  %v23170_v32 = vperm.slane %v23079_v26, 3  ;;  %v23182_v39 = vperm.slane %v23088_v7, 3  ;;  %v8337_v52 = vadd.f32 %v23062_v24, %v8318_v13  ;;  %v24618_v24 = vld [vmem:[#allocation17_spill] sm:$0xff] }
 0x627   :  { %v8503_v35 = vadd.f32 %v8502_v5, %v8484_v36  ;;  %v8621_v38 = vmul.f32 %v23083_v33, %v8595_v62  ;;  %v8667_v19 = vmax.f32 %v23161_v50, 0.0  ;;  %v7478_v10 = vadd.f32 %v24616_v23, %v23038_v29  ;;  %v16514_v50 = vld [vmem:[%s24240_s7 + $0x438] sm:$0xff] }
 0x628   :  { %v8591_v26 = vadd.f32 %v8427_v48, %v22860_v21 }
 0x629   :  { %16667 = vrot.lane.b32.xlu2 %v16666_v60, %s16756_s5  ;;  %v23188_v49 = vadd.f32 %v23095_v30, %v8621_v38 }
 0x62a   :  { %v8488_v34 = vpop.f32.mrf.mxu2  ;;  %v8507_v63 = vpop.f32.mrf.mxu3 }
 0x62b   :  { %v8489_v44 = vadd.f32 %v8488_v34, %v8470_v57  ;;  %v8519_v54 = vpop.f32.mrf.mxu0  ;;  %v8592_v57 = vadd.f32 %v8503_v35, %v7524_v42  ;;  %v8487_v34 = vadd.f32 %v8486_v59, %v8468_v61  ;;  %v8617_v59 = vmul.f32 %v23083_v33, %v8591_v26  ;;  %v24621_v61 = vld [vmem:[#allocation9_spill] sm:$0xff] }
 0x62c   :  { %v8538_v1 = vpop.f32.mrf.mxu1  ;;  %v7497_v35 = vadd.f32 %v24618_v24, %v7478_v10  ;;  %v16422_v24 = vld [vmem:[%s24240_s7 + $0x158] sm:$0xff] }
 0x62d   :  { %v8508_v46 = vadd.f32 %v8507_v63, %v8489_v44  ;;  %v8539_v14 = vadd.f32 %v8538_v1, %v8519_v54  ;;  %v8618_v54 = vmul.f32 %v23092_v22, %v8592_v57  ;;  %v8506_v43 = vadd.f32 %v23134_v6, %v8487_v34  ;;  %v24623_v34 = vld [vmem:[#allocation28_spill] sm:$0xff]  ;;  %9411 = vmatpush.bf16.msrb.mxu1 %v16422_v24 }
 0x62e   :  { %v23218_v3 = vadd.f32 %v23095_v30, %v8617_v59 }
 0x62f   :  { %v8600_v37 = vadd.f32 %v8508_v46, %v7532_v45  ;;  %v23210_v33 = vadd.f32 %v23100_v12, %v8618_v54 }
 0x630   :  { %v8659_v48 = vmax.f32 %v23218_v3, 0.0  ;;  %v16398_v3 = vld [vmem:[%s24240_s7 + $0x98] sm:$0xff] }
 0x631   :  { %v8626_v40 = vmul.f32 %v23092_v22, %v8600_v37 }
 0x632   :  { %v8557_v15 = vpop.f32.mrf.mxu2  ;;  %v8576_v16 = vpop.f32.mrf.mxu3 }
 0x633   :  { %v8558_v60 = vadd.f32 %v8557_v15, %v8539_v14  ;;  %v8521_v4 = vpop.f32.mrf.mxu0  ;;  %v23164_v2 = vadd.f32 %v23100_v12, %v8626_v40 }
 0x634   :  { %v8540_v28 = vpop.f32.mrf.mxu1 }
 0x635   :  { %v8577_v20 = vadd.f32 %v8576_v16, %v8558_v60  ;;  %v8668_v5 = vmax.f32 %v23164_v2, 0.0  ;;  %v8541_v31 = vadd.f32 %v8540_v28, %v8521_v4  ;;  %v24620_v4 = vld [vmem:[#allocation15_spill] sm:$0xff] }
 0x636   :  { %v8356_v28 = vadd.f32 %v24620_v4, %v8337_v52  ;;  %v16429_v4 = vld [vmem:[%s24240_s7 + $0x190] sm:$0xff] }
 0x637   :  { %v8589_v25 = vadd.f32 %v8577_v20, %v23027_v53  ;;  %v16681_v17 = vpack.i.bf16 %v8668_v5, %v8667_v19  ;;  %v7473_v53 = vadd.f32 %v23024_v27, %v23022_v47  ;;  %v8663_v47 = vmax.f32 %v23188_v49, 0.0 }
 0x638   :  { %v8313_v27 = vadd.f32 %v23051_v9, %v23049_v18  ;;  %v8596_v18 = vadd.f32 %v8506_v43, %v23011_v56  ;;  %v24619_v56 = vld [vmem:[#allocation20_spill] sm:$0xff]  ;;  %v24625_v43 = vld [vmem:[#allocation27_spill] sm:$0xff] }
 0x639   :  { %v8615_v63 = vmul.f32 %v23170_v32, %v8589_v25  ;;  %16682 = vrot.lane.b32.xlu2 %v16681_v17, %s16756_s5  ;;  %v7492_v21 = vadd.f32 %v23029_v11, %v7473_v53  ;;  %v24622_v17 = vld [vmem:[#allocation19_spill] sm:$0xff] }
 0x63a   :  { %v8559_v58 = vpop.f32.mrf.mxu2  ;;  %v8578_v44 = vpop.f32.mrf.mxu3  ;;  %v8332_v37 = vadd.f32 %v23054_v8, %v8313_v27  ;;  %v24617_v8 = vld [vmem:[#allocation12_spill] sm:$0xff]  ;;  %v8622_v30 = vmul.f32 %v23092_v22, %v8596_v18  ;;  %v7516_v26 = vadd.f32 %v24622_v17, %v7497_v35  ;;  %v24624_v53 = vld [vmem:[#allocation11_spill] sm:$0xff]  ;;  %v24626_v27 = vld [vmem:[#allocation13_spill] sm:$0xff] }
 0x63b   :  { %v23194_v7 = vadd.f32 %v23182_v39, %v8615_v63  ;;  %v8524_v1 = vpop.f32.mrf.mxu0  ;;  %v8560_v36 = vadd.f32 %v8559_v58, %v8541_v31  ;;  %v7511_v6 = vadd.f32 %v23031_v51, %v7492_v21  ;;  %v8660_v51 = vmax.f32 %v23210_v33, 0.0  ;;  %v16430_v35 = vld [vmem:[%s24240_s7 + $0x198] sm:$0xff]  ;;  %v16409_v17 = vld [vmem:[%s24240_s7 + $0xf0] sm:$0xff] }
 0x63c   :  { %v8543_v45 = vpop.f32.mrf.mxu1  ;;  %v8351_v60 = vadd.f32 %v24619_v56, %v8332_v37  ;;  %v8598_v58 = vadd.f32 %v8356_v28, %v24624_v53  ;;  %v23240_v54 = vadd.f32 %v23100_v12, %v8622_v30  ;;  %v7533_v31 = vadd.f32 %v7516_v26, %v24625_v43  ;;  %v16413_v56 = vld [vmem:[%s24240_s7 + $0x110] sm:$0xff]  ;;  %9424 = vmatpush.bf16.msrb.mxu2 %v16430_v35  ;;  %v16412_v28 = vld [vmem:[%s24240_s7 + $0x108] sm:$0xff]  ;;  %v16423_v43 = vld [vmem:[%s24240_s7 + $0x160] sm:$0xff] }
 0x63d   :  { %v8657_v46 = vmax.f32 %v23194_v7, 0.0  ;;  %v8544_v9 = vadd.f32 %v8543_v45, %v8524_v1  ;;  %v8579_v14 = vadd.f32 %v8578_v44, %v8560_v36  ;;  %v7525_v16 = vadd.f32 %v7511_v6, %v24617_v8  ;;  %v16420_v30 = vld [vmem:[%s24240_s7 + $0x148] sm:$0xff]  ;;  %v16417_v26 = vld [vmem:[%s24240_s7 + $0x130] sm:$0xff] }
 0x63e   :  { %v16671_v25 = vpack.i.bf16 %v8660_v51, %v8659_v48  ;;  %v8590_v63 = vadd.f32 %v8351_v60, %v24623_v34  ;;  %v8664_v37 = vmax.f32 %v23240_v54, 0.0  ;;  %v16421_v60 = vld [vmem:[%s24240_s7 + $0x150] sm:$0xff]  ;;  %v16416_v53 = vld [vmem:[%s24240_s7 + $0x128] sm:$0xff] }
 0x63f   :  { %v16656_v11 = vpack.i.bf16 %v8663_v47, %v8657_v46  ;;  %v8593_v20 = vadd.f32 %v8579_v14, %v7525_v16  ;;  %9412 = vmatpush.bf16.msrb.mxu1 %v16421_v60  ;;  %v16425_v34 = vld [vmem:[%s24240_s7 + $0x170] sm:$0xff]  ;;  %v16384_v35 = vld [vmem:[%s24240_s7 + $0x28] sm:$0xff] }
 0x640   :  { %v8616_v13 = vmul.f32 %v24626_v27, %v8590_v63  ;;  %9425 = vmatpush.bf16.msrb.mxu2 %v16429_v4  ;;  %v16408_v63 = vld [vmem:[%s24240_s7 + $0xe8] sm:$0xff] }
 0x641   :  { %16657 = vrot.lane.b32.xlu0 %v16656_v11, %s16756_s5  ;;  %v8619_v59 = vmul.f32 %v23170_v32, %v8593_v20  ;;  %v8624_v11 = vmul.f32 %v24626_v27, %v8598_v58  ;;  %v16427_v20 = vld [vmem:[%s24240_s7 + $0x180] sm:$0xff]  ;;  %v16424_v58 = vld [vmem:[%s24240_s7 + $0x168] sm:$0xff] }
 0x642   :  { %v8562_v62 = vpop.f32.mrf.mxu2  ;;  %v8581_v40 = vpop.f32.mrf.mxu3  ;;  %v23261_v10 = vadd.f32 %v23121_v55, %v8616_v13  ;;  %v16434_v13 = vld [vmem:[%s24240_s7 + $0x1b8] sm:$0xff] }
 0x643   :  { %v8563_v15 = vadd.f32 %v8562_v62, %v8544_v9  ;;  %v8526_v29 = vpop.f32.mrf.mxu0  ;;  %v23256_v9 = vadd.f32 %v23182_v39, %v8619_v59  ;;  %v23264_v62 = vadd.f32 %v23121_v55, %v8624_v11  ;;  %9413 = vmatpush.bf16.msrb.mxu1 %v16420_v30  ;;  %v16386_v59 = vld [vmem:[%s24240_s7 + $0x38] sm:$0xff]  ;;  %v16385_v11 = vld [vmem:[%s24240_s7 + $0x30] sm:$0xff]  ;;  %9441 = vmatpush.bf16.msrb.mxu3 %v16434_v13 }
 0x644   :  { %v8545_v38 = vpop.f32.mrf.mxu1 }
 0x645   :  { %v8582_v42 = vadd.f32 %v8581_v40, %v8563_v15  ;;  %v8546_v44 = vadd.f32 %v8545_v38, %v8526_v29  ;;  %v8661_v40 = vmax.f32 %v23256_v9, 0.0  ;;  %v8658_v15 = vmax.f32 %v23261_v10, 0.0  ;;  %v16411_v29 = vld [vmem:[%s24240_s7 + $0x100] sm:$0xff]  ;;  %v16396_v9 = vld [vmem:[%s24240_s7 + $0x88] sm:$0xff] }
 0x646   :  { %v8666_v8 = vmax.f32 %v23264_v62, 0.0  ;;  %v16419_v38 = vld [vmem:[%s24240_s7 + $0x140] sm:$0xff] }
 0x647   :  { %v8597_v57 = vadd.f32 %v8582_v42, %v24621_v61  ;;  %v16428_v42 = vld [vmem:[%s24240_s7 + $0x188] sm:$0xff]  ;;  %9414 = vmatpush.bf16.msrb.mxu1 %v16419_v38  ;;  %v16410_v61 = vld [vmem:[%s24240_s7 + $0xf8] sm:$0xff] }
 0x648   :  { %9426 = vmatpush.bf16.msrb.mxu2 %v16428_v42 }
 0x649   :  { %v8623_v22 = vmul.f32 %v23170_v32, %v8597_v57  ;;  %16672 = vrot.lane.b32.xlu0 %v16671_v25, %s16756_s5  ;;  %v16418_v57 = vld [vmem:[%s24240_s7 + $0x138] sm:$0xff] }
 0x64a   :  { %v8564_v21 = vpop.f32.mrf.mxu2  ;;  %v8583_v36 = vpop.f32.mrf.mxu3  ;;  %v16426_v25 = vld [vmem:[%s24240_s7 + $0x178] sm:$0xff] }
 0x64b   :  { %v8565_v1 = vadd.f32 %v8564_v21, %v8546_v44  ;;  %v23244_v45 = vadd.f32 %v23182_v39, %v8623_v22  ;;  %9415 = vmatpush.bf16.msrb.mxu1 %v16418_v57  ;;  %v16407_v44 = vld [vmem:[%s24240_s7 + $0xe0] sm:$0xff] }
 0x64c   :  { %9427 = vmatpush.bf16.msrb.mxu2 %v16427_v20  ;;  %v16415_v21 = vld [vmem:[%s24240_s7 + $0x120] sm:$0xff] }
 0x64d   :  { %v8584_v6 = vadd.f32 %v8583_v36, %v8565_v1  ;;  %v8665_v12 = vmax.f32 %v23244_v45, 0.0  ;;  %v16394_v1 = vld [vmem:[%s24240_s7 + $0x78] sm:$0xff]  ;;  %v24630_v20 = vld [vmem:[#allocation23_spill] sm:$0xff]  ;;  %v24635_v45 = vmax.f32 %v23128_v41, 0.0 }
 0x64e   :  { %v16402_v36 = vld [vmem:[%s24240_s7 + $0xb8] sm:$0xff]  ;;  %v16431_v41 = vld [vmem:[%s24240_s7 + $0x1a0] sm:$0xff] }
 0x64f   :  { %v8601_v52 = vadd.f32 %v8584_v6, %v7533_v31  ;;  %v16661_v18 = vpack.i.bf16 %v8665_v12, %v8664_v37  ;;  %9416 = vmatpush.bf16.msrb.mxu1 %v16417_v26  ;;  %v16393_v6 = vld [vmem:[%s24240_s7 + $0x70] sm:$0xff] }
 0x650   :  { %9428 = vmatpush.bf16.msrb.mxu2 %v16426_v25 }
 0x651   :  { %v8627_v23 = vmul.f32 %v23170_v32, %v8601_v52  ;;  %16662 = vrot.lane.b32.xlu1 %v16661_v18, %s16756_s5  ;;  %v16676_v32 = vpack.i.bf16 %v8658_v15, %v8661_v40 }
 0x653   :  { %v23268_v14 = vadd.f32 %v23182_v39, %v8627_v23  ;;  %v16414_v39 = vld [vmem:[%s24240_s7 + $0x118] sm:$0xff]  ;;  %9417 = vmatpush.bf16.msrb.mxu1 %v16416_v53  ;;  %v16433_v23 = vld [vmem:[%s24240_s7 + $0x1b0] sm:$0xff] }
 0x654   :  { %9398 = vmatpush.bf16.msrb.mxu0 %v16414_v39  ;;  %9429 = vmatpush.bf16.msrb.mxu2 %v16425_v34 }
 0x655   :  { %v8669_v16 = vmax.f32 %v23268_v14, 0.0  ;;  %9442 = vmatpush.bf16.msrb.mxu3 %v16433_v23  ;;  %v16400_v23 = vld [vmem:[%s24240_s7 + $0xa8] sm:$0xff] }
 0x657   :  { %v16686_v55 = vpack.i.bf16 %v8666_v8, %v8669_v16  ;;  %9418 = vmatpush.bf16.msrb.mxu1 %v16415_v21 }
 0x658   :  { %9399 = vmatpush.bf16.msrb.mxu0 %v16413_v56  ;;  %9430 = vmatpush.bf16.msrb.mxu2 %v16424_v58  ;;  %v16392_v56 = vld [vmem:[%s24240_s7 + $0x68] sm:$0xff] }
 0x659   :  { %16677 = vrot.lane.b32.xlu1 %v16676_v32, %s16756_s5  ;;  %16687 = vrot.lane.b32.xlu0 %v16686_v55, %s16756_s5  ;;  %v16401_v55 = vld [vmem:[%s24240_s7 + $0xb0] sm:$0xff]  ;;  %s16759_s5 = smov [#allocation2]  }
 0x65a   :  { %s11383_s6 = sshll.u32 %s16759_s5, 4  ;;  %s11384_s6 = int_to_ptr.vmem [resolvable:$true] %s11383_s6 }
 0x65b   :  { %9677 = vmatpush.bf16.msra.mxu1 %v16394_v1 }
 0x65c   :  { %9400 = vmatpush.bf16.msrb.mxu0 %v16412_v28  ;;  %9431 = vmatpush.bf16.msrb.mxu2 %v16423_v43  ;;  %v24628_v28 = vld [vmem:[#allocation24_spill] sm:$0xff] }
 0x65d   :  { %v24629_v30 = vmax.f32 %v24628_v28, 0.0  ;;  %v16406_v28 = vld [vmem:[%s24240_s7 + $0xd8] sm:$0xff] }
 0x65f   :  { %9678 = vmatpush.bf16.msra.mxu1 %v16393_v6 }
 0x660   :  { %9401 = vmatpush.bf16.msrb.mxu0 %v16411_v29  ;;  %9690 = vmatpush.bf16.msra.mxu2 %v16402_v36 }
 0x663   :  { %9679 = vmatpush.bf16.msra.mxu1 %v16392_v56 }
 0x664   :  { %9402 = vmatpush.bf16.msrb.mxu0 %v16410_v61  ;;  %9691 = vmatpush.bf16.msra.mxu2 %v16401_v55  ;;  %v24631_v61 = vmax.f32 %v24630_v20, 0.0 }
 0x668   :  { %9403 = vmatpush.bf16.msrb.mxu0 %v16409_v17  ;;  %9692 = vmatpush.bf16.msra.mxu2 %v16400_v23  ;;  %v16379_v23 = vld [vmem:[%s24240_s7] sm:$0xff] }
 0x66c   :  { %9404 = vmatpush.bf16.msrb.mxu0 %v16408_v63 }
 0x670   :  { %9405 = vmatpush.bf16.msrb.mxu0 %v16407_v44 }
 0x674   :  { %9664 = vmatpush.bf16.msra.mxu0 %v16386_v59 }
 0x678   :  { %9665 = vmatpush.bf16.msra.mxu0 %v16385_v11 }
 0x67b   :  { %v16653_v22 = vpop.permute.xlu2 %16652 }
 0x67c   :  { %v16655_v52 = vunpack.i.h.bf16 %v16653_v22  ;;  %v16654_v32 = vunpack.i.l.bf16 %v16653_v22  ;;  %9666 = vmatpush.bf16.msra.mxu0 %v16384_v35 }
 0x67e   :  { %v8720_v4 = vsel %vm8718_vm10, %v16654_v32, %v16655_v52 }
 0x67f   :  { %v8752_v57 = vmax.f32 %v24631_v61, %v8720_v4  ;;  %v16382_v4 = vld [vmem:[%s24240_s7 + $0x18] sm:$0xff] }
 0x681   :  { %v23405_v7 = vrot.slane %v8752_v57, 6 }
 0x683   :  { %v16668_v18 = vpop.permute.xlu2 %16667 }
 0x684   :  { %v16669_v60 = vunpack.i.l.bf16 %v16668_v18 }
 0x686   :  { %v8719_v38 = vsel %vm8718_vm10, %v16669_v60, %v16654_v32  ;;  %v16383_v32 = vld [vmem:[%s24240_s7 + $0x20] sm:$0xff] }
 0x687   :  { %v23401_v34 = vmax.f32 %v8654_v0, %v8719_v38  ;;  %9667 = vmatpush.bf16.msra.mxu0 %v16383_v32 }
 0x689   :  { %v8798_v59 = vsel %vm71_vm1, %v23401_v34, %v23405_v7 }
 0x68b   :  { %9668 = vmatpush.bf16.msra.mxu0 %v16382_v4 }
 0x6b3   :  { %v16658_v31 = vpop.permute.xlu0 %16657 }
 0x6b4   :  { %v16659_v27 = vunpack.i.l.bf16 %v16658_v31  ;;  %v16660_v63 = vunpack.i.h.bf16 %v16658_v31 }
 0x6b6   :  { %v8721_v39 = vsel %vm8718_vm10, %v16655_v52, %v16659_v27  ;;  %v8747_v24 = vsel %vm24627_vm12, %v16659_v27, 0.0  ;;  %vm24644_vm12 = vmmov %vm24634_vm3 }
 0x6b7   :  { %v8753_v42 = vmax.f32 %v24629_v30, %v8721_v39  ;;  %v8754_v29 = vmax.f32 %v8657_v46, %v8747_v24  ;;  %v16670_v46 = vunpack.i.h.bf16 %v16668_v18  ;;  %v16432_v18 = vld [vmem:[%s24240_s7 + $0x1a8] sm:$0xff]  ;;  %v16399_v24 = vld [vmem:[%s24240_s7 + $0xa0] sm:$0xff] }
 0x6b8   :  { %9443 = vmatpush.bf16.msrb.mxu3 %v16432_v18  ;;  %9693 = vmatpush.bf16.msra.mxu2 %v16399_v24 }
 0x6b9   :  { %v23395_v25 = vrot.slane %v8753_v42, 4  ;;  %v23397_v17 = vrot.slane %v8754_v29, 2  ;;  %v8725_v0 = vsel %vm8718_vm10, %v16670_v46, %v16660_v63  ;;  %v16390_v42 = vld [vmem:[%s24240_s7 + $0x58] sm:$0xff] }
 0x6bb   :  { %v23403_v53 = vpop.permute.xlu0 %16672  ;;  %v8799_v22 = vsel %vm1846_vm6, %v23397_v17, %v23395_v25 }
 0x6bc   :  { %v16675_v1 = vunpack.i.h.bf16 %v23403_v53  ;;  %v16674_v43 = vunpack.i.l.bf16 %v23403_v53  ;;  %v8800_v36 = vsel %vm24634_vm3, %v8798_v59, %v8799_v22  ;;  %9444 = vmatpush.bf16.msrb.mxu3 %v16431_v41  ;;  %v16381_v53 = vld [vmem:[%s24240_s7 + $0x10] sm:$0xff]  ;;  %9694 = vmatpush.bf16.msra.mxu2 %v16398_v3 }
 0x6bd   :  { %v8801_v55 = vrot.slane %v8800_v36, 2  ;;  %v16405_v22 = vld [vmem:[%s24240_s7 + $0xd0] sm:$0xff]  ;;  %9669 = vmatpush.bf16.msra.mxu0 %v16381_v53 }
 0x6be   :  { %v8723_v39 = vsel %vm8718_vm10, %v16674_v43, %v16675_v1 }
 0x6bf   :  { %v8756_v29 = vmax.f32 %v8659_v48, %v8723_v39  ;;  %v14583_v61 = vrot.slane %v8801_v55, 9 }
 0x6c0   :  { %9707 = vmatpush.bf16.msra.mxu3 %v16406_v28 }
 0x6c3   :  { %v16663_v58 = vpop.permute.xlu1 %16662 }
 0x6c4   :  { %v16665_v44 = vunpack.i.h.bf16 %v16663_v58  ;;  %v16664_v21 = vunpack.i.l.bf16 %v16663_v58  ;;  %v16389_v58 = vld [vmem:[%s24240_s7 + $0x50] sm:$0xff]  ;;  %9708 = vmatpush.bf16.msra.mxu3 %v16405_v22 }
 0x6c6   :  { %v8749_v31 = vsel %vm24633_vm15, %v16665_v44, 0.0  ;;  %v8726_v27 = vsel %vm8718_vm10, %v16660_v63, %v16664_v21  ;;  %v8727_v13 = vsel %vm8718_vm10, %v16664_v21, %v16665_v44  ;;  %v8786_v44 = vrot.slane %v8756_v29, 6  ;;  %vm24645_vm15 = vmmov %vm24643_vm4  ;;  %v16395_v29 = vld [vmem:[%s24240_s7 + $0x80] sm:$0xff] }
 0x6c7   :  { %v8762_v11 = vmax.f32 %v8665_v12, %v8749_v31  ;;  %v8760_v6 = vmax.f32 %v8663_v47, %v8726_v27  ;;  %v8761_v52 = vmax.f32 %v8664_v37, %v8727_v13  ;;  %v23437_v12 = vmax.f32 %v24635_v45, %v8725_v0  ;;  %v16391_v37 = vld [vmem:[%s24240_s7 + $0x60] sm:$0xff]  ;;  %v16397_v27 = vld [vmem:[%s24240_s7 + $0x90] sm:$0xff] }
 0x6c8   :  { %9680 = vmatpush.bf16.msra.mxu1 %v16391_v37  ;;  %v23498_v0 = vmax.f32 %v8801_v55, %v14583_v61  ;;  %9695 = vmatpush.bf16.msra.mxu2 %v16397_v27 }
 0x6c9   :  { %v23439_v49 = vrot.slane %v8762_v11, 2  ;;  %v23441_v47 = vrot.slane %v8760_v6, 6  ;;  %v23443_v54 = vrot.slane %v8761_v52, 4  ;;  %v16404_v6 = vld [vmem:[%s24240_s7 + $0xc8] sm:$0xff]  ;;  %v8796_v52 = vsel %vm24641_vm8, %v23395_v25, %v23397_v17 }
 0x6ca   :  { %v8935_v32 = vperm.slane %v23498_v0, 0  ;;  %v8936_v45 = vperm.slane %v23498_v0, 2  ;;  %9709 = vmatpush.bf16.msra.mxu3 %v16404_v6  ;;  %v8937_v22 = vperm.slane %v23498_v0, 4 }
 0x6cb   :  { %v8825_v35 = vsel %vm67_vm0, %v23437_v12, %v23441_v47  ;;  %v8826_v56 = vsel %vm24636_vm2, %v23443_v54, %v23439_v49  ;;  %v16678_v60 = vpop.permute.xlu1 %16677  ;;  %v8836_v38 = vsel %vm1846_vm6, %v23441_v47, %v23437_v12  ;;  %v8837_v20 = vsel %vm71_vm1, %v23443_v54, %v23439_v49  ;;  %vm24646_vm2 = vmmov %vm24643_vm4 }
 0x6cc   :  { %v8827_v30 = vsel %vm24637_vm9, %v8825_v35, %v8826_v56  ;;  %v23480_v57 = vsel %vm24638_vm14, %v8837_v20, %v8836_v38  ;;  %v16680_v26 = vunpack.i.h.bf16 %v16678_v60  ;;  %v16679_v63 = vunpack.i.l.bf16 %v16678_v60  ;;  %9681 = vmatpush.bf16.msra.mxu1 %v16390_v42  ;;  %v16387_v35 = vld [vmem:[%s24240_s7 + $0x40] sm:$0xff]  ;;  %9696 = vmatpush.bf16.msra.mxu2 %v16396_v9  ;;  %vm24647_vm9 = vmmov %vm24641_vm8 }
 0x6cd   :  { %v14590_v48 = vrot.slane %v8827_v30, 9  ;;  %v8795_v42 = vsel %vm67_vm0, %v23401_v34, %v23405_v7  ;;  %v9045_v61 = vpack.c.bf16 %v8936_v45, %v8935_v32  ;;  %vm24648_vm14 = vmmov %vm24646_vm2 }
 0x6ce   :  { %v8722_v46 = vsel %vm8718_vm10, %v16680_v26, %v16674_v43  ;;  %v8724_v59 = vsel %vm8718_vm10, %v16675_v1, %v16679_v63  ;;  %v8748_v31 = vsel %vm24639_vm5, %v16679_v63, 0.0  ;;  %v16380_v1 = vld [vmem:[%s24240_s7 + $0x8] sm:$0xff]  ;;  %v8797_v38 = vsel %vm24646_vm2, %v8795_v42, %v8796_v52  ;;  %vm24649_vm5 = vmmov %vm24634_vm3 }
 0x6cf   :  { %v8755_v21 = vmax.f32 %v8658_v15, %v8722_v46  ;;  %v8757_v43 = vmax.f32 %v8660_v51, %v8724_v59  ;;  %v23506_v13 = vmax.f32 %v8827_v30, %v14590_v48  ;;  %v8758_v33 = vmax.f32 %v8661_v40, %v8748_v31  ;;  %v16388_v51 = vld [vmem:[%s24240_s7 + $0x48] sm:$0xff]  ;;  %9670 = vmatpush.bf16.msra.mxu0 %v16380_v1  ;;  %v16403_v30 = vld [vmem:[%s24240_s7 + $0xc0] sm:$0xff] }
 0x6d0   :  { %9682 = vmatpush.bf16.msra.mxu1 %v16389_v58  ;;  %v8803_v26 = vsel %vm67_vm0, %v23395_v25, %v23397_v17  ;;  %v8828_v48 = vsel %vm71_vm1, %v23437_v12, %v23441_v47  ;;  %v8829_v63 = vsel %vm1846_vm6, %v23439_v49, %v23443_v54  ;;  %9710 = vmatpush.bf16.msra.mxu3 %v16403_v30  ;;  %v14582_v58 = vrot.slane %v8797_v38, 9 }
 0x6d1   :  { %v8810_v36 = vsel %vm67_vm0, %v8755_v21, %v8786_v44  ;;  %v8813_v10 = vsel %vm71_vm1, %v8755_v21, %v8786_v44  ;;  %v8817_v15 = vsel %vm24640_vm13, %v8755_v21, %v8786_v44  ;;  %v8787_v11 = vrot.slane %v8757_v43, 4  ;;  %9697 = vmatpush.bf16.msra.mxu2 %v16395_v29  ;;  %v16458_v29 = vld [vmem:[%s24240_s7 + $0x278] sm:$0xff] }
 0x6d2   :  { %v8788_v18 = vrot.slane %v8758_v33, 2  ;;  %v8821_v40 = vsel %vm1846_vm6, %v8786_v44, %v8755_v21  ;;  %v8963_v37 = vperm.slane %v23506_v13, 0  ;;  %v8964_v20 = vperm.slane %v23506_v13, 2 }
 0x6d3   :  { %9671 = vmatpush.bf16.msra.mxu0 %v16379_v23  ;;  %v8802_v46 = vsel %vm24647_vm9, %v23401_v34, %v23405_v7  ;;  %v8938_v44 = vperm.slane %v23498_v0, 6  ;;  %v9188_v59 = vunpack.c.l.b16 %v9045_v61  ;;  %v8830_v43 = vsel %vm24649_vm5, %v8828_v48, %v8829_v63 }
 0x6d4   :  { %v8811_v55 = vsel %vm24642_vm11, %v8787_v11, %v8788_v18  ;;  %v8814_v39 = vsel %vm1846_vm6, %v8788_v18, %v8787_v11  ;;  %v8818_v41 = vsel %vm67_vm0, %v8787_v11, %v8788_v18  ;;  %v8822_v24 = vsel %vm71_vm1, %v8787_v11, %v8788_v18  ;;  %9683 = vmatpush.bf16.msra.mxu1 %v16388_v51  ;;  %vm24652_vm11 = vmmov %vm24647_vm9 }
 0x6d5   :  { %v23543_v56 = vsel %vm24643_vm4, %v8810_v36, %v8811_v55  ;;  %v23546_v60 = vsel %vm24644_vm12, %v8813_v10, %v8814_v39  ;;  %v23549_v4 = vsel %vm24645_vm15, %v8818_v41, %v8817_v15  ;;  %v8823_v28 = vsel %vm24634_vm3, %v8822_v24, %v8821_v40  ;;  %v16450_v55 = vld [vmem:[%s24240_s7 + $0x238] sm:$0xff]  ;;  %vm24655_vm15 = vmmov %vm24646_vm2 }
 0x6d6   :  { %v8824_v3 = vrot.slane %v8823_v28, 6  ;;  %v9059_v53 = vpack.c.bf16 %v8964_v20, %v8963_v37  ;;  %v23578_v21 = vsel %vm24648_vm14, %v8803_v26, %v8802_v46  ;;  %v9189_v10 = vunpack.c.h.b16 %v9045_v61  ;;  %vm24658_vm9 = vmmov %vm24649_vm5 }
 0x6d7   :  { %v8965_v1 = vperm.slane %v23506_v13, 4  ;;  %v8805_v33 = vrot.slane %v23578_v21, 4  ;;  %v23583_v51 = vmax.f32 %v8797_v38, %v14582_v58  ;;  %v8966_v0 = vperm.slane %v23506_v13, 6  ;;  %v16447_v21 = vld [vmem:[%s24240_s7 + $0x220] sm:$0xff] }
 0x6d8   :  { %9684 = vmatpush.bf16.msra.mxu1 %v16387_v35  ;;  %v9192_v31 = vunpack.c.l.b16 %v9059_v53  ;;  %v14589_v27 = vrot.slane %v8824_v3, 9  ;;  %v9193_v15 = vunpack.c.h.b16 %v9059_v53  ;;  %v9046_v11 = vpack.c.bf16 %v8938_v44, %v8937_v22  ;;  %v16449_v53 = vld [vmem:[%s24240_s7 + $0x230] sm:$0xff] }
 0x6d9   :  { %v14652_v6 = vunpack.i.l.s16 %v9188_v59  ;;  %v8831_v9 = vrot.slane %v8830_v43, 2  ;;  %vm24650_vm13 = vcmask 1041409   ;;  %v14653_v32 = vunpack.i.l.s16 %v9189_v10 }
 0x6da   :  { %v14656_v36 = vunpack.i.l.s16 %v9192_v31  ;;  %v14657_v18 = vunpack.i.l.s16 %v9193_v15  ;;  %v8910_v40 = vmax.f32 %v8824_v3, %v14589_v27  ;;  %v9060_v37 = vpack.c.bf16 %v8966_v0, %v8965_v1  ;;  %vm24651_vm8 = vmmov %vm24650_vm13  ;;  %v16442_v0 = vld [vmem:[%s24240_s7 + $0x1f8] sm:$0xff] }
 0x6db   :  { %v14584_v39 = vrot.slane %v8805_v33, 9  ;;  %v9190_v13 = vunpack.c.l.b16 %v9046_v11  ;;  %v8931_v24 = vperm.slane %v23583_v51, 0  ;;  %v9191_v28 = vunpack.c.h.b16 %v9046_v11  ;;  %vm24653_vm4 = vmmov %vm24651_vm8  ;;  %v16462_v11 = vld [vmem:[%s24240_s7 + $0x298] sm:$0xff] }
 0x6dc   :  { %v9212_v52 = vrot.slane %v14656_v36, 7  ;;  %v9214_v45 = vrot.slane %v14657_v18, 7  ;;  %v9194_v30 = vunpack.c.l.b16 %v9060_v37  ;;  %v9195_v42 = vunpack.c.h.b16 %v9060_v37  ;;  %vm24654_vm12 = vmmov %vm24653_vm4 }
 0x6dd   :  { %v8832_v38 = vsel %vm24652_vm11, %v23437_v12, %v23441_v47  ;;  %v14591_v20 = vrot.slane %v8831_v9, 9  ;;  %v8932_v26 = vperm.slane %v23583_v51, 2  ;;  %v8833_v3 = vsel %vm67_vm0, %v23443_v54, %v23439_v49  ;;  %v16457_v49 = vld [vmem:[%s24240_s7 + $0x270] sm:$0xff]  ;;  %vm24656_vm3 = vmmov %vm24653_vm4 }
 0x6de   :  { %v9213_v23 = vsel %vm24650_vm13, %v9212_v52, %v14652_v6  ;;  %v9215_v35 = vsel %vm24651_vm8, %v9214_v45, %v14653_v32  ;;  %v14658_v48 = vunpack.i.l.s16 %v9194_v30  ;;  %v14659_v63 = vunpack.i.l.s16 %v9195_v42  ;;  %v16456_v32 = vld [vmem:[%s24240_s7 + $0x268] sm:$0xff]  ;;  %vm24657_vm2 = vmmov %vm24656_vm3 }
 0x6df   :  { %v9220_v41 = vpack.c.b16 %v9213_v23, %v9213_v23  ;;  %v9221_v61 = vpack.c.b16 %v9215_v35, %v9215_v35  ;;  %v8959_v46 = vperm.slane %v8910_v40, 0  ;;  %v14654_v58 = vunpack.i.l.s16 %v9190_v13  ;;  %v16441_v35 = vld [vmem:[%s24240_s7 + $0x1f0] sm:$0xff]  ;;  %vm24659_vm14 = vmmov %vm24657_vm2 }
 0x6e0   :  { %v14655_v12 = vunpack.i.l.s16 %v9191_v28  ;;  %v8960_v47 = vperm.slane %v8910_v40, 2  ;;  %v9043_v22 = vpack.c.bf16 %v8932_v26, %v8931_v24  ;;  %v9216_v44 = vrot.slane %v14658_v48, 7  ;;  %v16461_v28 = vld [vmem:[%s24240_s7 + $0x290] sm:$0xff]  ;;  %vm24660_vm5 = vmmov %vm24657_vm2 }
 0x6e1   :  { %9406 = vmatmul.bf16.vlgmr.msrb.gmra.mxu0 %v9220_v41  ;;  %9419 = vmatmul.bf16.vlgmr.msrb.gmra.mxu1 %v9221_v61  ;;  %v9218_v59 = vrot.slane %v14659_v63, 7  ;;  %v8961_v54 = vperm.slane %v8910_v40, 4  ;;  %v8962_v31 = vperm.slane %v8910_v40, 6  ;;  %v23610_v43 = vmax.f32 %v8831_v9, %v14591_v20  ;;  %v16455_v20 = vld [vmem:[%s24240_s7 + $0x260] sm:$0xff]  ;;  %vm24661_vm13 = vmmov %vm24657_vm2 }
 0x6e2   :  { %10000 = vmatpush.bf16.msrb.mxu0 %v16450_v55  ;;  %10013 = vmatpush.bf16.msrb.mxu1 %v16458_v29  ;;  %v9057_v27 = vpack.c.bf16 %v8960_v47, %v8959_v46  ;;  %v8933_v36 = vperm.slane %v23583_v51, 4  ;;  %v8934_v10 = vperm.slane %v23583_v51, 6  ;;  %v9217_v15 = vsel %vm24653_vm4, %v9216_v44, %v14654_v58  ;;  %v16448_v51 = vld [vmem:[%s24240_s7 + $0x228] sm:$0xff]  ;;  %vm24662_vm8 = vmmov %vm24657_vm2 }
 0x6e3   :  { %v9219_v1 = vsel %vm24654_vm12, %v9218_v59, %v14655_v12  ;;  %v9454_v6 = vunpack.c.l.b16 %v9043_v22  ;;  %v9058_v52 = vpack.c.bf16 %v8962_v31, %v8961_v54  ;;  %v9222_v18 = vpack.c.b16 %v9217_v15, %v9217_v15  ;;  %v16440_v46 = vld [vmem:[%s24240_s7 + $0x1e8] sm:$0xff]  ;;  %v16446_v59 = vld [vmem:[%s24240_s7 + $0x218] sm:$0xff]  ;;  %vm24663_vm11 = vmmov %vm24657_vm2 }
 0x6e4   :  { %v9223_v9 = vpack.c.b16 %v9219_v1, %v9219_v1  ;;  %v9458_v40 = vunpack.c.l.b16 %v9057_v27  ;;  %v9455_v23 = vunpack.c.h.b16 %v9043_v22  ;;  %v9459_v45 = vunpack.c.h.b16 %v9057_v27  ;;  %v16460_v58 = vld [vmem:[%s24240_s7 + $0x288] sm:$0xff]  ;;  %vm24664_vm4 = vmmov %vm24657_vm2 }
 0x6e5   :  { %9432 = vmatmul.bf16.vlgmr.msrb.gmra.mxu2 %v9222_v18  ;;  %v9460_v55 = vunpack.c.l.b16 %v9058_v52  ;;  %v9461_v41 = vunpack.c.h.b16 %v9058_v52  ;;  %v23631_v13 = vmax.f32 %v8805_v33, %v14584_v39  ;;  %v23634_v24 = vsel %vm24655_vm15, %v8833_v3, %v8832_v38  ;;  %v16439_v18 = vld [vmem:[%s24240_s7 + $0x1e0] sm:$0xff]  ;;  %vm24665_vm12 = vmmov %vm24657_vm2 }
 0x6e6   :  { %10001 = vmatpush.bf16.msrb.mxu0 %v16449_v53  ;;  %10014 = vmatpush.bf16.msrb.mxu1 %v16457_v49  ;;  %v14777_v37 = vunpack.i.l.s16 %v9458_v40  ;;  %v14778_v30 = vunpack.i.l.s16 %v9459_v45  ;;  %v9044_v42 = vpack.c.bf16 %v8934_v10, %v8933_v36  ;;  %v14773_v33 = vunpack.i.l.s16 %v9454_v6  ;;  %v16454_v36 = vld [vmem:[%s24240_s7 + $0x258] sm:$0xff]  ;;  %vm24666_vm15 = vmmov %vm24657_vm2 }
 0x6e7   :  { %14772 = vmatmul.msk.bf16.vlgmr.msrb.gmra.mxu3 %vm4078_vm7, %v9223_v9  ;;  %10030 = vmatpush.bf16.msrb.mxu2 %v16462_v11  ;;  %v14774_v29 = vunpack.i.l.s16 %v9455_v23  ;;  %v8967_v38 = vperm.slane %v23610_v43, 0  ;;  %v14779_v26 = vunpack.i.l.s16 %v9460_v55  ;;  %v14780_v3 = vunpack.i.l.s16 %v9461_v41  ;;  %v16459_v9 = vld [vmem:[%s24240_s7 + $0x280] sm:$0xff] }
 0x6e8   :  { %9987 = vmatpush.bf16.msrb.mxu3 %v16442_v0  ;;  %v9478_v39 = vrot.slane %v14777_v37, 7  ;;  %v9480_v61 = vrot.slane %v14778_v30, 7  ;;  %v8968_v48 = vperm.slane %v23610_v43, 2  ;;  %v8807_v63 = vsel %vm71_vm1, %v23395_v25, %v23397_v17  ;;  %v16453_v37 = vld [vmem:[%s24240_s7 + $0x250] sm:$0xff] }
 0x6e9   :  { %v9456_v47 = vunpack.c.l.b16 %v9044_v42  ;;  %v9457_v22 = vunpack.c.h.b16 %v9044_v42  ;;  %v8835_v25 = vrot.slane %v23634_v24, 4  ;;  %v8939_v49 = vperm.slane %v23631_v13, 0 }
 0x6ea   :  { %10002 = vmatpush.bf16.msrb.mxu0 %v16448_v51  ;;  %10015 = vmatpush.bf16.msrb.mxu1 %v16456_v32  ;;  %v9479_v53 = vsel %vm24656_vm3, %v9478_v39, %v14773_v33  ;;  %v9481_v12 = vsel %vm24657_vm2, %v9480_v61, %v14774_v29  ;;  %v23661_v44 = vpack.c.bf16 %v8968_v48, %v8967_v38  ;;  %v8940_v54 = vperm.slane %v23631_v13, 2  ;;  %v16444_v39 = vld [vmem:[%s24240_s7 + $0x208] sm:$0xff] }
 0x6eb   :  { %10031 = vmatpush.bf16.msrb.mxu2 %v16461_v28  ;;  %v9486_v17 = vpack.c.b16 %v9479_v53, %v9479_v53  ;;  %v9482_v31 = vrot.slane %v14779_v26, 7  ;;  %v9484_v27 = vrot.slane %v14780_v3, 7  ;;  %v8941_v10 = vperm.slane %v23631_v13, 4  ;;  %v16470_v28 = vld [vmem:[%s24240_s7 + $0x2d8] sm:$0xff]  ;;  %v16452_v38 = vld [vmem:[%s24240_s7 + $0x248] sm:$0xff]  ;;  %v16469_v53 = vld [vmem:[%s24240_s7 + $0x2d0] sm:$0xff] }
 0x6ec   :  { %9988 = vmatpush.bf16.msrb.mxu3 %v16441_v35  ;;  %v8942_v15 = vperm.slane %v23631_v13, 6  ;;  %v8806_v1 = vsel %vm1846_vm6, %v23405_v7, %v23401_v34  ;;  %v9487_v0 = vpack.c.b16 %v9481_v12, %v9481_v12  ;;  %v8969_v11 = vperm.slane %v23610_v43, 4  ;;  %v16438_v35 = vld [vmem:[%s24240_s7 + $0x1d8] sm:$0xff] }
 0x6ed   :  { %v8970_v6 = vperm.slane %v23610_v43, 6  ;;  %v8808_v52 = vsel %vm24658_vm9, %v8807_v63, %v8806_v1  ;;  %v14775_v51 = vunpack.i.l.s16 %v9456_v47  ;;  %v14776_v34 = vunpack.i.l.s16 %v9457_v22  ;;  %v16445_v43 = vld [vmem:[%s24240_s7 + $0x210] sm:$0xff]  ;;  %v16443_v22 = vld [vmem:[%s24240_s7 + $0x200] sm:$0xff]  ;;  %vm24668_vm9 = vmmov %vm24657_vm2 }
 0x6ee   :  { %10003 = vmatpush.bf16.msrb.mxu0 %v16447_v21  ;;  %10016 = vmatpush.bf16.msrb.mxu1 %v16455_v20  ;;  %v9782_v7 = vunpack.c.h.b16 %v23661_v44  ;;  %v14592_v40 = vrot.slane %v8835_v25, 9  ;;  %v23695_v55 = vpack.c.bf16 %v8940_v54, %v8939_v49  ;;  %v23697_v41 = vpack.c.bf16 %v8942_v15, %v8941_v10  ;;  %v16437_v63 = vld [vmem:[%s24240_s7 + $0x1d0] sm:$0xff]  ;;  %v16468_v10 = vld [vmem:[%s24240_s7 + $0x2c8] sm:$0xff] }
 0x6ef   :  { %10032 = vmatpush.bf16.msrb.mxu2 %v16460_v58  ;;  %v9062_v23 = vpack.c.bf16 %v8970_v6, %v8969_v11  ;;  %v9483_v32 = vsel %vm24659_vm14, %v9482_v31, %v14775_v51  ;;  %v9485_v45 = vsel %vm24660_vm5, %v9484_v27, %v14776_v34  ;;  %v8809_v13 = vrot.slane %v8808_v52, 6  ;;  %v16490_v27 = vld [vmem:[%s24240_s7 + $0x378] sm:$0xff]  ;;  %v16485_v34 = vld [vmem:[%s24240_s7 + $0x350] sm:$0xff]  ;;  %vm24669_vm14 = vmmov %vm24657_vm2 }
 0x6f0   :  { %9989 = vmatpush.bf16.msrb.mxu3 %v16440_v46  ;;  %v14955_v30 = vunpack.i.l.s16 %v9782_v7  ;;  %v23705_v42 = vmax.f32 %v8835_v25, %v14592_v40  ;;  %v9488_v21 = vpack.c.b16 %v9483_v32, %v9483_v32  ;;  %v9489_v33 = vpack.c.b16 %v9485_v45, %v9485_v45  ;;  %v16486_v25 = vld [vmem:[%s24240_s7 + $0x358] sm:$0xff]  ;;  %v16489_v32 = vld [vmem:[%s24240_s7 + $0x370] sm:$0xff]  ;;  %v16435_v45 = vld [vmem:[%s24240_s7 + $0x1c0] sm:$0xff] }
 0x6f1   :  { %9672 = vmatmul.bf16.vlgmr.msra.gmra.mxu0 %v9486_v17  ;;  %9685 = vmatmul.bf16.vlgmr.msra.gmra.mxu1 %v9487_v0  ;;  %v9783_v24 = vunpack.c.l.b16 %v9062_v23  ;;  %v9781_v20 = vunpack.c.l.b16 %v23661_v44  ;;  %v9778_v61 = vunpack.c.h.b16 %v23695_v55  ;;  %v9779_v26 = vunpack.c.l.b16 %v23697_v41  ;;  %v16451_v44 = vld [vmem:[%s24240_s7 + $0x240] sm:$0xff]  ;;  %vm24670_vm5 = vmmov %vm24657_vm2 }
 0x6f2   :  { %10004 = vmatpush.bf16.msrb.mxu0 %v16446_v59  ;;  %10017 = vmatpush.bf16.msrb.mxu1 %v16454_v36  ;;  %v9784_v3 = vunpack.c.h.b16 %v9062_v23  ;;  %v14585_v48 = vrot.slane %v8809_v13, 9  ;;  %v9803_v46 = vrot.slane %v14955_v30, 7  ;;  %v8973_v12 = vperm.slane %v23705_v42, 4  ;;  %v16436_v36 = vld [vmem:[%s24240_s7 + $0x1c8] sm:$0xff] }
 0x6f3   :  { %10033 = vmatpush.bf16.msrb.mxu2 %v16459_v9  ;;  %v14956_v29 = vunpack.i.l.s16 %v9783_v24  ;;  %v8974_v47 = vperm.slane %v23705_v42, 6  ;;  %v14954_v17 = vunpack.i.l.s16 %v9781_v20  ;;  %v14951_v59 = vunpack.i.l.s16 %v9778_v61 }
 0x6f4   :  { %9990 = vmatpush.bf16.msrb.mxu3 %v16439_v18  ;;  %v14952_v49 = vunpack.i.l.s16 %v9779_v26  ;;  %v14957_v54 = vunpack.i.l.s16 %v9784_v3  ;;  %v8906_v31 = vmax.f32 %v8809_v13, %v14585_v48  ;;  %v9777_v15 = vunpack.c.l.b16 %v23695_v55  ;;  %v16478_v13 = vld [vmem:[%s24240_s7 + $0x318] sm:$0xff]  ;;  %v16477_v26 = vld [vmem:[%s24240_s7 + $0x310] sm:$0xff] }
 0x6f5   :  { %9698 = vmatmul.bf16.vlgmr.msra.gmra.mxu2 %v9488_v21  ;;  %v9805_v58 = vrot.slane %v14956_v29, 7  ;;  %v9804_v1 = vsel %vm24661_vm13, %v9803_v46, %v14951_v59  ;;  %v9780_v0 = vunpack.c.h.b16 %v23697_v41  ;;  %v8971_v6 = vperm.slane %v23705_v42, 0  ;;  %v16484_v21 = vld [vmem:[%s24240_s7 + $0x348] sm:$0xff]  ;;  %v16483_v46 = vld [vmem:[%s24240_s7 + $0x340] sm:$0xff] }
 0x6f6   :  { %10005 = vmatpush.bf16.msrb.mxu0 %v16445_v43  ;;  %10018 = vmatpush.bf16.msrb.mxu1 %v16453_v37  ;;  %v8972_v52 = vperm.slane %v23705_v42, 2  ;;  %v23749_v18 = vpack.c.bf16 %v8974_v47, %v8973_v12  ;;  %v9801_v9 = vrot.slane %v14954_v17, 7  ;;  %v9807_v51 = vrot.slane %v14957_v54, 7  ;;  %v16467_v37 = vld [vmem:[%s24240_s7 + $0x2c0] sm:$0xff]  ;;  %v16465_v47 = vld [vmem:[%s24240_s7 + $0x2b0] sm:$0xff] }
 0x6f7   :  { %14893 = vmatmul.msk.bf16.vlgmr.msra.gmra.mxu3 %vm4078_vm7, %v9489_v33  ;;  %10311 = vmatpush.bf16.msra.mxu2 %v16470_v28  ;;  %v9806_v11 = vsel %vm24662_vm8, %v9805_v58, %v14952_v49  ;;  %v8945_v7 = vperm.slane %v8906_v31, 4  ;;  %v8946_v40 = vperm.slane %v8906_v31, 6  ;;  %v9810_v43 = vpack.c.b16 %v9804_v1, %v9804_v1  ;;  %v23807_v49 = vpop.permute.xlu2 %16682  ;;  %v16464_v1 = vld [vmem:[%s24240_s7 + $0x2a8] sm:$0xff] }
 0x6f8   :  { %9991 = vmatpush.bf16.msrb.mxu3 %v16438_v35  ;;  %v9811_v23 = vpack.c.b16 %v9806_v11, %v9806_v11  ;;  %v14950_v55 = vunpack.i.l.s16 %v9777_v15  ;;  %v14953_v41 = vunpack.i.l.s16 %v9780_v0  ;;  %v23766_v24 = vpack.c.bf16 %v8972_v52, %v8971_v6  ;;  %v16475_v6 = vld [vmem:[%s24240_s7 + $0x300] sm:$0xff]  ;;  %v16497_v52 = vld [vmem:[%s24240_s7 + $0x3b0] sm:$0xff] }
 0x6f9   :  { %v10108_v35 = vunpack.c.h.b16 %v23749_v18  ;;  %v8839_v28 = vrot.slane %v23480_v57, 6  ;;  %v8943_v33 = vperm.slane %v8906_v31, 0  ;;  %v23775_v29 = vpack.c.bf16 %v8946_v40, %v8945_v7  ;;  %v16466_v57 = vld [vmem:[%s24240_s7 + $0x2b8] sm:$0xff] }
 0x6fa   :  { %10006 = vmatpush.bf16.msrb.mxu0 %v16444_v39  ;;  %10019 = vmatpush.bf16.msrb.mxu1 %v16452_v38  ;;  %v9802_v30 = vsel %vm24663_vm11, %v9801_v9, %v14950_v55  ;;  %v9808_v42 = vsel %vm24664_vm4, %v9807_v51, %v14953_v41  ;;  %v8944_v39 = vperm.slane %v8906_v31, 2  ;;  %v16488_v38 = vld [vmem:[%s24240_s7 + $0x368] sm:$0xff]  ;;  %v10105_v3 = vunpack.c.l.b16 %v23766_v24  ;;  %v16463_v41 = vld [vmem:[%s24240_s7 + $0x2a0] sm:$0xff]  ;;  %vm24674_vm11 = vmmov %vm24657_vm2 }
 0x6fb   :  { %10312 = vmatpush.bf16.msra.mxu2 %v16469_v53  ;;  %v9809_v20 = vpack.c.b16 %v9802_v30, %v9802_v30  ;;  %v9812_v61 = vpack.c.b16 %v9808_v42, %v9808_v42  ;;  %v15134_v48 = vunpack.i.l.s16 %v10108_v35  ;;  %v14586_v53 = vrot.slane %v23543_v56, 9  ;;  %v16474_v30 = vld [vmem:[%s24240_s7 + $0x2f8] sm:$0xff] }
 0x6fc   :  { %9992 = vmatpush.bf16.msrb.mxu3 %v16437_v63  ;;  %v14593_v63 = vrot.slane %v8839_v28, 9  ;;  %v23792_v58 = vpack.c.bf16 %v8944_v39, %v8943_v33  ;;  %v10104_v12 = vunpack.c.h.b16 %v23775_v29  ;;  %v15131_v17 = vunpack.i.l.s16 %v10105_v3  ;;  %v16506_v42 = vld [vmem:[%s24240_s7 + $0x3f8] sm:$0xff] }
 0x6fd   :  { %v10131_v59 = vrot.slane %v15134_v48, 7  ;;  %v8907_v31 = vmax.f32 %v23543_v56, %v14586_v53  ;;  %v10107_v0 = vunpack.c.l.b16 %v23749_v18  ;;  %v16685_v56 = vunpack.i.h.bf16 %v23807_v49  ;;  %v16481_v18 = vld [vmem:[%s24240_s7 + $0x330] sm:$0xff] }
 0x6fe   :  { %10007 = vmatpush.bf16.msrb.mxu0 %v16443_v22  ;;  %10020 = vmatpush.bf16.msrb.mxu1 %v16451_v44  ;;  %v16487_v22 = vld [vmem:[%s24240_s7 + $0x360] sm:$0xff]  ;;  %v16476_v44 = vld [vmem:[%s24240_s7 + $0x308] sm:$0xff]  ;;  %v8914_v54 = vmax.f32 %v8839_v28, %v14593_v63  ;;  %v15130_v15 = vunpack.i.l.s16 %v10104_v12  ;;  %v10125_v9 = vrot.slane %v15131_v17, 7  ;;  %vm24667_vm3 = vcmask 261120  }
 0x6ff   :  { %10313 = vmatpush.bf16.msra.mxu2 %v16468_v10  ;;  %v10101_v10 = vunpack.c.l.b16 %v23792_v58  ;;  %v8947_v7 = vperm.slane %v8907_v31, 0  ;;  %v8948_v40 = vperm.slane %v8907_v31, 2  ;;  %v8950_v55 = vperm.slane %v8907_v31, 6 }
 0x700   :  { %9993 = vmatpush.bf16.msrb.mxu3 %v16436_v36  ;;  %v16482_v36 = vld [vmem:[%s24240_s7 + $0x338] sm:$0xff]  ;;  %v10132_v51 = vsel %vm24665_vm12, %v10131_v59, %v15130_v15  ;;  %v15133_v35 = vunpack.i.l.s16 %v10107_v0  ;;  %v10106_v3 = vunpack.c.h.b16 %v23766_v24  ;;  %v10103_v48 = vunpack.c.l.b16 %v23775_v29  ;;  %v16505_v24 = vld [vmem:[%s24240_s7 + $0x3f0] sm:$0xff] }
 0x701   :  { %10008 = vmatmul.bf16.vlgmr.msrb.gmra.mxu0 %v9810_v43  ;;  %10021 = vmatmul.bf16.vlgmr.msrb.gmra.mxu1 %v9811_v23  ;;  %v8975_v43 = vperm.slane %v8914_v54, 0  ;;  %v8978_v23 = vperm.slane %v8914_v54, 6  ;;  %v9051_v28 = vpack.c.bf16 %v8948_v40, %v8947_v7  ;;  %v16518_v0 = vld [vmem:[%s24240_s7 + $0x458] sm:$0xff]  ;;  %v16472_v7 = vld [vmem:[%s24240_s7 + $0x2e8] sm:$0xff]  ;;  %v10102_v2 = vunpack.c.h.b16 %v23792_v58 }
 0x702   :  { %10337 = vmatpush.bf16.msra.mxu0 %v16486_v25  ;;  %10354 = vmatpush.bf16.msra.mxu1 %v16490_v27  ;;  %v16498_v25 = vld [vmem:[%s24240_s7 + $0x3b8] sm:$0xff]  ;;  %v23810_v27 = vpop.permute.xlu0 %16687  ;;  %v10129_v12 = vrot.slane %v15133_v35, 7  ;;  %v16504_v40 = vld [vmem:[%s24240_s7 + $0x3e8] sm:$0xff]  ;;  %v16471_v35 = vld [vmem:[%s24240_s7 + $0x2e0] sm:$0xff]  ;;  %vm24672_vm13 = vcmask 1045508   ;;  %vm24673_vm8 = vcmask 1043456  }
 0x703   :  { %10314 = vmatpush.bf16.msra.mxu2 %v16467_v37  ;;  %v16689_v11 = vunpack.i.l.bf16 %v23810_v27  ;;  %v8976_v37 = vperm.slane %v8914_v54, 2 }
 0x704   :  { %9994 = vmatpush.bf16.msrb.mxu3 %v16435_v45  ;;  %v15127_v45 = vunpack.i.l.s16 %v10101_v10  ;;  %v16479_v10 = vld [vmem:[%s24240_s7 + $0x320] sm:$0xff] }
 0x705   :  { %15070 = vmatmul.msk.bf16.vlgmr.msrb.gmra.mxu2 %vm4078_vm7, %v9812_v61  ;;  %v9065_v33 = vpack.c.bf16 %v8976_v37, %v8975_v43  ;;  %v8730_v39 = vsel %vm8718_vm10, %v16685_v56, %v16689_v11  ;;  %v10425_v61 = vunpack.c.l.b16 %v9051_v28 }
 0x706   :  { %10338 = vmatpush.bf16.msra.mxu0 %v16485_v34  ;;  %10355 = vmatpush.bf16.msra.mxu1 %v16489_v32  ;;  %v8977_v34 = vperm.slane %v8914_v54, 4  ;;  %v8949_v32 = vperm.slane %v8907_v31, 4  ;;  %v16684_v54 = vunpack.i.l.bf16 %v23807_v49  ;;  %v16690_v31 = vunpack.i.h.bf16 %v23810_v27 }
 0x707   :  { %9995 = vmatmul.bf16.vlgmr.msrb.gmra.mxu3 %v9809_v20  ;;  %10315 = vmatpush.bf16.msra.mxu2 %v16466_v57  ;;  %v8750_v57 = vsel %vm24667_vm3, %v16689_v11, 0.0  ;;  %v16480_v20 = vld [vmem:[%s24240_s7 + $0x328] sm:$0xff]  ;;  %v10429_v63 = vunpack.c.l.b16 %v9065_v33  ;;  %v10430_v53 = vunpack.c.h.b16 %v9065_v33  ;;  %v15304_v29 = vunpack.i.l.s16 %v10425_v61 }
 0x708   :  { %10324 = vmatpush.bf16.msra.mxu3 %v16478_v13  ;;  %v10136_v13 = vpack.c.b16 %v10132_v51, %v10132_v51  ;;  %v15132_v27 = vunpack.i.l.s16 %v10106_v3  ;;  %v15129_v11 = vunpack.i.l.s16 %v10103_v48  ;;  %v23884_v51 = vmax.f32 %v8669_v16, %v8750_v57  ;;  %v16516_v33 = vld [vmem:[%s24240_s7 + $0x448] sm:$0xff]  ;;  %v16513_v3 = vld [vmem:[%s24240_s7 + $0x430] sm:$0xff] }
 0x709   :  { %v15309_v59 = vunpack.i.l.s16 %v10430_v53  ;;  %v8729_v43 = vsel %vm8718_vm10, %v16684_v54, %v16685_v56  ;;  %v8728_v37 = vsel %vm8718_vm10, %v16690_v31, %v16684_v54  ;;  %vm24671_vm10 = vmmov %vm24657_vm2  ;;  %v16492_v48 = vld [vmem:[%s24240_s7 + $0x388] sm:$0xff]  ;;  %v16515_v53 = vld [vmem:[%s24240_s7 + $0x440] sm:$0xff] }
 0x70a   :  { %10339 = vmatpush.bf16.msra.mxu0 %v16484_v21  ;;  %10356 = vmatpush.bf16.msra.mxu1 %v16488_v38  ;;  %v10126_v21 = vsel %vm24666_vm15, %v10125_v9, %v15127_v45  ;;  %v16496_v38 = vld [vmem:[%s24240_s7 + $0x3a8] sm:$0xff]  ;;  %v23880_v9 = vmax.f32 %v8668_v5, %v8730_v39  ;;  %v10130_v5 = vsel %vm24657_vm2, %v10129_v12, %v15129_v11  ;;  %v10127_v58 = vrot.slane %v15132_v27, 7  ;;  %v16517_v45 = vld [vmem:[%s24240_s7 + $0x450] sm:$0xff]  ;;  %v16499_v11 = vld [vmem:[%s24240_s7 + $0x3c0] sm:$0xff] }
 0x70b   :  { %10316 = vmatpush.bf16.msra.mxu2 %v16465_v47  ;;  %v23855_v47 = vpack.c.bf16 %v8950_v55, %v8949_v32  ;;  %v10135_v55 = vpack.c.b16 %v10130_v5, %v10130_v5  ;;  %v23915_v56 = vmax.f32 %v8667_v19, %v8729_v43  ;;  %v16493_v19 = vld [vmem:[%s24240_s7 + $0x390] sm:$0xff]  ;;  %v16500_v31 = vld [vmem:[%s24240_s7 + $0x3c8] sm:$0xff] }
 0x70c   :  { %10325 = vmatpush.bf16.msra.mxu3 %v16477_v26  ;;  %v10426_v26 = vunpack.c.h.b16 %v9051_v28  ;;  %v16503_v28 = vld [vmem:[%s24240_s7 + $0x3e0] sm:$0xff]  ;;  %v16525_v54 = vld [vmem:[%s24240_s7 + $0x490] sm:$0xff]  ;;  %v16524_v27 = vld [vmem:[%s24240_s7 + $0x488] sm:$0xff] }
 0x70d   :  { %v10428_v15 = vunpack.c.h.b16 %v23855_v47  ;;  %v10427_v39 = vunpack.c.l.b16 %v23855_v47  ;;  %v16526_v47 = vld [vmem:[%s24240_s7 + $0x498] sm:$0xff]  ;;  %v16541_v43 = vld [vmem:[%s24240_s7 + $0x510] sm:$0xff] }
 0x70e   :  { %10340 = vmatpush.bf16.msra.mxu0 %v16483_v46  ;;  %10357 = vmatpush.bf16.msra.mxu1 %v16487_v22  ;;  %v10133_v46 = vpack.c.b16 %v10126_v21, %v10126_v21  ;;  %v23857_v22 = vpack.c.bf16 %v8978_v23, %v8977_v34  ;;  %v15305_v17 = vunpack.i.l.s16 %v10426_v26  ;;  %v16494_v23 = vld [vmem:[%s24240_s7 + $0x398] sm:$0xff] }
 0x70f   :  { %10317 = vmatpush.bf16.msra.mxu2 %v16464_v1  ;;  %v15307_v34 = vunpack.i.l.s16 %v10428_v15 }
 0x710   :  { %10326 = vmatpush.bf16.msra.mxu3 %v16476_v44  ;;  %v16473_v44 = vld [vmem:[%s24240_s7 + $0x2f0] sm:$0xff]  ;;  %v10432_v1 = vunpack.c.h.b16 %v23857_v22  ;;  %v10431_v57 = vunpack.c.l.b16 %v23857_v22 }
 0x711   :  { %15247 = vmatmul.msk.bf16.vlgmr.msra.gmra.mxu1 %vm4078_vm7, %v10136_v13  ;;  %v8794_v13 = vrot.slane %v23884_v51, 2  ;;  %v16501_v22 = vld [vmem:[%s24240_s7 + $0x3d0] sm:$0xff]  ;;  %v16540_v51 = vld [vmem:[%s24240_s7 + $0x508] sm:$0xff] }
 0x712   :  { %10635 = vmatpush.bf16.msrb.mxu1 %v16498_v25  ;;  %10341 = vmatpush.bf16.msra.mxu0 %v16482_v36  ;;  %v15308_v25 = vunpack.i.l.s16 %v10429_v63  ;;  %v16495_v36 = vld [vmem:[%s24240_s7 + $0x3a0] sm:$0xff]  ;;  %v15310_v61 = vunpack.i.l.s16 %v10431_v57 }
 0x713   :  { %10318 = vmatpush.bf16.msra.mxu2 %v16463_v41  ;;  %v8793_v41 = vrot.slane %v23880_v9, 4  ;;  %v16508_v9 = vld [vmem:[%s24240_s7 + $0x408] sm:$0xff] }
 0x714   :  { %10327 = vmatpush.bf16.msra.mxu3 %v16475_v6  ;;  %v10449_v6 = vrot.slane %v15308_v25, 7  ;;  %v8816_v25 = vrot.slane %v23546_v60, 2  ;;  %v16511_v60 = vld [vmem:[%s24240_s7 + $0x420] sm:$0xff] }
 0x715   :  { %v8841_v62 = vsel %vm24672_vm13, %v8793_v41, %v8794_v13 }
 0x716   :  { %10636 = vmatpush.bf16.msrb.mxu1 %v16497_v52  ;;  %10342 = vmatpush.bf16.msra.mxu0 %v16481_v18  ;;  %v10451_v52 = vrot.slane %v15309_v59, 7  ;;  %v15311_v18 = vunpack.i.l.s16 %v10432_v1  ;;  %v23895_v14 = vsel %vm24668_vm9, %v10449_v6, %v15304_v29  ;;  %v16491_v29 = vld [vmem:[%s24240_s7 + $0x380] sm:$0xff]  ;;  %v16534_v59 = vld [vmem:[%s24240_s7 + $0x4d8] sm:$0xff]  ;;  %v16533_v1 = vld [vmem:[%s24240_s7 + $0x4d0] sm:$0xff] }
 0x717   :  { %10648 = vmatpush.bf16.msrb.mxu2 %v16506_v42  ;;  %v23933_v42 = vmax.f32 %v8666_v8, %v8728_v37  ;;  %v16502_v8 = vld [vmem:[%s24240_s7 + $0x3d8] sm:$0xff]  ;;  %v10457_v15 = vpack.c.b16 %v23895_v14, %v23895_v14  ;;  %v16509_v14 = vld [vmem:[%s24240_s7 + $0x410] sm:$0xff] }
 0x718   :  { %10328 = vmatpush.bf16.msra.mxu3 %v16474_v30  ;;  %10319 = vmatmul.bf16.vlgmr.msra.gmra.mxu2 %v10133_v46  ;;  %v23898_v16 = vsel %vm24669_vm14, %v10451_v52, %v15305_v17  ;;  %v10455_v32 = vrot.slane %v15311_v18, 7  ;;  %v15128_v30 = vunpack.i.l.s16 %v10102_v2  ;;  %v10453_v46 = vrot.slane %v15310_v61, 7  ;;  %v16510_v6 = vld [vmem:[%s24240_s7 + $0x418] sm:$0xff]  ;;  %v16523_v2 = vld [vmem:[%s24240_s7 + $0x480] sm:$0xff] }
 0x719   :  { %v16542_v52 = vld [vmem:[%s24240_s7 + $0x518] sm:$0xff]  ;;  %v10458_v5 = vpack.c.b16 %v23898_v16, %v23898_v16  ;;  %v8844_v16 = vsel %vm1846_vm6, %v8794_v13, %v8793_v41 }
 0x71a   :  { %10637 = vmatpush.bf16.msrb.mxu1 %v16496_v38  ;;  %10343 = vmatpush.bf16.msra.mxu0 %v16480_v20  ;;  %v23911_v49 = vsel %vm24670_vm5, %v10455_v32, %v15307_v34  ;;  %v10128_v21 = vsel %vm24671_vm10, %v10127_v58, %v15128_v30  ;;  %v8792_v38 = vrot.slane %v23915_v56, 6  ;;  %v15306_v20 = vunpack.i.l.s16 %v10427_v39  ;;  %v16522_v37 = vld [vmem:[%s24240_s7 + $0x478] sm:$0xff]  ;;  %v16529_v39 = vld [vmem:[%s24240_s7 + $0x4b0] sm:$0xff] }
 0x71b   :  { %10649 = vmatpush.bf16.msrb.mxu2 %v16505_v24  ;;  %v10134_v26 = vpack.c.b16 %v10128_v21, %v10128_v21  ;;  %v16512_v24 = vld [vmem:[%s24240_s7 + $0x428] sm:$0xff]  ;;  %v16530_v56 = vld [vmem:[%s24240_s7 + $0x4b8] sm:$0xff]  ;;  %v16539_v21 = vld [vmem:[%s24240_s7 + $0x500] sm:$0xff]  ;;  %vm11364_vm5 = vcmask 74752  }
 0x71c   :  { %10329 = vmatpush.bf16.msra.mxu3 %v16473_v44  ;;  %v8840_v63 = vsel %vm67_vm0, %v23933_v42, %v8792_v38  ;;  %v23971_v44 = vsel %vm24674_vm11, %v10453_v46, %v15306_v20  ;;  %vm24675_vm0 = vcmask 1045506   ;;  %v16520_v20 = vld [vmem:[%s24240_s7 + $0x468] sm:$0xff]  ;;  %v16545_v46 = vld [vmem:[%s24240_s7 + $0x530] sm:$0xff] }
 0x71d   :  { %v8842_v12 = vsel %vm24673_vm8, %v8840_v63, %v8841_v62  ;;  %v10459_v63 = vpack.c.b16 %v23971_v44, %v23971_v44  ;;  %v16519_v44 = vld [vmem:[%s24240_s7 + $0x460] sm:$0xff] }
 0x71e   :  { %10638 = vmatpush.bf16.msrb.mxu1 %v16495_v36  ;;  %10344 = vmatpush.bf16.msra.mxu0 %v16479_v10  ;;  %v14594_v17 = vrot.slane %v8842_v12, 9  ;;  %v14587_v36 = vrot.slane %v8816_v25, 9 }
 0x71f   :  { %10650 = vmatpush.bf16.msrb.mxu2 %v16504_v40  ;;  %v16532_v40 = vld [vmem:[%s24240_s7 + $0x4c8] sm:$0xff] }
 0x720   :  { %10330 = vmatpush.bf16.msra.mxu3 %v16472_v7  ;;  %v23992_v10 = vmax.f32 %v8842_v12, %v14594_v17  ;;  %v24014_v34 = vmax.f32 %v8816_v25, %v14587_v36  ;;  %v16528_v12 = vld [vmem:[%s24240_s7 + $0x4a8] sm:$0xff] }
 0x721   :  { %10345 = vmatmul.bf16.vlgmr.msra.gmra.mxu0 %v10135_v55  ;;  %v8843_v55 = vsel %vm71_vm1, %v23933_v42, %v8792_v38  ;;  %v16507_v42 = vld [vmem:[%s24240_s7 + $0x400] sm:$0xff]  ;;  %vm24676_vm1 = vmmov %vm24657_vm2 }
 0x722   :  { %10678 = vmatpush.bf16.msrb.mxu0 %v16518_v0  ;;  %10639 = vmatpush.bf16.msrb.mxu1 %v16494_v23  ;;  %v10460_v0 = vpack.c.b16 %v23911_v49, %v23911_v49  ;;  %v8979_v18 = vperm.slane %v23992_v10, 0  ;;  %v8980_v7 = vperm.slane %v23992_v10, 2  ;;  %v16531_v23 = vld [vmem:[%s24240_s7 + $0x4c0] sm:$0xff]  ;;  %v8951_v32 = vperm.slane %v24014_v34, 0  ;;  %vm24677_vm6 = vmmov %vm24676_vm1 }
 0x723   :  { %10651 = vmatpush.bf16.msrb.mxu2 %v16503_v28  ;;  %v8952_v58 = vperm.slane %v24014_v34, 2  ;;  %v8845_v49 = vsel %vm24675_vm0, %v8843_v55, %v8844_v16  ;;  %v8981_v28 = vperm.slane %v23992_v10, 4  ;;  %v8982_v30 = vperm.slane %v23992_v10, 6  ;;  %v16544_v10 = vld [vmem:[%s24240_s7 + $0x528] sm:$0xff]  ;;  %vm24678_vm4 = vmmov %vm24676_vm1 }
 0x724   :  { %10331 = vmatpush.bf16.msra.mxu3 %v16471_v35  ;;  %v8953_v61 = vperm.slane %v24014_v34, 4  ;;  %v16560_v55 = vld [vmem:[%s24240_s7 + $0x5a8] sm:$0xff]  ;;  %vm24679_vm12 = vmmov %vm24676_vm1 }
 0x725   :  { %v9053_v41 = vpack.c.bf16 %v8952_v58, %v8951_v32  ;;  %v16569_v32 = vld [vmem:[%s24240_s7 + $0x5f0] sm:$0xff]  ;;  %vm24680_vm15 = vmmov %vm24676_vm1 }
 0x726   :  { %10679 = vmatpush.bf16.msrb.mxu0 %v16517_v45  ;;  %10640 = vmatpush.bf16.msrb.mxu1 %v16493_v19  ;;  %v9067_v45 = vpack.c.bf16 %v8980_v7, %v8979_v18  ;;  %v8846_v19 = vrot.slane %v8845_v49, 2  ;;  %v16536_v7 = vld [vmem:[%s24240_s7 + $0x4e8] sm:$0xff]  ;;  %v16574_v49 = vld [vmem:[%s24240_s7 + $0x618] sm:$0xff]  ;;  %vm24681_vm3 = vmmov %vm24676_vm1 }
 0x727   :  { %10332 = vmatmul.bf16.vlgmr.msra.gmra.mxu3 %v10134_v26  ;;  %10652 = vmatpush.bf16.msrb.mxu2 %v16502_v8  ;;  %v10749_v57 = vunpack.c.l.b16 %v9053_v41  ;;  %v10750_v62 = vunpack.c.h.b16 %v9053_v41  ;;  %v8954_v26 = vperm.slane %v24014_v34, 6  ;;  %v16561_v34 = vld [vmem:[%s24240_s7 + $0x5b0] sm:$0xff]  ;;  %vm24682_vm2 = vmmov %vm24676_vm1 }
 0x728   :  { %10661 = vmatpush.bf16.msrb.mxu3 %v16514_v50  ;;  %v10753_v13 = vunpack.c.l.b16 %v9067_v45  ;;  %v10754_v35 = vunpack.c.h.b16 %v9067_v45  ;;  %v16521_v50 = vld [vmem:[%s24240_s7 + $0x470] sm:$0xff]  ;;  %vm24683_vm9 = vmmov %vm24676_vm1 }
 0x729   :  { %v9054_v25 = vpack.c.bf16 %v8954_v26, %v8953_v61  ;;  %v16553_v41 = vld [vmem:[%s24240_s7 + $0x570] sm:$0xff]  ;;  %v16558_v61 = vld [vmem:[%s24240_s7 + $0x598] sm:$0xff] }
 0x72a   :  { %10680 = vmatpush.bf16.msrb.mxu0 %v16516_v33  ;;  %10641 = vmatpush.bf16.msrb.mxu1 %v16492_v48  ;;  %v16546_v33 = vld [vmem:[%s24240_s7 + $0x538] sm:$0xff]  ;;  %v15485_v38 = vunpack.i.l.s16 %v10753_v13  ;;  %v15486_v8 = vunpack.i.l.s16 %v10754_v35  ;;  %v14595_v48 = vrot.slane %v8846_v19, 9 }
 0x72b   :  { %10653 = vmatpush.bf16.msrb.mxu2 %v16501_v22 }
 0x72c   :  { %10662 = vmatpush.bf16.msrb.mxu3 %v16513_v3  ;;  %v9068_v3 = vpack.c.bf16 %v8982_v30, %v8981_v28  ;;  %v10773_v22 = vrot.slane %v15485_v38, 7  ;;  %v24102_v36 = vmax.f32 %v8846_v19, %v14595_v48  ;;  %v16568_v28 = vld [vmem:[%s24240_s7 + $0x5e8] sm:$0xff] }
 0x72d   :  { %v16552_v38 = vld [vmem:[%s24240_s7 + $0x568] sm:$0xff] }
 0x72e   :  { %10681 = vmatpush.bf16.msrb.mxu0 %v16515_v53  ;;  %10642 = vmatpush.bf16.msrb.mxu1 %v16491_v29  ;;  %v16538_v53 = vld [vmem:[%s24240_s7 + $0x4f8] sm:$0xff]  ;;  %v10775_v29 = vrot.slane %v15486_v8, 7  ;;  %v10755_v17 = vunpack.c.l.b16 %v9068_v3  ;;  %v8983_v30 = vperm.slane %v24102_v36, 0 }
 0x72f   :  { %10654 = vmatpush.bf16.msrb.mxu2 %v16500_v31  ;;  %v8820_v31 = vrot.slane %v23549_v4, 4 }
 0x730   :  { %10663 = vmatpush.bf16.msrb.mxu3 %v16512_v24  ;;  %v15482_v24 = vunpack.i.l.s16 %v10750_v62  ;;  %v16567_v62 = vld [vmem:[%s24240_s7 + $0x5e0] sm:$0xff] }
 0x731   :  { %10643 = vmatmul.bf16.vlgmr.msrb.gmra.mxu1 %v10457_v15  ;;  %15424 = vmatmul.msk.bf16.vlgmr.msrb.gmra.mxu0 %vm4078_vm7, %v10460_v0  ;;  %v16527_v15 = vld [vmem:[%s24240_s7 + $0x4a0] sm:$0xff]  ;;  %v16570_v0 = vld [vmem:[%s24240_s7 + $0x5f8] sm:$0xff]  ;;  %v14588_v18 = vrot.slane %v8820_v31, 9 }
 0x732   :  { %10959 = vmatpush.bf16.msra.mxu0 %v16526_v47  ;;  %10972 = vmatpush.bf16.msra.mxu1 %v16534_v59  ;;  %v15481_v47 = vunpack.i.l.s16 %v10749_v57  ;;  %v10756_v59 = vunpack.c.h.b16 %v9068_v3  ;;  %v10776_v4 = vsel %vm24677_vm6, %v10775_v29, %v15482_v24  ;;  %v16573_v57 = vld [vmem:[%s24240_s7 + $0x610] sm:$0xff] }
 0x733   :  { %10655 = vmatpush.bf16.msrb.mxu2 %v16499_v11  ;;  %v10752_v11 = vunpack.c.h.b16 %v9054_v25 }
 0x734   :  { %10664 = vmatpush.bf16.msrb.mxu3 %v16511_v60  ;;  %v16537_v60 = vld [vmem:[%s24240_s7 + $0x4f0] sm:$0xff] }
 0x735   :  { %v15484_v45 = vunpack.i.l.s16 %v10752_v11 }
 0x736   :  { %10960 = vmatpush.bf16.msra.mxu0 %v16525_v54  ;;  %10973 = vmatpush.bf16.msra.mxu1 %v16533_v1  ;;  %v16562_v54 = vld [vmem:[%s24240_s7 + $0x5b8] sm:$0xff]  ;;  %v10774_v1 = vsel %vm24676_vm1, %v10773_v22, %v15481_v47  ;;  %v16557_v22 = vld [vmem:[%s24240_s7 + $0x590] sm:$0xff] }
 0x737   :  { %10985 = vmatpush.bf16.msra.mxu2 %v16542_v52  ;;  %v15488_v52 = vunpack.i.l.s16 %v10756_v59  ;;  %v16565_v59 = vld [vmem:[%s24240_s7 + $0x5d0] sm:$0xff] }
 0x738   :  { %10665 = vmatpush.bf16.msrb.mxu3 %v16510_v6  ;;  %10656 = vmatmul.bf16.vlgmr.msrb.gmra.mxu2 %v10458_v5  ;;  %v15487_v6 = vunpack.i.l.s16 %v10755_v17  ;;  %v8986_v5 = vperm.slane %v24102_v36, 6  ;;  %v16550_v17 = vld [vmem:[%s24240_s7 + $0x558] sm:$0xff] }
 0x73a   :  { %10961 = vmatpush.bf16.msra.mxu0 %v16524_v27  ;;  %10974 = vmatpush.bf16.msra.mxu1 %v16532_v40  ;;  %v10751_v27 = vunpack.c.l.b16 %v9054_v25  ;;  %v10781_v40 = vpack.c.b16 %v10774_v1, %v10774_v1  ;;  %v10777_v16 = vrot.slane %v15487_v6, 7  ;;  %v16571_v25 = vld [vmem:[%s24240_s7 + $0x600] sm:$0xff] }
 0x73b   :  { %10986 = vmatpush.bf16.msra.mxu2 %v16541_v43  ;;  %v10782_v43 = vpack.c.b16 %v10776_v4, %v10776_v4  ;;  %v16549_v4 = vld [vmem:[%s24240_s7 + $0x550] sm:$0xff] }
 0x73c   :  { %10666 = vmatpush.bf16.msrb.mxu3 %v16509_v14  ;;  %v16543_v14 = vld [vmem:[%s24240_s7 + $0x520] sm:$0xff]  ;;  %v15483_v58 = vunpack.i.l.s16 %v10751_v27  ;;  %v16564_v27 = vld [vmem:[%s24240_s7 + $0x5c8] sm:$0xff] }
 0x73e   :  { %10962 = vmatpush.bf16.msra.mxu0 %v16523_v2  ;;  %10975 = vmatpush.bf16.msra.mxu1 %v16531_v23  ;;  %v8985_v2 = vperm.slane %v24102_v36, 4  ;;  %v16554_v23 = vld [vmem:[%s24240_s7 + $0x578] sm:$0xff]  ;;  %v10778_v13 = vsel %vm24678_vm4, %v10777_v16, %v15483_v58 }
 0x73f   :  { %10987 = vmatpush.bf16.msra.mxu2 %v16540_v51  ;;  %v16535_v51 = vld [vmem:[%s24240_s7 + $0x4e0] sm:$0xff] }
 0x740   :  { %10667 = vmatpush.bf16.msrb.mxu3 %v16508_v9  ;;  %v8909_v9 = vmax.f32 %v8820_v31, %v14588_v18  ;;  %v16555_v18 = vld [vmem:[%s24240_s7 + $0x580] sm:$0xff] }
 0x742   :  { %10963 = vmatpush.bf16.msra.mxu0 %v16522_v37  ;;  %10976 = vmatpush.bf16.msra.mxu1 %v16530_v56  ;;  %v10779_v37 = vrot.slane %v15488_v52, 7  ;;  %v9070_v56 = vpack.c.bf16 %v8986_v5, %v8985_v2  ;;  %v8957_v19 = vperm.slane %v8909_v9, 4  ;;  %v8955_v3 = vperm.slane %v8909_v9, 0 }
 0x743   :  { %10988 = vmatpush.bf16.msra.mxu2 %v16539_v21  ;;  %v16559_v21 = vld [vmem:[%s24240_s7 + $0x5a0] sm:$0xff]  ;;  %v8956_v48 = vperm.slane %v8909_v9, 2 }
 0x744   :  { %10668 = vmatpush.bf16.msrb.mxu3 %v16507_v42  ;;  %v10780_v35 = vsel %vm24679_vm12, %v10779_v37, %v15484_v45  ;;  %v8958_v42 = vperm.slane %v8909_v9, 6  ;;  %v11080_v8 = vunpack.c.h.b16 %v9070_v56  ;;  %v16547_v9 = vld [vmem:[%s24240_s7 + $0x540] sm:$0xff] }
 0x745   :  { %v9055_v29 = vpack.c.bf16 %v8956_v48, %v8955_v3 }
 0x746   :  { %10964 = vmatpush.bf16.msra.mxu0 %v16521_v50  ;;  %10977 = vmatpush.bf16.msra.mxu1 %v16529_v39  ;;  %v8984_v50 = vperm.slane %v24102_v36, 2  ;;  %v10784_v39 = vpack.c.b16 %v10780_v35, %v10780_v35  ;;  %v9056_v26 = vpack.c.bf16 %v8958_v42, %v8957_v19  ;;  %v16556_v36 = vld [vmem:[%s24240_s7 + $0x588] sm:$0xff] }
 0x747   :  { %10669 = vmatmul.bf16.vlgmr.msrb.gmra.mxu3 %v10459_v63  ;;  %10989 = vmatpush.bf16.msra.mxu2 %v16538_v53  ;;  %v16572_v63 = vld [vmem:[%s24240_s7 + $0x608] sm:$0xff]  ;;  %v16551_v53 = vld [vmem:[%s24240_s7 + $0x560] sm:$0xff] }
 0x748   :  { %11002 = vmatpush.bf16.msra.mxu3 %v16546_v33  ;;  %v10783_v33 = vpack.c.b16 %v10778_v13, %v10778_v13  ;;  %v11076_v24 = vunpack.c.h.b16 %v9056_v26  ;;  %v11075_v52 = vunpack.c.l.b16 %v9056_v26 }
 0x74a   :  { %10965 = vmatpush.bf16.msra.mxu0 %v16520_v20  ;;  %10978 = vmatpush.bf16.msra.mxu1 %v16528_v12  ;;  %v9069_v20 = vpack.c.bf16 %v8984_v50, %v8983_v30  ;;  %v15665_v12 = vunpack.i.l.s16 %v11080_v8  ;;  %v15660_v45 = vunpack.i.l.s16 %v11075_v52 }
 0x74b   :  { %10990 = vmatpush.bf16.msra.mxu2 %v16537_v60  ;;  %v15661_v60 = vunpack.i.l.s16 %v11076_v24 }
 0x74c   :  { %11003 = vmatpush.bf16.msra.mxu3 %v16545_v46  ;;  %v16566_v46 = vld [vmem:[%s24240_s7 + $0x5d8] sm:$0xff]  ;;  %v11078_v47 = vunpack.c.h.b16 %v9069_v20 }
 0x74e   :  { %10966 = vmatpush.bf16.msra.mxu0 %v16519_v44  ;;  %10979 = vmatpush.bf16.msra.mxu1 %v16527_v15  ;;  %v11079_v44 = vunpack.c.l.b16 %v9070_v56  ;;  %v15663_v31 = vunpack.i.l.s16 %v11078_v47  ;;  %v11074_v15 = vunpack.c.h.b16 %v9055_v29 }
 0x74f   :  { %10991 = vmatpush.bf16.msra.mxu2 %v16536_v7 }
 0x750   :  { %11004 = vmatpush.bf16.msra.mxu3 %v16544_v10  ;;  %v11077_v10 = vunpack.c.l.b16 %v9069_v20  ;;  %v15664_v1 = vunpack.i.l.s16 %v11079_v44  ;;  %v11099_v6 = vrot.slane %v15663_v31, 7 }
 0x751   :  { %10967 = vmatmul.bf16.vlgmr.msra.gmra.mxu0 %v10781_v40  ;;  %10980 = vmatmul.bf16.vlgmr.msra.gmra.mxu1 %v10782_v43  ;;  %v15659_v40 = vunpack.i.l.s16 %v11074_v15  ;;  %v16548_v43 = vld [vmem:[%s24240_s7 + $0x548] sm:$0xff] }
 0x752   :  { %11296 = vmatpush.bf16.msrb.mxu0 %v16562_v54  ;;  %11309 = vmatpush.bf16.msrb.mxu1 %v16570_v0  ;;  %v11103_v54 = vrot.slane %v15665_v12, 7  ;;  %v15662_v7 = vunpack.i.l.s16 %v11077_v10  ;;  %v11101_v2 = vrot.slane %v15664_v1, 7 }
 0x753   :  { %10992 = vmatpush.bf16.msra.mxu2 %v16535_v51  ;;  %v11100_v58 = vsel %vm24681_vm3, %v11099_v6, %v15659_v40 }
 0x754   :  { %11005 = vmatpush.bf16.msra.mxu3 %v16543_v14  ;;  %v11104_v0 = vsel %vm24680_vm15, %v11103_v54, %v15661_v60  ;;  %v11097_v16 = vrot.slane %v15662_v7, 7  ;;  %v11102_v37 = vsel %vm24682_vm2, %v11101_v2, %v15660_v45 }
 0x755   :  { %v11108_v5 = vpack.c.b16 %v11104_v0, %v11104_v0  ;;  %v11107_v56 = vpack.c.b16 %v11102_v37, %v11102_v37 }
 0x756   :  { %11297 = vmatpush.bf16.msrb.mxu0 %v16561_v34  ;;  %11310 = vmatpush.bf16.msrb.mxu1 %v16569_v32  ;;  %v11073_v32 = vunpack.c.l.b16 %v9055_v29 }
 0x757   :  { %11326 = vmatpush.bf16.msrb.mxu2 %v16574_v49  ;;  %15601 = vmatmul.msk.bf16.vlgmr.msra.gmra.mxu3 %vm4078_vm7, %v10784_v39 }
 0x758   :  { %11283 = vmatpush.bf16.msrb.mxu3 %v16554_v23  ;;  %10993 = vmatmul.bf16.vlgmr.msra.gmra.mxu2 %v10783_v33  ;;  %v16563_v23 = vld [vmem:[%s24240_s7 + $0x5c0] sm:$0xff]  ;;  %v15658_v51 = vunpack.i.l.s16 %v11073_v32 }
 0x75a   :  { %11298 = vmatpush.bf16.msrb.mxu0 %v16560_v55  ;;  %11311 = vmatpush.bf16.msrb.mxu1 %v16568_v28  ;;  %v11106_v55 = vpack.c.b16 %v11100_v58, %v11100_v58 }
 0x75b   :  { %11327 = vmatpush.bf16.msrb.mxu2 %v16573_v57 }
 0x75c   :  { %11284 = vmatpush.bf16.msrb.mxu3 %v16553_v41  ;;  %v11098_v41 = vsel %vm24683_vm9, %v11097_v16, %v15658_v51 }
 0x75d   :  { %v11105_v35 = vpack.c.b16 %v11098_v41, %v11098_v41 }
 0x75e   :  { %11299 = vmatpush.bf16.msrb.mxu0 %v16559_v21  ;;  %11312 = vmatpush.bf16.msrb.mxu1 %v16567_v62  ;;  %v9407_v11 = vpop.f32.mrf.mxu0  ;;  %v9420_v34 = vpop.f32.mrf.mxu1 }
 0x75f   :  { %11328 = vmatpush.bf16.msrb.mxu2 %v16572_v63  ;;  %v9421_v14 = vadd.f32 %v9420_v34, %v9407_v11 }
 0x760   :  { %11285 = vmatpush.bf16.msrb.mxu3 %v16552_v38 }
 0x762   :  { %11300 = vmatpush.bf16.msrb.mxu0 %v16558_v61  ;;  %11313 = vmatpush.bf16.msrb.mxu1 %v16566_v46 }
 0x763   :  { %11329 = vmatpush.bf16.msrb.mxu2 %v16571_v25 }
 0x764   :  { %11286 = vmatpush.bf16.msrb.mxu3 %v16551_v53 }
 0x766   :  { %11301 = vmatpush.bf16.msrb.mxu0 %v16557_v22  ;;  %11314 = vmatpush.bf16.msrb.mxu1 %v16565_v59  ;;  %v9409_v49 = vpop.f32.mrf.mxu0  ;;  %v9422_v13 = vpop.f32.mrf.mxu1 }
 0x768   :  { %11287 = vmatpush.bf16.msrb.mxu3 %v16550_v17  ;;  %15778 = vmatmul.msk.bf16.vlgmr.msrb.gmra.mxu2 %vm4078_vm7, %v11108_v5  ;;  %v9433_v28 = vpop.f32.mrf.mxu2  ;;  %vm11342_vm7 = vcmask 25600  }
 0x769   :  { %v9434_v50 = vadd.f32 %v9433_v28, %v9421_v14 }
 0x76a   :  { %11302 = vmatpush.bf16.msrb.mxu0 %v16556_v36  ;;  %11315 = vmatpush.bf16.msrb.mxu1 %v16564_v27  ;;  %v9446_v30 = vpop.f32.mrf.mxu3 }
 0x76b   :  { %v9447_v42 = vadd.f32 %v9446_v30, %v9434_v50 }
 0x76c   :  { %11288 = vmatpush.bf16.msrb.mxu3 %v16549_v4 }
 0x76e   :  { %11303 = vmatpush.bf16.msrb.mxu0 %v16555_v18  ;;  %11316 = vmatpush.bf16.msrb.mxu1 %v16563_v23  ;;  %v9673_v19 = vpop.f32.mrf.mxu0  ;;  %v9686_v21 = vpop.f32.mrf.mxu1 }
 0x76f   :  { %v9674_v33 = vadd.f32 %v9673_v19, %v9447_v42 }
 0x770   :  { %11289 = vmatpush.bf16.msrb.mxu3 %v16548_v43  ;;  %v9435_v57 = vpop.f32.mrf.mxu2 }
 0x771   :  { %11304 = vmatmul.bf16.vlgmr.msrb.gmra.mxu0 %v11106_v55  ;;  %11317 = vmatmul.bf16.vlgmr.msrb.gmra.mxu1 %v11107_v56  ;;  %v9687_v39 = vadd.f32 %v9686_v21, %v9674_v33 }
 0x772   :  { %v9448_v38 = vpop.f32.mrf.mxu3 }
 0x774   :  { %11290 = vmatpush.bf16.msrb.mxu3 %v16547_v9 }
 0x776   :  { %v9675_v62 = vpop.f32.mrf.mxu0  ;;  %v9688_v8 = vpop.f32.mrf.mxu1 }
 0x777   :  { %11291 = vmatmul.bf16.vlgmr.msrb.gmra.mxu3 %v11105_v35 }
 0x778   :  { %v9699_v20 = vpop.f32.mrf.mxu2 }
 0x779   :  { %v9700_v26 = vadd.f32 %v9699_v20, %v9687_v39  ;;  %v16691_v20 = vld [vmem:[%s24241_s8] ss:$0 sm:$0xff] }
 0x77a   :  { %v9712_v61 = vpop.f32.mrf.mxu3 }
 0x77b   :  { %v9713_v3 = vadd.f32 %v9712_v61, %v9700_v26 }
 0x77e   :  { %v10009_v48 = vpop.f32.mrf.mxu0  ;;  %v10022_v63 = vpop.f32.mrf.mxu1 }
 0x780   :  { %v9701_v53 = vpop.f32.mrf.mxu2 }
 0x781   :  { %v16757_v53 = vmov 4.0  }
 0x782   :  { %v9714_v46 = vpop.f32.mrf.mxu3 }
 0x786   :  { %v10011_v12 = vpop.f32.mrf.mxu0  ;;  %v10024_v47 = vpop.f32.mrf.mxu1 }
 0x788   :  { %v10035_v24 = vpop.f32.mrf.mxu2 }
 0x78a   :  { %v9996_v22 = vpop.f32.mrf.mxu3 }
 0x78b   :  { %v10010_v29 = vadd.f32 %v10009_v48, %v9996_v22 }
 0x78d   :  { %v10023_v44 = vadd.f32 %v10022_v63, %v10010_v29 }
 0x78e   :  { %v10359_v17 = vpop.f32.mrf.mxu1 }
 0x78f   :  { %v10036_v25 = vadd.f32 %v10035_v24, %v10023_v44  ;;  %v16692_v44 = vld [vmem:[%s24242_s9] ss:$0 sm:$0xff]  ;;  %s16758_s9 = smov [#allocation4]  }
 0x790   :  { %v10037_v31 = vpop.f32.mrf.mxu2  ;;  %s11394_s28 = sshll.u32 %s16758_s9, 4  ;;  %s11395_s28 = int_to_ptr.vmem [resolvable:$true] %s11394_s28 }
 0x791   :  { %v10039_v59 = vadd.f32 %v10036_v25, %v9713_v3 }
 0x792   :  { %v9998_v54 = vpop.f32.mrf.mxu3 }
 0x796   :  { %v10361_v60 = vpop.f32.mrf.mxu1 }
 0x79b   :  { %v10320_v36 = vpop.f32.mrf.mxu2 }
 0x79e   :  { %v10346_v10 = vpop.f32.mrf.mxu0 }
 0x7a3   :  { %v10322_v15 = vpop.f32.mrf.mxu2 }
 0x7a6   :  { %v10348_v1 = vpop.f32.mrf.mxu0 }
 0x7aa   :  { %v10333_v4 = vpop.f32.mrf.mxu3 }
 0x7ab   :  { %v10334_v0 = vadd.f32 %v10333_v4, %v10320_v36 }
 0x7ad   :  { %v10347_v27 = vadd.f32 %v10346_v10, %v10334_v0 }
 0x7ae   :  { %v10644_v11 = vpop.f32.mrf.mxu1  ;;  %v10683_v6 = vpop.f32.mrf.mxu0 }
 0x7af   :  { %v10360_v52 = vadd.f32 %v10359_v17, %v10347_v27  ;;  %v16693_v17 = vld [vmem:[%s24243_s10] ss:$0 sm:$0xff] }
 0x7b1   :  { %v10363_v40 = vadd.f32 %v10360_v52, %v10039_v59 }
 0x7b2   :  { %v10335_v34 = vpop.f32.mrf.mxu3 }
 0x7b6   :  { %v10646_v18 = vpop.f32.mrf.mxu1  ;;  %v10685_v7 = vpop.f32.mrf.mxu0 }
 0x7bb   :  { %v10657_v2 = vpop.f32.mrf.mxu2 }
 0x7bc   :  { %v10658_v14 = vadd.f32 %v10657_v2, %v10644_v11 }
 0x7c3   :  { %v10659_v5 = vpop.f32.mrf.mxu2 }
 0x7ca   :  { %v10670_v43 = vpop.f32.mrf.mxu3 }
 0x7cb   :  { %v10671_v23 = vadd.f32 %v10670_v43, %v10658_v14 }
 0x7cd   :  { %v10684_v58 = vadd.f32 %v10683_v6, %v10671_v23 }
 0x7ce   :  { %v10968_v32 = vpop.f32.mrf.mxu0  ;;  %v10981_v45 = vpop.f32.mrf.mxu1 }
 0x7cf   :  { %v10687_v16 = vadd.f32 %v10684_v58, %v10363_v40  ;;  %v10982_v30 = vadd.f32 %v10981_v45, %v10968_v32 }
 0x7d2   :  { %v10672_v37 = vpop.f32.mrf.mxu3 }
 0x7d6   :  { %v10970_v55 = vpop.f32.mrf.mxu0  ;;  %v10983_v9 = vpop.f32.mrf.mxu1 }
 0x7da   :  { %v11007_v49 = vpop.f32.mrf.mxu3 }
 0x7db   :  { %v10994_v51 = vpop.f32.mrf.mxu2 }
 0x7dc   :  { %v10995_v19 = vadd.f32 %v10994_v51, %v10982_v30 }
 0x7de   :  { %v11008_v39 = vadd.f32 %v11007_v49, %v10995_v19 }
 0x7e0   :  { %v11011_v62 = vadd.f32 %v11008_v39, %v10687_v16 }
 0x7e2   :  { %v11009_v41 = vpop.f32.mrf.mxu3 }
 0x7e3   :  { %v10996_v56 = vpop.f32.mrf.mxu2 }
 0x7eb   :  { %v11331_v35 = vpop.f32.mrf.mxu2 }
 0x7ee   :  { %v11305_v13 = vpop.f32.mrf.mxu0  ;;  %v11318_v28 = vpop.f32.mrf.mxu1 }
 0x7f3   :  { %v11333_v42 = vpop.f32.mrf.mxu2 }
 0x7f6   :  { %v11307_v50 = vpop.f32.mrf.mxu0  ;;  %v11320_v21 = vpop.f32.mrf.mxu1 }
 0x7fa   :  { %v11292_v33 = vpop.f32.mrf.mxu3 }
 0x7fb   :  { %v11306_v57 = vadd.f32 %v11305_v13, %v11292_v33 }
 0x7fd   :  { %v11319_v38 = vadd.f32 %v11318_v28, %v11306_v57 }
 0x7ff   :  { %v11332_v8 = vadd.f32 %v11331_v35, %v11319_v38 }
 0x801   :  { %v11335_v61 = vadd.f32 %v11332_v8, %v11011_v62 }
 0x802   :  { %v11294_v26 = vpop.f32.mrf.mxu3 }
 0x803   :  { %v11340_v3 = vadd.f32 %v16691_v20, %v11335_v61 }
 0x805   :  { %16694 = vtanh.f32 %v11340_v3 }
 0x806   :  { %16696 = vrcp.f32 %v16757_v53 }
 0x80b   :  { %v16695_v48 = vpop.eup %16694 }
 0x80c   :  { %v11343_v63 = vsel %vm11342_vm7, %v16695_v48, 0.0  ;;  %v16697_v46 = vpop.eup %16696 }
 0x80d   :  { %11344 = vadd.xlane.f32.xlu1 %v11343_v63  ;;  %v11347_v12 = vmul.f32 4.0, %v16697_v46  ;;  %vm11351_vm14 = vweird.f32 %v16697_v46 }
 0x80f   :  { %v11348_v47 = vsub.f32 1.0, %v11347_v12 }
 0x811   :  { %v11349_v22 = vmul.f32 %v16697_v46, %v11348_v47 }
 0x813   :  { %v11350_v24 = vadd.f32 %v16697_v46, %v11349_v22 }
 0x815   :  { %v11352_v29 = vsel %vm11351_vm14, %v16697_v46, %v11350_v24 }
 0x880   :  { %v11345_v25 = vpop.xlane.xlu1 %11344 }
 0x881   :  { %v11353_v59 = vmul.f32 %v11352_v29, %v11345_v25 }
 0x883   :  { %v11358_v54 = vmul.f32 %v16692_v44, %v11353_v59 }
 0x885   :  { %v11363_v31 = vadd.f32 %v16693_v17, %v11358_v54 }
 0x887   :  { %v11365_v60 = vsel %vm11364_vm5, %v11363_v31, -inf  ;;  %11377 = vst.msk [vmem:[#allocation4] sm:$0x3] %vm11364_vm5, %v11363_v31 }
 0x888   :  { %11366 = vmax.xlane.f32.xlu2 %v11365_v60  ;;  %11399 = dma.vmem_to_hbm [thread:$0]  %s11395_s28, 32, %s11397_s30, [#allocation5]  }
 0x8fb   :  { %v11367_v36 = vpop.xlane.xlu2 %11366 }
 0x8fc   :  { %v11368_v10 = vsub.f32 %v11363_v31, %v11367_v36 }
 0x8fe   :  { %v11369_v15 = vmul.f32 1.442695, %v11368_v10 }
 0x900   :  { %16698 = vpow2.f32 %v11369_v15 }
 0x906   :  { %v16699_v1 = vpop.eup %16698 }
 0x907   :  { %v11371_v4 = vsel %vm11364_vm5, %v16699_v1, 0.0 }
 0x908   :  { %11372 = vadd.xlane.f32.xlu0 %v11371_v4 }
 0x97b   :  { %v11373_v0 = vpop.xlane.xlu0 %11372 }
 0x97c   :  { %16700 = vrcp.f32 %v11373_v0 }
 0x982   :  { %v16701_v27 = vpop.eup %16700 }
 0x983   :  { %v11375_v11 = vmul.f32 %v16701_v27, %v16699_v1 }
 0x985   :  { %11376 = vst.msk [vmem:[#allocation2] sm:$0x3] %vm11364_vm5, %v11375_v11 }
 0x986   :  { %11388 = dma.vmem_to_hbm [thread:$0]  %s11384_s6, 32, %s11386_s13, [#allocation3]  }
 0x987   :  { %16750 = dma.done.wait [#allocation3], 32  }
 0x988   :  { %16751 = vsyncadd [#allocation3], 4294967264 }
 0x989   :  { %16752 = dma.done.wait [#allocation5], 32  }
 0x98a   :  { %16753 = vsyncadd [#allocation5], 4294967264 }
 0x98b   :  { %11408 = vsyncpa [#allocation3], 1 }
 0x98c   :  { %11409 = vsyncpa [#allocation5], 1 }

</bundles_post_ra>
